<compile_context>
chip_gen: v5e
topology: v5e:2x2
jax: 0.10.0
libtpu: 0.0.40
codegen_flags: <defaults>
</compile_context>

<pallas_src>
import functools

import jax
import jax.numpy as jnp
import numpy as np
from jax import lax
from jax.experimental import pallas as pl
from jax.experimental.pallas import tpu as pltpu

MXU_DTYPE = jnp.bfloat16            # matmul-operand dtype (f32 accumulation)
VMEM_LIMIT_BYTES = 32 * 1024 * 1024


# ------------------------------------------------------------------ kernels

def _conv_pool_kernel(x_ref, w_ref, b_ref, o_ref, lhs_ref, *, K, Hp, CinW, half):
    """Fused valid-conv + bias + ReLU + 2x2 max-pool for one image.

    x_ref:   (H, Cin*W)          activation, lane = ci*W + w              (f32)
    w_ref:   (K*Cin*W, 2*half)   merged Toeplitz weight, cols [0:half] =
                                 even-wo conv columns, [half:] = odd-wo   (bf16)
    b_ref:   (1, half)           bias tiled per pooled column             (f32)
    o_ref:   (Hp, half)          pooled output, lane = co*Wp + wp         (f32)
    lhs_ref: (2*Hp, K*Cin*W)     VMEM scratch; rows [0:Hp] = even conv rows,
                                 rows [Hp:2Hp] = odd conv rows.
    """
    for kh in range(K):                     # static, fully unrolled
        cols = slice(kh * CinW, (kh + 1) * CinW)
        lhs_ref[0:Hp, cols] = x_ref[pl.ds(kh, Hp, 2), :]          # conv rows 2*hp
        lhs_ref[Hp:2 * Hp, cols] = x_ref[pl.ds(kh + 1, Hp, 2), :]  # rows 2*hp + 1
    acc = jnp.dot(lhs_ref[...].astype(jnp.bfloat16), w_ref[...],
                  preferred_element_type=jnp.float32)             # (2*Hp, 2*half)
    y = jnp.maximum(acc[:, :half], acc[:, half:])                 # pool along W
    y = jnp.maximum(y[:Hp, :], y[Hp:, :])                         # pool along H
    # max/ReLU commute with the (per-column-constant) bias add, so this equals
    # pool(relu(conv + b)) exactly.
    o_ref[...] = jnp.maximum(y + b_ref[...], 0.0).astype(o_ref.dtype)


def _conv3_tail_kernel(x_ref, w3_ref, b3_ref, w4_ref, b4_ref, w5_ref, b5_ref,
                       o_ref, lhs_ref, *, K3, Hp3, CinW3, half3):
    """Fused conv3(+pool) -> conv4+ReLU -> conv5 (+folded Linear), one image.

    x_ref: (19, 32*19); w3_ref: (K3*608, 2*448); w4_ref: (5, 448, 128*3);
    w5_ref: (3, 384, 5) with Linear(10,5) folded in; o_ref: (1, 5).
    """
    # --- conv3 + bias + ReLU + 2x2 max-pool (same scheme as _conv_pool_kernel)
    for kh in range(K3):
        cols = slice(kh * CinW3, (kh + 1) * CinW3)
        lhs_ref[0:Hp3, cols] = x_ref[pl.ds(kh, Hp3, 2), :]
        lhs_ref[Hp3:2 * Hp3, cols] = x_ref[pl.ds(kh + 1, Hp3, 2), :]
    acc3 = jnp.dot(lhs_ref[...].astype(jnp.bfloat16), w3_ref[...],
                   preferred_element_type=jnp.float32)            # (14, 2*448)
    y3 = jnp.maximum(acc3[:, :half3], acc3[:, half3:])
    y3 = jnp.maximum(y3[:Hp3, :], y3[Hp3:, :])
    y3 = jnp.maximum(y3 + b3_ref[...], 0.0)                       # (7, 64*7) f32

    # --- conv4 (5x5, 64->128) + ReLU.
    # TODO(synk): Dropout(0.5) is identity in eval mode; no train-mode RNG here.
    K4 = w4_ref.shape[0]
    Ho4 = Hp3 - K4 + 1                                            # 3
    acc4 = jnp.zeros((Ho4, w4_ref.shape[2]), jnp.float32)
    for kh in range(K4):
        acc4 = acc4 + jnp.dot(y3[kh:kh + Ho4, :].astype(jnp.bfloat16), w4_ref[kh],
                              preferred_element_type=jnp.float32)
    h4 = jnp.maximum(acc4 + b4_ref[...], 0.0)                     # (3, 128*3) f32

    # --- conv5 (3x3, 128->10) with the Linear(10,5) folded into its weight.
    K5 = w5_ref.shape[0]
    acc5 = jnp.zeros((1, w5_ref.shape[2]), jnp.float32)
    for kh in range(K5):
        acc5 = acc5 + jnp.dot(h4[kh:kh + 1, :].astype(jnp.bfloat16), w5_ref[kh],
                              preferred_element_type=jnp.float32)
    o_ref[...] = (acc5 + b5_ref[...]).astype(o_ref.dtype)


# ------------------------------------------------------------------ wrappers

def _const_spec(shape, single_buffer):
    """BlockSpec for a grid-invariant (VMEM-resident) operand."""
    ndim = len(shape)
    index_map = lambda i, _n=ndim: (0,) * _n
    if single_buffer:
        # Constant index map => a second pipeline buffer is pure VMEM waste.
        return pl.BlockSpec(shape, index_map, pipeline_mode=pl.Buffered(1))
    return pl.BlockSpec(shape, index_map)


def conv_pool_block(x, lc, single_buffer):
    """x: (B, H, Cin*W) f32 -> (B, Hp, Cout*Wp) f32.  One pallas_call."""
    B, H, CinW = x.shape
    K = lc["K"]
    Ho = H - K + 1
    assert Ho % 2 == 0
    Hp = Ho // 2
    half = lc["b"].shape[1]
    kernel = functools.partial(_conv_pool_kernel, K=K, Hp=Hp, CinW=CinW, half=half)
    return pl.pallas_call(
        kernel,
        out_shape=jax.ShapeDtypeStruct((B, Hp, half), jnp.float32),
        grid=(B,),
        in_specs=[
            pl.BlockSpec((None, H, CinW), lambda i: (i, 0, 0)),
            _const_spec(lc["w"].shape, single_buffer),
            _const_spec(lc["b"].shape, single_buffer),
        ],
        out_specs=pl.BlockSpec((None, Hp, half), lambda i: (i, 0, 0)),
        scratch_shapes=[pltpu.VMEM((2 * Hp, K * CinW), jnp.float32)],
        compiler_params=pltpu.CompilerParams(
            dimension_semantics=("parallel",),
            vmem_limit_bytes=VMEM_LIMIT_BYTES),
    )(x, lc["w"], lc["b"])


def conv3_tail_block(x, tc, single_buffer):
    """x: (B, 19, 608) f32 -> (B, 5). conv3+pool+conv4+conv5(+Linear) fused."""
    B, H, CinW = x.shape
    K3 = tc["K3"]
    Hp3 = (H - K3 + 1) // 2
    half3 = tc["b3"].shape[1]
    kernel = functools.partial(_conv3_tail_kernel, K3=K3, Hp3=Hp3,
                               CinW3=CinW, half3=half3)
    out = pl.pallas_call(
        kernel,
        out_shape=jax.ShapeDtypeStruct((B, 1, 5), jnp.float32),
        grid=(B,),
        in_specs=[
            pl.BlockSpec((None, H, CinW), lambda i: (i, 0, 0)),
            _const_spec(tc["w3"].shape, single_buffer),
            _const_spec(tc["b3"].shape, single_buffer),
            _const_spec(tc["w4"].shape, single_buffer),
            _const_spec(tc["b4"].shape, single_buffer),
            _const_spec(tc["w5"].shape, single_buffer),
            _const_spec(tc["b5"].shape, single_buffer),
        ],
        out_specs=pl.BlockSpec((None, 1, 5), lambda i: (i, 0, 0)),
        scratch_shapes=[pltpu.VMEM((2 * Hp3, K3 * CinW), jnp.float32)],
        compiler_params=pltpu.CompilerParams(
            dimension_semantics=("parallel",),
            vmem_limit_bytes=VMEM_LIMIT_BYTES),
    )(x, tc["w3"], tc["b3"], tc["w4"], tc["b4"], tc["w5"], tc["b5"])
    return out.reshape(B, 5)


def hisnet_forward(x_nchw, consts, single_buffer_weights=True):
    # Cin=1, so the NCHW input is already in the (B, H, C*W) lane-dense layout.
    x = x_nchw[:, 0, :, :]                                        # (B, 88, 88)
    x = conv_pool_block(x, consts["c1"], single_buffer_weights)   # (B, 42, 672)
    x = conv_pool_block(x, consts["c2"], single_buffer_weights)   # (B, 19, 608)
    return conv3_tail_block(x, consts["tail"], single_buffer_weights)  # (B, 5)


# ------------------------------------------- host-side weight pre-expansion

def _expand_conv_weight_pooled_merged(w, W_in):
    """Dense (K,K,Cin,Cout) -> (K*Cin*W_in, 2*Cout*Wp) single-GEMM weight.

    LHS column layout (built in-kernel): kh*Cin*W_in + ci*W_in + w'.
    Output column layout: [even-wo block | odd-wo block], col = co*Wp + wp.
    """
    w = np.asarray(w, np.float32)
    K, _, Cin, Cout = w.shape
    Wo = W_in - K + 1
    Wp = Wo // 2
    CinW = Cin * W_in
    half = Cout * Wp
    We = np.zeros((K * CinW, 2 * half), np.float32)
    ci = np.arange(Cin)
    co = np.arange(Cout)
    for kh in range(K):
        for par in range(2):
            for wp in range(Wp):
                wo = 2 * wp + par
                cols = par * half + co * Wp + wp
                for kw in range(K):
                    rows = kh * CinW + ci * W_in + wo + kw
                    We[np.ix_(rows, cols)] = w[kh, kw]
    return We


def _expand_conv_weight(w, W_in):
    """Dense (K,K,Cin,Cout) -> (K, Cin*W_in, Cout*Wo) per-tap row-GEMM weight."""
    w = np.asarray(w, np.float32)
    K, _, Cin, Cout = w.shape
    Wo = W_in - K + 1
    We = np.zeros((K, Cin * W_in, Cout * Wo), np.float32)
    ci = np.arange(Cin)
    co = np.arange(Cout)
    for kh in range(K):
        for wo in range(Wo):
            cols = co * Wo + wo
            for kw in range(K):
                rows = ci * W_in + wo + kw
                We[kh][np.ix_(rows, cols)] = w[kh, kw]
    return We


def _pooled_layer_consts(w, b, W_in):
    w_np = np.asarray(w, np.float32)
    K = w_np.shape[0]
    Wp = (W_in - K + 1) // 2
    return {
        "w": jnp.asarray(_expand_conv_weight_pooled_merged(w_np, W_in), MXU_DTYPE),
        "b": jnp.asarray(np.repeat(np.asarray(b, np.float32), Wp)[None, :]),
        "K": K,
    }


def prepare_constants(p):
    """Build all kernel constants once (host-side) from the dense parameters."""
    c = {
        "c1": _pooled_layer_consts(p["w1"], p["b1"], 88),   # 88 -> 84 -> 42
        "c2": _pooled_layer_consts(p["w2"], p["b2"], 42),   # 42 -> 38 -> 19
    }
    c3 = _pooled_layer_consts(p["w3"], p["b3"], 19)         # 19 -> 14 -> 7
    w4 = np.asarray(p["w4"], np.float32)                    # (5,5,64,128)
    Wo4 = 7 - w4.shape[0] + 1                               # 3
    w5 = np.asarray(p["w5"], np.float32)                    # (3,3,128,10)
    wl = np.asarray(p["wl"], np.float32)                    # (10,5)
    bl = np.asarray(p["bl"], np.float32)                    # (5,)
    # conv5 weight as (kh, ci*Wo4+kw, co) slabs matching conv4's output lane
    # layout, with the Linear(10,5) folded in: W5' = W5 @ Wl, b' = b5 @ Wl + bl.
    w5f = np.stack([w5[kh].transpose(1, 0, 2).reshape(-1, w5.shape[3])
                    for kh in range(w5.shape[0])])          # (3, 384, 10)
    w5fold = np.einsum("krc,co->kro", w5f, wl)              # (3, 384, 5)
    b5fold = np.asarray(p["b5"], np.float32) @ wl + bl      # (5,)
    c["tail"] = {
        "K3": c3["K"],
        "w3": c3["w"],
        "b3": c3["b"],
        "w4": jnp.asarray(_expand_conv_weight(w4, 7), MXU_DTYPE),
        "b4": jnp.asarray(np.repeat(np.asarray(p["b4"], np.float32), Wo4)[None, :]),
        "w5": jnp.asarray(w5fold, MXU_DTYPE),
        "b5": jnp.asarray(b5fold[None, :]),
    }
    return c


# ------------------------------------------------------------------ params

def init_params(key):
    """Deterministic synthetic parameters (PyTorch-default-style uniform init)."""
    def conv_init(key, k, cin, cout):
        kw_key, kb_key = jax.random.split(key)
        bound = 1.0 / np.sqrt(cin * k * k)
        w = jax.random.uniform(kw_key, (k, k, cin, cout), jnp.float32,
                               -bound, bound)
        b = jax.random.uniform(kb_key, (cout,), jnp.float32, -bound, bound)
        return w, b

    keys = jax.random.split(key, 6)
    p = {}
    p["w1"], p["b1"] = conv_init(keys[0], 5, 1, 16)
    p["w2"], p["b2"] = conv_init(keys[1], 5, 16, 32)
    p["w3"], p["b3"] = conv_init(keys[2], 6, 32, 64)
    p["w4"], p["b4"] = conv_init(keys[3], 5, 64, 128)
    p["w5"], p["b5"] = conv_init(keys[4], 3, 128, 10)
    bound = 1.0 / np.sqrt(10)
    lw_key, lb_key = jax.random.split(keys[5])
    p["wl"] = jax.random.uniform(lw_key, (10, 5), jnp.float32, -bound, bound)
    p["bl"] = jax.random.uniform(lb_key, (5,), jnp.float32, -bound, bound)
    return p


# ----------------------------------------------------------- JAX references

def ref_forward(x_nchw, p):
    """Full-f32 reference with the original PyTorch semantics."""
    def conv(x, w, b):
        wt = jnp.transpose(w, (3, 2, 0, 1))  # (K,K,Cin,Cout) -> OIHW
        y = lax.conv_general_dilated(x, wt, (1, 1), "VALID",
                                     dimension_numbers=("NCHW", "OIHW", "NCHW"))
        return y + b.reshape(1, -1, 1, 1)

    def pool(x):
        return lax.reduce_window(x, -jnp.inf, lax.max,
                                 (1, 1, 2, 2), (1, 1, 2, 2), "VALID")

    x = pool(jnp.maximum(conv(x_nchw, p["w1"], p["b1"]), 0.0))
    x = pool(jnp.maximum(conv(x, p["w2"], p["b2"]), 0.0))
    x = pool(jnp.maximum(conv(x, p["w3"], p["b3"]), 0.0))
    x = jnp.maximum(conv(x, p["w4"], p["b4"]), 0.0)
    x = conv(x, p["w5"], p["b5"])
    x = x.reshape(x.shape[0], 10)
    return x @ p["wl"] + p["bl"]


def ref_forward_matched(x_nchw, p):
    """Reference using the kernel's exact mixed precision: bf16 matmul operands,
    f32 accumulation/epilogue, Linear(10,5) folded into the conv5 weight."""
    def conv(x, w, b):
        wt = jnp.transpose(w, (3, 2, 0, 1)).astype(jnp.bfloat16)
        y = lax.conv_general_dilated(x.astype(jnp.bfloat16), wt, (1, 1), "VALID",
                                     dimension_numbers=("NCHW", "OIHW", "NCHW"),
                                     preferred_element_type=jnp.float32)
        return y + b.reshape(1, -1, 1, 1).astype(jnp.float32)

    def pool(x):
        return lax.reduce_window(x, -jnp.inf, lax.max,
                                 (1, 1, 2, 2), (1, 1, 2, 2), "VALID")

    x = pool(jnp.maximum(conv(x_nchw, p["w1"], p["b1"]), 0.0))
    x = pool(jnp.maximum(conv(x, p["w2"], p["b2"]), 0.0))
    x = pool(jnp.maximum(conv(x, p["w3"], p["b3"]), 0.0))
    x = jnp.maximum(conv(x, p["w4"], p["b4"]), 0.0)
    w5p = jnp.einsum("abcd,de->abce", p["w5"], p["wl"])       # fold Linear
    b5p = p["b5"] @ p["wl"] + p["bl"]
    x = conv(x, w5p, b5p)
    return x.reshape(x.shape[0], 5)


# ------------------------------------------------------------------ main

def _run_and_check(x, consts, refs, single_buffer):
    out = jax.block_until_ready(hisnet_forward(x, consts, single_buffer))
    assert out.shape == (x.shape[0], 5), out.shape
    ref_matched, ref_f32 = refs
    # Strict check against the precision-matched reference.
    np.testing.assert_allclose(np.asarray(out), np.asarray(ref_matched),
                               rtol=2e-3, atol=2e-3)
    # Loose sanity check against the full-f32 PyTorch-semantics reference.
    np.testing.assert_allclose(np.asarray(out), np.asarray(ref_f32),
                               rtol=5e-2, atol=5e-2)


if __name__ == "__main__":
    key = jax.random.PRNGKey(0)
    pkey, xkey = jax.random.split(key)
    params = init_params(pkey)
    consts = prepare_constants(params)

    # Smallest input consistent with the architecture: (B, 1, 88, 88).
    x = jax.random.normal(xkey, (2, 1, 88, 88), jnp.float32)

    refs = (jax.block_until_ready(ref_forward_matched(x, params)),
            jax.block_until_ready(ref_forward(x, params)))

    try:
        # Preferred path: constant weight/bias blocks single-buffered in VMEM.
        _run_and_check(x, consts, refs, single_buffer=True)
    except Exception:
        # Fallback for JAX builds where pl.Buffered(1) is unavailable/rejected.
        _run_and_check(x, consts, refs, single_buffer=False)

    print("KERNEL_OK")
</pallas_src>

<mosaic_0001>
module attributes {stable_mosaic.version = 11 : i64} {
  func.func @_conv_pool_kernel(%arg0: i32, %arg1: memref<1x88x88xf32, #tpu.memory_space<vmem>>, %arg2: memref<440x1344xbf16, #tpu.memory_space<vmem>>, %arg3: memref<1x672xf32, #tpu.memory_space<vmem>>, %arg4: memref<1x42x672xf32, #tpu.memory_space<vmem>>, %arg5: memref<84x440xf32, #tpu.memory_space<vmem>>) attributes {dimension_semantics = [#tpu.dimension_semantics<parallel>], iteration_bounds = array<i64: 2>, scalar_prefetch = 0 : i64, scratch_operands = 1 : i64, tpu.core_type = #tpu.core_type<tc>, window_params = [{transform_indices = @transform_0, window_bounds = array<i64: 1, 88, 88>}, {pipeline_mode = #tpu.pipeline_mode<synchronous>, transform_indices = @transform_1, window_bounds = array<i64: 440, 1344>}, {pipeline_mode = #tpu.pipeline_mode<synchronous>, transform_indices = @transform_2, window_bounds = array<i64: 1, 672>}, {transform_indices = @transform_3, window_bounds = array<i64: 1, 42, 672>}]} {
    %c0 = arith.constant 0 : index
    %c0_0 = arith.constant 0 : index
    %c0_1 = arith.constant 0 : index
    %0 = tpu.strided_load %arg1[%c0, %c0_0, %c0_1] {strides = array<i32: 1, 2, 1>} : memref<1x88x88xf32, #tpu.memory_space<vmem>>, vector<1x42x88xf32>
    %1 = vector.shape_cast %0 : vector<1x42x88xf32> to vector<42x88xf32>
    %c0_2 = arith.constant 0 : index
    %c0_3 = arith.constant 0 : index
    %2 = vector.load %arg5[%c0_2, %c0_3] : memref<84x440xf32, #tpu.memory_space<vmem>>, vector<42x88xf32>
    tpu.vector_store %arg5[%c0_2, %c0_3], %1 {strides = array<i32>} : memref<84x440xf32, #tpu.memory_space<vmem>>, vector<42x88xf32>,
    %c0_4 = arith.constant 0 : index
    %c1 = arith.constant 1 : index
    %c0_5 = arith.constant 0 : index
    %3 = tpu.strided_load %arg1[%c0_4, %c1, %c0_5] {strides = array<i32: 1, 2, 1>} : memref<1x88x88xf32, #tpu.memory_space<vmem>>, vector<1x42x88xf32>
    %4 = vector.shape_cast %3 : vector<1x42x88xf32> to vector<42x88xf32>
    %c42 = arith.constant 42 : index
    %c0_6 = arith.constant 0 : index
    %5 = vector.load %arg5[%c42, %c0_6] : memref<84x440xf32, #tpu.memory_space<vmem>>, vector<42x88xf32>
    tpu.vector_store %arg5[%c42, %c0_6], %4 {strides = array<i32>} : memref<84x440xf32, #tpu.memory_space<vmem>>, vector<42x88xf32>,
    %c0_7 = arith.constant 0 : index
    %c1_8 = arith.constant 1 : index
    %c0_9 = arith.constant 0 : index
    %6 = tpu.strided_load %arg1[%c0_7, %c1_8, %c0_9] {strides = array<i32: 1, 2, 1>} : memref<1x88x88xf32, #tpu.memory_space<vmem>>, vector<1x42x88xf32>
    %7 = vector.shape_cast %6 : vector<1x42x88xf32> to vector<42x88xf32>
    %c0_10 = arith.constant 0 : index
    %c88 = arith.constant 88 : index
    %8 = vector.load %arg5[%c0_10, %c88] : memref<84x440xf32, #tpu.memory_space<vmem>>, vector<42x88xf32>
    tpu.vector_store %arg5[%c0_10, %c88], %7 {strides = array<i32>} : memref<84x440xf32, #tpu.memory_space<vmem>>, vector<42x88xf32>,
    %c0_11 = arith.constant 0 : index
    %c2 = arith.constant 2 : index
    %c0_12 = arith.constant 0 : index
    %9 = tpu.strided_load %arg1[%c0_11, %c2, %c0_12] {strides = array<i32: 1, 2, 1>} : memref<1x88x88xf32, #tpu.memory_space<vmem>>, vector<1x42x88xf32>
    %10 = vector.shape_cast %9 : vector<1x42x88xf32> to vector<42x88xf32>
    %c42_13 = arith.constant 42 : index
    %c88_14 = arith.constant 88 : index
    %11 = vector.load %arg5[%c42_13, %c88_14] : memref<84x440xf32, #tpu.memory_space<vmem>>, vector<42x88xf32>
    tpu.vector_store %arg5[%c42_13, %c88_14], %10 {strides = array<i32>} : memref<84x440xf32, #tpu.memory_space<vmem>>, vector<42x88xf32>,
    %c0_15 = arith.constant 0 : index
    %c2_16 = arith.constant 2 : index
    %c0_17 = arith.constant 0 : index
    %12 = tpu.strided_load %arg1[%c0_15, %c2_16, %c0_17] {strides = array<i32: 1, 2, 1>} : memref<1x88x88xf32, #tpu.memory_space<vmem>>, vector<1x42x88xf32>
    %13 = vector.shape_cast %12 : vector<1x42x88xf32> to vector<42x88xf32>
    %c0_18 = arith.constant 0 : index
    %c176 = arith.constant 176 : index
    %14 = vector.load %arg5[%c0_18, %c176] : memref<84x440xf32, #tpu.memory_space<vmem>>, vector<42x88xf32>
    tpu.vector_store %arg5[%c0_18, %c176], %13 {strides = array<i32>} : memref<84x440xf32, #tpu.memory_space<vmem>>, vector<42x88xf32>,
    %c0_19 = arith.constant 0 : index
    %c3 = arith.constant 3 : index
    %c0_20 = arith.constant 0 : index
    %15 = tpu.strided_load %arg1[%c0_19, %c3, %c0_20] {strides = array<i32: 1, 2, 1>} : memref<1x88x88xf32, #tpu.memory_space<vmem>>, vector<1x42x88xf32>
    %16 = vector.shape_cast %15 : vector<1x42x88xf32> to vector<42x88xf32>
    %c42_21 = arith.constant 42 : index
    %c176_22 = arith.constant 176 : index
    %17 = vector.load %arg5[%c42_21, %c176_22] : memref<84x440xf32, #tpu.memory_space<vmem>>, vector<42x88xf32>
    tpu.vector_store %arg5[%c42_21, %c176_22], %16 {strides = array<i32>} : memref<84x440xf32, #tpu.memory_space<vmem>>, vector<42x88xf32>,
    %c0_23 = arith.constant 0 : index
    %c3_24 = arith.constant 3 : index
    %c0_25 = arith.constant 0 : index
    %18 = tpu.strided_load %arg1[%c0_23, %c3_24, %c0_25] {strides = array<i32: 1, 2, 1>} : memref<1x88x88xf32, #tpu.memory_space<vmem>>, vector<1x42x88xf32>
    %19 = vector.shape_cast %18 : vector<1x42x88xf32> to vector<42x88xf32>
    %c0_26 = arith.constant 0 : index
    %c264 = arith.constant 264 : index
    %20 = vector.load %arg5[%c0_26, %c264] : memref<84x440xf32, #tpu.memory_space<vmem>>, vector<42x88xf32>
    tpu.vector_store %arg5[%c0_26, %c264], %19 {strides = array<i32>} : memref<84x440xf32, #tpu.memory_space<vmem>>, vector<42x88xf32>,
    %c0_27 = arith.constant 0 : index
    %c4 = arith.constant 4 : index
    %c0_28 = arith.constant 0 : index
    %21 = tpu.strided_load %arg1[%c0_27, %c4, %c0_28] {strides = array<i32: 1, 2, 1>} : memref<1x88x88xf32, #tpu.memory_space<vmem>>, vector<1x42x88xf32>
    %22 = vector.shape_cast %21 : vector<1x42x88xf32> to vector<42x88xf32>
    %c42_29 = arith.constant 42 : index
    %c264_30 = arith.constant 264 : index
    %23 = vector.load %arg5[%c42_29, %c264_30] : memref<84x440xf32, #tpu.memory_space<vmem>>, vector<42x88xf32>
    tpu.vector_store %arg5[%c42_29, %c264_30], %22 {strides = array<i32>} : memref<84x440xf32, #tpu.memory_space<vmem>>, vector<42x88xf32>,
    %c0_31 = arith.constant 0 : index
    %c4_32 = arith.constant 4 : index
    %c0_33 = arith.constant 0 : index
    %24 = tpu.strided_load %arg1[%c0_31, %c4_32, %c0_33] {strides = array<i32: 1, 2, 1>} : memref<1x88x88xf32, #tpu.memory_space<vmem>>, vector<1x42x88xf32>
    %25 = vector.shape_cast %24 : vector<1x42x88xf32> to vector<42x88xf32>
    %c0_34 = arith.constant 0 : index
    %c352 = arith.constant 352 : index
    %26 = vector.load %arg5[%c0_34, %c352] : memref<84x440xf32, #tpu.memory_space<vmem>>, vector<42x88xf32>
    tpu.vector_store %arg5[%c0_34, %c352], %25 {strides = array<i32>} : memref<84x440xf32, #tpu.memory_space<vmem>>, vector<42x88xf32>,
    %c0_35 = arith.constant 0 : index
    %c5 = arith.constant 5 : index
    %c0_36 = arith.constant 0 : index
    %27 = tpu.strided_load %arg1[%c0_35, %c5, %c0_36] {strides = array<i32: 1, 2, 1>} : memref<1x88x88xf32, #tpu.memory_space<vmem>>, vector<1x42x88xf32>
    %28 = vector.shape_cast %27 : vector<1x42x88xf32> to vector<42x88xf32>
    %c42_37 = arith.constant 42 : index
    %c352_38 = arith.constant 352 : index
    %29 = vector.load %arg5[%c42_37, %c352_38] : memref<84x440xf32, #tpu.memory_space<vmem>>, vector<42x88xf32>
    tpu.vector_store %arg5[%c42_37, %c352_38], %28 {strides = array<i32>} : memref<84x440xf32, #tpu.memory_space<vmem>>, vector<42x88xf32>,
    %c0_39 = arith.constant 0 : index
    %c0_40 = arith.constant 0 : index
    %30 = vector.load %arg5[%c0_39, %c0_40] : memref<84x440xf32, #tpu.memory_space<vmem>>, vector<84x440xf32>
    %31 = arith.truncf %30 : vector<84x440xf32> to vector<84x440xbf16>
    %c0_41 = arith.constant 0 : index
    %c0_42 = arith.constant 0 : index
    %32 = vector.load %arg2[%c0_41, %c0_42] : memref<440x1344xbf16, #tpu.memory_space<vmem>>, vector<440x1344xbf16>
    %cst = arith.constant dense<0.000000e+00> : vector<84x1344xf32>
    %33 = tpu.matmul %31, %32, %cst {dimension_numbers = #tpu.dot_dimension_numbers<[1], [0], [0], [1], [0, 0, 1, 1], [], []>} : vector<84x440xbf16>, vector<440x1344xbf16>, vector<84x1344xf32> -> vector<84x1344xf32>
    %34 = vector.extract_strided_slice %33 {offsets = [0, 0], sizes = [84, 672], strides = [1, 1]} : vector<84x1344xf32> to vector<84x672xf32>
    %35 = vector.extract_strided_slice %33 {offsets = [0, 672], sizes = [84, 672], strides = [1, 1]} : vector<84x1344xf32> to vector<84x672xf32>
    %36 = arith.maximumf %34, %35 : vector<84x672xf32>
    %37 = vector.extract_strided_slice %36 {offsets = [0, 0], sizes = [42, 672], strides = [1, 1]} : vector<84x672xf32> to vector<42x672xf32>
    %38 = vector.extract_strided_slice %36 {offsets = [42, 0], sizes = [42, 672], strides = [1, 1]} : vector<84x672xf32> to vector<42x672xf32>
    %39 = arith.maximumf %37, %38 : vector<42x672xf32>
    %c0_43 = arith.constant 0 : index
    %c0_44 = arith.constant 0 : index
    %40 = vector.load %arg3[%c0_43, %c0_44] : memref<1x672xf32, #tpu.memory_space<vmem>>, vector<1x672xf32>
    %41 = vector.broadcast %40 : vector<1x672xf32> to vector<42x672xf32>
    %42 = arith.addf %39, %41 : vector<42x672xf32>
    %cst_45 = arith.constant 0.000000e+00 : f32
    %43 = vector.broadcast %cst_45 : f32 to vector<42x672xf32>
    %44 = arith.maximumf %42, %43 : vector<42x672xf32>
    %c0_46 = arith.constant 0 : index
    %c0_47 = arith.constant 0 : index
    %c0_48 = arith.constant 0 : index
    %45 = vector.load %arg4[%c0_46, %c0_47, %c0_48] : memref<1x42x672xf32, #tpu.memory_space<vmem>>, vector<1x42x672xf32>
    %46 = vector.shape_cast %45 : vector<1x42x672xf32> to vector<42x672xf32>
    %47 = vector.shape_cast %44 : vector<42x672xf32> to vector<1x42x672xf32>
    tpu.vector_store %arg4[%c0_46, %c0_47, %c0_48], %47 {strides = array<i32>} : memref<1x42x672xf32, #tpu.memory_space<vmem>>, vector<1x42x672xf32>,
    return
  }
  func.func @transform_0(%arg0: i32) -> (i32, i32, i32) {
    %c0_i32 = arith.constant 0 : i32
    %c0_i32_0 = arith.constant 0 : i32
    %c0_i32_1 = arith.constant 0 : i32
    return %arg0, %c0_i32, %c0_i32_0 : i32, i32, i32
  }
  func.func @transform_1(%arg0: i32) -> (i32, i32) {
    %c0_i32 = arith.constant 0 : i32
    %c0_i32_0 = arith.constant 0 : i32
    %c0_i32_1 = arith.constant 0 : i32
    return %c0_i32, %c0_i32_0 : i32, i32
  }
  func.func @transform_2(%arg0: i32) -> (i32, i32) {
    %c0_i32 = arith.constant 0 : i32
    %c0_i32_0 = arith.constant 0 : i32
    %c0_i32_1 = arith.constant 0 : i32
    return %c0_i32, %c0_i32_0 : i32, i32
  }
  func.func @transform_3(%arg0: i32) -> (i32, i32, i32) {
    %c0_i32 = arith.constant 0 : i32
    %c0_i32_0 = arith.constant 0 : i32
    %c0_i32_1 = arith.constant 0 : i32
    return %arg0, %c0_i32, %c0_i32_0 : i32, i32, i32
  }
}

module attributes {stable_mosaic.version = 11 : i64} {
  func.func @_conv_pool_kernel(%arg0: i32, %arg1: memref<1x88x88xf32, #tpu.memory_space<vmem>>, %arg2: memref<440x1344xbf16, #tpu.memory_space<vmem>>, %arg3: memref<1x672xf32, #tpu.memory_space<vmem>>, %arg4: memref<1x42x672xf32, #tpu.memory_space<vmem>>, %arg5: memref<84x440xf32, #tpu.memory_space<vmem>>) attributes {dimension_semantics = [#tpu.dimension_semantics<parallel>], iteration_bounds = array<i64: 2>, scalar_prefetch = 0 : i64, scratch_operands = 1 : i64, tpu.core_type = #tpu.core_type<tc>, window_params = [{transform_indices = @transform_0, window_bounds = array<i64: 1, 88, 88>}, {pipeline_mode = #tpu.pipeline_mode<synchronous>, transform_indices = @transform_1, window_bounds = array<i64: 440, 1344>}, {pipeline_mode = #tpu.pipeline_mode<synchronous>, transform_indices = @transform_2, window_bounds = array<i64: 1, 672>}, {transform_indices = @transform_3, window_bounds = array<i64: 1, 42, 672>}]} {
    %c0 = arith.constant 0 : index
    %c0_0 = arith.constant 0 : index
    %c0_1 = arith.constant 0 : index
    %0 = tpu.strided_load %arg1[%c0, %c0_0, %c0_1] {strides = array<i32: 1, 2, 1>} : memref<1x88x88xf32, #tpu.memory_space<vmem>>, vector<1x42x88xf32>
    %1 = vector.shape_cast %0 : vector<1x42x88xf32> to vector<42x88xf32>
    %c0_2 = arith.constant 0 : index
    %c0_3 = arith.constant 0 : index
    %2 = vector.load %arg5[%c0_2, %c0_3] : memref<84x440xf32, #tpu.memory_space<vmem>>, vector<42x88xf32>
    tpu.vector_store %arg5[%c0_2, %c0_3], %1 {strides = array<i32>} : memref<84x440xf32, #tpu.memory_space<vmem>>, vector<42x88xf32>,
    %c0_4 = arith.constant 0 : index
    %c1 = arith.constant 1 : index
    %c0_5 = arith.constant 0 : index
    %3 = tpu.strided_load %arg1[%c0_4, %c1, %c0_5] {strides = array<i32: 1, 2, 1>} : memref<1x88x88xf32, #tpu.memory_space<vmem>>, vector<1x42x88xf32>
    %4 = vector.shape_cast %3 : vector<1x42x88xf32> to vector<42x88xf32>
    %c42 = arith.constant 42 : index
    %c0_6 = arith.constant 0 : index
    %5 = vector.load %arg5[%c42, %c0_6] : memref<84x440xf32, #tpu.memory_space<vmem>>, vector<42x88xf32>
    tpu.vector_store %arg5[%c42, %c0_6], %4 {strides = array<i32>} : memref<84x440xf32, #tpu.memory_space<vmem>>, vector<42x88xf32>,
    %c0_7 = arith.constant 0 : index
    %c1_8 = arith.constant 1 : index
    %c0_9 = arith.constant 0 : index
    %6 = tpu.strided_load %arg1[%c0_7, %c1_8, %c0_9] {strides = array<i32: 1, 2, 1>} : memref<1x88x88xf32, #tpu.memory_space<vmem>>, vector<1x42x88xf32>
    %7 = vector.shape_cast %6 : vector<1x42x88xf32> to vector<42x88xf32>
    %c0_10 = arith.constant 0 : index
    %c88 = arith.constant 88 : index
    %8 = vector.load %arg5[%c0_10, %c88] : memref<84x440xf32, #tpu.memory_space<vmem>>, vector<42x88xf32>
    tpu.vector_store %arg5[%c0_10, %c88], %7 {strides = array<i32>} : memref<84x440xf32, #tpu.memory_space<vmem>>, vector<42x88xf32>,
    %c0_11 = arith.constant 0 : index
    %c2 = arith.constant 2 : index
    %c0_12 = arith.constant 0 : index
    %9 = tpu.strided_load %arg1[%c0_11, %c2, %c0_12] {strides = array<i32: 1, 2, 1>} : memref<1x88x88xf32, #tpu.memory_space<vmem>>, vector<1x42x88xf32>
    %10 = vector.shape_cast %9 : vector<1x42x88xf32> to vector<42x88xf32>
    %c42_13 = arith.constant 42 : index
    %c88_14 = arith.constant 88 : index
    %11 = vector.load %arg5[%c42_13, %c88_14] : memref<84x440xf32, #tpu.memory_space<vmem>>, vector<42x88xf32>
    tpu.vector_store %arg5[%c42_13, %c88_14], %10 {strides = array<i32>} : memref<84x440xf32, #tpu.memory_space<vmem>>, vector<42x88xf32>,
    %c0_15 = arith.constant 0 : index
    %c2_16 = arith.constant 2 : index
    %c0_17 = arith.constant 0 : index
    %12 = tpu.strided_load %arg1[%c0_15, %c2_16, %c0_17] {strides = array<i32: 1, 2, 1>} : memref<1x88x88xf32, #tpu.memory_space<vmem>>, vector<1x42x88xf32>
    %13 = vector.shape_cast %12 : vector<1x42x88xf32> to vector<42x88xf32>
    %c0_18 = arith.constant 0 : index
    %c176 = arith.constant 176 : index
    %14 = vector.load %arg5[%c0_18, %c176] : memref<84x440xf32, #tpu.memory_space<vmem>>, vector<42x88xf32>
    tpu.vector_store %arg5[%c0_18, %c176], %13 {strides = array<i32>} : memref<84x440xf32, #tpu.memory_space<vmem>>, vector<42x88xf32>,
    %c0_19 = arith.constant 0 : index
    %c3 = arith.constant 3 : index
    %c0_20 = arith.constant 0 : index
    %15 = tpu.strided_load %arg1[%c0_19, %c3, %c0_20] {strides = array<i32: 1, 2, 1>} : memref<1x88x88xf32, #tpu.memory_space<vmem>>, vector<1x42x88xf32>
    %16 = vector.shape_cast %15 : vector<1x42x88xf32> to vector<42x88xf32>
    %c42_21 = arith.constant 42 : index
    %c176_22 = arith.constant 176 : index
    %17 = vector.load %arg5[%c42_21, %c176_22] : memref<84x440xf32, #tpu.memory_space<vmem>>, vector<42x88xf32>
    tpu.vector_store %arg5[%c42_21, %c176_22], %16 {strides = array<i32>} : memref<84x440xf32, #tpu.memory_space<vmem>>, vector<42x88xf32>,
    %c0_23 = arith.constant 0 : index
    %c3_24 = arith.constant 3 : index
    %c0_25 = arith.constant 0 : index
    %18 = tpu.strided_load %arg1[%c0_23, %c3_24, %c0_25] {strides = array<i32: 1, 2, 1>} : memref<1x88x88xf32, #tpu.memory_space<vmem>>, vector<1x42x88xf32>
    %19 = vector.shape_cast %18 : vector<1x42x88xf32> to vector<42x88xf32>
    %c0_26 = arith.constant 0 : index
    %c264 = arith.constant 264 : index
    %20 = vector.load %arg5[%c0_26, %c264] : memref<84x440xf32, #tpu.memory_space<vmem>>, vector<42x88xf32>
    tpu.vector_store %arg5[%c0_26, %c264], %19 {strides = array<i32>} : memref<84x440xf32, #tpu.memory_space<vmem>>, vector<42x88xf32>,
    %c0_27 = arith.constant 0 : index
    %c4 = arith.constant 4 : index
    %c0_28 = arith.constant 0 : index
    %21 = tpu.strided_load %arg1[%c0_27, %c4, %c0_28] {strides = array<i32: 1, 2, 1>} : memref<1x88x88xf32, #tpu.memory_space<vmem>>, vector<1x42x88xf32>
    %22 = vector.shape_cast %21 : vector<1x42x88xf32> to vector<42x88xf32>
    %c42_29 = arith.constant 42 : index
    %c264_30 = arith.constant 264 : index
    %23 = vector.load %arg5[%c42_29, %c264_30] : memref<84x440xf32, #tpu.memory_space<vmem>>, vector<42x88xf32>
    tpu.vector_store %arg5[%c42_29, %c264_30], %22 {strides = array<i32>} : memref<84x440xf32, #tpu.memory_space<vmem>>, vector<42x88xf32>,
    %c0_31 = arith.constant 0 : index
    %c4_32 = arith.constant 4 : index
    %c0_33 = arith.constant 0 : index
    %24 = tpu.strided_load %arg1[%c0_31, %c4_32, %c0_33] {strides = array<i32: 1, 2, 1>} : memref<1x88x88xf32, #tpu.memory_space<vmem>>, vector<1x42x88xf32>
    %25 = vector.shape_cast %24 : vector<1x42x88xf32> to vector<42x88xf32>
    %c0_34 = arith.constant 0 : index
    %c352 = arith.constant 352 : index
    %26 = vector.load %arg5[%c0_34, %c352] : memref<84x440xf32, #tpu.memory_space<vmem>>, vector<42x88xf32>
    tpu.vector_store %arg5[%c0_34, %c352], %25 {strides = array<i32>} : memref<84x440xf32, #tpu.memory_space<vmem>>, vector<42x88xf32>,
    %c0_35 = arith.constant 0 : index
    %c5 = arith.constant 5 : index
    %c0_36 = arith.constant 0 : index
    %27 = tpu.strided_load %arg1[%c0_35, %c5, %c0_36] {strides = array<i32: 1, 2, 1>} : memref<1x88x88xf32, #tpu.memory_space<vmem>>, vector<1x42x88xf32>
    %28 = vector.shape_cast %27 : vector<1x42x88xf32> to vector<42x88xf32>
    %c42_37 = arith.constant 42 : index
    %c352_38 = arith.constant 352 : index
    %29 = vector.load %arg5[%c42_37, %c352_38] : memref<84x440xf32, #tpu.memory_space<vmem>>, vector<42x88xf32>
    tpu.vector_store %arg5[%c42_37, %c352_38], %28 {strides = array<i32>} : memref<84x440xf32, #tpu.memory_space<vmem>>, vector<42x88xf32>,
    %c0_39 = arith.constant 0 : index
    %c0_40 = arith.constant 0 : index
    %30 = vector.load %arg5[%c0_39, %c0_40] : memref<84x440xf32, #tpu.memory_space<vmem>>, vector<84x440xf32>
    %31 = arith.truncf %30 : vector<84x440xf32> to vector<84x440xbf16>
    %c0_41 = arith.constant 0 : index
    %c0_42 = arith.constant 0 : index
    %32 = vector.load %arg2[%c0_41, %c0_42] : memref<440x1344xbf16, #tpu.memory_space<vmem>>, vector<440x1344xbf16>
    %cst = arith.constant dense<0.000000e+00> : vector<84x1344xf32>
    %33 = tpu.matmul %31, %32, %cst {dimension_numbers = #tpu.dot_dimension_numbers<[1], [0], [0], [1], [0, 0, 1, 1], [], []>} : vector<84x440xbf16>, vector<440x1344xbf16>, vector<84x1344xf32> -> vector<84x1344xf32>
    %34 = vector.extract_strided_slice %33 {offsets = [0, 0], sizes = [84, 672], strides = [1, 1]} : vector<84x1344xf32> to vector<84x672xf32>
    %35 = vector.extract_strided_slice %33 {offsets = [0, 672], sizes = [84, 672], strides = [1, 1]} : vector<84x1344xf32> to vector<84x672xf32>
    %36 = arith.maximumf %34, %35 : vector<84x672xf32>
    %37 = vector.extract_strided_slice %36 {offsets = [0, 0], sizes = [42, 672], strides = [1, 1]} : vector<84x672xf32> to vector<42x672xf32>
    %38 = vector.extract_strided_slice %36 {offsets = [42, 0], sizes = [42, 672], strides = [1, 1]} : vector<84x672xf32> to vector<42x672xf32>
    %39 = arith.maximumf %37, %38 : vector<42x672xf32>
    %c0_43 = arith.constant 0 : index
    %c0_44 = arith.constant 0 : index
    %40 = vector.load %arg3[%c0_43, %c0_44] : memref<1x672xf32, #tpu.memory_space<vmem>>, vector<1x672xf32>
    %41 = vector.broadcast %40 : vector<1x672xf32> to vector<42x672xf32>
    %42 = arith.addf %39, %41 : vector<42x672xf32>
    %cst_45 = arith.constant 0.000000e+00 : f32
    %43 = vector.broadcast %cst_45 : f32 to vector<42x672xf32>
    %44 = arith.maximumf %42, %43 : vector<42x672xf32>
    %c0_46 = arith.constant 0 : index
    %c0_47 = arith.constant 0 : index
    %c0_48 = arith.constant 0 : index
    %45 = vector.load %arg4[%c0_46, %c0_47, %c0_48] : memref<1x42x672xf32, #tpu.memory_space<vmem>>, vector<1x42x672xf32>
    %46 = vector.shape_cast %45 : vector<1x42x672xf32> to vector<42x672xf32>
    %47 = vector.shape_cast %44 : vector<42x672xf32> to vector<1x42x672xf32>
    tpu.vector_store %arg4[%c0_46, %c0_47, %c0_48], %47 {strides = array<i32>} : memref<1x42x672xf32, #tpu.memory_space<vmem>>, vector<1x42x672xf32>,
    return
  }
  func.func @transform_0(%arg0: i32) -> (i32, i32, i32) {
    %c0_i32 = arith.constant 0 : i32
    %c0_i32_0 = arith.constant 0 : i32
    %c0_i32_1 = arith.constant 0 : i32
    return %arg0, %c0_i32, %c0_i32_0 : i32, i32, i32
  }
  func.func @transform_1(%arg0: i32) -> (i32, i32) {
    %c0_i32 = arith.constant 0 : i32
    %c0_i32_0 = arith.constant 0 : i32
    %c0_i32_1 = arith.constant 0 : i32
    return %c0_i32, %c0_i32_0 : i32, i32
  }
  func.func @transform_2(%arg0: i32) -> (i32, i32) {
    %c0_i32 = arith.constant 0 : i32
    %c0_i32_0 = arith.constant 0 : i32
    %c0_i32_1 = arith.constant 0 : i32
    return %c0_i32, %c0_i32_0 : i32, i32
  }
  func.func @transform_3(%arg0: i32) -> (i32, i32, i32) {
    %c0_i32 = arith.constant 0 : i32
    %c0_i32_0 = arith.constant 0 : i32
    %c0_i32_1 = arith.constant 0 : i32
    return %arg0, %c0_i32, %c0_i32_0 : i32, i32, i32
  }
}

</mosaic_0001>

<bundles_post_ra>
// kernel: tpu_custom_call.1
= control target key start
LH: loop header
LB: loop body
LE: loop exit
PB: predicated region body
PF: predicated region fallthrough
CT: control target
= control target key end

     0   :  { %8 = vsyncpa [#allocation4], 0  ;;  %s8557_s0 = inlined_call_operand.hbm [shape: f32[2,88,88], index: 0, kind: input, shape index: {}]   ;;  %s8558_s1 = inlined_call_operand.hbm [shape: bf16[440,1344], index: 1, kind: input, shape index: {}]   ;;  %s8559_s2 = inlined_call_operand.hbm [shape: f32[1,672], index: 2, kind: input, shape index: {}]   ;;  %s8560_s3 = inlined_call_operand.vmem [shape: f32[2,42,672], index: 3, kind: output, shape index: {}]  }
   0x1   :  { %10 = vsyncpa [#allocation4 + $0x1], 0 }
   0x2   :  { %11 = vsyncpa [#allocation6], 0  ;;  %s6996_s12 = smov 0   ;;  %s6998_s13 = smov 0  }
   0x3   :  { %s7000_s14 = smov 0   ;;  %s7002_s15 = smov 0  }
   0x4 LB: > { %s7015_s16 = sadd.s32 4294967295, %s6964_s15   ;;  %p37_p0 = scmp.ne.s32.totalorder %s6956_s13, %s6952_s12  ;;  %s6964_s15 = sphi %s7002_s15, %s8720_s15   ;;  %s6960_s14 = sphi %s7000_s14, %s8719_s14   ;;  %s6956_s13 = sphi %s6998_s13, %s8718_s13   ;;  %s6952_s12 = sphi %s6996_s12, %s8717_s12  }
   0x5   : > { %p38_p1 = scmp.eq.s32.totalorder %s7015_s16, 0  ;;  %p5142_p2 = scmp.ge.s32.totalorder %s6964_s15, 1 }
   0x6   : > { %p116_p3 = scmp.lt.s32.totalorder %s6964_s15, 3  ;;  %s127_s20 = sshll.u32 %s8558_s1, 4  ;;  %s128_s20 = int_to_ptr.hbm [resolvable:$true] %s127_s20 }
   0x7   : > { %p7023_p4 = por %p38_p1, %p37_p0  ;;  %s6966_s22 = smov [#allocation5]  }
   0x8   : > { %p7030_p5 = pnand %p5142_p2, %p116_p3  ;;  %s129_s23 = sshll.u32 %s6966_s22, 4  ;;  %s130_s23 = int_to_ptr.vmem [resolvable:$true] %s129_s23 }
   0x9   : > { %s142_s26 = sshll.u32 %s8559_s2, 4  ;;  %s6967_s27 = smov 704   ;;  %s143_s26 = int_to_ptr.hbm [resolvable:$true] %s142_s26 }
   0xa   : > { %p6777_p6 = pneg %p7030_p5  ;;  %s6968_s28 = smov 44  }
   0xb   : > { %s6969_s29 = smov [#allocation7]   ;;  %s7042_s4 = sadd.s32 1, %s6964_s15  }
   0xc   : > { %p6778_p7 = pnand %p6777_p6, %p38_p1  ;;  %s144_s30 = sshll.u32 %s6969_s29, 4  ;;  %s145_s30 = int_to_ptr.vmem [resolvable:$true] %s144_s30 }
   0xd   : > { %s24_s5 = sadd.s32 1, %s6960_s14  ;;  %s21_s6 = ssub.s32 %s6964_s15, %s7042_s4 }
   0xe   : > { %6780 = dma.hbm_to_vmem [thread:$0]  (!%p6778_p7), %s128_s20, 38720, %s130_s23, [#allocation6], %s6967_s27, %s6967_s27, %s6968_s28  }
   0xf   : > { %6783 = dma.hbm_to_vmem [thread:$0]  (!%p6778_p7), %s143_s26, 96, %s145_s30, [#allocation6]  }
  0x10   : > { %p31_p8 = scmp.ne.s32.totalorder %s6960_s14, %s6956_s13  ;;  %p22_p9 = scmp.eq.s32.totalorder %s21_s6, 0 }
  0x11   : > { %p32_p10 = scmp.eq.s32.totalorder %s6964_s15, 0  ;;  %p6790_p11 = scmp.lt.s32.totalorder %s6964_s15, 2 }
  0x12   : > { %s155_s7 = sand.u32 1, %s6960_s14   ;;  %s6764_s10 = smul.u32 88, %s6964_s15 }
  0x13   : > { %s7053_s8 = scalar_select %p22_p9, %s6960_s14, %s24_s5  }
  0x14   : > { %p33_p12 = por %p32_p10, %p31_p8  ;;  %s6763_s9 = smul.u32 88, %s155_s7 }
  0x15   : > { %s164_s19 = scalar_lea.hbm %s8557_s0, %s6764_s10  ;;  %s156_s24 = scalar_lea.sflag [#allocation4], %s155_s7 }
  0x16   : > { %p7056_p13 = pnand %p6790_p11, %p33_p12  ;;  %s159_s20 = scalar_lea.vmem [#allocation3], %s6763_s9 }
  0x17   : > { %s167_s22 = sshll.u32 %s159_s20, 4  ;;  %s165_s23 = sshll.u32 %s164_s19, 4  ;;  %s168_s22 = int_to_ptr.vmem [resolvable:$true] %s167_s22  ;;  %s166_s23 = int_to_ptr.hbm [resolvable:$true] %s165_s23 }
  0x18   : > { %s6896_s25 = sshra.s32 %s166_s23, 4  ;;  %p6900_p2 = pneg %p7056_p13  ;;  %s6897_s25 = int_to_ptr.hbm [resolvable:$true] %s6896_s25 }
  0x19   : > { %s6898_s26 = scalar_lea.hbm %s6897_s25, 88  ;;  %s6903_s28 = scalar_lea.hbm %s8557_s0, 176 }
  0x1a   : > { %p6899_p0 = scmp.ne.s32.totalorder %s6897_s25, %s6898_s26  ;;  %p6904_p7 = scmp.lt.s32.totalorder %s6897_s25, %s8557_s0 }
  0x1b   : > { %p6905_p8 = scmp.lt.s32.totalorder %s6903_s28, %s6898_s26 }
  0x1c   : > { %p6901_p3 = pnand %p6900_p2, %p6899_p0 }
  0x1d   : > { %p6906_p9 = por %p6905_p8, %p6904_p7 }
  0x1e   : > { %p6902_p6 = pneg %p6901_p3 }
  0x20   : > { %p6907_p10 = pnand %p6906_p9, %p6902_p6 }
  0x22   : > { %6910 = shalt.err (!%p6907_p10)
}
  0x23   : > { %s6970_s5 = smov 128   ;;  %s6971_s6 = smov 8  }
  0x24   : > { %6787 = dma.hbm_to_vmem [thread:$0]  (!%p7056_p13), %s166_s23, 1408, %s168_s22, %s156_s24, %s6970_s5, %s6970_s5, %s6971_s6  }
  0x25   : > { %179 = sbr.rel (%p7030_p5) target bundleno = 1503 (0x5df), region = 32 }
  0x2a   : > { %s181_s7 = sand.u32 1, %s6956_s13  }
  0x2b   : > { %s6765_s9 = smul.u32 88, %s181_s7  ;;  %s182_s10 = scalar_lea.sflag [#allocation4], %s181_s7 }
  0x2d   : > { %s7076_s12 = scalar_lea.vmem [#allocation3], %s6765_s9 }
  0x2e   : > { %6943 = dma.done.wait (%p7023_p4), %s182_s10, 1408  }
  0x2f   : > { %6945 = vsyncadd (%p7023_p4), %s182_s10, 4294965888 }
  0x30   : > { %6947 = dma.done.wait (%p38_p1), [#allocation6], 38816  }
  0x31   : > { %6949 = vsyncadd (%p38_p1), [#allocation6], 4294928480  ;;  %v5198_v0 = vld [vmem:[%s7076_s12 + $0x4] ss:$2 sm:$0xff]  ;;  %s6972_s21 = smov 96   ;;  %s6973_s17 = smov 48  }
  0x32   : > { %v5174_v1 = vld [vmem:[%s7076_s12 + $0x2] ss:$2 sm:$0xff]  ;;  %611 = vrot.lane.b32.xlu0 %v5198_v0, %s6972_s21  ;;  %v5186_v2 = vld [vmem:[%s7076_s12 + $0x3] ss:$2 sm:$0xff]  ;;  %s6974_s11 = smov 8   ;;  %s6975_s18 = smov 88  }
  0x33   : > { %409 = vrot.lane.b32.xlu1 %v5174_v1, %s6973_s17  ;;  %518 = vrot.lane.b32.xlu2 %v5186_v2, %s6974_s11  ;;  %v5199_v3 = vld [vmem:[%s7076_s12 + $0x14] ss:$2 sm:$0xff]  ;;  %v5187_v5 = vld [vmem:[%s7076_s12 + $0x13] ss:$2 sm:$0xff]  ;;  %v6724_v33 = vld [vmem:[#allocation5 + $0x810] sm:$0xf0] }
  0x34   : > { %v5175_v4 = vld [vmem:[%s7076_s12 + $0x12] ss:$2 sm:$0xff]  ;;  %v5163_v6 = vld [vmem:[%s7076_s12 + $0x11] ss:$2 sm:$0xff]  ;;  %v5162_v7 = vld [vmem:[%s7076_s12 + $0x1] ss:$2 sm:$0xff] }
  0x35   : > { %v5200_v8 = vld [vmem:[%s7076_s12 + $0x24] ss:$2 sm:$0xff]  ;;  %v5201_v10 = vld [vmem:[%s7076_s12 + $0x34] ss:$2 sm:$0xff]  ;;  %v5189_v12 = vld [vmem:[%s7076_s12 + $0x33] ss:$2 sm:$0xff] }
  0x36   : > { %v5176_v9 = vld [vmem:[%s7076_s12 + $0x22] ss:$2 sm:$0xff]  ;;  %v5177_v11 = vld [vmem:[%s7076_s12 + $0x32] ss:$2 sm:$0xff]  ;;  %v5188_v13 = vld [vmem:[%s7076_s12 + $0x23] ss:$2 sm:$0xff] }
  0x37   : > { %v5164_v14 = vld [vmem:[%s7076_s12 + $0x21] ss:$2 sm:$0xff]  ;;  %v5202_v15 = vld [vmem:[%s7076_s12 + $0x44] ss:$2 sm:$0xff]  ;;  %v5165_v16 = vld [vmem:[%s7076_s12 + $0x31] ss:$2 sm:$0xff] }
  0x38   : > { %v5203_v17 = vld [vmem:[%s7076_s12 + $0x54] ss:$2 sm:$0x3]  ;;  %v5204_v18 = vld [vmem:[%s7076_s12 + $0x5] ss:$2 sm:$0xff]  ;;  %vm262_vm0 = vcmask 1041408  }
  0x39   : > { %v663_v19 = vrot.slane %v5204_v18, 6  ;;  %v5178_v20 = vld [vmem:[%s7076_s12 + $0x42] ss:$2 sm:$0xff]  ;;  %v5179_v21 = vld [vmem:[%s7076_s12 + $0x52] ss:$2 sm:$0x3] }
  0x3a   : > { %613 = vrot.lane.b32.xlu0 %v5199_v3, %s6972_s21  ;;  %v5180_v22 = vld [vmem:[%s7076_s12 + $0x3] ss:$2 sm:$0xff]  ;;  %v5191_v25 = vld [vmem:[%s7076_s12 + $0x53] ss:$2 sm:$0x3]  ;;  %vm2664_vm1 = vcmask 1043456  }
  0x3b   : > { %411 = vrot.lane.b32.xlu1 %v5175_v4, %s6973_s17  ;;  %520 = vrot.lane.b32.xlu2 %v5187_v5, %s6974_s11  ;;  %v461_v23 = vrot.slane %v5180_v22, 6  ;;  %v5190_v24 = vld [vmem:[%s7076_s12 + $0x43] ss:$2 sm:$0xff]  ;;  %v5192_v26 = vld [vmem:[%s7076_s12 + $0x4] ss:$2 sm:$0xff]  ;;  %vm236_vm2 = vcmask 719872  }
  0x3c   : > { %v562_v27 = vrot.slane %v5192_v26, 6  ;;  %v5166_v28 = vld [vmem:[%s7076_s12 + $0x41] ss:$2 sm:$0xff]  ;;  %v5167_v30 = vld [vmem:[%s7076_s12 + $0x51] ss:$2 sm:$0x3] }
  0x3d   : > { %v5205_v29 = vld [vmem:[%s7076_s12 + $0x15] ss:$2 sm:$0xff]  ;;  %v7139_v31 = vld [vmem:[%s7076_s12 + $0x25] ss:$2 sm:$0xff]  ;;  %v7144_v35 = vld [vmem:[%s7076_s12 + $0x2] ss:$2 sm:$0xff] }
  0x3e   : > { %v6224_v32 = vld [vmem:[#allocation5 + $0x7e8] sm:$0xf]  ;;  %v664_v34 = vrot.slane %v5205_v29, 6  ;;  %v666_v37 = vrot.slane %v7139_v31, 6  ;;  %v352_v38 = vrot.slane %v7144_v35, 6  ;;  %vm631_vm3 = vcmask 457728  }
  0x3f   : > { %v6225_v36 = vor.u32 %v6724_v33, %v6224_v32  ;;  %v5181_v39 = vld [vmem:[%s7076_s12 + $0x13] ss:$2 sm:$0xff]  ;;  %v7151_v40 = vld [vmem:[%s7076_s12 + $0x23] ss:$2 sm:$0xff]  ;;  %v5193_v45 = vld [vmem:[%s7076_s12 + $0x14] ss:$2 sm:$0xff] }
  0x40   : > { %v665_v41 = vsel %vm262_vm0, %v663_v19, %v664_v34  ;;  %v667_v42 = vsel %vm262_vm0, %v664_v34, %v666_v37  ;;  %v462_v43 = vrot.slane %v5181_v39, 6  ;;  %v464_v44 = vrot.slane %v7151_v40, 6  ;;  %v6180_v46 = vld [vmem:[#allocation5 + $0x790] sm:$0xf]  ;;  %v6713_v47 = vld [vmem:[#allocation5 + $0x7b8] sm:$0xf0] }
  0x41   : > { %2774 = vmatpush.bf16.msra.mxu2 %v6225_v36  ;;  %v5520_v48 = vld [vmem:[#allocation5 + $0x268] sm:$0xf]  ;;  %v6181_v49 = vor.u32 %v6713_v47, %v6180_v46  ;;  %v6548_v50 = vld [vmem:[#allocation5 + $0x290] sm:$0xf0]  ;;  %v6136_v55 = vld [vmem:[#allocation5 + $0x738] sm:$0xf] }
  0x42   : > { %300 = vrot.lane.b32.xlu0 %v5162_v7, %s6975_s18  ;;  %v5872_v51 = vld [vmem:[#allocation5 + $0x528] sm:$0xf]  ;;  %v6636_v52 = vld [vmem:[#allocation5 + $0x550] sm:$0xf0]  ;;  %v5521_v53 = vor.u32 %v6548_v50, %v5520_v48  ;;  %v6702_v56 = vld [vmem:[#allocation5 + $0x760] sm:$0xf0]  ;;  %v465_v59 = vsel %vm262_vm0, %v462_v43, %v464_v44  ;;  %v463_v60 = vsel %vm262_vm0, %v461_v23, %v462_v43 }
  0x43   : > { %302 = vrot.lane.b32.xlu1 %v5163_v6, %s6975_s18  ;;  %615 = vrot.lane.b32.xlu2 %v5200_v8, %s6972_s21  ;;  %v5873_v54 = vor.u32 %v6636_v52, %v5872_v51  ;;  %v6137_v57 = vor.u32 %v6702_v56, %v6136_v55  ;;  %v563_v58 = vrot.slane %v5193_v45, 6  ;;  %v5169_v61 = vld [vmem:[%s7076_s12 + $0x12] ss:$2 sm:$0xff]  ;;  %v7172_v0 = vld [vmem:[%s7076_s12 + $0x22] ss:$2 sm:$0xff]  ;;  %vm429_vm4 = vcmask 64512  }
  0x44   : > { %2698 = vmatpush.bf16.msra.mxu0 %v5521_v53  ;;  %v7168_v62 = vld [vmem:[%s7076_s12 + $0x24] ss:$2 sm:$0xff]  ;;  %v353_v3 = vrot.slane %v5169_v61, 6  ;;  %v6048_v29 = vld [vmem:[#allocation5 + $0x688] sm:$0xf]  ;;  %vm536_vm5 = vcmask 785472  }
  0x45   : > { %2775 = vmatpush.bf16.msra.mxu2 %v6181_v49  ;;  %2736 = vmatpush.bf16.msra.mxu1 %v5873_v54  ;;  %v564_v63 = vsel %vm262_vm0, %v562_v27, %v563_v58  ;;  %v5476_v1 = vld [vmem:[#allocation5 + $0x210] sm:$0xf]  ;;  %v6537_v2 = vld [vmem:[#allocation5 + $0x238] sm:$0xf0]  ;;  %v565_v5 = vrot.slane %v7168_v62, 6  ;;  %v7178_v8 = vld [vmem:[#allocation5 + $0x948] sm:$0xff] }
  0x46   : > { %v5477_v4 = vor.u32 %v6537_v2, %v5476_v1  ;;  %v5828_v6 = vld [vmem:[#allocation5 + $0x4d0] sm:$0xf]  ;;  %v6625_v7 = vld [vmem:[#allocation5 + $0x4f8] sm:$0xf0]  ;;  %v5432_v18 = vld [vmem:[#allocation5 + $0x1b8] sm:$0xf] }
  0x47   : > { %v566_v22 = vsel %vm262_vm0, %v563_v58, %v565_v5  ;;  %v5388_v36 = vld [vmem:[#allocation5 + $0x160] sm:$0xf]  ;;  %v6603_v47 = vld [vmem:[#allocation5 + $0x448] sm:$0xf0]  ;;  %v6004_v48 = vld [vmem:[#allocation5 + $0x630] sm:$0xf] }
  0x48   : > { %2699 = vmatpush.bf16.msra.mxu0 %v5477_v4  ;;  %v5740_v43 = vld [vmem:[#allocation5 + $0x420] sm:$0xf]  ;;  %v6669_v49 = vld [vmem:[#allocation5 + $0x658] sm:$0xf0]  ;;  %v5344_v53 = vld [vmem:[#allocation5 + $0x108] sm:$0xf] }
  0x49   : > { %2776 = vmatpush.bf16.msra.mxu2 %v6137_v57  ;;  %v5195_v50 = vld [vmem:[%s7076_s12 + $0x34] ss:$2 sm:$0xff]  ;;  %v5741_v51 = vor.u32 %v6603_v47, %v5740_v43  ;;  %v6005_v52 = vor.u32 %v6669_v49, %v6004_v48  ;;  %v6504_v54 = vld [vmem:[#allocation5 + $0x130] sm:$0xf0]  ;;  %v6312_v55 = vld [vmem:[#allocation5 + $0x898] sm:$0xf] }
  0x4a   : > { %617 = vrot.lane.b32.xlu0 %v5201_v10, %s6972_s21  ;;  %v5829_v10 = vor.u32 %v6625_v7, %v5828_v6  ;;  %v5345_v58 = vor.u32 %v6504_v54, %v5344_v53  ;;  %v6592_v61 = vld [vmem:[#allocation5 + $0x3f0] sm:$0xf0]  ;;  %v5300_v6 = vld [vmem:[#allocation5 + $0xb0] sm:$0xf]  ;;  %v6493_v7 = vld [vmem:[#allocation5 + $0xd8] sm:$0xf0] }
  0x4b   : > { %413 = vrot.lane.b32.xlu1 %v5176_v9, %s6973_s17  ;;  %415 = vrot.lane.b32.xlu2 %v5177_v11, %s6973_s17  ;;  %v355_v9 = vrot.slane %v7172_v0, 6  ;;  %v6092_v11 = vld [vmem:[#allocation5 + $0x6e0] sm:$0xf]  ;;  %v567_v40 = vrot.slane %v5195_v50, 6  ;;  %v6471_v47 = vld [vmem:[#allocation5 + $0x28] sm:$0xf0] }
  0x4c   : > { %2737 = vmatpush.bf16.msra.mxu1 %v5829_v10  ;;  %v6268_v10 = vld [vmem:[#allocation5 + $0x840] sm:$0xf]  ;;  %v6559_v50 = vld [vmem:[#allocation5 + $0x2e8] sm:$0xf0]  ;;  %vm629_vm6 = vcmask 1048320   ;;  %vm318_vm7 = vcmask 1048256  }
  0x4d   : > { %v356_v26 = vsel %vm262_vm0, %v353_v3, %v355_v9  ;;  %v5564_v49 = vld [vmem:[#allocation5 + $0x2c0] sm:$0xf]  ;;  %vm320_vm8 = vcmask 392192   ;;  %vm427_vm9 = vcmask 1047936   ;;  %vm643_vm10 = vcmask 451584   ;;  %p219_p1 = scmp.lt.s32.totalorder %s7015_s16, 1 }
  0x4e   : > { %v5565_v53 = vor.u32 %v6559_v50, %v5564_v49  ;;  %v5185_v54 = vld [vmem:[%s7076_s12 + $0x53] ss:$2 sm:$0x3]  ;;  %vm441_vm11 = vcmask 58368   ;;  %vm242_vm12 = vcmask 713728   ;;  %vm542_vm13 = vcmask 779328  }
  0x4f   : > { %vm641_vm14 = vcmask 1042176   ;;  %v7342_v50 = vld [vmem:[%s7076_s12 + $0x1] ss:$2 sm:$0xff]  ;;  %vm330_vm15 = vcmask 1042112   ;;  %s8722_s16 = smov (!%p219_p1, %s7015_s16), 1 }
  0x50   : > { %s6766_s19 = smul.u32 288, %s8722_s16 }
  0x52   : > { %522 = vrot.lane.b32.xlu0 %v5188_v13, %s6974_s11  ;;  %v2030_v13 = vunpack.c.l.b16 %v7178_v8  ;;  %s8028_s22 = scalar_lea.vmem %s8560_s3, %s6766_s19 }
  0x53   : > { %524 = vrot.lane.b32.xlu1 %v5189_v12, %s6974_s11  ;;  %304 = vrot.lane.b32.xlu2 %v5164_v14, %s6975_s18  ;;  %v6691_v12 = vld [vmem:[#allocation5 + $0x708] sm:$0xf0] }
  0x54   : > { %v5207_v14 = vld [vmem:[%s7076_s12 + $0x35] ss:$2 sm:$0xff] }
  0x55   : > { %v668_v33 = vrot.slane %v5207_v14, 6 }
  0x57   : > { %v669_v57 = vsel %vm262_vm0, %v666_v37, %v668_v33  ;;  %v6658_v37 = vld [vmem:[#allocation5 + $0x600] sm:$0xf0] }
  0x5a   : > { %306 = vrot.lane.b32.xlu0 %v5165_v16, %s6975_s18  ;;  %v7184_v16 = vld [vmem:[%s7076_s12 + $0x45] ss:$2 sm:$0xff] }
  0x5b   : > { %619 = vrot.lane.b32.xlu1 %v5202_v15, %s6972_s21  ;;  %621 = vrot.lane.b32.xlu2 %v5203_v17, %s6972_s21  ;;  %v6093_v15 = vor.u32 %v6691_v12, %v6092_v11  ;;  %v7187_v17 = vld [vmem:[%s7076_s12 + $0x33] ss:$2 sm:$0xff]  ;;  %v670_v34 = vrot.slane %v7184_v16, 6  ;;  %v7224_v11 = vld [vmem:[%s7076_s12 + $0x44] ss:$2 sm:$0xff]  ;;  %v5301_v12 = vor.u32 %v6493_v7, %v5300_v6 }
  0x5c   : > { %v466_v35 = vrot.slane %v7187_v17, 6 }
  0x5d   : > { %2777 = vmatpush.bf16.msra.mxu2 %v6093_v15  ;;  %v671_v56 = vsel %vm262_vm0, %v668_v33, %v670_v34  ;;  %v5151_v15 = vld [vmem:[%s7076_s12 + $0x10] ss:$2 sm:$0xff] }
  0x5e   : > { %v467_v1 = vsel %vm262_vm0, %v464_v44, %v466_v35  ;;  %238 = vst.msk [vmem:[#allocation2 + $0x20] sm:$0xff] %vm236_vm2, %v5151_v15  ;;  %v5608_v33 = vld [vmem:[#allocation5 + $0x318] sm:$0xf] }
  0x62   : > { %674 = vrot.lane.b32.xlu0 %v663_v19, %s6972_s21  ;;  %v6526_v19 = vld [vmem:[#allocation5 + $0x1e0] sm:$0xf0] }
  0x63   : > { %417 = vrot.lane.b32.xlu1 %v5178_v20, %s6973_s17  ;;  %419 = vrot.lane.b32.xlu2 %v5179_v21, %s6973_s17  ;;  %v2338_v20 = vpack.c.b16 %v2030_v13, %v2030_v13  ;;  %v354_v21 = vsel %vm262_vm0, %v352_v38, %v353_v3  ;;  %v5960_v3 = vld [vmem:[#allocation5 + $0x5d8] sm:$0xf]  ;;  %v6735_v13 = vld [vmem:[#allocation5 + $0x868] sm:$0xf0] }
  0x64   : > { %v5961_v4 = vor.u32 %v6658_v37, %v5960_v3  ;;  %v6269_v14 = vor.u32 %v6735_v13, %v6268_v10  ;;  %v5153_v3 = vld [vmem:[%s7076_s12 + $0x30] ss:$2 sm:$0xff] }
  0x65   : > { %240 = vst.msk [vmem:[#allocation2 + $0x60] sm:$0xff] %vm236_vm2, %v5153_v3  ;;  %v6521_v3 = vld [vmem:[#allocation5 + $0x1bc] sm:$0xf] }
  0x6a   : > { %472 = vrot.lane.b32.xlu0 %v461_v23, %s6973_s17  ;;  %v5433_v23 = vor.u32 %v6526_v19, %v5432_v18  ;;  %v225_v18 = vld [vmem:[%s7076_s12] ss:$2 sm:$0xff] }
  0x6b   : > { %526 = vrot.lane.b32.xlu1 %v5190_v24, %s6974_s11  ;;  %528 = vrot.lane.b32.xlu2 %v5191_v25, %s6974_s11  ;;  %v5784_v24 = vld [vmem:[#allocation5 + $0x478] sm:$0xf]  ;;  %v6614_v25 = vld [vmem:[#allocation5 + $0x4a0] sm:$0xf0]  ;;  %237 = vst.msk [vmem:[#allocation2] sm:$0xff] %vm236_vm2, %v225_v18 }
  0x6c   : > { %2700 = vmatpush.bf16.msra.mxu0 %v5433_v23  ;;  %v568_v23 = vsel %vm262_vm0, %v565_v5, %v567_v40  ;;  %v5256_v5 = vld [vmem:[#allocation5 + $0x58] sm:$0xf] }
  0x72   : > { %573 = vrot.lane.b32.xlu0 %v562_v27, %s6974_s11  ;;  %v2666_v27 = vsel %vm2664_vm1, %v2338_v20, 0  ;;  %v569_v20 = vrot.slane %v7224_v11, 6 }
  0x73   : > { %308 = vrot.lane.b32.xlu1 %v5166_v28, %s6975_s18  ;;  %310 = vrot.lane.b32.xlu2 %v5167_v30, %s6975_s18  ;;  %v5785_v28 = vor.u32 %v6614_v25, %v5784_v24  ;;  %v6680_v30 = vld [vmem:[#allocation5 + $0x6b0] sm:$0xf0] }
  0x74   : > { %2816 = vmatpush.bf16.msra.mxu3 %v2666_v27  ;;  %v6049_v32 = vor.u32 %v6680_v30, %v6048_v29  ;;  %v6647_v27 = vld [vmem:[#allocation5 + $0x5a8] sm:$0xf0]  ;;  %v570_v30 = vsel %vm262_vm0, %v567_v40, %v569_v20 }
  0x75   : > { %2738 = vmatpush.bf16.msra.mxu1 %v5785_v28  ;;  %v5171_v28 = vld [vmem:[%s7076_s12 + $0x32] ss:$2 sm:$0xff]  ;;  %v5172_v29 = vld [vmem:[%s7076_s12 + $0x42] ss:$2 sm:$0xff] }
  0x76   : > { %2778 = vmatpush.bf16.msra.mxu2 %v6049_v32  ;;  %v6482_v32 = vld [vmem:[#allocation5 + $0x80] sm:$0xf0] }
  0x77   : > { %v5257_v17 = vor.u32 %v6482_v32, %v5256_v5  ;;  %v2031_v5 = vunpack.c.h.b16 %v7178_v8  ;;  %v6631_v32 = vld [vmem:[#allocation5 + $0x52c] sm:$0xf] }
  0x78   : > { %v5154_v8 = vld [vmem:[%s7076_s12 + $0x40] ss:$2 sm:$0xff] }
  0x79   : > { %2739 = vmatpush.bf16.msra.mxu1 %v5741_v51  ;;  %241 = vst.msk [vmem:[#allocation2 + $0x80] sm:$0xff] %vm236_vm2, %v5154_v8  ;;  %v5742_v8 = vld [vmem:[#allocation5 + $0x44c] sm:$0xf0] }
  0x7a   : > { %363 = vrot.lane.b32.xlu0 %v352_v38, %s6975_s18  ;;  %v6515_v38 = vld [vmem:[#allocation5 + $0x188] sm:$0xf0]  ;;  %2779 = vmatpush.bf16.msra.mxu2 %v6005_v52 }
  0x7b   : > { %676 = vrot.lane.b32.xlu1 %v665_v41, %s6972_s21  ;;  %678 = vrot.lane.b32.xlu2 %v667_v42, %s6972_s21  ;;  %v5389_v39 = vor.u32 %v6515_v38, %v5388_v36  ;;  %v6356_v41 = vld [vmem:[#allocation5 + $0x8f0] sm:$0xf]  ;;  %v6757_v42 = vld [vmem:[#allocation5 + $0x918] sm:$0xf0]  ;;  %v357_v36 = vrot.slane %v5171_v28, 6  ;;  %v359_v38 = vrot.slane %v5172_v29, 6 }
  0x7c   : > { %v6357_v46 = vor.u32 %v6757_v42, %v6356_v41  ;;  %v5209_v41 = vld [vmem:[%s7076_s12 + $0x55] ss:$2 sm:$0x3] }
  0x7d   : > { %2701 = vmatpush.bf16.msra.mxu0 %v5389_v39  ;;  %v672_v42 = vrot.slane %v5209_v41, 6  ;;  %v360_v51 = vsel %vm262_vm0, %v357_v36, %v359_v38  ;;  %v358_v52 = vsel %vm262_vm0, %v355_v9, %v357_v36  ;;  %v6719_v36 = vld [vmem:[#allocation5 + $0x7ec] sm:$0xf]  ;;  %v2339_v41 = vpack.c.b16 %v2031_v5, %v2031_v5 }
  0x7e   : > { %2817 = vmatpush.bf16.msra.mxu3 %v6357_v46  ;;  %2780 = vmatpush.bf16.msra.mxu2 %v5961_v4  ;;  %v5212_v46 = vld [vmem:[#allocation5] sm:$0xf] }
  0x7f   : > { %v5213_v48 = vor.u32 %v6471_v47, %v5212_v46  ;;  %v2669_v46 = vsel %vm2664_vm1, %v2339_v41, 0 }
  0x81   : > { %2702 = vmatpush.bf16.msra.mxu0 %v5345_v58  ;;  %v470_v58 = vrot.slane %v5185_v54, 6  ;;  %v6532_v54 = vld [vmem:[#allocation5 + $0x214] sm:$0xf] }
  0x82   : > { %474 = vrot.lane.b32.xlu0 %v463_v60, %s6973_s17  ;;  %v5696_v60 = vld [vmem:[#allocation5 + $0x3c8] sm:$0xf] }
  0x83   : > { %476 = vrot.lane.b32.xlu1 %v465_v59, %s6973_s17  ;;  %575 = vrot.lane.b32.xlu2 %v564_v63, %s6974_s11  ;;  %v6746_v59 = vld [vmem:[#allocation5 + $0x8c0] sm:$0xf0]  ;;  %v7212_v63 = vld [vmem:[%s7076_s12 + $0x43] ss:$2 sm:$0xff]  ;;  %v5697_v31 = vor.u32 %v6592_v61, %v5696_v60 }
  0x84   : > { %v6313_v2 = vor.u32 %v6746_v59, %v6312_v55  ;;  %v468_v44 = vrot.slane %v7212_v63, 6  ;;  %v5197_v55 = vld [vmem:[%s7076_s12 + $0x54] ss:$2 sm:$0x3] }
  0x85   : > { %2740 = vmatpush.bf16.msra.mxu1 %v5697_v31  ;;  %2703 = vmatpush.bf16.msra.mxu0 %v5301_v12  ;;  %v571_v0 = vrot.slane %v5197_v55, 6  ;;  %v5173_v59 = vld [vmem:[%s7076_s12 + $0x52] ss:$2 sm:$0x3] }
  0x86   : > { %2818 = vmatpush.bf16.msra.mxu3 %v6313_v2  ;;  %v469_v24 = vsel %vm262_vm0, %v466_v35, %v468_v44  ;;  %v6570_v35 = vld [vmem:[#allocation5 + $0x340] sm:$0xf0]  ;;  %v361_v60 = vrot.slane %v5173_v59, 6  ;;  %v471_v61 = vsel %vm262_vm0, %v468_v44, %v470_v58  ;;  %v5478_v55 = vld [vmem:[#allocation5 + $0x23c] sm:$0xf0] }
  0x87   : > { %v5609_v39 = vor.u32 %v6570_v35, %v5608_v33  ;;  %v5830_v58 = vld [vmem:[#allocation5 + $0x4fc] sm:$0xf0] }
  0x88   : > { %v362_v2 = vsel %vm262_vm0, %v359_v38, %v361_v60  ;;  %v6226_v38 = vld [vmem:[#allocation5 + $0x814] sm:$0xf0] }
  0x89   : > { %2704 = vmatpush.bf16.msra.mxu0 %v5257_v17  ;;  %v5874_v17 = vld [vmem:[#allocation5 + $0x554] sm:$0xf0] }
  0x8a   : > { %577 = vrot.lane.b32.xlu0 %v566_v22, %s6974_s11  ;;  %v6581_v22 = vld [vmem:[#allocation5 + $0x398] sm:$0xf0]  ;;  %2819 = vmatpush.bf16.msra.mxu3 %v6269_v14  ;;  %v5877_v35 = vor.u32 %v6631_v32, %v5874_v17 }
  0x8b   : > { %365 = vrot.lane.b32.xlu1 %v354_v21, %s6975_s18  ;;  %367 = vrot.lane.b32.xlu2 %v356_v26, %s6975_s18  ;;  %v5652_v21 = vld [vmem:[#allocation5 + $0x370] sm:$0xf]  ;;  %v5916_v26 = vld [vmem:[#allocation5 + $0x580] sm:$0xf] }
  0x8c   : > { %v5653_v25 = vor.u32 %v6581_v22, %v5652_v21  ;;  %v5917_v62 = vor.u32 %v6647_v27, %v5916_v26  ;;  %v5155_v22 = vld [vmem:[%s7076_s12 + $0x50] ss:$2 sm:$0x3] }
  0x8d   : > { %v7202_v45 = vpop.permute.xlu2 %518  ;;  %2705 = vmatpush.bf16.msra.mxu0 %v5213_v48  ;;  %243 = vst.msk [vmem:[#allocation2 + $0xa0] sm:$0x3] %vm242_vm12, %v5155_v22  ;;  %vm280_vm12 = vcmask 719874  }
  0x8e   : > { %2741 = vmatpush.bf16.msra.mxu1 %v5653_v25  ;;  %2781 = vmatpush.bf16.msra.mxu2 %v5917_v62 }
  0x91   : > { %2888 = vmatpush.bf16.msrb.mxu0 %v5877_v35 }
  0x92   : > { %680 = vrot.lane.b32.xlu0 %v669_v57, %s6972_s21  ;;  %2742 = vmatpush.bf16.msra.mxu1 %v5609_v39  ;;  %v5152_v57 = vld [vmem:[%s7076_s12 + $0x20] ss:$2 sm:$0xff] }
  0x93   : > { %682 = vrot.lane.b32.xlu1 %v671_v56, %s6972_s21  ;;  %478 = vrot.lane.b32.xlu2 %v467_v1, %s6973_s17  ;;  %v673_v56 = vsel %vm262_vm0, %v670_v34, %v672_v42  ;;  %239 = vst.msk [vmem:[#allocation2 + $0x40] sm:$0xff] %vm236_vm2, %v5152_v57  ;;  %v572_v1 = vsel %vm262_vm0, %v569_v20, %v571_v0  ;;  %v6620_v57 = vld [vmem:[#allocation5 + $0x4d4] sm:$0xf] }
  0x94   : > { %v6229_v42 = vor.u32 %v6719_v36, %v6226_v38  ;;  %2968 = vmatpush.bf16.msrb.mxu2 %v2669_v46  ;;  %v5833_v0 = vor.u32 %v6620_v57, %v5830_v58  ;;  %v6510_v36 = vld [vmem:[#allocation5 + $0x164] sm:$0xf]  ;;  %v5390_v38 = vld [vmem:[#allocation5 + $0x18c] sm:$0xf0] }
  0x95   : > { %v7228_v19 = vpop.permute.xlu2 %520  ;;  %v5393_v41 = vor.u32 %v6510_v36, %v5390_v38  ;;  %v6664_v36 = vld [vmem:[#allocation5 + $0x634] sm:$0xf] }
  0x96   : > { %2743 = vmatpush.bf16.msra.mxu1 %v5565_v53  ;;  %v263_v53 = vrot.slane %v7342_v50, 6  ;;  %2889 = vmatpush.bf16.msrb.mxu0 %v5833_v0  ;;  %v6094_v50 = vld [vmem:[#allocation5 + $0x70c] sm:$0xf0] }
  0x98   : > { %281 = vst.msk [vmem:[#allocation2 + $0xa0] sm:$0xfc] %vm280_vm12, %v263_v53  ;;  %vm383_vm12 = vcmask 392194  }
  0x9a   : > { %480 = vrot.lane.b32.xlu0 %v469_v24, %s6973_s17  ;;  %v5522_v24 = vld [vmem:[#allocation5 + $0x294] sm:$0xf0]  ;;  %2926 = vmatpush.bf16.msrb.mxu1 %v6229_v42  ;;  %v6598_v42 = vld [vmem:[#allocation5 + $0x424] sm:$0xf] }
  0x9b   : > { %579 = vrot.lane.b32.xlu1 %v568_v23, %s6974_s11  ;;  %581 = vrot.lane.b32.xlu2 %v570_v30, %s6974_s11  ;;  %v5745_v46 = vor.u32 %v6598_v42, %v5742_v8 }
  0x9d   : > { %v7250_v43 = vpop.permute.xlu2 %615 }
  0x9e   : > { %636 = vst.msk [vmem:[#allocation2 + $0x58] sm:$0xff] %vm631_vm3, %v7250_v43 }
  0xa2   : > { %369 = vrot.lane.b32.xlu0 %v358_v52, %s6975_s18 }
  0xa3   : > { %371 = vrot.lane.b32.xlu1 %v360_v51, %s6975_s18  ;;  %684 = vrot.lane.b32.xlu2 %v673_v56, %s6972_s21  ;;  %v5481_v56 = vor.u32 %v6532_v54, %v5478_v55 }
  0xa4   : > { %v612_v9 = vpop.permute.xlu0 %611 }
  0xa5   : > { %v410_v16 = vpop.permute.xlu1 %409  ;;  %632 = vst.msk [vmem:[#allocation2 + $0x18] sm:$0xff] %vm631_vm3, %v612_v9  ;;  %v7269_v34 = vpop.permute.xlu2 %415  ;;  %v719_v28 = vld [vmem:[#allocation2 + $0x58] sm:$0xff] }
  0xa6   : > { %430 = vst.msk [vmem:[#allocation2 + $0x10] sm:$0xff] %vm429_vm4, %v410_v16 }
  0xa7   : > { %537 = vst.msk [vmem:[#allocation2 + $0x10] sm:$0xff] %vm536_vm5, %v7202_v45 }
  0xa8   : > { %630 = vst.msk [vmem:[#allocation2 + $0x10] sm:$0xff] %vm629_vm6, %v612_v9 }
  0xa9   : > { %436 = vst.msk [vmem:[#allocation2 + $0x70] sm:$0xff] %vm429_vm4, %v7269_v34 }
  0xaa   : > { %482 = vrot.lane.b32.xlu0 %v471_v61, %s6973_s17 }
  0xab   : > { %583 = vrot.lane.b32.xlu1 %v572_v1, %s6974_s11  ;;  %373 = vrot.lane.b32.xlu2 %v362_v2, %s6975_s18 }
  0xac   : > { %v614_v45 = vpop.permute.xlu0 %613  ;;  %v711_v37 = vld [vmem:[#allocation2 + $0x18] sm:$0xff] }
  0xad   : > { %v412_v63 = vpop.permute.xlu1 %411  ;;  %634 = vst.msk [vmem:[#allocation2 + $0x38] sm:$0xff] %vm631_vm3, %v614_v45  ;;  %v305_v31 = vpop.permute.xlu2 %304 }
  0xae   : > { %432 = vst.msk [vmem:[#allocation2 + $0x30] sm:$0xff] %vm429_vm4, %v412_v63 }
  0xaf   : > { %538 = vst.msk [vmem:[#allocation2 + $0x30] sm:$0xff] %vm536_vm5, %v7228_v19  ;;  %v710_v44 = vld [vmem:[#allocation2 + $0x10] sm:$0xff]  ;;  %v6543_v19 = vld [vmem:[#allocation5 + $0x26c] sm:$0xf] }
  0xb0   : > { %633 = vst.msk [vmem:[#allocation2 + $0x30] sm:$0xff] %vm629_vm6, %v614_v45  ;;  %v5525_v26 = vor.u32 %v6543_v19, %v5522_v24  ;;  %v6358_v19 = vld [vmem:[#allocation5 + $0x91c] sm:$0xf0] }
  0xb1   : > { %324 = vst.msk [vmem:[#allocation2 + $0x40] sm:$0xff] %vm318_vm7, %v305_v31 }
  0xb2   : > { %325 = vst.msk [vmem:[#allocation2 + $0x48] sm:$0xff] %vm320_vm8, %v305_v31  ;;  %2850 = vmatpush.bf16.msrb.mxu3 %v5525_v26  ;;  %v6182_v31 = vld [vmem:[#allocation5 + $0x7bc] sm:$0xf0]  ;;  %v5786_v26 = vld [vmem:[#allocation5 + $0x4a4] sm:$0xf0] }
  0xb4   : > { %v715_v4 = vld [vmem:[#allocation2 + $0x38] sm:$0xff]  ;;  %v301_v7 = vpop.permute.xlu0 %300 }
  0xb5   : > { %v303_v6 = vpop.permute.xlu1 %302  ;;  %v7297_v10 = vpack.c.bf16 %v715_v4, %v711_v37  ;;  %v622_v40 = vpop.permute.xlu2 %621  ;;  %319 = vst.msk [vmem:[#allocation2] sm:$0xff] %vm318_vm7, %v301_v7  ;;  %v5434_v4 = vld [vmem:[#allocation5 + $0x1e4] sm:$0xf0] }
  0xb6   : > { %322 = vst.msk [vmem:[#allocation2 + $0x20] sm:$0xff] %vm318_vm7, %v303_v6  ;;  %2851 = vmatpush.bf16.msrb.mxu3 %v5481_v56  ;;  %v5346_v56 = vld [vmem:[#allocation5 + $0x134] sm:$0xf0] }
  0xb7   : > { %323 = vst.msk [vmem:[#allocation2 + $0x28] sm:$0xff] %vm320_vm8, %v303_v6  ;;  %v714_v11 = vld [vmem:[#allocation2 + $0x30] sm:$0xff]  ;;  %6398 = vmatmul.msk.bf16.vlgmr.msra.gmra.mxu3 %vm631_vm3, %v7297_v10 }
  0xb8   : > { %431 = vst.msk [vmem:[#allocation2 + $0x28] sm:$0xff] %vm427_vm9, %v412_v63  ;;  %v7304_v12 = vpack.c.bf16 %v714_v11, %v710_v44  ;;  %v6708_v63 = vld [vmem:[#allocation5 + $0x794] sm:$0xf]  ;;  %v5157_v6 = vld [vmem:[%s7076_s12 + $0x11] ss:$2 sm:$0xff] }
  0xb9   : > { %321 = vst.msk [vmem:[#allocation2 + $0x8] sm:$0xff] %vm320_vm8, %v301_v7  ;;  %v6185_v37 = vor.u32 %v6708_v63, %v6182_v31  ;;  %v7372_v7 = vld [vmem:[%s7076_s12 + $0x21] ss:$2 sm:$0xff]  ;;  %v264_v44 = vrot.slane %v5157_v6, 6 }
  0xba   : > { %8589 = vst [vmem:[#allocation10_spill] sm:$0xff] %v7304_v12  ;;  %2782 = vmatmul.bf16.vlgmr.msra.gmra.mxu2 %v7304_v12  ;;  %v266_v11 = vrot.slane %v7372_v7, 6 }
  0xbb   : > { %428 = vst.msk [vmem:[#allocation2 + $0x8] sm:$0xff] %vm427_vm9, %v410_v16  ;;  %2927 = vmatpush.bf16.msrb.mxu1 %v6185_v37  ;;  %v265_v5 = vsel %vm262_vm0, %v263_v53, %v264_v44 }
  0xbc   : > { %644 = vst.msk [vmem:[#allocation2 + $0xb8] sm:$0x3] %vm643_vm10, %v622_v40  ;;  %v618_v14 = vpop.permute.xlu0 %617  ;;  %v708_v21 = vld [vmem:[#allocation2] sm:$0xff]  ;;  %vm332_vm10 = vcmask 386048   ;;  %v267_v24 = vsel %vm262_vm0, %v264_v44, %v266_v11 }
  0xbd   : > { %v414_v13 = vpop.permute.xlu1 %413  ;;  %v712_v15 = vld [vmem:[#allocation2 + $0x20] sm:$0xff]  ;;  %v7311_v18 = vpop.permute.xlu2 %419  ;;  %638 = vst.msk [vmem:[#allocation2 + $0x78] sm:$0xff] %vm631_vm3, %v618_v14 }
  0xbe   : > { %433 = vst.msk [vmem:[#allocation2 + $0x48] sm:$0xff] %vm427_vm9, %v414_v13  ;;  %v7316_v23 = vpack.c.bf16 %v712_v15, %v708_v21 }
  0xbf   : > { %434 = vst.msk [vmem:[#allocation2 + $0x50] sm:$0xff] %vm429_vm4, %v414_v13  ;;  %v713_v20 = vld [vmem:[#allocation2 + $0x28] sm:$0xff] }
  0xc0   : > { %8590 = vst [vmem:[#allocation11_spill] sm:$0xff] %v7316_v23  ;;  %2706 = vmatmul.bf16.vlgmr.msra.gmra.mxu0 %v7316_v23 }
  0xc1   : > { %442 = vst.msk [vmem:[#allocation2 + $0xb0] sm:$0x3] %vm441_vm11, %v7311_v18  ;;  %vm439_vm11 = vcmask 1041792  }
  0xc2   : > { %v709_v25 = vld [vmem:[#allocation2 + $0x8] sm:$0xff]  ;;  %283 = vst.msk [vmem:[#allocation2 + $0xe0] sm:$0xff] %vm236_vm2, %v267_v24 }
  0xc3   : > { %v7319_v27 = vpack.c.bf16 %v713_v20, %v709_v25  ;;  %v6609_v20 = vld [vmem:[#allocation5 + $0x47c] sm:$0xf]  ;;  %282 = vst.msk [vmem:[#allocation2 + $0xc0] sm:$0xff] %vm236_vm2, %v265_v5  ;;  %v5698_v24 = vld [vmem:[#allocation5 + $0x3f4] sm:$0xf0] }
  0xc4   : > { %v523_v30 = vpop.permute.xlu0 %522  ;;  %v723_v33 = vld [vmem:[#allocation2 + $0x78] sm:$0xff]  ;;  %v6488_v5 = vld [vmem:[#allocation5 + $0xb4] sm:$0xf] }
  0xc5   : > { %8591 = vst [vmem:[#allocation12_spill] sm:$0xff] %v7319_v27  ;;  %2744 = vmatmul.bf16.vlgmr.msra.gmra.mxu1 %v7319_v27  ;;  %v525_v29 = vpop.permute.xlu1 %524  ;;  %v529_v62 = vpop.permute.xlu2 %528  ;;  %v7326_v39 = vpack.c.bf16 %v723_v33, %v719_v28  ;;  %v717_v1 = vld [vmem:[#allocation2 + $0x48] sm:$0xff] }
  0xc6   : > { %540 = vst.msk [vmem:[#allocation2 + $0x70] sm:$0xff] %vm536_vm5, %v525_v29  ;;  %v6697_v28 = vld [vmem:[#allocation5 + $0x73c] sm:$0xf] }
  0xc7   : > { %637 = vst.msk [vmem:[#allocation2 + $0x70] sm:$0xff] %vm629_vm6, %v618_v14  ;;  %6399 = vmatmul.msk.bf16.gmra.mxu3 %vm631_vm3, %v7326_v39 }
  0xc8   : > { %539 = vst.msk [vmem:[#allocation2 + $0x50] sm:$0xff] %vm536_vm5, %v523_v30  ;;  %v5789_v30 = vor.u32 %v6609_v20, %v5786_v26  ;;  %v6050_v26 = vld [vmem:[#allocation5 + $0x6b4] sm:$0xf0] }
  0xc9   : > { %635 = vst.msk [vmem:[#allocation2 + $0x50] sm:$0xff] %vm629_vm6, %v7250_v43 }
  0xca   : > { %543 = vst.msk [vmem:[#allocation2 + $0xb0] sm:$0x3] %vm542_vm13, %v529_v62  ;;  %vm694_vm13 = vcmask 457730   ;;  %v6138_v62 = vld [vmem:[#allocation5 + $0x764] sm:$0xf0]  ;;  %2890 = vmatpush.bf16.msrb.mxu0 %v5789_v30 }
  0xcb   : > { %642 = vst.msk [vmem:[#allocation2 + $0xb0] sm:$0x3] %vm641_vm14, %v622_v40  ;;  %v5437_v40 = vor.u32 %v6521_v3, %v5434_v4  ;;  %vm492_vm14 = vcmask 64514   ;;  %v6141_v32 = vor.u32 %v6697_v28, %v6138_v62 }
  0xcc   : > { %v307_v48 = vpop.permute.xlu0 %306 }
  0xcd   : > { %v7337_v47 = vpop.permute.xlu1 %619  ;;  %v311_v43 = vpop.permute.xlu2 %310  ;;  %326 = vst.msk [vmem:[#allocation2 + $0x60] sm:$0xff] %vm318_vm7, %v307_v48  ;;  %2852 = vmatpush.bf16.msrb.mxu3 %v5437_v40  ;;  %2928 = vmatpush.bf16.msrb.mxu1 %v6141_v32  ;;  %v5302_v32 = vld [vmem:[#allocation5 + $0xdc] sm:$0xf0] }
  0xce   : > { %v722_v49 = vld [vmem:[#allocation2 + $0x70] sm:$0xff]  ;;  %640 = vst.msk [vmem:[#allocation2 + $0x98] sm:$0xff] %vm631_vm3, %v7337_v47  ;;  %2891 = vmatpush.bf16.msrb.mxu0 %v5745_v46 }
  0xcf   : > { %327 = vst.msk [vmem:[#allocation2 + $0x68] sm:$0xff] %vm320_vm8, %v307_v48  ;;  %v6006_v46 = vld [vmem:[#allocation5 + $0x65c] sm:$0xf0] }
  0xd0   : > { %v718_v51 = vld [vmem:[#allocation2 + $0x50] sm:$0xff]  ;;  %435 = vst.msk [vmem:[#allocation2 + $0x68] sm:$0xff] %vm427_vm9, %v7269_v34  ;;  %v716_v34 = vld [vmem:[#allocation2 + $0x40] sm:$0xff] }
  0xd1   : > { %v7346_v52 = vpack.c.bf16 %v722_v49, %v718_v51  ;;  %331 = vst.msk [vmem:[#allocation2 + $0xa0] sm:$0x3] %vm330_vm15, %v311_v43  ;;  %vm591_vm15 = vcmask 785474   ;;  %2853 = vmatpush.bf16.msrb.mxu3 %v5393_v41  ;;  %v6499_v51 = vld [vmem:[#allocation5 + $0x10c] sm:$0xf] }
  0xd2   : > { %333 = vst.msk [vmem:[#allocation2 + $0xa8] sm:$0x3] %vm332_vm10, %v311_v43  ;;  %vm692_vm10 = vcmask 1048322   ;;  %v6686_v43 = vld [vmem:[#allocation5 + $0x6e4] sm:$0xf]  ;;  %v5349_v58 = vor.u32 %v6499_v51, %v5346_v56 }
  0xd3   : > { %2787 = vmatmul.bf16.gmra.mxu2 %v7346_v52  ;;  %440 = vst.msk [vmem:[#allocation2 + $0xa8] sm:$0x3] %vm439_vm11, %v7311_v18  ;;  %v6752_v18 = vld [vmem:[#allocation5 + $0x8f4] sm:$0xf]  ;;  %vm381_vm11 = vcmask 1048258   ;;  %v6097_v55 = vor.u32 %v6686_v43, %v6094_v50 }
  0xd4   : > { %v7355_v16 = vpop.permute.xlu0 %674  ;;  %v720_v59 = vld [vmem:[#allocation2 + $0x60] sm:$0xff]  ;;  %v6361_v25 = vor.u32 %v6752_v18, %v6358_v19  ;;  %v6314_v18 = vld [vmem:[#allocation5 + $0x8c4] sm:$0xf0]  ;;  %v5161_v43 = vld [vmem:[%s7076_s12 + $0x51] ss:$2 sm:$0x3] }
  0xd5   : > { %v7353_v9 = vpop.permute.xlu1 %417  ;;  %v7360_v60 = vpop.permute.xlu2 %678  ;;  %v7362_v61 = vpack.c.bf16 %v720_v59, %v716_v34  ;;  %695 = vst.msk [vmem:[#allocation2 + $0xb8] sm:$0xfc] %vm694_vm13, %v7355_v16  ;;  %v727_v13 = vld [vmem:[#allocation2 + $0x98] sm:$0xff]  ;;  %vm490_vm13 = vcmask 1047938   ;;  %2929 = vmatpush.bf16.msrb.mxu1 %v6097_v55  ;;  %2854 = vmatpush.bf16.msrb.mxu3 %v5349_v58 }
  0xd6   : > { %438 = vst.msk [vmem:[#allocation2 + $0x90] sm:$0xff] %vm429_vm4, %v7353_v9  ;;  %2969 = vmatpush.bf16.msrb.mxu2 %v6361_v25  ;;  %v5159_v59 = vld [vmem:[%s7076_s12 + $0x31] ss:$2 sm:$0xff] }
  0xd7   : > { %8592 = vst [vmem:[#allocation13_spill] sm:$0xff] %v7362_v61  ;;  %v721_v2 = vld [vmem:[#allocation2 + $0x68] sm:$0xff]  ;;  %2711 = vmatmul.bf16.gmra.mxu0 %v7362_v61  ;;  %v268_v37 = vrot.slane %v5159_v59, 6  ;;  %v6730_v59 = vld [vmem:[#allocation5 + $0x844] sm:$0xf] }
  0xd8   : > { %699 = vst.msk [vmem:[#allocation2 + $0xf8] sm:$0xff] %vm631_vm3, %v7360_v60  ;;  %v7367_v45 = vpack.c.bf16 %v721_v2, %v717_v1  ;;  %v7409_v1 = vld [vmem:[%s7076_s12 + $0x41] ss:$2 sm:$0xff] }
  0xd9   : > { %v270_v4 = vrot.slane %v7409_v1, 6  ;;  %v269_v19 = vsel %vm262_vm0, %v266_v11, %v268_v37  ;;  %v6653_v1 = vld [vmem:[#allocation5 + $0x5dc] sm:$0xf] }
  0xda   : > { %2749 = vmatmul.bf16.gmra.mxu1 %v7367_v45  ;;  %284 = vst.msk [vmem:[#allocation2 + $0x100] sm:$0xff] %vm236_vm2, %v269_v19 }
  0xdc   : > { %v473_v15 = vpop.permute.xlu0 %472  ;;  %v731_v21 = vld [vmem:[#allocation2 + $0xb8] sm:$0xff] }
  0xdd   : > { %v527_v14 = vpop.permute.xlu1 %526  ;;  %v7377_v22 = vpop.permute.xlu2 %575  ;;  %v7382_v29 = vpack.c.bf16 %v731_v21, %v727_v13  ;;  %493 = vst.msk [vmem:[#allocation2 + $0xb0] sm:$0xfc] %vm492_vm14, %v473_v15  ;;  %v6587_v21 = vld [vmem:[#allocation5 + $0x3cc] sm:$0xf]  ;;  %vm706_vm14 = vcmask 453632  }
  0xde   : > { %541 = vst.msk [vmem:[#allocation2 + $0x90] sm:$0xff] %vm536_vm5, %v527_v14  ;;  %v271_v14 = vsel %vm262_vm0, %v268_v37, %v270_v4  ;;  %v5701_v25 = vor.u32 %v6587_v21, %v5698_v24  ;;  %v5214_v21 = vld [vmem:[#allocation5 + $0x2c] sm:$0xf0] }
  0xdf   : > { %639 = vst.msk [vmem:[#allocation2 + $0x90] sm:$0xff] %vm629_vm6, %v7337_v47  ;;  %6400 = vmatmul.msk.bf16.gmra.mxu3 %vm631_vm3, %v7382_v29  ;;  %v739_v0 = vld [vmem:[#allocation2 + $0xf8] sm:$0xff] }
  0xe0   : > { %285 = vst.msk [vmem:[#allocation2 + $0x120] sm:$0xff] %vm236_vm2, %v271_v14  ;;  %2892 = vmatpush.bf16.msrb.mxu0 %v5701_v25  ;;  %vm395_vm2 = vcmask 388096  }
  0xe4   : > { %v574_v33 = vpop.permute.xlu0 %573 }
  0xe5   : > { %v309_v17 = vpop.permute.xlu1 %308  ;;  %v368_v35 = vpop.permute.xlu2 %367  ;;  %592 = vst.msk [vmem:[#allocation2 + $0xb0] sm:$0xfc] %vm591_vm15, %v574_v33  ;;  %v6576_v33 = vld [vmem:[#allocation5 + $0x374] sm:$0xf]  ;;  %vm286_vm15 = vcmask 715776  }
  0xe6   : > { %328 = vst.msk [vmem:[#allocation2 + $0x80] sm:$0xff] %vm318_vm7, %v309_v17  ;;  %v726_v53 = vld [vmem:[#allocation2 + $0x90] sm:$0xff] }
  0xe7   : > { %329 = vst.msk [vmem:[#allocation2 + $0x88] sm:$0xff] %vm320_vm8, %v309_v17  ;;  %v5305_v17 = vor.u32 %v6488_v5, %v5302_v32  ;;  %v5918_v32 = vld [vmem:[#allocation5 + $0x5ac] sm:$0xf0] }
  0xe8   : > { %437 = vst.msk [vmem:[#allocation2 + $0x88] sm:$0xff] %vm427_vm9, %v7353_v9 }
  0xe9   : > { %693 = vst.msk [vmem:[#allocation2 + $0xb0] sm:$0xfc] %vm692_vm10, %v7355_v16  ;;  %2855 = vmatpush.bf16.msrb.mxu3 %v5305_v17  ;;  %vm393_vm10 = vcmask 1044160  }
  0xea   : > { %387 = vst.msk [vmem:[#allocation2 + $0xe0] sm:$0xff] %vm318_vm7, %v368_v35 }
  0xeb   : > { %388 = vst.msk [vmem:[#allocation2 + $0xe8] sm:$0xff] %vm320_vm8, %v368_v35  ;;  %v5654_v35 = vld [vmem:[#allocation5 + $0x39c] sm:$0xf0] }
  0xec   : > { %v364_v48 = vpop.permute.xlu0 %363  ;;  %v5657_v8 = vor.u32 %v6576_v33, %v5654_v35 }
  0xed   : > { %v677_v47 = vpop.permute.xlu1 %676  ;;  %v7400_v49 = vpop.permute.xlu2 %478  ;;  %382 = vst.msk [vmem:[#allocation2 + $0xa0] sm:$0xfc] %vm381_vm11, %v364_v48  ;;  %v724_v2 = vld [vmem:[#allocation2 + $0x80] sm:$0xff] }
  0xee   : > { %697 = vst.msk [vmem:[#allocation2 + $0xd8] sm:$0xff] %vm631_vm3, %v677_v47  ;;  %2893 = vmatpush.bf16.msrb.mxu0 %v5657_v8 }
  0xef   : > { %384 = vst.msk [vmem:[#allocation2 + $0xa8] sm:$0xfc] %vm383_vm12, %v364_v48  ;;  %v725_v40 = vld [vmem:[#allocation2 + $0x88] sm:$0xff] }
  0xf0   : > { %v730_v54 = vld [vmem:[#allocation2 + $0xb0] sm:$0xff]  ;;  %491 = vst.msk [vmem:[#allocation2 + $0xa8] sm:$0xfc] %vm490_vm13, %v473_v15  ;;  %v6741_v15 = vld [vmem:[#allocation5 + $0x89c] sm:$0xf] }
  0xf1   : > { %v7402_v57 = vpack.c.bf16 %v730_v54, %v726_v53  ;;  %499 = vst.msk [vmem:[#allocation2 + $0x110] sm:$0xff] %vm429_vm4, %v7400_v49  ;;  %v6317_v20 = vor.u32 %v6741_v15, %v6314_v18  ;;  %v736_v11 = vld [vmem:[#allocation2 + $0xe0] sm:$0xff]  ;;  %v272_v53 = vrot.slane %v5161_v43, 6 }
  0xf3   : > { %2792 = vmatmul.bf16.gmra.mxu2 %v7402_v57  ;;  %v273_v58 = vsel %vm262_vm0, %v270_v4, %v272_v53  ;;  %vm504_vm0 = vcmask 60416  }
  0xf4   : > { %v475_v34 = vpop.permute.xlu0 %474  ;;  %v728_v31 = vld [vmem:[#allocation2 + $0xa0] sm:$0xff]  ;;  %2970 = vmatpush.bf16.msrb.mxu2 %v6317_v20  ;;  %287 = vst.msk [vmem:[#allocation2 + $0x140] sm:$0xf] %vm286_vm15, %v273_v58  ;;  %v6466_v20 = vld [vmem:[#allocation5 + $0x4] sm:$0xf] }
  0xf5   : > { %v735_v9 = vld [vmem:[#allocation2 + $0xd8] sm:$0xff]  ;;  %v477_v16 = vpop.permute.xlu1 %476  ;;  %v7414_v3 = vpop.permute.xlu2 %581  ;;  %v7417_v6 = vpack.c.bf16 %v728_v31, %v724_v2  ;;  %495 = vst.msk [vmem:[#allocation2 + $0xd0] sm:$0xff] %vm429_vm4, %v475_v34  ;;  %v6270_v2 = vld [vmem:[#allocation5 + $0x86c] sm:$0xf0]  ;;  %v6565_v31 = vld [vmem:[#allocation5 + $0x31c] sm:$0xf] }
  0xf6   : > { %v7411_v63 = vpack.c.bf16 %v739_v0, %v735_v9  ;;  %496 = vst.msk [vmem:[#allocation2 + $0xe8] sm:$0xff] %vm427_vm9, %v477_v16  ;;  %v6477_v0 = vld [vmem:[#allocation5 + $0x5c] sm:$0xf]  ;;  %v5258_v9 = vld [vmem:[#allocation5 + $0x84] sm:$0xf0]  ;;  %v6273_v37 = vor.u32 %v6730_v59, %v6270_v2 }
  0xf7   : > { %497 = vst.msk [vmem:[#allocation2 + $0xf0] sm:$0xff] %vm429_vm4, %v477_v16  ;;  %v729_v44 = vld [vmem:[#allocation2 + $0xa8] sm:$0xff]  ;;  %2716 = vmatmul.bf16.gmra.mxu0 %v7417_v6  ;;  %v5880_v58 = vld [vmem:[#allocation5 + $0x530] sm:$0xf] }
  0xf8   : > { %6401 = vmatmul.msk.bf16.gmra.mxu3 %vm631_vm3, %v7411_v63  ;;  %v7423_v13 = vpack.c.bf16 %v729_v44, %v725_v40  ;;  %593 = vst.msk [vmem:[#allocation2 + $0xd0] sm:$0xff] %vm536_vm5, %v7377_v22  ;;  %v6675_v22 = vld [vmem:[#allocation5 + $0x68c] sm:$0xf]  ;;  %v5610_v40 = vld [vmem:[#allocation5 + $0x344] sm:$0xf0]  ;;  %2971 = vmatpush.bf16.msrb.mxu2 %v6273_v37 }
  0xf9   : > { %696 = vst.msk [vmem:[#allocation2 + $0xd0] sm:$0xff] %vm629_vm6, %v677_v47  ;;  %v6053_v62 = vor.u32 %v6675_v22, %v6050_v26  ;;  %v5962_v44 = vld [vmem:[#allocation5 + $0x604] sm:$0xf0]  ;;  %v5613_v18 = vor.u32 %v6565_v31, %v5610_v40  ;;  %v5217_v22 = vor.u32 %v6466_v20, %v5214_v21  ;;  %v6725_v2 = vld [vmem:[#allocation5 + $0x818] sm:$0xf0] }
  0xfa   : > { %2754 = vmatmul.bf16.gmra.mxu1 %v7423_v13  ;;  %v5965_v19 = vor.u32 %v6653_v1, %v5962_v44  ;;  %v5484_v44 = vld [vmem:[#allocation5 + $0x218] sm:$0xf]  ;;  %v6714_v20 = vld [vmem:[#allocation5 + $0x7c0] sm:$0xf0] }
  0xfb   : > { %2930 = vmatpush.bf16.msrb.mxu1 %v6053_v62  ;;  %2894 = vmatpush.bf16.msrb.mxu0 %v5613_v18  ;;  %v5566_v62 = vld [vmem:[#allocation5 + $0x2ec] sm:$0xf0]  ;;  %v6626_v18 = vld [vmem:[#allocation5 + $0x500] sm:$0xf0] }
  0xfc   : > { %v578_v30 = vpop.permute.xlu0 %577 }
  0xfd   : > { %v366_v28 = vpop.permute.xlu1 %365  ;;  %v7439_v7 = vpop.permute.xlu2 %684  ;;  %594 = vst.msk [vmem:[#allocation2 + $0xf0] sm:$0xff] %vm536_vm5, %v578_v30  ;;  %v737_v50 = vld [vmem:[#allocation2 + $0xe8] sm:$0xff]  ;;  %v6554_v30 = vld [vmem:[#allocation5 + $0x2c4] sm:$0xf] }
  0xfe   : > { %385 = vst.msk [vmem:[#allocation2 + $0xc0] sm:$0xff] %vm318_vm7, %v366_v28  ;;  %v5569_v5 = vor.u32 %v6554_v30, %v5566_v62  ;;  %v5440_v30 = vld [vmem:[#allocation5 + $0x1c0] sm:$0xf]  ;;  %v6527_v62 = vld [vmem:[#allocation5 + $0x1e8] sm:$0xf0] }
  0xff   : > { %386 = vst.msk [vmem:[#allocation2 + $0xc8] sm:$0xff] %vm320_vm8, %v366_v28 }
 0x100   : > { %494 = vst.msk [vmem:[#allocation2 + $0xc8] sm:$0xff] %vm427_vm9, %v475_v34  ;;  %v734_v55 = vld [vmem:[#allocation2 + $0xd0] sm:$0xff]  ;;  %v5261_v34 = vor.u32 %v6477_v0, %v5258_v9  ;;  %2895 = vmatpush.bf16.msrb.mxu0 %v5569_v5  ;;  %v6637_v9 = vld [vmem:[#allocation5 + $0x558] sm:$0xf0]  ;;  %v6364_v5 = vld [vmem:[#allocation5 + $0x8f8] sm:$0xf] }
 0x101   : > { %698 = vst.msk [vmem:[#allocation2 + $0xf0] sm:$0xff] %vm629_vm6, %v7360_v60  ;;  %v6009_v60 = vor.u32 %v6664_v36, %v6006_v46  ;;  %v5881_v59 = vor.u32 %v6637_v9, %v5880_v58  ;;  %v6604_v9 = vld [vmem:[#allocation5 + $0x450] sm:$0xf0] }
 0x102   : > { %707 = vst.msk [vmem:[#allocation2 + $0x158] sm:$0xf] %vm706_vm14, %v7439_v7  ;;  %2856 = vmatpush.bf16.msrb.mxu3 %v5261_v34  ;;  %v6232_v34 = vld [vmem:[#allocation5 + $0x7f0] sm:$0xf] }
 0x103   : > { %2931 = vmatpush.bf16.msrb.mxu1 %v6009_v60  ;;  %v6233_v37 = vor.u32 %v6725_v2, %v6232_v34  ;;  %v6100_v34 = vld [vmem:[#allocation5 + $0x6e8] sm:$0xf] }
 0x104   : > { %v681_v42 = vpop.permute.xlu0 %680  ;;  %3040 = vmatpush.bf16.msra.mxu0 %v5881_v59 }
 0x105   : > { %v732_v38 = vld [vmem:[#allocation2 + $0xc0] sm:$0xff]  ;;  %v683_v41 = vpop.permute.xlu1 %682  ;;  %v374_v48 = vpop.permute.xlu2 %373  ;;  %701 = vst.msk [vmem:[#allocation2 + $0x118] sm:$0xff] %vm631_vm3, %v681_v42 }
 0x106   : > { %v7447_v47 = vpack.c.bf16 %v736_v11, %v732_v38  ;;  %703 = vst.msk [vmem:[#allocation2 + $0x138] sm:$0xff] %vm631_vm3, %v683_v41  ;;  %2857 = vmatpush.bf16.msrb.mxu3 %v5217_v22  ;;  %v6642_v11 = vld [vmem:[#allocation5 + $0x584] sm:$0xf]  ;;  %v5528_v38 = vld [vmem:[#allocation5 + $0x270] sm:$0xf] }
 0x107   : > { %v733_v51 = vld [vmem:[#allocation2 + $0xc8] sm:$0xff]  ;;  %396 = vst.msk [vmem:[#allocation2 + $0x148] sm:$0xf] %vm395_vm2, %v374_v48  ;;  %2932 = vmatpush.bf16.msrb.mxu1 %v5965_v19  ;;  %v5921_v33 = vor.u32 %v6642_v11, %v5918_v32  ;;  %v5441_v11 = vor.u32 %v6527_v62, %v5440_v30  ;;  %v6758_v32 = vld [vmem:[#allocation5 + $0x920] sm:$0xf0] }
 0x108   : > { %v7452_v54 = vpack.c.bf16 %v737_v50, %v733_v51  ;;  %v738_v56 = vld [vmem:[#allocation2 + $0xf0] sm:$0xff]  ;;  %2721 = vmatmul.bf16.gmra.mxu0 %v7447_v47  ;;  %394 = vst.msk [vmem:[#allocation2 + $0x140] sm:$0xf] %vm393_vm10, %v374_v48  ;;  %v6188_v19 = vld [vmem:[#allocation5 + $0x798] sm:$0xf] }
 0x109   : > { %v7459_v16 = vpack.c.bf16 %v738_v56, %v734_v55  ;;  %v751_v36 = vld [vmem:[#allocation2 + $0x158] sm:$0xf]  ;;  %v7494_v56 = vld [vmem:[#allocation5 + $0x950] sm:$0xff]  ;;  %v6189_v22 = vor.u32 %v6714_v20, %v6188_v19  ;;  %v6593_v30 = vld [vmem:[#allocation5 + $0x3f8] sm:$0xf0] }
 0x10a   : > { %2759 = vmatmul.bf16.gmra.mxu1 %v7452_v54 }
 0x10b   : > { %2797 = vmatmul.bf16.gmra.mxu2 %v7459_v16  ;;  %2933 = vmatpush.bf16.msrb.mxu1 %v5921_v33  ;;  %v6365_v33 = vor.u32 %v6758_v32, %v6364_v5  ;;  %v6681_v5 = vld [vmem:[#allocation5 + $0x6b8] sm:$0xf0] }
 0x10c   : > { %v481_v15 = vpop.permute.xlu0 %480  ;;  %v743_v24 = vld [vmem:[#allocation2 + $0x118] sm:$0xff] }
 0x10d   : > { %v747_v4 = vld [vmem:[#allocation2 + $0x138] sm:$0xff]  ;;  %v580_v14 = vpop.permute.xlu1 %579  ;;  %501 = vst.msk [vmem:[#allocation2 + $0x130] sm:$0xff] %vm429_vm4, %v481_v15  ;;  %vm597_vm4 = vcmask 781376  }
 0x10e   : > { %595 = vst.msk [vmem:[#allocation2 + $0x110] sm:$0xff] %vm536_vm5, %v580_v14  ;;  %v7464_v25 = vpack.c.bf16 %v747_v4, %v743_v24  ;;  %v6538_v4 = vld [vmem:[#allocation5 + $0x240] sm:$0xf0]  ;;  %v5836_v14 = vld [vmem:[#allocation5 + $0x4d8] sm:$0xf] }
 0x10f   : > { %700 = vst.msk [vmem:[#allocation2 + $0x110] sm:$0xff] %vm629_vm6, %v681_v42  ;;  %v7483_v42 = vpack.c.bf16 %v751_v36, %v751_v36  ;;  %v748_v40 = vld [vmem:[#allocation2 + $0x140] sm:$0xf]  ;;  %3078 = vmatpush.bf16.msra.mxu1 %v6233_v37  ;;  %v5837_v24 = vor.u32 %v6626_v18, %v5836_v14  ;;  %v6144_v36 = vld [vmem:[#allocation5 + $0x740] sm:$0xf] }
 0x110   : > { %596 = vst.msk [vmem:[#allocation2 + $0x130] sm:$0xff] %vm536_vm5, %v7414_v3  ;;  %6402 = vmatmul.msk.bf16.gmra.mxu3 %vm631_vm3, %v7464_v25  ;;  %vm704_vm5 = vcmask 1044224   ;;  %v7501_v21 = vpack.c.bf16 %v748_v40, %v748_v40 }
 0x111   : > { %702 = vst.msk [vmem:[#allocation2 + $0x130] sm:$0xff] %vm629_vm6, %v683_v41  ;;  %v6549_v41 = vld [vmem:[#allocation5 + $0x298] sm:$0xf0]  ;;  %vm502_vm6 = vcmask 1043840   ;;  %3041 = vmatpush.bf16.msra.mxu0 %v5837_v24 }
 0x112   : > { %8594 = vst [vmem:[#allocation15_spill] sm:$0xff] %v7483_v42  ;;  %v5529_v60 = vor.u32 %v6549_v41, %v5528_v38  ;;  %v6703_v38 = vld [vmem:[#allocation5 + $0x768] sm:$0xf0] }
 0x113   : > { %8596 = vst [vmem:[#allocation17_spill] sm:$0xff] %v7501_v21  ;;  %3079 = vmatpush.bf16.msra.mxu1 %v6189_v22 }
 0x114   : > { %v370_v28 = vpop.permute.xlu0 %369  ;;  %3002 = vmatpush.bf16.msra.mxu3 %v5529_v60 }
 0x115   : > { %v372_v26 = vpop.permute.xlu1 %371  ;;  %389 = vst.msk [vmem:[#allocation2 + $0x100] sm:$0xff] %vm318_vm7, %v370_v28 }
 0x116   : > { %391 = vst.msk [vmem:[#allocation2 + $0x120] sm:$0xff] %vm318_vm7, %v372_v26  ;;  %v742_v17 = vld [vmem:[#allocation2 + $0x110] sm:$0xff]  ;;  %vm4792_vm7 = vcmask 1045504  }
 0x117   : > { %392 = vst.msk [vmem:[#allocation2 + $0x128] sm:$0xff] %vm320_vm8, %v372_v26 }
 0x118   : > { %500 = vst.msk [vmem:[#allocation2 + $0x128] sm:$0xff] %vm427_vm9, %v481_v15  ;;  %v746_v3 = vld [vmem:[#allocation2 + $0x130] sm:$0xff]  ;;  %v5485_v15 = vor.u32 %v6538_v4, %v5484_v44  ;;  %v6505_v44 = vld [vmem:[#allocation5 + $0x138] sm:$0xf0] }
 0x119   : > { %v7477_v35 = vpack.c.bf16 %v746_v3, %v742_v17  ;;  %390 = vst.msk [vmem:[#allocation2 + $0x108] sm:$0xff] %vm320_vm8, %v370_v28  ;;  %v5792_v17 = vld [vmem:[#allocation5 + $0x480] sm:$0xf]  ;;  %v6615_v3 = vld [vmem:[#allocation5 + $0x4a8] sm:$0xf0]  ;;  %vm5053_vm8 = vcmask 254976  }
 0x11a   : > { %498 = vst.msk [vmem:[#allocation2 + $0x108] sm:$0xff] %vm427_vm9, %v7400_v49  ;;  %3003 = vmatpush.bf16.msra.mxu3 %v5485_v15  ;;  %v5793_v41 = vor.u32 %v6615_v3, %v5792_v17  ;;  %v6320_v4 = vld [vmem:[#allocation5 + $0x8a0] sm:$0xf]  ;;  %v6747_v15 = vld [vmem:[#allocation5 + $0x8c8] sm:$0xf0] }
 0x11b   : > { %8593 = vst [vmem:[#allocation14_spill] sm:$0xff] %v7477_v35  ;;  %2802 = vmatmul.bf16.gmra.mxu2 %v7477_v35  ;;  %v6321_v19 = vor.u32 %v6747_v15, %v6320_v4  ;;  %v6571_v4 = vld [vmem:[#allocation5 + $0x348] sm:$0xf0]  ;;  %v5968_v15 = vld [vmem:[#allocation5 + $0x5e0] sm:$0xf] }
 0x11c   : > { %v483_v8 = vpop.permute.xlu0 %482  ;;  %v740_v50 = vld [vmem:[#allocation2 + $0x100] sm:$0xff]  ;;  %3042 = vmatpush.bf16.msra.mxu0 %v5793_v41 }
 0x11d   : > { %v584_v46 = vpop.permute.xlu1 %583  ;;  %v744_v48 = vld [vmem:[#allocation2 + $0x120] sm:$0xff]  ;;  %505 = vst.msk [vmem:[#allocation2 + $0x150] sm:$0xf] %vm504_vm0, %v483_v8 }
 0x11e   : > { %598 = vst.msk [vmem:[#allocation2 + $0x150] sm:$0xf] %vm597_vm4, %v584_v46  ;;  %v7486_v49 = vpack.c.bf16 %v744_v48, %v740_v50  ;;  %3004 = vmatpush.bf16.msra.mxu3 %v5441_v11  ;;  %v6516_v50 = vld [vmem:[#allocation5 + $0x190] sm:$0xf0]  ;;  %v6056_v11 = vld [vmem:[#allocation5 + $0x690] sm:$0xf] }
 0x11f   : > { %v745_v43 = vld [vmem:[#allocation2 + $0x128] sm:$0xff]  ;;  %705 = vst.msk [vmem:[#allocation2 + $0x150] sm:$0xf] %vm704_vm5, %v7439_v7  ;;  %v2032_v7 = vunpack.c.l.b16 %v7494_v56  ;;  %v6057_v17 = vor.u32 %v6681_v5, %v6056_v11  ;;  %v6472_v11 = vld [vmem:[#allocation5 + $0x30] sm:$0xf0] }
 0x120   : > { %503 = vst.msk [vmem:[#allocation2 + $0x148] sm:$0xf] %vm502_vm6, %v483_v8  ;;  %6403 = vmatmul.msk.bf16.gmra.mxu3 %vm631_vm3, %v7483_v42  ;;  %2726 = vmatmul.bf16.gmra.mxu0 %v7486_v49  ;;  %v6145_v8 = vor.u32 %v6703_v38, %v6144_v36 }
 0x121   : > { %v741_v51 = vld [vmem:[#allocation2 + $0x108] sm:$0xff]  ;;  %v2340_v31 = vpack.c.b16 %v2032_v7, %v2032_v7  ;;  %v5748_v7 = vld [vmem:[#allocation5 + $0x428] sm:$0xf] }
 0x122   : > { %v7490_v53 = vpack.c.bf16 %v745_v43, %v741_v51  ;;  %3080 = vmatpush.bf16.msra.mxu1 %v6145_v8  ;;  %v5396_v43 = vld [vmem:[#allocation5 + $0x168] sm:$0xf]  ;;  %v5749_v2 = vor.u32 %v6604_v9, %v5748_v7  ;;  %v5264_v9 = vld [vmem:[#allocation5 + $0x60] sm:$0xf] }
 0x123   : > { %v2672_v1 = vsel %vm2664_vm1, %v2340_v31, 0  ;;  %v6692_v31 = vld [vmem:[#allocation5 + $0x710] sm:$0xf0] }
 0x124   : > { %2764 = vmatmul.bf16.gmra.mxu1 %v7490_v53  ;;  %3120 = vmatpush.bf16.msra.mxu2 %v2672_v1  ;;  %v6101_v40 = vor.u32 %v6692_v31, %v6100_v34  ;;  %v5352_v1 = vld [vmem:[#allocation5 + $0x110] sm:$0xf]  ;;  %v6483_v34 = vld [vmem:[#allocation5 + $0x88] sm:$0xf0]  ;;  %v6276_v31 = vld [vmem:[#allocation5 + $0x848] sm:$0xf] }
 0x125   : > { %3043 = vmatpush.bf16.msra.mxu0 %v5749_v2  ;;  %v5353_v14 = vor.u32 %v6505_v44, %v5352_v1  ;;  %v5616_v1 = vld [vmem:[#allocation5 + $0x320] sm:$0xf] }
 0x126   : > { %v750_v55 = vld [vmem:[#allocation2 + $0x150] sm:$0xf]  ;;  %3081 = vmatpush.bf16.msra.mxu1 %v6101_v40  ;;  %v6736_v40 = vld [vmem:[#allocation5 + $0x870] sm:$0xf0] }
 0x127   : > { %v7496_v0 = vpack.c.bf16 %v750_v55, %v750_v55  ;;  %v749_v26 = vld [vmem:[#allocation2 + $0x148] sm:$0xf]  ;;  %v5397_v55 = vor.u32 %v6516_v50, %v5396_v43  ;;  %v6582_v50 = vld [vmem:[#allocation5 + $0x3a0] sm:$0xf0]  ;;  %v6277_v44 = vor.u32 %v6736_v40, %v6276_v31 }
 0x128   : > { %v7504_v28 = vpack.c.bf16 %v749_v26, %v749_v26  ;;  %3121 = vmatpush.bf16.msra.mxu2 %v6365_v33  ;;  %v5704_v26 = vld [vmem:[#allocation5 + $0x3d0] sm:$0xf]  ;;  %v5660_v43 = vld [vmem:[#allocation5 + $0x378] sm:$0xf] }
 0x129   : > { %8595 = vst [vmem:[#allocation16_spill] sm:$0xff] %v7496_v0  ;;  %3005 = vmatpush.bf16.msra.mxu3 %v5397_v55  ;;  %v5705_v62 = vor.u32 %v6593_v30, %v5704_v26  ;;  %v6012_v55 = vld [vmem:[#allocation5 + $0x638] sm:$0xf] }
 0x12a   : > { %8597 = vst [vmem:[#allocation18_spill] sm:$0xff] %v7504_v28  ;;  %3082 = vmatpush.bf16.msra.mxu1 %v6057_v17 }
 0x12b   : > { %2807 = vmatmul.bf16.gmra.mxu2 %v7496_v0  ;;  %3044 = vmatpush.bf16.msra.mxu0 %v5705_v62  ;;  %v5220_v62 = vld [vmem:[#allocation5 + $0x8] sm:$0xf] }
 0x12c   : > { %3122 = vmatpush.bf16.msra.mxu2 %v6321_v19  ;;  %v6659_v19 = vld [vmem:[#allocation5 + $0x608] sm:$0xf0] }
 0x12d   : > { %3006 = vmatpush.bf16.msra.mxu3 %v5353_v14  ;;  %v5617_v14 = vor.u32 %v6571_v4, %v5616_v1  ;;  %v5969_v26 = vor.u32 %v6659_v19, %v5968_v15 }
 0x130   : > { %2858 = vmatmul.bf16.vlgmr.msrb.gmra.mxu3 %v7316_v23  ;;  %2731 = vmatmul.bf16.gmra.mxu0 %v7501_v21 }
 0x131   : > { %3123 = vmatpush.bf16.msra.mxu2 %v6277_v44 }
 0x134   : > { %2769 = vmatmul.bf16.gmra.mxu1 %v7504_v28 }
 0x13a   : > { %v2821_v59 = vpop.f32.mrf.mxu3 }
 0x13b   : > { %6404 = vmatmul.msk.bf16.vlgmr.msrb.gmra.mxu2 %vm631_vm3, %v7297_v10 }
 0x13d   : > { %v2707_v46 = vpop.f32.mrf.mxu0  ;;  %v2783_v51 = vpop.f32.mrf.mxu2 }
 0x140   : > { %2863 = vmatmul.bf16.gmra.mxu3 %v7362_v61  ;;  %2896 = vmatmul.bf16.vlgmr.msrb.gmra.mxu0 %v7319_v27 }
 0x142   : > { %v2745_v60 = vpop.f32.mrf.mxu1  ;;  %v7522_v24 = vpop.f32.mrf.mxu3 }
 0x143   : > { %v2746_v48 = vadd.f32 %v2745_v60, %v2707_v46  ;;  %v5308_v46 = vld [vmem:[#allocation5 + $0xb8] sm:$0xf]  ;;  %v6494_v60 = vld [vmem:[#allocation5 + $0xe0] sm:$0xf0] }
 0x144   : > { %2934 = vmatmul.bf16.vlgmr.msrb.gmra.mxu1 %v7304_v12 }
 0x145   : > { %v2784_v58 = vadd.f32 %v2783_v51, %v2746_v48  ;;  %v7517_v18 = vpop.f32.mrf.mxu0  ;;  %v7524_v22 = vpop.f32.mrf.mxu2  ;;  %v5309_v48 = vor.u32 %v6494_v60, %v5308_v46  ;;  %v5661_v51 = vor.u32 %v6582_v50, %v5660_v43  ;;  %v5572_v60 = vld [vmem:[#allocation5 + $0x2c8] sm:$0xf] }
 0x146   : > { %v5924_v43 = vld [vmem:[#allocation5 + $0x588] sm:$0xf] }
 0x147   : > { %v7513_v37 = vadd.f32 %v2821_v59, %v2784_v58  ;;  %3007 = vmatpush.bf16.msra.mxu3 %v5309_v48  ;;  %3045 = vmatpush.bf16.msra.mxu0 %v5661_v51  ;;  %v6670_v58 = vld [vmem:[#allocation5 + $0x660] sm:$0xf0]  ;;  %v5265_v59 = vor.u32 %v6483_v34, %v5264_v9  ;;  %v6560_v48 = vld [vmem:[#allocation5 + $0x2f0] sm:$0xf0]  ;;  %v5530_v9 = vld [vmem:[#allocation5 + $0x29c] sm:$0xf0] }
 0x148   : > { %v6013_v7 = vor.u32 %v6670_v58, %v6012_v55  ;;  %v5573_v51 = vor.u32 %v6560_v48, %v5572_v60  ;;  %v6648_v55 = vld [vmem:[#allocation5 + $0x5b0] sm:$0xf0] }
 0x149   : > { %v5925_v58 = vor.u32 %v6648_v55, %v5924_v43  ;;  %v5838_v55 = vld [vmem:[#allocation5 + $0x504] sm:$0xf0] }
 0x14a   : > { %v7519_v20 = vpop.f32.mrf.mxu1  ;;  %v2826_v41 = vpop.f32.mrf.mxu3  ;;  %3083 = vmatpush.bf16.msra.mxu1 %v6013_v7  ;;  %v6544_v7 = vld [vmem:[#allocation5 + $0x274] sm:$0xf] }
 0x14b   : > { %6405 = vmatmul.msk.bf16.gmra.mxu2 %vm631_vm3, %v7326_v39  ;;  %3008 = vmatpush.bf16.msra.mxu3 %v5265_v59  ;;  %v5533_v59 = vor.u32 %v6544_v7, %v5530_v9 }
 0x14c   : > { %3046 = vmatpush.bf16.msra.mxu0 %v5617_v14 }
 0x14e   : > { %3084 = vmatpush.bf16.msra.mxu1 %v5969_v26  ;;  %v2033_v26 = vunpack.c.h.b16 %v7494_v56  ;;  %v5486_v56 = vld [vmem:[#allocation5 + $0x244] sm:$0xf0] }
 0x150   : > { %2868 = vmatmul.bf16.gmra.mxu3 %v7417_v6  ;;  %2901 = vmatmul.bf16.gmra.mxu0 %v7367_v45 }
 0x151   : > { %3047 = vmatpush.bf16.msra.mxu0 %v5573_v51 }
 0x152   : > { %v7535_v2 = vpop.f32.mrf.mxu3  ;;  %3085 = vmatpush.bf16.msra.mxu1 %v5925_v58 }
 0x154   : > { %2939 = vmatmul.bf16.gmra.mxu1 %v7346_v52  ;;  %v2712_v32 = vpop.f32.mrf.mxu0 }
 0x156   : > { %v2788_v36 = vpop.f32.mrf.mxu2 }
 0x157   : > { %v2750_v33 = vpop.f32.mrf.mxu1 }
 0x158   : > { %v2751_v3 = vadd.f32 %v2750_v33, %v2712_v32  ;;  %v5221_v32 = vor.u32 %v6472_v11, %v5220_v62  ;;  %v6632_v62 = vld [vmem:[#allocation5 + $0x534] sm:$0xf]  ;;  %v5882_v11 = vld [vmem:[#allocation5 + $0x55c] sm:$0xf0] }
 0x15a   : > { %v2789_v38 = vadd.f32 %v2788_v36, %v2751_v3  ;;  %3009 = vmatpush.bf16.msra.mxu3 %v5221_v32  ;;  %v6720_v32 = vld [vmem:[#allocation5 + $0x7f4] sm:$0xf] }
 0x15b   : > { %6406 = vmatmul.msk.bf16.gmra.mxu2 %vm631_vm3, %v7382_v29 }
 0x15c   : > { %v7530_v8 = vadd.f32 %v2826_v41, %v2789_v38  ;;  %v7539_v30 = vpop.f32.mrf.mxu0 }
 0x15e   : > { %v7541_v5 = vpop.f32.mrf.mxu2  ;;  %3154 = vmatpush.bf16.msrb.mxu3 %v5533_v59 }
 0x15f   : > { %v7543_v17 = vpop.f32.mrf.mxu1 }
 0x160   : > { %2873 = vmatmul.bf16.gmra.mxu3 %v7447_v47  ;;  %2906 = vmatmul.bf16.gmra.mxu0 %v7423_v13 }
 0x162   : > { %v2831_v33 = vpop.f32.mrf.mxu3 }
 0x164   : > { %2944 = vmatmul.bf16.gmra.mxu1 %v7402_v57 }
 0x16a   : > { %v2833_v46 = vpop.f32.mrf.mxu3 }
 0x16b   : > { %6407 = vmatmul.msk.bf16.gmra.mxu2 %vm631_vm3, %v7411_v63 }
 0x170   : > { %2878 = vmatmul.bf16.gmra.mxu3 %v7486_v49  ;;  %2911 = vmatmul.bf16.gmra.mxu0 %v7452_v54 }
 0x174   : > { %2949 = vmatmul.bf16.gmra.mxu1 %v7459_v16  ;;  %v2717_v3 = vpop.f32.mrf.mxu0 }
 0x176   : > { %v2793_v36 = vpop.f32.mrf.mxu2 }
 0x177   : > { %v2755_v38 = vpop.f32.mrf.mxu1 }
 0x178   : > { %v2756_v41 = vadd.f32 %v2755_v38, %v2717_v3  ;;  %v5885_v3 = vor.u32 %v6632_v62, %v5882_v11  ;;  %v6522_v62 = vld [vmem:[#allocation5 + $0x1c4] sm:$0xf] }
 0x17a   : > { %v2794_v50 = vadd.f32 %v2793_v36, %v2756_v41  ;;  %v6234_v36 = vld [vmem:[#allocation5 + $0x81c] sm:$0xf0]  ;;  %v2341_v41 = vpack.c.b16 %v2033_v26, %v2033_v26  ;;  %3192 = vmatpush.bf16.msrb.mxu0 %v5885_v3  ;;  %v6190_v26 = vld [vmem:[#allocation5 + $0x7c4] sm:$0xf0] }
 0x17b   : > { %6408 = vmatmul.msk.bf16.gmra.mxu2 %vm631_vm3, %v7464_v25  ;;  %v2836_v44 = vpop.f32.mrf.mxu3  ;;  %v6237_v60 = vor.u32 %v6720_v32, %v6234_v36 }
 0x17c   : > { %v7550_v34 = vadd.f32 %v2831_v33, %v2794_v50  ;;  %v2719_v31 = vpop.f32.mrf.mxu0  ;;  %v2675_v48 = vsel %vm2664_vm1, %v2341_v41, 0  ;;  %v6621_v50 = vld [vmem:[#allocation5 + $0x4dc] sm:$0xf]  ;;  %v6610_v41 = vld [vmem:[#allocation5 + $0x484] sm:$0xf] }
 0x17d   : > { %3230 = vmatpush.bf16.msrb.mxu1 %v6237_v60  ;;  %3272 = vmatpush.bf16.msrb.mxu2 %v2675_v48  ;;  %v5841_v7 = vor.u32 %v6621_v50, %v5838_v55  ;;  %v5794_v48 = vld [vmem:[#allocation5 + $0x4ac] sm:$0xf0]  ;;  %v6698_v50 = vld [vmem:[#allocation5 + $0x744] sm:$0xf] }
 0x17e   : > { %v2795_v4 = vpop.f32.mrf.mxu2 }
 0x17f   : > { %v2757_v40 = vpop.f32.mrf.mxu1  ;;  %3193 = vmatpush.bf16.msrb.mxu0 %v5841_v7 }
 0x180   : > { %v2758_v1 = vadd.f32 %v2757_v40, %v2719_v31  ;;  %2883 = vmatmul.bf16.gmra.mxu3 %v7501_v21  ;;  %2916 = vmatmul.bf16.gmra.mxu0 %v7490_v53 }
 0x182   : > { %v2796_v14 = vadd.f32 %v2795_v4, %v2758_v1 }
 0x183   : > { %v2838_v43 = vpop.f32.mrf.mxu3 }
 0x184   : > { %2954 = vmatmul.bf16.gmra.mxu1 %v7477_v35  ;;  %v7555_v15 = vadd.f32 %v2833_v46, %v2796_v14  ;;  %v6533_v46 = vld [vmem:[#allocation5 + $0x21c] sm:$0xf] }
 0x185   : > { %v2722_v19 = vpop.f32.mrf.mxu0  ;;  %v5489_v51 = vor.u32 %v6533_v46, %v5486_v56  ;;  %v5797_v56 = vor.u32 %v6610_v41, %v5794_v48  ;;  %v6687_v48 = vld [vmem:[#allocation5 + $0x6ec] sm:$0xf] }
 0x187   : > { %v2760_v33 = vpop.f32.mrf.mxu1  ;;  %3155 = vmatpush.bf16.msrb.mxu3 %v5489_v51  ;;  %v6146_v51 = vld [vmem:[#allocation5 + $0x76c] sm:$0xf0]  ;;  %3194 = vmatpush.bf16.msrb.mxu0 %v5797_v56  ;;  %v6102_v56 = vld [vmem:[#allocation5 + $0x714] sm:$0xf0] }
 0x188   : > { %v2761_v38 = vadd.f32 %v2760_v33, %v2722_v19  ;;  %v6709_v19 = vld [vmem:[#allocation5 + $0x79c] sm:$0xf]  ;;  %v5442_v33 = vld [vmem:[#allocation5 + $0x1ec] sm:$0xf0]  ;;  %v6149_v55 = vor.u32 %v6698_v50, %v6146_v51  ;;  %v6500_v50 = vld [vmem:[#allocation5 + $0x114] sm:$0xf]  ;;  %v6105_v51 = vor.u32 %v6687_v48, %v6102_v56 }
 0x189   : > { %v6193_v32 = vor.u32 %v6709_v19, %v6190_v26  ;;  %v5445_v3 = vor.u32 %v6522_v62, %v5442_v33  ;;  %v6599_v19 = vld [vmem:[#allocation5 + $0x42c] sm:$0xf]  ;;  %v5750_v62 = vld [vmem:[#allocation5 + $0x454] sm:$0xf0] }
 0x18a   : > { %v5753_v33 = vor.u32 %v6599_v19, %v5750_v62  ;;  %v6742_v19 = vld [vmem:[#allocation5 + $0x8a4] sm:$0xf]  ;;  %v6588_v62 = vld [vmem:[#allocation5 + $0x3d4] sm:$0xf] }
 0x18b   : > { %6409 = vmatmul.msk.bf16.gmra.mxu2 %vm631_vm3, %v7483_v42  ;;  %3231 = vmatpush.bf16.msrb.mxu1 %v6193_v32 }
 0x18c   : > { %3156 = vmatpush.bf16.msrb.mxu3 %v5445_v3  ;;  %3195 = vmatpush.bf16.msrb.mxu0 %v5753_v33  ;;  %v5706_v33 = vld [vmem:[#allocation5 + $0x3fc] sm:$0xf0] }
 0x18d   : > { %v2724_v31 = vpop.f32.mrf.mxu0 }
 0x18e   : > { %v2798_v58 = vpop.f32.mrf.mxu2 }
 0x18f   : > { %v2799_v9 = vadd.f32 %v2798_v58, %v2761_v38  ;;  %v2762_v40 = vpop.f32.mrf.mxu1  ;;  %v6366_v38 = vld [vmem:[#allocation5 + $0x924] sm:$0xf0]  ;;  %3232 = vmatpush.bf16.msrb.mxu1 %v6149_v55  ;;  %v5354_v55 = vld [vmem:[#allocation5 + $0x13c] sm:$0xf0] }
 0x190   : > { %3010 = vmatmul.bf16.vlgmr.msra.gmra.mxu3 %v7316_v23  ;;  %2921 = vmatmul.bf16.gmra.mxu0 %v7504_v28  ;;  %v2763_v4 = vadd.f32 %v2762_v40, %v2724_v31 }
 0x191   : > { %v7562_v59 = vadd.f32 %v2836_v44, %v2799_v9  ;;  %v6753_v44 = vld [vmem:[#allocation5 + $0x8fc] sm:$0xf] }
 0x192   : > { %v6369_v60 = vor.u32 %v6753_v44, %v6366_v38 }
 0x193   : > { %v2841_v1 = vpop.f32.mrf.mxu3  ;;  %3233 = vmatpush.bf16.msrb.mxu1 %v6105_v51  ;;  %v6489_v51 = vld [vmem:[#allocation5 + $0xbc] sm:$0xf] }
 0x194   : > { %2959 = vmatmul.bf16.gmra.mxu1 %v7496_v0  ;;  %3273 = vmatpush.bf16.msrb.mxu2 %v6369_v60 }
 0x196   : > { %v2800_v14 = vpop.f32.mrf.mxu2 }
 0x197   : > { %v2801_v11 = vadd.f32 %v2800_v14, %v2763_v4  ;;  %v6511_v4 = vld [vmem:[#allocation5 + $0x16c] sm:$0xf]  ;;  %v5398_v14 = vld [vmem:[#allocation5 + $0x194] sm:$0xf0] }
 0x198   : > { %v5401_v26 = vor.u32 %v6511_v4, %v5398_v14 }
 0x199   : > { %v7566_v36 = vadd.f32 %v2838_v43, %v2801_v11 }
 0x19a   : > { %3157 = vmatpush.bf16.msrb.mxu3 %v5401_v26  ;;  %v6322_v26 = vld [vmem:[#allocation5 + $0x8cc] sm:$0xf0] }
 0x19b   : > { %6410 = vmatmul.msk.bf16.vlgmr.msra.gmra.mxu2 %vm631_vm3, %v7297_v10  ;;  %v2843_v46 = vpop.f32.mrf.mxu3 }
 0x19d   : > { %v2727_v43 = vpop.f32.mrf.mxu0 }
 0x19e   : > { %v2803_v58 = vpop.f32.mrf.mxu2 }
 0x1a0   : > { %3015 = vmatmul.bf16.gmra.mxu3 %v7362_v61  ;;  %3048 = vmatmul.bf16.vlgmr.msra.gmra.mxu0 %v7319_v27 }
 0x1a1   : > { %v2765_v7 = vpop.f32.mrf.mxu1 }
 0x1a2   : > { %v2766_v9 = vadd.f32 %v2765_v7, %v2727_v43 }
 0x1a3   : > { %v2846_v31 = vpop.f32.mrf.mxu3 }
 0x1a4   : > { %v2804_v40 = vadd.f32 %v2803_v58, %v2766_v9  ;;  %3086 = vmatmul.bf16.vlgmr.msra.gmra.mxu1 %v7304_v12 }
 0x1a5   : > { %v2729_v3 = vpop.f32.mrf.mxu0 }
 0x1a6   : > { %v7573_v11 = vadd.f32 %v2841_v1, %v2804_v40  ;;  %v2805_v32 = vpop.f32.mrf.mxu2  ;;  %v5357_v1 = vor.u32 %v6500_v50, %v5354_v55  ;;  %v5310_v55 = vld [vmem:[#allocation5 + $0xe4] sm:$0xf0] }
 0x1a8   : > { %3158 = vmatpush.bf16.msrb.mxu3 %v5357_v1  ;;  %v5313_v1 = vor.u32 %v6489_v51, %v5310_v55 }
 0x1a9   : > { %v2767_v44 = vpop.f32.mrf.mxu1 }
 0x1aa   : > { %v2768_v38 = vadd.f32 %v2767_v44, %v2729_v3  ;;  %v6058_v3 = vld [vmem:[#allocation5 + $0x6bc] sm:$0xf0] }
 0x1ab   : > { %6411 = vmatmul.msk.bf16.gmra.mxu2 %vm631_vm3, %v7326_v39  ;;  %v2848_v41 = vpop.f32.mrf.mxu3 }
 0x1ac   : > { %v2806_v60 = vadd.f32 %v2805_v32, %v2768_v38  ;;  %v6325_v32 = vor.u32 %v6742_v19, %v6322_v26  ;;  %v5709_v41 = vor.u32 %v6588_v62, %v5706_v33  ;;  %3159 = vmatpush.bf16.msrb.mxu3 %v5313_v1  ;;  %v6665_v33 = vld [vmem:[#allocation5 + $0x63c] sm:$0xf] }
 0x1ad   : > { %v2732_v7 = vpop.f32.mrf.mxu0 }
 0x1ae   : > { %v2808_v58 = vpop.f32.mrf.mxu2  ;;  %v7577_v43 = vadd.f32 %v2843_v46, %v2806_v60  ;;  %v6676_v46 = vld [vmem:[#allocation5 + $0x694] sm:$0xf]  ;;  %3274 = vmatpush.bf16.msrb.mxu2 %v6325_v32  ;;  %3196 = vmatpush.bf16.msrb.mxu0 %v5709_v41  ;;  %v5266_v41 = vld [vmem:[#allocation5 + $0x8c] sm:$0xf0] }
 0x1af   : > { %v6061_v60 = vor.u32 %v6676_v46, %v6058_v3  ;;  %v6014_v46 = vld [vmem:[#allocation5 + $0x664] sm:$0xf0]  ;;  %v6478_v3 = vld [vmem:[#allocation5 + $0x64] sm:$0xf] }
 0x1b0   : > { %3020 = vmatmul.bf16.gmra.mxu3 %v7417_v6  ;;  %3053 = vmatmul.bf16.gmra.mxu0 %v7367_v45 }
 0x1b1   : > { %v2770_v9 = vpop.f32.mrf.mxu1  ;;  %3234 = vmatpush.bf16.msrb.mxu1 %v6061_v60 }
 0x1b2   : > { %v2771_v40 = vadd.f32 %v2770_v9, %v2732_v7  ;;  %v5662_v7 = vld [vmem:[#allocation5 + $0x3a4] sm:$0xf0] }
 0x1b3   : > { %v2859_v4 = vpop.f32.mrf.mxu3 }
 0x1b4   : > { %v2809_v14 = vadd.f32 %v2808_v58, %v2771_v40  ;;  %3091 = vmatmul.bf16.gmra.mxu1 %v7346_v52  ;;  %v6577_v58 = vld [vmem:[#allocation5 + $0x37c] sm:$0xf] }
 0x1b5   : > { %v2734_v48 = vpop.f32.mrf.mxu0 }
 0x1b6   : > { %v7582_v44 = vadd.f32 %v2846_v31, %v2809_v14  ;;  %v2810_v38 = vpop.f32.mrf.mxu2  ;;  %v5665_v31 = vor.u32 %v6577_v58, %v5662_v7  ;;  %v5269_v48 = vor.u32 %v6478_v3, %v5266_v41  ;;  %v6731_v7 = vld [vmem:[#allocation5 + $0x84c] sm:$0xf] }
 0x1b7   : > { %v6017_v38 = vor.u32 %v6665_v33, %v6014_v46 }
 0x1b8   : > { %3197 = vmatpush.bf16.msrb.mxu0 %v5665_v31  ;;  %3160 = vmatpush.bf16.msrb.mxu3 %v5269_v48  ;;  %v6566_v31 = vld [vmem:[#allocation5 + $0x324] sm:$0xf] }
 0x1b9   : > { %v2772_v56 = vpop.f32.mrf.mxu1  ;;  %3235 = vmatpush.bf16.msrb.mxu1 %v6017_v38  ;;  %v5222_v38 = vld [vmem:[#allocation5 + $0x34] sm:$0xf0] }
 0x1bb   : > { %6412 = vmatmul.msk.bf16.gmra.mxu2 %vm631_vm3, %v7382_v29  ;;  %v2861_v50 = vpop.f32.mrf.mxu3 }
 0x1bd   : > { %v2897_v40 = vpop.f32.mrf.mxu0 }
 0x1be   : > { %v2973_v9 = vpop.f32.mrf.mxu2  ;;  %v2898_v14 = vadd.f32 %v2897_v40, %v2859_v4 }
 0x1c0   : > { %3025 = vmatmul.bf16.gmra.mxu3 %v7447_v47  ;;  %3058 = vmatmul.bf16.gmra.mxu0 %v7423_v13 }
 0x1c1   : > { %v2935_v19 = vpop.f32.mrf.mxu1 }
 0x1c2   : > { %v2936_v26 = vadd.f32 %v2935_v19, %v2898_v14  ;;  %v5618_v14 = vld [vmem:[#allocation5 + $0x34c] sm:$0xf0]  ;;  %v6654_v19 = vld [vmem:[#allocation5 + $0x5e4] sm:$0xf] }
 0x1c3   : > { %v2864_v62 = vpop.f32.mrf.mxu3  ;;  %v5621_v46 = vor.u32 %v6566_v31, %v5618_v14 }
 0x1c4   : > { %v7588_v32 = vadd.f32 %v2973_v9, %v2936_v26  ;;  %3096 = vmatmul.bf16.gmra.mxu1 %v7402_v57  ;;  %v6278_v9 = vld [vmem:[#allocation5 + $0x874] sm:$0xf0]  ;;  %v5970_v26 = vld [vmem:[#allocation5 + $0x60c] sm:$0xf0] }
 0x1c5   : > { %v2899_v4 = vpop.f32.mrf.mxu0  ;;  %v6281_v40 = vor.u32 %v6731_v7, %v6278_v9  ;;  %v5973_v3 = vor.u32 %v6654_v19, %v5970_v26  ;;  %3198 = vmatpush.bf16.msrb.mxu0 %v5621_v46  ;;  %v6555_v7 = vld [vmem:[#allocation5 + $0x2cc] sm:$0xf]  ;;  %v5574_v9 = vld [vmem:[#allocation5 + $0x2f4] sm:$0xf0] }
 0x1c6   : > { %8598 = vst [vmem:[#allocation19_spill] sm:$0xff] %v7588_v32  ;;  %v2975_v60 = vpop.f32.mrf.mxu2  ;;  %v2900_v56 = vadd.f32 %v2899_v4, %v2861_v50  ;;  %v6467_v50 = vld [vmem:[#allocation5 + $0xc] sm:$0xf]  ;;  %v5577_v31 = vor.u32 %v6555_v7, %v5574_v9 }
 0x1c7   : > { %3275 = vmatpush.bf16.msrb.mxu2 %v6281_v40  ;;  %v5225_v48 = vor.u32 %v6467_v50, %v5222_v38  ;;  %3236 = vmatpush.bf16.msrb.mxu1 %v5973_v3  ;;  %v6643_v50 = vld [vmem:[#allocation5 + $0x58c] sm:$0xf]  ;;  %v5536_v38 = vld [vmem:[#allocation5 + $0x278] sm:$0xf] }
 0x1c9   : > { %v2937_v51 = vpop.f32.mrf.mxu1  ;;  %3161 = vmatpush.bf16.msrb.mxu3 %v5225_v48  ;;  %3199 = vmatpush.bf16.msrb.mxu0 %v5577_v31  ;;  %v6550_v48 = vld [vmem:[#allocation5 + $0x2a0] sm:$0xf0] }
 0x1ca   : > { %v2938_v55 = vadd.f32 %v2937_v51, %v2900_v56 }
 0x1cb   : > { %6413 = vmatmul.msk.bf16.gmra.mxu2 %vm631_vm3, %v7411_v63  ;;  %v2866_v58 = vpop.f32.mrf.mxu3 }
 0x1cc   : > { %v7593_v1 = vadd.f32 %v2975_v60, %v2938_v55 }
 0x1cd   : > { %v2902_v41 = vpop.f32.mrf.mxu0 }
 0x1ce   : > { %8599 = vst [vmem:[#allocation20_spill] sm:$0xff] %v7593_v1  ;;  %v2978_v33 = vpop.f32.mrf.mxu2  ;;  %v2903_v4 = vadd.f32 %v2902_v41, %v2864_v62 }
 0x1d0   : > { %3030 = vmatmul.bf16.gmra.mxu3 %v7486_v49  ;;  %3063 = vmatmul.bf16.gmra.mxu0 %v7452_v54 }
 0x1d1   : > { %v2940_v60 = vpop.f32.mrf.mxu1 }
 0x1d2   : > { %v2941_v56 = vadd.f32 %v2940_v60, %v2903_v4  ;;  %v5537_v60 = vor.u32 %v6550_v48, %v5536_v38 }
 0x1d3   : > { %v2869_v51 = vpop.f32.mrf.mxu3 }
 0x1d4   : > { %v7597_v55 = vadd.f32 %v2978_v33, %v2941_v56  ;;  %3101 = vmatmul.bf16.gmra.mxu1 %v7459_v16  ;;  %v5926_v33 = vld [vmem:[#allocation5 + $0x5b4] sm:$0xf0]  ;;  %3306 = vmatpush.bf16.msra.mxu3 %v5537_v60 }
 0x1d5   : > { %v2904_v14 = vpop.f32.mrf.mxu0  ;;  %v5929_v41 = vor.u32 %v6643_v50, %v5926_v33  ;;  %v6726_v33 = vld [vmem:[#allocation5 + $0x820] sm:$0xf0] }
 0x1d6   : > { %8600 = vst [vmem:[#allocation21_spill] sm:$0xff] %v7597_v55  ;;  %v2980_v40 = vpop.f32.mrf.mxu2  ;;  %v2905_v62 = vadd.f32 %v2904_v14, %v2866_v58  ;;  %v7609_v14 = vld [vmem:[#allocation5 + $0x958] sm:$0xff] }
 0x1d7   : > { %3237 = vmatpush.bf16.msrb.mxu1 %v5929_v41 }
 0x1d9   : > { %v2942_v19 = vpop.f32.mrf.mxu1 }
 0x1da   : > { %v2943_v26 = vadd.f32 %v2942_v19, %v2905_v62  ;;  %v5888_v62 = vld [vmem:[#allocation5 + $0x538] sm:$0xf]  ;;  %v6638_v19 = vld [vmem:[#allocation5 + $0x560] sm:$0xf0] }
 0x1db   : > { %6414 = vmatmul.msk.bf16.gmra.mxu2 %vm631_vm3, %v7464_v25  ;;  %v2871_v46 = vpop.f32.mrf.mxu3  ;;  %v5889_v50 = vor.u32 %v6638_v19, %v5888_v62  ;;  %v5492_v62 = vld [vmem:[#allocation5 + $0x220] sm:$0xf]  ;;  %v6539_v19 = vld [vmem:[#allocation5 + $0x248] sm:$0xf0] }
 0x1dc   : > { %v7602_v3 = vadd.f32 %v2980_v40, %v2943_v26  ;;  %v2034_v26 = vunpack.c.l.b16 %v7609_v14 }
 0x1dd   : > { %v2907_v56 = vpop.f32.mrf.mxu0  ;;  %3344 = vmatpush.bf16.msra.mxu0 %v5889_v50 }
 0x1de   : > { %8601 = vst [vmem:[#allocation22_spill] sm:$0xff] %v7602_v3  ;;  %v2983_v4 = vpop.f32.mrf.mxu2  ;;  %v2908_v7 = vadd.f32 %v2907_v56, %v2869_v51  ;;  %v6240_v51 = vld [vmem:[#allocation5 + $0x7f8] sm:$0xf]  ;;  %v2342_v60 = vpack.c.b16 %v2034_v26, %v2034_v26  ;;  %v5844_v3 = vld [vmem:[#allocation5 + $0x4e0] sm:$0xf] }
 0x1df   : > { %v6241_v41 = vor.u32 %v6726_v33, %v6240_v51  ;;  %v5493_v51 = vor.u32 %v6539_v19, %v5492_v62  ;;  %v6627_v33 = vld [vmem:[#allocation5 + $0x508] sm:$0xf0] }
 0x1e0   : > { %3035 = vmatmul.bf16.gmra.mxu3 %v7501_v21  ;;  %3068 = vmatmul.bf16.gmra.mxu0 %v7490_v53  ;;  %v5845_v50 = vor.u32 %v6627_v33, %v5844_v3  ;;  %v6528_v3 = vld [vmem:[#allocation5 + $0x1f0] sm:$0xf0] }
 0x1e1   : > { %v2945_v58 = vpop.f32.mrf.mxu1  ;;  %3382 = vmatpush.bf16.msra.mxu1 %v6241_v41  ;;  %3307 = vmatpush.bf16.msra.mxu3 %v5493_v51 }
 0x1e2   : > { %v2946_v9 = vadd.f32 %v2945_v58, %v2908_v7  ;;  %v2678_v7 = vsel %vm2664_vm1, %v2342_v60, 0  ;;  %3345 = vmatpush.bf16.msra.mxu0 %v5845_v50 }
 0x1e3   : > { %v2874_v31 = vpop.f32.mrf.mxu3  ;;  %3424 = vmatpush.bf16.msra.mxu2 %v2678_v7  ;;  %v6715_v7 = vld [vmem:[#allocation5 + $0x7c8] sm:$0xf0] }
 0x1e4   : > { %v7606_v40 = vadd.f32 %v2983_v4, %v2946_v9  ;;  %3106 = vmatmul.bf16.gmra.mxu1 %v7477_v35 }
 0x1e5   : > { %v2909_v48 = vpop.f32.mrf.mxu0 }
 0x1e6   : > { %8602 = vst [vmem:[#allocation23_spill] sm:$0xff] %v7606_v40  ;;  %v2985_v38 = vpop.f32.mrf.mxu2  ;;  %v2910_v56 = vadd.f32 %v2909_v48, %v2871_v46 }
 0x1e9   : > { %v2947_v4 = vpop.f32.mrf.mxu1 }
 0x1ea   : > { %v2948_v58 = vadd.f32 %v2947_v4, %v2910_v56  ;;  %v6196_v4 = vld [vmem:[#allocation5 + $0x7a0] sm:$0xf] }
 0x1eb   : > { %6415 = vmatmul.msk.bf16.gmra.mxu2 %vm631_vm3, %v7483_v42  ;;  %v2876_v9 = vpop.f32.mrf.mxu3  ;;  %v6197_v62 = vor.u32 %v6715_v7, %v6196_v4  ;;  %v6152_v4 = vld [vmem:[#allocation5 + $0x748] sm:$0xf]  ;;  %v6704_v7 = vld [vmem:[#allocation5 + $0x770] sm:$0xf0] }
 0x1ec   : > { %v7615_v40 = vadd.f32 %v2985_v38, %v2948_v58  ;;  %v5448_v58 = vld [vmem:[#allocation5 + $0x1c8] sm:$0xf] }
 0x1ed   : > { %v2912_v46 = vpop.f32.mrf.mxu0  ;;  %v5449_v51 = vor.u32 %v6528_v3, %v5448_v58  ;;  %3383 = vmatpush.bf16.msra.mxu1 %v6197_v62  ;;  %v6153_v58 = vor.u32 %v6704_v7, %v6152_v4 }
 0x1ee   : > { %8603 = vst [vmem:[#allocation24_spill] sm:$0xff] %v7615_v40  ;;  %v2988_v26 = vpop.f32.mrf.mxu2  ;;  %v2913_v41 = vadd.f32 %v2912_v46, %v2874_v31  ;;  %v6372_v46 = vld [vmem:[#allocation5 + $0x900] sm:$0xf] }
 0x1ef   : > { %3308 = vmatpush.bf16.msra.mxu3 %v5449_v51 }
 0x1f0   : > { %3162 = vmatmul.bf16.vlgmr.msrb.gmra.mxu3 %v7316_v23  ;;  %3073 = vmatmul.bf16.gmra.mxu0 %v7504_v28 }
 0x1f1   : > { %v2950_v48 = vpop.f32.mrf.mxu1  ;;  %3384 = vmatpush.bf16.msra.mxu1 %v6153_v58 }
 0x1f2   : > { %v2951_v60 = vadd.f32 %v2950_v48, %v2913_v41  ;;  %v6759_v41 = vld [vmem:[#allocation5 + $0x928] sm:$0xf0]  ;;  %v5800_v48 = vld [vmem:[#allocation5 + $0x488] sm:$0xf] }
 0x1f3   : > { %v2879_v56 = vpop.f32.mrf.mxu3 }
 0x1f4   : > { %v7619_v38 = vadd.f32 %v2988_v26, %v2951_v60  ;;  %3111 = vmatmul.bf16.gmra.mxu1 %v7496_v0  ;;  %v6373_v26 = vor.u32 %v6759_v41, %v6372_v46  ;;  %v6616_v60 = vld [vmem:[#allocation5 + $0x4b0] sm:$0xf0]  ;;  %v5756_v46 = vld [vmem:[#allocation5 + $0x430] sm:$0xf] }
 0x1f5   : > { %v2914_v31 = vpop.f32.mrf.mxu0  ;;  %v5801_v32 = vor.u32 %v6616_v60, %v5800_v48 }
 0x1f6   : > { %8604 = vst [vmem:[#allocation25_spill] sm:$0xff] %v7619_v38  ;;  %v2990_v19 = vpop.f32.mrf.mxu2  ;;  %v2915_v33 = vadd.f32 %v2914_v31, %v2876_v9  ;;  %3425 = vmatpush.bf16.msra.mxu2 %v6373_v26 }
 0x1f7   : > { %3346 = vmatpush.bf16.msra.mxu0 %v5801_v32  ;;  %v6605_v32 = vld [vmem:[#allocation5 + $0x458] sm:$0xf0] }
 0x1f8   : > { %v5757_v26 = vor.u32 %v6605_v32, %v5756_v46 }
 0x1f9   : > { %v2952_v50 = vpop.f32.mrf.mxu1 }
 0x1fa   : > { %v2953_v55 = vadd.f32 %v2952_v50, %v2915_v33 }
 0x1fb   : > { %6416 = vmatmul.msk.bf16.vlgmr.msrb.gmra.mxu2 %vm631_vm3, %v7297_v10  ;;  %v2881_v1 = vpop.f32.mrf.mxu3  ;;  %3347 = vmatpush.bf16.msra.mxu0 %v5757_v26 }
 0x1fc   : > { %v7624_v38 = vadd.f32 %v2990_v19, %v2953_v55  ;;  %v5404_v55 = vld [vmem:[#allocation5 + $0x170] sm:$0xf]  ;;  %v6517_v19 = vld [vmem:[#allocation5 + $0x198] sm:$0xf0] }
 0x1fd   : > { %v2917_v62 = vpop.f32.mrf.mxu0  ;;  %v5405_v41 = vor.u32 %v6517_v19, %v5404_v55  ;;  %v6506_v55 = vld [vmem:[#allocation5 + $0x140] sm:$0xf0] }
 0x1fe   : > { %8605 = vst [vmem:[#allocation26_spill] sm:$0xff] %v7624_v38  ;;  %v2993_v9 = vpop.f32.mrf.mxu2  ;;  %v2918_v3 = vadd.f32 %v2917_v62, %v2879_v56  ;;  %v6108_v62 = vld [vmem:[#allocation5 + $0x6f0] sm:$0xf] }
 0x1ff   : > { %3309 = vmatpush.bf16.msra.mxu3 %v5405_v41 }
 0x200   : > { %3167 = vmatmul.bf16.gmra.mxu3 %v7362_v61  ;;  %3200 = vmatmul.bf16.vlgmr.msrb.gmra.mxu0 %v7319_v27 }
 0x201   : > { %v2955_v51 = vpop.f32.mrf.mxu1 }
 0x202   : > { %v2956_v31 = vadd.f32 %v2955_v51, %v2918_v3  ;;  %v6693_v3 = vld [vmem:[#allocation5 + $0x718] sm:$0xf0]  ;;  %v5360_v51 = vld [vmem:[#allocation5 + $0x118] sm:$0xf] }
 0x203   : > { %v2884_v33 = vpop.f32.mrf.mxu3 }
 0x204   : > { %v7628_v50 = vadd.f32 %v2993_v9, %v2956_v31  ;;  %3238 = vmatmul.bf16.vlgmr.msrb.gmra.mxu1 %v7304_v12  ;;  %v6109_v31 = vor.u32 %v6693_v3, %v6108_v62  ;;  %v6064_v62 = vld [vmem:[#allocation5 + $0x698] sm:$0xf]  ;;  %v6682_v3 = vld [vmem:[#allocation5 + $0x6c0] sm:$0xf0] }
 0x205   : > { %v2919_v60 = vpop.f32.mrf.mxu0 }
 0x206   : > { %8606 = vst [vmem:[#allocation27_spill] sm:$0xff] %v7628_v50  ;;  %v2995_v48 = vpop.f32.mrf.mxu2  ;;  %v2920_v56 = vadd.f32 %v2919_v60, %v2881_v1  ;;  %v5361_v50 = vor.u32 %v6506_v55, %v5360_v51  ;;  %3385 = vmatpush.bf16.msra.mxu1 %v6109_v31  ;;  %v6328_v60 = vld [vmem:[#allocation5 + $0x8a8] sm:$0xf]  ;;  %v6065_v31 = vor.u32 %v6682_v3, %v6064_v62 }
 0x208   : > { %3310 = vmatpush.bf16.msra.mxu3 %v5361_v50 }
 0x209   : > { %v2957_v4 = vpop.f32.mrf.mxu1 }
 0x20a   : > { %v2958_v7 = vadd.f32 %v2957_v4, %v2920_v56  ;;  %v6748_v56 = vld [vmem:[#allocation5 + $0x8d0] sm:$0xf0]  ;;  %v5712_v4 = vld [vmem:[#allocation5 + $0x3d8] sm:$0xf]  ;;  %3386 = vmatpush.bf16.msra.mxu1 %v6065_v31  ;;  %v5272_v31 = vld [vmem:[#allocation5 + $0x68] sm:$0xf] }
 0x20b   : > { %6417 = vmatmul.msk.bf16.gmra.mxu2 %vm631_vm3, %v7326_v39  ;;  %v2886_v58 = vpop.f32.mrf.mxu3 }
 0x20c   : > { %v7633_v9 = vadd.f32 %v2995_v48, %v2958_v7  ;;  %v6329_v7 = vor.u32 %v6748_v56, %v6328_v60  ;;  %v6594_v58 = vld [vmem:[#allocation5 + $0x400] sm:$0xf0]  ;;  %v6583_v60 = vld [vmem:[#allocation5 + $0x3a8] sm:$0xf0] }
 0x20d   : > { %v2922_v46 = vpop.f32.mrf.mxu0  ;;  %v5713_v51 = vor.u32 %v6594_v58, %v5712_v4 }
 0x20e   : > { %8607 = vst [vmem:[#allocation28_spill] sm:$0xff] %v7633_v9  ;;  %v2998_v19 = vpop.f32.mrf.mxu2  ;;  %v2923_v41 = vadd.f32 %v2922_v46, %v2884_v33  ;;  %3426 = vmatpush.bf16.msra.mxu2 %v6329_v7  ;;  %v5316_v46 = vld [vmem:[#allocation5 + $0xc0] sm:$0xf] }
 0x20f   : > { %3348 = vmatpush.bf16.msra.mxu0 %v5713_v51  ;;  %v6671_v51 = vld [vmem:[#allocation5 + $0x668] sm:$0xf0] }
 0x210   : > { %3172 = vmatmul.bf16.gmra.mxu3 %v7417_v6  ;;  %3205 = vmatmul.bf16.gmra.mxu0 %v7367_v45 }
 0x211   : > { %v2960_v1 = vpop.f32.mrf.mxu1 }
 0x212   : > { %v2961_v32 = vadd.f32 %v2960_v1, %v2923_v41  ;;  %v6495_v41 = vld [vmem:[#allocation5 + $0xe8] sm:$0xf0]  ;;  %v5668_v1 = vld [vmem:[#allocation5 + $0x380] sm:$0xf] }
 0x213   : > { %v3011_v26 = vpop.f32.mrf.mxu3 }
 0x214   : > { %v7637_v48 = vadd.f32 %v2998_v19, %v2961_v32  ;;  %3243 = vmatmul.bf16.gmra.mxu1 %v7346_v52  ;;  %v5317_v32 = vor.u32 %v6495_v41, %v5316_v46 }
 0x215   : > { %v2924_v55 = vpop.f32.mrf.mxu0 }
 0x216   : > { %8608 = vst [vmem:[#allocation29_spill] sm:$0xff] %v7637_v48  ;;  %v3000_v33 = vpop.f32.mrf.mxu2  ;;  %v5669_v48 = vor.u32 %v6583_v60, %v5668_v1  ;;  %3311 = vmatpush.bf16.msra.mxu3 %v5317_v32 }
 0x217   : > { %v6020_v33 = vld [vmem:[#allocation5 + $0x640] sm:$0xf] }
 0x218   : > { %3349 = vmatpush.bf16.msra.mxu0 %v5669_v48  ;;  %v6021_v55 = vor.u32 %v6671_v51, %v6020_v33  ;;  %v6572_v33 = vld [vmem:[#allocation5 + $0x350] sm:$0xf0]  ;;  %v5976_v51 = vld [vmem:[#allocation5 + $0x5e8] sm:$0xf] }
 0x219   : > { %v2962_v50 = vpop.f32.mrf.mxu1 }
 0x21a   : > { %v6484_v50 = vld [vmem:[#allocation5 + $0x90] sm:$0xf0]  ;;  %3387 = vmatpush.bf16.msra.mxu1 %v6021_v55 }
 0x21b   : > { %6418 = vmatmul.msk.bf16.gmra.mxu2 %vm631_vm3, %v7382_v29  ;;  %v3013_v19 = vpop.f32.mrf.mxu3  ;;  %v5273_v41 = vor.u32 %v6484_v50, %v5272_v31 }
 0x21d   : > { %v3049_v9 = vpop.f32.mrf.mxu0  ;;  %3312 = vmatpush.bf16.msra.mxu3 %v5273_v41  ;;  %v6473_v41 = vld [vmem:[#allocation5 + $0x38] sm:$0xf0] }
 0x21e   : > { %v3125_v56 = vpop.f32.mrf.mxu2  ;;  %v3050_v4 = vadd.f32 %v3049_v9, %v3011_v26 }
 0x220   : > { %3177 = vmatmul.bf16.gmra.mxu3 %v7447_v47  ;;  %3210 = vmatmul.bf16.gmra.mxu0 %v7423_v13 }
 0x221   : > { %v3087_v7 = vpop.f32.mrf.mxu1 }
 0x222   : > { %v3088_v58 = vadd.f32 %v3087_v7, %v3050_v4  ;;  %v6737_v4 = vld [vmem:[#allocation5 + $0x878] sm:$0xf0]  ;;  %v5624_v7 = vld [vmem:[#allocation5 + $0x328] sm:$0xf] }
 0x223   : > { %v3016_v62 = vpop.f32.mrf.mxu3  ;;  %v5625_v50 = vor.u32 %v6572_v33, %v5624_v7  ;;  %v6561_v7 = vld [vmem:[#allocation5 + $0x2f8] sm:$0xf0] }
 0x224   : > { %v7644_v3 = vadd.f32 %v3125_v56, %v3088_v58  ;;  %3248 = vmatmul.bf16.gmra.mxu1 %v7402_v57  ;;  %v6284_v56 = vld [vmem:[#allocation5 + $0x850] sm:$0xf] }
 0x225   : > { %v3051_v9 = vpop.f32.mrf.mxu0  ;;  %v6285_v58 = vor.u32 %v6737_v4, %v6284_v56  ;;  %3350 = vmatpush.bf16.msra.mxu0 %v5625_v50 }
 0x226   : > { %8609 = vst [vmem:[#allocation30_spill] sm:$0xff] %v7644_v3  ;;  %v3127_v46 = vpop.f32.mrf.mxu2  ;;  %v3052_v26 = vadd.f32 %v3051_v9, %v3013_v19  ;;  %v6660_v3 = vld [vmem:[#allocation5 + $0x610] sm:$0xf0]  ;;  %v5228_v19 = vld [vmem:[#allocation5 + $0x10] sm:$0xf] }
 0x227   : > { %v5977_v55 = vor.u32 %v6660_v3, %v5976_v51  ;;  %3427 = vmatpush.bf16.msra.mxu2 %v6285_v58  ;;  %v5580_v3 = vld [vmem:[#allocation5 + $0x2d0] sm:$0xf] }
 0x228   : > { %v5581_v33 = vor.u32 %v6561_v7, %v5580_v3 }
 0x229   : > { %v3089_v48 = vpop.f32.mrf.mxu1  ;;  %3388 = vmatpush.bf16.msra.mxu1 %v5977_v55 }
 0x22a   : > { %v3090_v1 = vadd.f32 %v3089_v48, %v3052_v26  ;;  %v5229_v26 = vor.u32 %v6473_v41, %v5228_v19  ;;  %3351 = vmatpush.bf16.msra.mxu0 %v5581_v33 }
 0x22b   : > { %6419 = vmatmul.msk.bf16.gmra.mxu2 %vm631_vm3, %v7411_v63  ;;  %v3018_v32 = vpop.f32.mrf.mxu3 }
 0x22c   : > { %v7649_v60 = vadd.f32 %v3127_v46, %v3090_v1  ;;  %3313 = vmatpush.bf16.msra.mxu3 %v5229_v26  ;;  %v6545_v26 = vld [vmem:[#allocation5 + $0x27c] sm:$0xf] }
 0x22d   : > { %v3054_v9 = vpop.f32.mrf.mxu0 }
 0x22e   : > { %8610 = vst [vmem:[#allocation31_spill] sm:$0xff] %v7649_v60  ;;  %v3130_v31 = vpop.f32.mrf.mxu2  ;;  %v3055_v48 = vadd.f32 %v3054_v9, %v3016_v62  ;;  %v5932_v9 = vld [vmem:[#allocation5 + $0x590] sm:$0xf] }
 0x230   : > { %3182 = vmatmul.bf16.gmra.mxu3 %v7486_v49  ;;  %3215 = vmatmul.bf16.gmra.mxu0 %v7452_v54 }
 0x231   : > { %v3092_v46 = vpop.f32.mrf.mxu1 }
 0x232   : > { %v3093_v1 = vadd.f32 %v3092_v46, %v3055_v48  ;;  %v5538_v46 = vld [vmem:[#allocation5 + $0x2a4] sm:$0xf0] }
 0x233   : > { %v3021_v56 = vpop.f32.mrf.mxu3 }
 0x234   : > { %v7653_v4 = vadd.f32 %v3130_v31, %v3093_v1  ;;  %3253 = vmatmul.bf16.gmra.mxu1 %v7459_v16  ;;  %v6649_v31 = vld [vmem:[#allocation5 + $0x5b8] sm:$0xf0] }
 0x235   : > { %v3056_v51 = vpop.f32.mrf.mxu0  ;;  %v5933_v48 = vor.u32 %v6649_v31, %v5932_v9  ;;  %v6721_v9 = vld [vmem:[#allocation5 + $0x7fc] sm:$0xf] }
 0x236   : > { %8611 = vst [vmem:[#allocation32_spill] sm:$0xff] %v7653_v4  ;;  %v3132_v58 = vpop.f32.mrf.mxu2  ;;  %v3057_v62 = vadd.f32 %v3056_v51, %v3018_v32  ;;  %v5541_v4 = vor.u32 %v6545_v26, %v5538_v46  ;;  %v6242_v26 = vld [vmem:[#allocation5 + $0x824] sm:$0xf0] }
 0x237   : > { %3389 = vmatpush.bf16.msra.mxu1 %v5933_v48  ;;  %v6245_v46 = vor.u32 %v6721_v9, %v6242_v26  ;;  %v5846_v9 = vld [vmem:[#allocation5 + $0x50c] sm:$0xf0] }
 0x238   : > { %3458 = vmatpush.bf16.msrb.mxu3 %v5541_v4 }
 0x239   : > { %v3094_v19 = vpop.f32.mrf.mxu1 }
 0x23a   : > { %v3095_v50 = vadd.f32 %v3094_v19, %v3057_v62  ;;  %v2035_v62 = vunpack.c.h.b16 %v7609_v14  ;;  %v6633_v19 = vld [vmem:[#allocation5 + $0x53c] sm:$0xf] }
 0x23b   : > { %6420 = vmatmul.msk.bf16.gmra.mxu2 %vm631_vm3, %v7464_v25  ;;  %v3023_v55 = vpop.f32.mrf.mxu3  ;;  %3534 = vmatpush.bf16.msrb.mxu1 %v6245_v46 }
 0x23c   : > { %v7658_v41 = vadd.f32 %v3132_v58, %v3095_v50  ;;  %v5890_v50 = vld [vmem:[#allocation5 + $0x564] sm:$0xf0]  ;;  %v2343_v48 = vpack.c.b16 %v2035_v62, %v2035_v62 }
 0x23d   : > { %v3059_v3 = vpop.f32.mrf.mxu0  ;;  %v5893_v31 = vor.u32 %v6633_v19, %v5890_v50  ;;  %v6534_v19 = vld [vmem:[#allocation5 + $0x224] sm:$0xf]  ;;  %v5494_v50 = vld [vmem:[#allocation5 + $0x24c] sm:$0xf0] }
 0x23e   : > { %8612 = vst [vmem:[#allocation33_spill] sm:$0xff] %v7658_v41  ;;  %v3135_v1 = vpop.f32.mrf.mxu2  ;;  %v3060_v7 = vadd.f32 %v3059_v3, %v3021_v56  ;;  %v5497_v62 = vor.u32 %v6534_v19, %v5494_v50 }
 0x23f   : > { %3496 = vmatpush.bf16.msrb.mxu0 %v5893_v31 }
 0x240   : > { %3187 = vmatmul.bf16.gmra.mxu3 %v7501_v21  ;;  %3220 = vmatmul.bf16.gmra.mxu0 %v7490_v53 }
 0x241   : > { %v3097_v32 = vpop.f32.mrf.mxu1  ;;  %3459 = vmatpush.bf16.msrb.mxu3 %v5497_v62 }
 0x242   : > { %v3098_v33 = vadd.f32 %v3097_v32, %v3060_v7  ;;  %v2681_v7 = vsel %vm2664_vm1, %v2343_v48, 0 }
 0x243   : > { %v3026_v51 = vpop.f32.mrf.mxu3  ;;  %3576 = vmatpush.bf16.msrb.mxu2 %v2681_v7  ;;  %v6710_v7 = vld [vmem:[#allocation5 + $0x7a4] sm:$0xf] }
 0x244   : > { %v7662_v58 = vadd.f32 %v3135_v1, %v3098_v33  ;;  %3258 = vmatmul.bf16.gmra.mxu1 %v7477_v35 }
 0x245   : > { %v3061_v3 = vpop.f32.mrf.mxu0 }
 0x246   : > { %8613 = vst [vmem:[#allocation34_spill] sm:$0xff] %v7662_v58  ;;  %v3137_v56 = vpop.f32.mrf.mxu2  ;;  %v3062_v4 = vadd.f32 %v3061_v3, %v3023_v55  ;;  %v6622_v58 = vld [vmem:[#allocation5 + $0x4e4] sm:$0xf] }
 0x247   : > { %v5849_v31 = vor.u32 %v6622_v58, %v5846_v9  ;;  %v5450_v58 = vld [vmem:[#allocation5 + $0x1f4] sm:$0xf0] }
 0x249   : > { %v3099_v1 = vpop.f32.mrf.mxu1  ;;  %3497 = vmatpush.bf16.msrb.mxu0 %v5849_v31 }
 0x24a   : > { %v3100_v32 = vadd.f32 %v3099_v1, %v3062_v4  ;;  %v6198_v1 = vld [vmem:[#allocation5 + $0x7cc] sm:$0xf0] }
 0x24b   : > { %6421 = vmatmul.msk.bf16.gmra.mxu2 %vm631_vm3, %v7483_v42  ;;  %v3028_v14 = vpop.f32.mrf.mxu3  ;;  %v6201_v19 = vor.u32 %v6710_v7, %v6198_v1  ;;  %v6699_v7 = vld [vmem:[#allocation5 + $0x74c] sm:$0xf]  ;;  %v6154_v1 = vld [vmem:[#allocation5 + $0x774] sm:$0xf0] }
 0x24c   : > { %v7669_v33 = vadd.f32 %v3137_v56, %v3100_v32  ;;  %v6523_v32 = vld [vmem:[#allocation5 + $0x1cc] sm:$0xf] }
 0x24d   : > { %v3064_v55 = vpop.f32.mrf.mxu0  ;;  %v5453_v62 = vor.u32 %v6523_v32, %v5450_v58  ;;  %3535 = vmatpush.bf16.msrb.mxu1 %v6201_v19  ;;  %v6157_v32 = vor.u32 %v6699_v7, %v6154_v1 }
 0x24e   : > { %8614 = vst [vmem:[#allocation35_spill] sm:$0xff] %v7669_v33  ;;  %v3140_v26 = vpop.f32.mrf.mxu2  ;;  %v3065_v48 = vadd.f32 %v3064_v55, %v3026_v51  ;;  %v6754_v55 = vld [vmem:[#allocation5 + $0x904] sm:$0xf] }
 0x24f   : > { %3460 = vmatpush.bf16.msrb.mxu3 %v5453_v62 }
 0x250   : > { %3314 = vmatmul.bf16.vlgmr.msra.gmra.mxu3 %v7316_v23  ;;  %3225 = vmatmul.bf16.gmra.mxu0 %v7504_v28 }
 0x251   : > { %v3102_v46 = vpop.f32.mrf.mxu1  ;;  %3536 = vmatpush.bf16.msrb.mxu1 %v6157_v32 }
 0x252   : > { %v3103_v3 = vadd.f32 %v3102_v46, %v3065_v48  ;;  %v6374_v48 = vld [vmem:[#allocation5 + $0x92c] sm:$0xf0]  ;;  %v6611_v46 = vld [vmem:[#allocation5 + $0x48c] sm:$0xf] }
 0x253   : > { %v3031_v4 = vpop.f32.mrf.mxu3 }
 0x254   : > { %v7673_v56 = vadd.f32 %v3140_v26, %v3103_v3  ;;  %3263 = vmatmul.bf16.gmra.mxu1 %v7496_v0  ;;  %v6377_v26 = vor.u32 %v6754_v55, %v6374_v48  ;;  %v5802_v3 = vld [vmem:[#allocation5 + $0x4b4] sm:$0xf0]  ;;  %v6600_v55 = vld [vmem:[#allocation5 + $0x434] sm:$0xf] }
 0x255   : > { %v3066_v51 = vpop.f32.mrf.mxu0 }
 0x256   : > { %8615 = vst [vmem:[#allocation36_spill] sm:$0xff] %v7673_v56  ;;  %v3142_v50 = vpop.f32.mrf.mxu2  ;;  %v3067_v9 = vadd.f32 %v3066_v51, %v3028_v14  ;;  %v5805_v56 = vor.u32 %v6611_v46, %v5802_v3  ;;  %3577 = vmatpush.bf16.msrb.mxu2 %v6377_v26 }
 0x258   : > { %3498 = vmatpush.bf16.msrb.mxu0 %v5805_v56  ;;  %v5758_v56 = vld [vmem:[#allocation5 + $0x45c] sm:$0xf0] }
 0x259   : > { %v3104_v31 = vpop.f32.mrf.mxu1  ;;  %v5761_v26 = vor.u32 %v6600_v55, %v5758_v56 }
 0x25a   : > { %v3105_v41 = vadd.f32 %v3104_v31, %v3067_v9 }
 0x25b   : > { %6422 = vmatmul.msk.bf16.vlgmr.msra.gmra.mxu2 %vm631_vm3, %v7297_v10  ;;  %v3033_v60 = vpop.f32.mrf.mxu3 }
 0x25c   : > { %v7678_v33 = vadd.f32 %v3142_v50, %v3105_v41  ;;  %v6512_v41 = vld [vmem:[#allocation5 + $0x174] sm:$0xf]  ;;  %v5406_v50 = vld [vmem:[#allocation5 + $0x19c] sm:$0xf0]  ;;  %3499 = vmatpush.bf16.msrb.mxu0 %v5761_v26 }
 0x25d   : > { %v3069_v19 = vpop.f32.mrf.mxu0  ;;  %v5409_v48 = vor.u32 %v6512_v41, %v5406_v50  ;;  %v5362_v41 = vld [vmem:[#allocation5 + $0x144] sm:$0xf0] }
 0x25e   : > { %8616 = vst [vmem:[#allocation37_spill] sm:$0xff] %v7678_v33  ;;  %v3145_v14 = vpop.f32.mrf.mxu2  ;;  %v3070_v58 = vadd.f32 %v3069_v19, %v3031_v4  ;;  %v6688_v19 = vld [vmem:[#allocation5 + $0x6f4] sm:$0xf] }
 0x25f   : > { %3461 = vmatpush.bf16.msrb.mxu3 %v5409_v48 }
 0x260   : > { %3319 = vmatmul.bf16.gmra.mxu3 %v7362_v61  ;;  %3352 = vmatmul.bf16.vlgmr.msra.gmra.mxu0 %v7319_v27 }
 0x261   : > { %v3107_v62 = vpop.f32.mrf.mxu1 }
 0x262   : > { %v3108_v51 = vadd.f32 %v3107_v62, %v3070_v58  ;;  %v6110_v58 = vld [vmem:[#allocation5 + $0x71c] sm:$0xf0]  ;;  %v6501_v62 = vld [vmem:[#allocation5 + $0x11c] sm:$0xf] }
 0x263   : > { %v3036_v9 = vpop.f32.mrf.mxu3 }
 0x264   : > { %v7682_v31 = vadd.f32 %v3145_v14, %v3108_v51  ;;  %3390 = vmatmul.bf16.vlgmr.msra.gmra.mxu1 %v7304_v12  ;;  %v6113_v51 = vor.u32 %v6688_v19, %v6110_v58  ;;  %v6677_v19 = vld [vmem:[#allocation5 + $0x69c] sm:$0xf]  ;;  %v6066_v58 = vld [vmem:[#allocation5 + $0x6c4] sm:$0xf0] }
 0x265   : > { %v3071_v3 = vpop.f32.mrf.mxu0 }
 0x266   : > { %8617 = vst [vmem:[#allocation38_spill] sm:$0xff] %v7682_v31  ;;  %v3147_v46 = vpop.f32.mrf.mxu2  ;;  %v3072_v4 = vadd.f32 %v3071_v3, %v3033_v60  ;;  %v5365_v31 = vor.u32 %v6501_v62, %v5362_v41  ;;  %3537 = vmatpush.bf16.msrb.mxu1 %v6113_v51  ;;  %v6743_v3 = vld [vmem:[#allocation5 + $0x8ac] sm:$0xf]  ;;  %v6069_v51 = vor.u32 %v6677_v19, %v6066_v58 }
 0x268   : > { %3462 = vmatpush.bf16.msrb.mxu3 %v5365_v31 }
 0x269   : > { %v3109_v7 = vpop.f32.mrf.mxu1 }
 0x26a   : > { %v3110_v1 = vadd.f32 %v3109_v7, %v3072_v4  ;;  %v6330_v4 = vld [vmem:[#allocation5 + $0x8d4] sm:$0xf0]  ;;  %v6589_v7 = vld [vmem:[#allocation5 + $0x3dc] sm:$0xf]  ;;  %3538 = vmatpush.bf16.msrb.mxu1 %v6069_v51  ;;  %v6479_v51 = vld [vmem:[#allocation5 + $0x6c] sm:$0xf] }
 0x26b   : > { %6423 = vmatmul.msk.bf16.gmra.mxu2 %vm631_vm3, %v7326_v39  ;;  %v3038_v32 = vpop.f32.mrf.mxu3 }
 0x26c   : > { %v7687_v14 = vadd.f32 %v3147_v46, %v3110_v1  ;;  %v6333_v1 = vor.u32 %v6743_v3, %v6330_v4  ;;  %v5714_v32 = vld [vmem:[#allocation5 + $0x404] sm:$0xf0]  ;;  %v5670_v3 = vld [vmem:[#allocation5 + $0x3ac] sm:$0xf0] }
 0x26d   : > { %v3074_v55 = vpop.f32.mrf.mxu0  ;;  %v5717_v62 = vor.u32 %v6589_v7, %v5714_v32 }
 0x26e   : > { %8618 = vst [vmem:[#allocation39_spill] sm:$0xff] %v7687_v14  ;;  %v3150_v50 = vpop.f32.mrf.mxu2  ;;  %v3075_v48 = vadd.f32 %v3074_v55, %v3036_v9  ;;  %3578 = vmatpush.bf16.msrb.mxu2 %v6333_v1  ;;  %v6490_v55 = vld [vmem:[#allocation5 + $0xc4] sm:$0xf] }
 0x26f   : > { %3500 = vmatpush.bf16.msrb.mxu0 %v5717_v62  ;;  %v6022_v62 = vld [vmem:[#allocation5 + $0x66c] sm:$0xf0] }
 0x270   : > { %3324 = vmatmul.bf16.gmra.mxu3 %v7417_v6  ;;  %3357 = vmatmul.bf16.gmra.mxu0 %v7367_v45 }
 0x271   : > { %v3112_v60 = vpop.f32.mrf.mxu1 }
 0x272   : > { %v3113_v56 = vadd.f32 %v3112_v60, %v3075_v48  ;;  %v5318_v48 = vld [vmem:[#allocation5 + $0xec] sm:$0xf0]  ;;  %v6578_v60 = vld [vmem:[#allocation5 + $0x384] sm:$0xf] }
 0x273   : > { %v3163_v26 = vpop.f32.mrf.mxu3 }
 0x274   : > { %v7691_v46 = vadd.f32 %v3150_v50, %v3113_v56  ;;  %3395 = vmatmul.bf16.gmra.mxu1 %v7346_v52  ;;  %v5321_v56 = vor.u32 %v6490_v55, %v5318_v48 }
 0x275   : > { %v3076_v41 = vpop.f32.mrf.mxu0 }
 0x276   : > { %8619 = vst [vmem:[#allocation40_spill] sm:$0xff] %v7691_v46  ;;  %v3152_v9 = vpop.f32.mrf.mxu2  ;;  %v5673_v46 = vor.u32 %v6578_v60, %v5670_v3  ;;  %3463 = vmatpush.bf16.msrb.mxu3 %v5321_v56 }
 0x277   : > { %v6666_v9 = vld [vmem:[#allocation5 + $0x644] sm:$0xf] }
 0x278   : > { %3501 = vmatpush.bf16.msrb.mxu0 %v5673_v46  ;;  %v6025_v41 = vor.u32 %v6666_v9, %v6022_v62  ;;  %v5626_v9 = vld [vmem:[#allocation5 + $0x354] sm:$0xf0]  ;;  %v6655_v62 = vld [vmem:[#allocation5 + $0x5ec] sm:$0xf] }
 0x279   : > { %v3114_v31 = vpop.f32.mrf.mxu1 }
 0x27a   : > { %v5274_v31 = vld [vmem:[#allocation5 + $0x94] sm:$0xf0]  ;;  %3539 = vmatpush.bf16.msrb.mxu1 %v6025_v41 }
 0x27b   : > { %6424 = vmatmul.msk.bf16.gmra.mxu2 %vm631_vm3, %v7382_v29  ;;  %v3165_v50 = vpop.f32.mrf.mxu3  ;;  %v5277_v48 = vor.u32 %v6479_v51, %v5274_v31 }
 0x27d   : > { %v3201_v14 = vpop.f32.mrf.mxu0  ;;  %3464 = vmatpush.bf16.msrb.mxu3 %v5277_v48  ;;  %v5230_v48 = vld [vmem:[#allocation5 + $0x3c] sm:$0xf0] }
 0x27e   : > { %v3277_v4 = vpop.f32.mrf.mxu2  ;;  %v3202_v7 = vadd.f32 %v3201_v14, %v3163_v26 }
 0x280   : > { %3329 = vmatmul.bf16.gmra.mxu3 %v7447_v47  ;;  %3362 = vmatmul.bf16.gmra.mxu0 %v7423_v13 }
 0x281   : > { %v3239_v1 = vpop.f32.mrf.mxu1 }
 0x282   : > { %v3240_v32 = vadd.f32 %v3239_v1, %v3202_v7  ;;  %v6286_v7 = vld [vmem:[#allocation5 + $0x87c] sm:$0xf0]  ;;  %v6567_v1 = vld [vmem:[#allocation5 + $0x32c] sm:$0xf] }
 0x283   : > { %v3168_v19 = vpop.f32.mrf.mxu3  ;;  %v5629_v31 = vor.u32 %v6567_v1, %v5626_v9  ;;  %v5582_v1 = vld [vmem:[#allocation5 + $0x2fc] sm:$0xf0] }
 0x284   : > { %v7698_v58 = vadd.f32 %v3277_v4, %v3240_v32  ;;  %3400 = vmatmul.bf16.gmra.mxu1 %v7402_v57  ;;  %v6732_v4 = vld [vmem:[#allocation5 + $0x854] sm:$0xf] }
 0x285   : > { %v3203_v14 = vpop.f32.mrf.mxu0  ;;  %v6289_v32 = vor.u32 %v6732_v4, %v6286_v7  ;;  %3502 = vmatpush.bf16.msrb.mxu0 %v5629_v31 }
 0x286   : > { %8620 = vst [vmem:[#allocation41_spill] sm:$0xff] %v7698_v58  ;;  %v3279_v55 = vpop.f32.mrf.mxu2  ;;  %v3204_v26 = vadd.f32 %v3203_v14, %v3165_v50  ;;  %v5978_v58 = vld [vmem:[#allocation5 + $0x614] sm:$0xf0]  ;;  %v6468_v50 = vld [vmem:[#allocation5 + $0x14] sm:$0xf] }
 0x287   : > { %v5981_v41 = vor.u32 %v6655_v62, %v5978_v58  ;;  %3579 = vmatpush.bf16.msrb.mxu2 %v6289_v32  ;;  %v6556_v58 = vld [vmem:[#allocation5 + $0x2d4] sm:$0xf] }
 0x288   : > { %v5585_v9 = vor.u32 %v6556_v58, %v5582_v1 }
 0x289   : > { %v3241_v46 = vpop.f32.mrf.mxu1  ;;  %3540 = vmatpush.bf16.msrb.mxu1 %v5981_v41 }
 0x28a   : > { %v3242_v60 = vadd.f32 %v3241_v46, %v3204_v26  ;;  %v5233_v26 = vor.u32 %v6468_v50, %v5230_v48  ;;  %3503 = vmatpush.bf16.msrb.mxu0 %v5585_v9 }
 0x28b   : > { %6425 = vmatmul.msk.bf16.gmra.mxu2 %vm631_vm3, %v7411_v63  ;;  %v3170_v56 = vpop.f32.mrf.mxu3 }
 0x28c   : > { %v7703_v3 = vadd.f32 %v3279_v55, %v3242_v60  ;;  %3465 = vmatpush.bf16.msrb.mxu3 %v5233_v26  ;;  %v5544_v26 = vld [vmem:[#allocation5 + $0x280] sm:$0xf] }
 0x28d   : > { %v3206_v14 = vpop.f32.mrf.mxu0 }
 0x28e   : > { %8621 = vst [vmem:[#allocation42_spill] sm:$0xff] %v7703_v3  ;;  %v3282_v51 = vpop.f32.mrf.mxu2  ;;  %v3207_v46 = vadd.f32 %v3206_v14, %v3168_v19  ;;  %v6644_v14 = vld [vmem:[#allocation5 + $0x594] sm:$0xf]  ;;  %v5852_v3 = vld [vmem:[#allocation5 + $0x4e8] sm:$0xf] }
 0x290   : > { %3334 = vmatmul.bf16.gmra.mxu3 %v7486_v49  ;;  %3367 = vmatmul.bf16.gmra.mxu0 %v7452_v54 }
 0x291   : > { %v3244_v55 = vpop.f32.mrf.mxu1 }
 0x292   : > { %v3245_v60 = vadd.f32 %v3244_v55, %v3207_v46  ;;  %v6551_v55 = vld [vmem:[#allocation5 + $0x2a8] sm:$0xf0] }
 0x293   : > { %v3173_v4 = vpop.f32.mrf.mxu3 }
 0x294   : > { %v7707_v7 = vadd.f32 %v3282_v51, %v3245_v60  ;;  %3405 = vmatmul.bf16.gmra.mxu1 %v7459_v16  ;;  %v5934_v51 = vld [vmem:[#allocation5 + $0x5bc] sm:$0xf0] }
 0x295   : > { %v3208_v62 = vpop.f32.mrf.mxu0  ;;  %v5937_v46 = vor.u32 %v6644_v14, %v5934_v51 }
 0x296   : > { %8622 = vst [vmem:[#allocation43_spill] sm:$0xff] %v7707_v7  ;;  %v3284_v32 = vpop.f32.mrf.mxu2  ;;  %v3209_v19 = vadd.f32 %v3208_v62, %v3170_v56  ;;  %v5545_v7 = vor.u32 %v6551_v55, %v5544_v26  ;;  %v6727_v26 = vld [vmem:[#allocation5 + $0x828] sm:$0xf0] }
 0x297   : > { %3541 = vmatpush.bf16.msrb.mxu1 %v5937_v46 }
 0x298   : > { %3610 = vmatpush.bf16.msra.mxu3 %v5545_v7 }
 0x299   : > { %v3246_v50 = vpop.f32.mrf.mxu1 }
 0x29a   : > { %v3247_v31 = vadd.f32 %v3246_v50, %v3209_v19  ;;  %v7719_v19 = vld [vmem:[#allocation5 + $0x960] sm:$0xff] }
 0x29b   : > { %6426 = vmatmul.msk.bf16.gmra.mxu2 %vm631_vm3, %v7464_v25  ;;  %v3175_v41 = vpop.f32.mrf.mxu3  ;;  %v5896_v50 = vld [vmem:[#allocation5 + $0x540] sm:$0xf]  ;;  %v2036_v14 = vunpack.c.l.b16 %v7719_v19 }
 0x29c   : > { %v7712_v48 = vadd.f32 %v3284_v32, %v3247_v31  ;;  %v6639_v31 = vld [vmem:[#allocation5 + $0x568] sm:$0xf0] }
 0x29d   : > { %v3211_v58 = vpop.f32.mrf.mxu0  ;;  %v5897_v51 = vor.u32 %v6639_v31, %v5896_v50  ;;  %v5500_v50 = vld [vmem:[#allocation5 + $0x228] sm:$0xf]  ;;  %v6540_v31 = vld [vmem:[#allocation5 + $0x250] sm:$0xf0] }
 0x29e   : > { %8623 = vst [vmem:[#allocation44_spill] sm:$0xff] %v7712_v48  ;;  %v3287_v60 = vpop.f32.mrf.mxu2  ;;  %v3212_v1 = vadd.f32 %v3211_v58, %v3173_v4  ;;  %v6248_v4 = vld [vmem:[#allocation5 + $0x800] sm:$0xf]  ;;  %v2344_v58 = vpack.c.b16 %v2036_v14, %v2036_v14 }
 0x29f   : > { %v6249_v55 = vor.u32 %v6727_v26, %v6248_v4  ;;  %3648 = vmatpush.bf16.msra.mxu0 %v5897_v51  ;;  %v5501_v4 = vor.u32 %v6540_v31, %v5500_v50  ;;  %v6628_v26 = vld [vmem:[#allocation5 + $0x510] sm:$0xf0] }
 0x2a0   : > { %3339 = vmatmul.bf16.gmra.mxu3 %v7501_v21  ;;  %3372 = vmatmul.bf16.gmra.mxu0 %v7490_v53  ;;  %v5853_v51 = vor.u32 %v6628_v26, %v5852_v3  ;;  %v6529_v3 = vld [vmem:[#allocation5 + $0x1f8] sm:$0xf0] }
 0x2a1   : > { %v3249_v56 = vpop.f32.mrf.mxu1  ;;  %3686 = vmatpush.bf16.msra.mxu1 %v6249_v55  ;;  %3611 = vmatpush.bf16.msra.mxu3 %v5501_v4 }
 0x2a2   : > { %v3250_v9 = vadd.f32 %v3249_v56, %v3212_v1  ;;  %v2684_v56 = vsel %vm2664_vm1, %v2344_v58, 0 }
 0x2a3   : > { %v3178_v62 = vpop.f32.mrf.mxu3  ;;  %3728 = vmatpush.bf16.msra.mxu2 %v2684_v56  ;;  %3649 = vmatpush.bf16.msra.mxu0 %v5853_v51  ;;  %v6716_v56 = vld [vmem:[#allocation5 + $0x7d0] sm:$0xf0] }
 0x2a4   : > { %v7716_v32 = vadd.f32 %v3287_v60, %v3250_v9  ;;  %3410 = vmatmul.bf16.gmra.mxu1 %v7477_v35 }
 0x2a5   : > { %v3213_v7 = vpop.f32.mrf.mxu0 }
 0x2a6   : > { %8624 = vst [vmem:[#allocation45_spill] sm:$0xff] %v7716_v32  ;;  %v3289_v46 = vpop.f32.mrf.mxu2  ;;  %v3214_v1 = vadd.f32 %v3213_v7, %v3175_v41 }
 0x2a9   : > { %v3251_v60 = vpop.f32.mrf.mxu1 }
 0x2aa   : > { %v3252_v9 = vadd.f32 %v3251_v60, %v3214_v1  ;;  %v6204_v60 = vld [vmem:[#allocation5 + $0x7a8] sm:$0xf] }
 0x2ab   : > { %6427 = vmatmul.msk.bf16.gmra.mxu2 %vm631_vm3, %v7483_v42  ;;  %v3180_v32 = vpop.f32.mrf.mxu3  ;;  %v6205_v50 = vor.u32 %v6716_v56, %v6204_v60  ;;  %v6160_v60 = vld [vmem:[#allocation5 + $0x750] sm:$0xf]  ;;  %v6705_v56 = vld [vmem:[#allocation5 + $0x778] sm:$0xf0] }
 0x2ac   : > { %v7725_v48 = vadd.f32 %v3289_v46, %v3252_v9  ;;  %v5456_v9 = vld [vmem:[#allocation5 + $0x1d0] sm:$0xf] }
 0x2ad   : > { %v3216_v41 = vpop.f32.mrf.mxu0  ;;  %v5457_v4 = vor.u32 %v6529_v3, %v5456_v9  ;;  %3687 = vmatpush.bf16.msra.mxu1 %v6205_v50  ;;  %v6161_v9 = vor.u32 %v6705_v56, %v6160_v60 }
 0x2ae   : > { %8625 = vst [vmem:[#allocation46_spill] sm:$0xff] %v7725_v48  ;;  %v3292_v14 = vpop.f32.mrf.mxu2  ;;  %v3217_v55 = vadd.f32 %v3216_v41, %v3178_v62  ;;  %v6380_v41 = vld [vmem:[#allocation5 + $0x908] sm:$0xf] }
 0x2af   : > { %3612 = vmatpush.bf16.msra.mxu3 %v5457_v4 }
 0x2b0   : > { %3466 = vmatmul.bf16.vlgmr.msrb.gmra.mxu3 %v7316_v23  ;;  %3377 = vmatmul.bf16.gmra.mxu0 %v7504_v28 }
 0x2b1   : > { %v3254_v7 = vpop.f32.mrf.mxu1  ;;  %3688 = vmatpush.bf16.msra.mxu1 %v6161_v9 }
 0x2b2   : > { %v3255_v58 = vadd.f32 %v3254_v7, %v3217_v55  ;;  %v6760_v55 = vld [vmem:[#allocation5 + $0x930] sm:$0xf0]  ;;  %v5808_v7 = vld [vmem:[#allocation5 + $0x490] sm:$0xf] }
 0x2b3   : > { %v3183_v1 = vpop.f32.mrf.mxu3 }
 0x2b4   : > { %v7729_v46 = vadd.f32 %v3292_v14, %v3255_v58  ;;  %3415 = vmatmul.bf16.gmra.mxu1 %v7496_v0  ;;  %v6381_v14 = vor.u32 %v6760_v55, %v6380_v41  ;;  %v6617_v58 = vld [vmem:[#allocation5 + $0x4b8] sm:$0xf0]  ;;  %v5764_v41 = vld [vmem:[#allocation5 + $0x438] sm:$0xf] }
 0x2b5   : > { %v3218_v62 = vpop.f32.mrf.mxu0  ;;  %v5809_v33 = vor.u32 %v6617_v58, %v5808_v7 }
 0x2b6   : > { %8626 = vst [vmem:[#allocation47_spill] sm:$0xff] %v7729_v46  ;;  %v3294_v31 = vpop.f32.mrf.mxu2  ;;  %v3219_v26 = vadd.f32 %v3218_v62, %v3180_v32  ;;  %3729 = vmatpush.bf16.msra.mxu2 %v6381_v14 }
 0x2b7   : > { %3650 = vmatpush.bf16.msra.mxu0 %v5809_v33  ;;  %v6606_v33 = vld [vmem:[#allocation5 + $0x460] sm:$0xf0] }
 0x2b8   : > { %v5765_v14 = vor.u32 %v6606_v33, %v5764_v41 }
 0x2b9   : > { %v3256_v51 = vpop.f32.mrf.mxu1 }
 0x2ba   : > { %v3257_v48 = vadd.f32 %v3256_v51, %v3219_v26 }
 0x2bb   : > { %6428 = vmatmul.msk.bf16.vlgmr.msrb.gmra.mxu2 %vm631_vm3, %v7297_v10  ;;  %v3185_v46 = vpop.f32.mrf.mxu3  ;;  %3651 = vmatpush.bf16.msra.mxu0 %v5765_v14 }
 0x2bc   : > { %v7734_v38 = vadd.f32 %v3294_v31, %v3257_v48  ;;  %v5412_v48 = vld [vmem:[#allocation5 + $0x178] sm:$0xf]  ;;  %v6518_v31 = vld [vmem:[#allocation5 + $0x1a0] sm:$0xf0] }
 0x2bd   : > { %v3221_v50 = vpop.f32.mrf.mxu0  ;;  %v5413_v55 = vor.u32 %v6518_v31, %v5412_v48  ;;  %v6507_v48 = vld [vmem:[#allocation5 + $0x148] sm:$0xf0] }
 0x2be   : > { %8627 = vst [vmem:[#allocation48_spill] sm:$0xff] %v7734_v38  ;;  %v3297_v32 = vpop.f32.mrf.mxu2  ;;  %v3222_v3 = vadd.f32 %v3221_v50, %v3183_v1  ;;  %v6116_v50 = vld [vmem:[#allocation5 + $0x6f8] sm:$0xf] }
 0x2bf   : > { %3613 = vmatpush.bf16.msra.mxu3 %v5413_v55 }
 0x2c0   : > { %3471 = vmatmul.bf16.gmra.mxu3 %v7362_v61  ;;  %3504 = vmatmul.bf16.vlgmr.msrb.gmra.mxu0 %v7319_v27 }
 0x2c1   : > { %v3259_v4 = vpop.f32.mrf.mxu1 }
 0x2c2   : > { %v3260_v62 = vadd.f32 %v3259_v4, %v3222_v3  ;;  %v6694_v3 = vld [vmem:[#allocation5 + $0x720] sm:$0xf0]  ;;  %v5368_v4 = vld [vmem:[#allocation5 + $0x120] sm:$0xf] }
 0x2c3   : > { %v3188_v26 = vpop.f32.mrf.mxu3 }
 0x2c4   : > { %v7738_v51 = vadd.f32 %v3297_v32, %v3260_v62  ;;  %3542 = vmatmul.bf16.vlgmr.msrb.gmra.mxu1 %v7304_v12  ;;  %v6117_v62 = vor.u32 %v6694_v3, %v6116_v50  ;;  %v6072_v50 = vld [vmem:[#allocation5 + $0x6a0] sm:$0xf]  ;;  %v6683_v3 = vld [vmem:[#allocation5 + $0x6c8] sm:$0xf0] }
 0x2c5   : > { %v3223_v58 = vpop.f32.mrf.mxu0 }
 0x2c6   : > { %8628 = vst [vmem:[#allocation49_spill] sm:$0xff] %v7738_v51  ;;  %v3299_v7 = vpop.f32.mrf.mxu2  ;;  %v3224_v1 = vadd.f32 %v3223_v58, %v3185_v46  ;;  %v5369_v51 = vor.u32 %v6507_v48, %v5368_v4  ;;  %3689 = vmatpush.bf16.msra.mxu1 %v6117_v62  ;;  %v6336_v58 = vld [vmem:[#allocation5 + $0x8b0] sm:$0xf]  ;;  %v6073_v62 = vor.u32 %v6683_v3, %v6072_v50 }
 0x2c8   : > { %3614 = vmatpush.bf16.msra.mxu3 %v5369_v51 }
 0x2c9   : > { %v3261_v60 = vpop.f32.mrf.mxu1 }
 0x2ca   : > { %v3262_v56 = vadd.f32 %v3261_v60, %v3224_v1  ;;  %v6749_v1 = vld [vmem:[#allocation5 + $0x8d8] sm:$0xf0]  ;;  %v5720_v60 = vld [vmem:[#allocation5 + $0x3e0] sm:$0xf]  ;;  %3690 = vmatpush.bf16.msra.mxu1 %v6073_v62  ;;  %v5280_v62 = vld [vmem:[#allocation5 + $0x70] sm:$0xf] }
 0x2cb   : > { %6429 = vmatmul.msk.bf16.gmra.mxu2 %vm631_vm3, %v7326_v39  ;;  %v3190_v9 = vpop.f32.mrf.mxu3 }
 0x2cc   : > { %v7743_v32 = vadd.f32 %v3299_v7, %v3262_v56  ;;  %v6337_v56 = vor.u32 %v6749_v1, %v6336_v58  ;;  %v6595_v9 = vld [vmem:[#allocation5 + $0x408] sm:$0xf0]  ;;  %v6584_v58 = vld [vmem:[#allocation5 + $0x3b0] sm:$0xf0] }
 0x2cd   : > { %v3226_v41 = vpop.f32.mrf.mxu0  ;;  %v5721_v4 = vor.u32 %v6595_v9, %v5720_v60 }
 0x2ce   : > { %8629 = vst [vmem:[#allocation50_spill] sm:$0xff] %v7743_v32  ;;  %v3302_v31 = vpop.f32.mrf.mxu2  ;;  %v3227_v55 = vadd.f32 %v3226_v41, %v3188_v26  ;;  %3730 = vmatpush.bf16.msra.mxu2 %v6337_v56  ;;  %v5324_v41 = vld [vmem:[#allocation5 + $0xc8] sm:$0xf] }
 0x2cf   : > { %3652 = vmatpush.bf16.msra.mxu0 %v5721_v4  ;;  %v6672_v4 = vld [vmem:[#allocation5 + $0x670] sm:$0xf0] }
 0x2d0   : > { %3476 = vmatmul.bf16.gmra.mxu3 %v7417_v6  ;;  %3509 = vmatmul.bf16.gmra.mxu0 %v7367_v45 }
 0x2d1   : > { %v3264_v46 = vpop.f32.mrf.mxu1 }
 0x2d2   : > { %v3265_v33 = vadd.f32 %v3264_v46, %v3227_v55  ;;  %v6496_v55 = vld [vmem:[#allocation5 + $0xf0] sm:$0xf0]  ;;  %v5676_v46 = vld [vmem:[#allocation5 + $0x388] sm:$0xf] }
 0x2d3   : > { %v3315_v14 = vpop.f32.mrf.mxu3 }
 0x2d4   : > { %v7747_v7 = vadd.f32 %v3302_v31, %v3265_v33  ;;  %3547 = vmatmul.bf16.gmra.mxu1 %v7346_v52  ;;  %v5325_v33 = vor.u32 %v6496_v55, %v5324_v41 }
 0x2d5   : > { %v3228_v48 = vpop.f32.mrf.mxu0 }
 0x2d6   : > { %8630 = vst [vmem:[#allocation51_spill] sm:$0xff] %v7747_v7  ;;  %v3304_v26 = vpop.f32.mrf.mxu2  ;;  %v5677_v7 = vor.u32 %v6584_v58, %v5676_v46  ;;  %3615 = vmatpush.bf16.msra.mxu3 %v5325_v33 }
 0x2d7   : > { %v6028_v26 = vld [vmem:[#allocation5 + $0x648] sm:$0xf] }
 0x2d8   : > { %3653 = vmatpush.bf16.msra.mxu0 %v5677_v7  ;;  %v6029_v48 = vor.u32 %v6672_v4, %v6028_v26  ;;  %v6573_v26 = vld [vmem:[#allocation5 + $0x358] sm:$0xf0]  ;;  %v5984_v4 = vld [vmem:[#allocation5 + $0x5f0] sm:$0xf] }
 0x2d9   : > { %v3266_v51 = vpop.f32.mrf.mxu1 }
 0x2da   : > { %v6485_v51 = vld [vmem:[#allocation5 + $0x98] sm:$0xf0]  ;;  %3691 = vmatpush.bf16.msra.mxu1 %v6029_v48 }
 0x2db   : > { %6430 = vmatmul.msk.bf16.gmra.mxu2 %vm631_vm3, %v7382_v29  ;;  %v3317_v31 = vpop.f32.mrf.mxu3  ;;  %v5281_v55 = vor.u32 %v6485_v51, %v5280_v62 }
 0x2dd   : > { %v3353_v32 = vpop.f32.mrf.mxu0  ;;  %3616 = vmatpush.bf16.msra.mxu3 %v5281_v55  ;;  %v6474_v55 = vld [vmem:[#allocation5 + $0x40] sm:$0xf0] }
 0x2de   : > { %v3429_v1 = vpop.f32.mrf.mxu2  ;;  %v3354_v60 = vadd.f32 %v3353_v32, %v3315_v14 }
 0x2e0   : > { %3481 = vmatmul.bf16.gmra.mxu3 %v7447_v47  ;;  %3514 = vmatmul.bf16.gmra.mxu0 %v7423_v13 }
 0x2e1   : > { %v3391_v56 = vpop.f32.mrf.mxu1 }
 0x2e2   : > { %v3392_v9 = vadd.f32 %v3391_v56, %v3354_v60  ;;  %v6738_v60 = vld [vmem:[#allocation5 + $0x880] sm:$0xf0]  ;;  %v5632_v56 = vld [vmem:[#allocation5 + $0x330] sm:$0xf] }
 0x2e3   : > { %v3320_v50 = vpop.f32.mrf.mxu3  ;;  %v5633_v51 = vor.u32 %v6573_v26, %v5632_v56  ;;  %v6562_v56 = vld [vmem:[#allocation5 + $0x300] sm:$0xf0] }
 0x2e4   : > { %v7754_v3 = vadd.f32 %v3429_v1, %v3392_v9  ;;  %3552 = vmatmul.bf16.gmra.mxu1 %v7402_v57  ;;  %v6292_v1 = vld [vmem:[#allocation5 + $0x858] sm:$0xf] }
 0x2e5   : > { %v3355_v32 = vpop.f32.mrf.mxu0  ;;  %v6293_v9 = vor.u32 %v6738_v60, %v6292_v1  ;;  %3654 = vmatpush.bf16.msra.mxu0 %v5633_v51 }
 0x2e6   : > { %8631 = vst [vmem:[#allocation52_spill] sm:$0xff] %v7754_v3  ;;  %v3431_v41 = vpop.f32.mrf.mxu2  ;;  %v3356_v14 = vadd.f32 %v3355_v32, %v3317_v31  ;;  %v6661_v3 = vld [vmem:[#allocation5 + $0x618] sm:$0xf0]  ;;  %v5236_v31 = vld [vmem:[#allocation5 + $0x18] sm:$0xf] }
 0x2e7   : > { %v5985_v48 = vor.u32 %v6661_v3, %v5984_v4  ;;  %3731 = vmatpush.bf16.msra.mxu2 %v6293_v9  ;;  %v5588_v3 = vld [vmem:[#allocation5 + $0x2d8] sm:$0xf] }
 0x2e8   : > { %v5589_v26 = vor.u32 %v6562_v56, %v5588_v3 }
 0x2e9   : > { %v3393_v7 = vpop.f32.mrf.mxu1  ;;  %3692 = vmatpush.bf16.msra.mxu1 %v5985_v48 }
 0x2ea   : > { %v3394_v46 = vadd.f32 %v3393_v7, %v3356_v14  ;;  %v5237_v14 = vor.u32 %v6474_v55, %v5236_v31  ;;  %3655 = vmatpush.bf16.msra.mxu0 %v5589_v26 }
 0x2eb   : > { %6431 = vmatmul.msk.bf16.gmra.mxu2 %vm631_vm3, %v7411_v63  ;;  %v3322_v33 = vpop.f32.mrf.mxu3 }
 0x2ec   : > { %v7759_v58 = vadd.f32 %v3431_v41, %v3394_v46  ;;  %3617 = vmatpush.bf16.msra.mxu3 %v5237_v14  ;;  %v6546_v14 = vld [vmem:[#allocation5 + $0x284] sm:$0xf] }
 0x2ed   : > { %v3358_v32 = vpop.f32.mrf.mxu0 }
 0x2ee   : > { %8632 = vst [vmem:[#allocation53_spill] sm:$0xff] %v7759_v58  ;;  %v3434_v62 = vpop.f32.mrf.mxu2  ;;  %v3359_v7 = vadd.f32 %v3358_v32, %v3320_v50  ;;  %v5940_v32 = vld [vmem:[#allocation5 + $0x598] sm:$0xf] }
 0x2f0   : > { %3486 = vmatmul.bf16.gmra.mxu3 %v7486_v49  ;;  %3519 = vmatmul.bf16.gmra.mxu0 %v7452_v54 }
 0x2f1   : > { %v3396_v41 = vpop.f32.mrf.mxu1 }
 0x2f2   : > { %v3397_v46 = vadd.f32 %v3396_v41, %v3359_v7  ;;  %v5546_v41 = vld [vmem:[#allocation5 + $0x2ac] sm:$0xf0] }
 0x2f3   : > { %v3325_v1 = vpop.f32.mrf.mxu3 }
 0x2f4   : > { %v7763_v60 = vadd.f32 %v3434_v62, %v3397_v46  ;;  %3557 = vmatmul.bf16.gmra.mxu1 %v7459_v16  ;;  %v6650_v62 = vld [vmem:[#allocation5 + $0x5c0] sm:$0xf0] }
 0x2f5   : > { %v3360_v4 = vpop.f32.mrf.mxu0  ;;  %v5941_v7 = vor.u32 %v6650_v62, %v5940_v32  ;;  %v6722_v32 = vld [vmem:[#allocation5 + $0x804] sm:$0xf] }
 0x2f6   : > { %8633 = vst [vmem:[#allocation54_spill] sm:$0xff] %v7763_v60  ;;  %v3436_v9 = vpop.f32.mrf.mxu2  ;;  %v3361_v50 = vadd.f32 %v3360_v4, %v3322_v33  ;;  %v5549_v60 = vor.u32 %v6546_v14, %v5546_v41  ;;  %v6250_v14 = vld [vmem:[#allocation5 + $0x82c] sm:$0xf0] }
 0x2f7   : > { %3693 = vmatpush.bf16.msra.mxu1 %v5941_v7  ;;  %v6253_v41 = vor.u32 %v6722_v32, %v6250_v14  ;;  %v5854_v32 = vld [vmem:[#allocation5 + $0x514] sm:$0xf0] }
 0x2f8   : > { %3762 = vmatpush.bf16.msrb.mxu3 %v5549_v60 }
 0x2f9   : > { %v3398_v31 = vpop.f32.mrf.mxu1 }
 0x2fa   : > { %v3399_v51 = vadd.f32 %v3398_v31, %v3361_v50  ;;  %v2037_v50 = vunpack.c.h.b16 %v7719_v19  ;;  %v6634_v31 = vld [vmem:[#allocation5 + $0x544] sm:$0xf] }
 0x2fb   : > { %6432 = vmatmul.msk.bf16.gmra.mxu2 %vm631_vm3, %v7464_v25  ;;  %v3327_v48 = vpop.f32.mrf.mxu3  ;;  %3838 = vmatpush.bf16.msrb.mxu1 %v6253_v41 }
 0x2fc   : > { %v7768_v55 = vadd.f32 %v3436_v9, %v3399_v51  ;;  %v5898_v51 = vld [vmem:[#allocation5 + $0x56c] sm:$0xf0]  ;;  %v2345_v7 = vpack.c.b16 %v2037_v50, %v2037_v50 }
 0x2fd   : > { %v3363_v3 = vpop.f32.mrf.mxu0  ;;  %v5901_v62 = vor.u32 %v6634_v31, %v5898_v51  ;;  %v6535_v31 = vld [vmem:[#allocation5 + $0x22c] sm:$0xf]  ;;  %v5502_v51 = vld [vmem:[#allocation5 + $0x254] sm:$0xf0] }
 0x2fe   : > { %8634 = vst [vmem:[#allocation55_spill] sm:$0xff] %v7768_v55  ;;  %v3439_v46 = vpop.f32.mrf.mxu2  ;;  %v3364_v56 = vadd.f32 %v3363_v3, %v3325_v1  ;;  %v5505_v50 = vor.u32 %v6535_v31, %v5502_v51 }
 0x2ff   : > { %3800 = vmatpush.bf16.msrb.mxu0 %v5901_v62 }
 0x300   : > { %3491 = vmatmul.bf16.gmra.mxu3 %v7501_v21  ;;  %3524 = vmatmul.bf16.gmra.mxu0 %v7490_v53 }
 0x301   : > { %v3401_v33 = vpop.f32.mrf.mxu1  ;;  %3763 = vmatpush.bf16.msrb.mxu3 %v5505_v50 }
 0x302   : > { %v3402_v26 = vadd.f32 %v3401_v33, %v3364_v56  ;;  %v2687_v56 = vsel %vm2664_vm1, %v2345_v7, 0 }
 0x303   : > { %v3330_v4 = vpop.f32.mrf.mxu3  ;;  %3880 = vmatpush.bf16.msrb.mxu2 %v2687_v56  ;;  %v6711_v56 = vld [vmem:[#allocation5 + $0x7ac] sm:$0xf] }
 0x304   : > { %v7772_v9 = vadd.f32 %v3439_v46, %v3402_v26  ;;  %3562 = vmatmul.bf16.gmra.mxu1 %v7477_v35 }
 0x305   : > { %v3365_v3 = vpop.f32.mrf.mxu0 }
 0x306   : > { %8635 = vst [vmem:[#allocation56_spill] sm:$0xff] %v7772_v9  ;;  %v3441_v1 = vpop.f32.mrf.mxu2  ;;  %v3366_v60 = vadd.f32 %v3365_v3, %v3327_v48  ;;  %v6623_v9 = vld [vmem:[#allocation5 + $0x4ec] sm:$0xf] }
 0x307   : > { %v5857_v62 = vor.u32 %v6623_v9, %v5854_v32  ;;  %v5458_v9 = vld [vmem:[#allocation5 + $0x1fc] sm:$0xf0] }
 0x309   : > { %v3403_v46 = vpop.f32.mrf.mxu1  ;;  %3801 = vmatpush.bf16.msrb.mxu0 %v5857_v62 }
 0x30a   : > { %v3404_v33 = vadd.f32 %v3403_v46, %v3366_v60  ;;  %v6206_v46 = vld [vmem:[#allocation5 + $0x7d4] sm:$0xf0] }
 0x30b   : > { %6433 = vmatmul.msk.bf16.gmra.mxu2 %vm631_vm3, %v7483_v42  ;;  %v3332_v19 = vpop.f32.mrf.mxu3  ;;  %v6209_v31 = vor.u32 %v6711_v56, %v6206_v46  ;;  %v6700_v56 = vld [vmem:[#allocation5 + $0x754] sm:$0xf]  ;;  %v6162_v46 = vld [vmem:[#allocation5 + $0x77c] sm:$0xf0] }
 0x30c   : > { %v7779_v26 = vadd.f32 %v3441_v1, %v3404_v33  ;;  %v6524_v33 = vld [vmem:[#allocation5 + $0x1d4] sm:$0xf] }
 0x30d   : > { %v3368_v48 = vpop.f32.mrf.mxu0  ;;  %v5461_v50 = vor.u32 %v6524_v33, %v5458_v9  ;;  %3839 = vmatpush.bf16.msrb.mxu1 %v6209_v31  ;;  %v6165_v33 = vor.u32 %v6700_v56, %v6162_v46 }
 0x30e   : > { %8636 = vst [vmem:[#allocation57_spill] sm:$0xff] %v7779_v26  ;;  %v3444_v14 = vpop.f32.mrf.mxu2  ;;  %v3369_v7 = vadd.f32 %v3368_v48, %v3330_v4  ;;  %v6755_v48 = vld [vmem:[#allocation5 + $0x90c] sm:$0xf] }
 0x30f   : > { %3764 = vmatpush.bf16.msrb.mxu3 %v5461_v50 }
 0x310   : > { %3618 = vmatmul.bf16.vlgmr.msra.gmra.mxu3 %v7316_v23  ;;  %3529 = vmatmul.bf16.gmra.mxu0 %v7504_v28 }
 0x311   : > { %v3406_v41 = vpop.f32.mrf.mxu1  ;;  %3840 = vmatpush.bf16.msrb.mxu1 %v6165_v33 }
 0x312   : > { %v3407_v3 = vadd.f32 %v3406_v41, %v3369_v7  ;;  %v6382_v7 = vld [vmem:[#allocation5 + $0x934] sm:$0xf0]  ;;  %v6612_v41 = vld [vmem:[#allocation5 + $0x494] sm:$0xf] }
 0x313   : > { %v3335_v60 = vpop.f32.mrf.mxu3 }
 0x314   : > { %v7783_v1 = vadd.f32 %v3444_v14, %v3407_v3  ;;  %3567 = vmatmul.bf16.gmra.mxu1 %v7496_v0  ;;  %v6385_v14 = vor.u32 %v6755_v48, %v6382_v7  ;;  %v5810_v3 = vld [vmem:[#allocation5 + $0x4bc] sm:$0xf0]  ;;  %v6601_v48 = vld [vmem:[#allocation5 + $0x43c] sm:$0xf] }
 0x315   : > { %v3370_v4 = vpop.f32.mrf.mxu0 }
 0x316   : > { %8637 = vst [vmem:[#allocation58_spill] sm:$0xff] %v7783_v1  ;;  %v3446_v51 = vpop.f32.mrf.mxu2  ;;  %v3371_v32 = vadd.f32 %v3370_v4, %v3332_v19  ;;  %v5813_v1 = vor.u32 %v6612_v41, %v5810_v3  ;;  %3881 = vmatpush.bf16.msrb.mxu2 %v6385_v14 }
 0x318   : > { %3802 = vmatpush.bf16.msrb.mxu0 %v5813_v1  ;;  %v5766_v1 = vld [vmem:[#allocation5 + $0x464] sm:$0xf0] }
 0x319   : > { %v3408_v62 = vpop.f32.mrf.mxu1  ;;  %v5769_v14 = vor.u32 %v6601_v48, %v5766_v1 }
 0x31a   : > { %v3409_v55 = vadd.f32 %v3408_v62, %v3371_v32 }
 0x31b   : > { %6434 = vmatmul.msk.bf16.vlgmr.msra.gmra.mxu2 %vm631_vm3, %v7297_v10  ;;  %v3337_v58 = vpop.f32.mrf.mxu3 }
 0x31c   : > { %v7788_v26 = vadd.f32 %v3446_v51, %v3409_v55  ;;  %v6513_v55 = vld [vmem:[#allocation5 + $0x17c] sm:$0xf]  ;;  %v5414_v51 = vld [vmem:[#allocation5 + $0x1a4] sm:$0xf0]  ;;  %3803 = vmatpush.bf16.msrb.mxu0 %v5769_v14 }
 0x31d   : > { %v3373_v31 = vpop.f32.mrf.mxu0  ;;  %v5417_v7 = vor.u32 %v6513_v55, %v5414_v51  ;;  %v5370_v55 = vld [vmem:[#allocation5 + $0x14c] sm:$0xf0] }
 0x31e   : > { %8638 = vst [vmem:[#allocation59_spill] sm:$0xff] %v7788_v26  ;;  %v3449_v19 = vpop.f32.mrf.mxu2  ;;  %v3374_v9 = vadd.f32 %v3373_v31, %v3335_v60  ;;  %v6689_v31 = vld [vmem:[#allocation5 + $0x6fc] sm:$0xf]  ;;  %v5986_v26 = vld [vmem:[#allocation5 + $0x61c] sm:$0xf0] }
 0x31f   : > { %3765 = vmatpush.bf16.msrb.mxu3 %v5417_v7 }
 0x320   : > { %3623 = vmatmul.bf16.gmra.mxu3 %v7362_v61  ;;  %3656 = vmatmul.bf16.vlgmr.msra.gmra.mxu0 %v7319_v27 }
 0x321   : > { %v3411_v50 = vpop.f32.mrf.mxu1 }
 0x322   : > { %v3412_v4 = vadd.f32 %v3411_v50, %v3374_v9  ;;  %v6118_v9 = vld [vmem:[#allocation5 + $0x724] sm:$0xf0]  ;;  %v6502_v50 = vld [vmem:[#allocation5 + $0x124] sm:$0xf] }
 0x323   : > { %v3340_v32 = vpop.f32.mrf.mxu3 }
 0x324   : > { %v7792_v62 = vadd.f32 %v3449_v19, %v3412_v4  ;;  %3694 = vmatmul.bf16.vlgmr.msra.gmra.mxu1 %v7304_v12  ;;  %v6121_v4 = vor.u32 %v6689_v31, %v6118_v9  ;;  %v6678_v31 = vld [vmem:[#allocation5 + $0x6a4] sm:$0xf]  ;;  %v6074_v9 = vld [vmem:[#allocation5 + $0x6cc] sm:$0xf0] }
 0x325   : > { %v3375_v3 = vpop.f32.mrf.mxu0 }
 0x326   : > { %8639 = vst [vmem:[#allocation60_spill] sm:$0xff] %v7792_v62  ;;  %v3451_v41 = vpop.f32.mrf.mxu2  ;;  %v3376_v60 = vadd.f32 %v3375_v3, %v3337_v58  ;;  %v5373_v62 = vor.u32 %v6502_v50, %v5370_v55  ;;  %3841 = vmatpush.bf16.msrb.mxu1 %v6121_v4  ;;  %v6744_v3 = vld [vmem:[#allocation5 + $0x8b4] sm:$0xf]  ;;  %v6077_v4 = vor.u32 %v6678_v31, %v6074_v9 }
 0x328   : > { %3766 = vmatpush.bf16.msrb.mxu3 %v5373_v62 }
 0x329   : > { %v3413_v56 = vpop.f32.mrf.mxu1 }
 0x32a   : > { %v3414_v46 = vadd.f32 %v3413_v56, %v3376_v60  ;;  %v6338_v60 = vld [vmem:[#allocation5 + $0x8dc] sm:$0xf0]  ;;  %v6590_v56 = vld [vmem:[#allocation5 + $0x3e4] sm:$0xf]  ;;  %3842 = vmatpush.bf16.msrb.mxu1 %v6077_v4  ;;  %v6480_v4 = vld [vmem:[#allocation5 + $0x74] sm:$0xf] }
 0x32b   : > { %6435 = vmatmul.msk.bf16.gmra.mxu2 %vm631_vm3, %v7326_v39  ;;  %v3342_v33 = vpop.f32.mrf.mxu3 }
 0x32c   : > { %v7797_v19 = vadd.f32 %v3451_v41, %v3414_v46  ;;  %v6341_v46 = vor.u32 %v6744_v3, %v6338_v60  ;;  %v5722_v33 = vld [vmem:[#allocation5 + $0x40c] sm:$0xf0]  ;;  %v5678_v3 = vld [vmem:[#allocation5 + $0x3b4] sm:$0xf0] }
 0x32d   : > { %v3378_v48 = vpop.f32.mrf.mxu0  ;;  %v5725_v50 = vor.u32 %v6590_v56, %v5722_v33 }
 0x32e   : > { %8640 = vst [vmem:[#allocation61_spill] sm:$0xff] %v7797_v19  ;;  %v3454_v51 = vpop.f32.mrf.mxu2  ;;  %v3379_v7 = vadd.f32 %v3378_v48, %v3340_v32  ;;  %3882 = vmatpush.bf16.msrb.mxu2 %v6341_v46  ;;  %v6491_v48 = vld [vmem:[#allocation5 + $0xcc] sm:$0xf] }
 0x32f   : > { %3804 = vmatpush.bf16.msrb.mxu0 %v5725_v50  ;;  %v6030_v50 = vld [vmem:[#allocation5 + $0x674] sm:$0xf0] }
 0x330   : > { %3628 = vmatmul.bf16.gmra.mxu3 %v7417_v6  ;;  %3661 = vmatmul.bf16.gmra.mxu0 %v7367_v45 }
 0x331   : > { %v3416_v58 = vpop.f32.mrf.mxu1 }
 0x332   : > { %v3417_v1 = vadd.f32 %v3416_v58, %v3379_v7  ;;  %v5326_v7 = vld [vmem:[#allocation5 + $0xf4] sm:$0xf0]  ;;  %v6579_v58 = vld [vmem:[#allocation5 + $0x38c] sm:$0xf] }
 0x333   : > { %v3467_v14 = vpop.f32.mrf.mxu3 }
 0x334   : > { %v7801_v41 = vadd.f32 %v3454_v51, %v3417_v1  ;;  %3699 = vmatmul.bf16.gmra.mxu1 %v7346_v52  ;;  %v5329_v1 = vor.u32 %v6491_v48, %v5326_v7 }
 0x335   : > { %v3380_v55 = vpop.f32.mrf.mxu0 }
 0x336   : > { %8641 = vst [vmem:[#allocation62_spill] sm:$0xff] %v7801_v41  ;;  %v3456_v32 = vpop.f32.mrf.mxu2  ;;  %v5681_v41 = vor.u32 %v6579_v58, %v5678_v3  ;;  %3767 = vmatpush.bf16.msrb.mxu3 %v5329_v1 }
 0x337   : > { %v6667_v32 = vld [vmem:[#allocation5 + $0x64c] sm:$0xf] }
 0x338   : > { %3805 = vmatpush.bf16.msrb.mxu0 %v5681_v41  ;;  %v6033_v55 = vor.u32 %v6667_v32, %v6030_v50  ;;  %v5634_v32 = vld [vmem:[#allocation5 + $0x35c] sm:$0xf0]  ;;  %v6656_v50 = vld [vmem:[#allocation5 + $0x5f4] sm:$0xf] }
 0x339   : > { %v3418_v62 = vpop.f32.mrf.mxu1 }
 0x33a   : > { %v5282_v62 = vld [vmem:[#allocation5 + $0x9c] sm:$0xf0]  ;;  %3843 = vmatpush.bf16.msrb.mxu1 %v6033_v55  ;;  %v5989_v55 = vor.u32 %v6656_v50, %v5986_v26  ;;  %v6557_v26 = vld [vmem:[#allocation5 + $0x2dc] sm:$0xf] }
 0x33b   : > { %6436 = vmatmul.msk.bf16.gmra.mxu2 %vm631_vm3, %v7382_v29  ;;  %v3469_v51 = vpop.f32.mrf.mxu3 }
 0x33d   : > { %v3505_v19 = vpop.f32.mrf.mxu0 }
 0x33e   : > { %v3581_v60 = vpop.f32.mrf.mxu2  ;;  %v3506_v56 = vadd.f32 %v3505_v19, %v3467_v14  ;;  %v5285_v14 = vor.u32 %v6480_v4, %v5282_v62  ;;  %v6469_v62 = vld [vmem:[#allocation5 + $0x1c] sm:$0xf]  ;;  %3844 = vmatpush.bf16.msrb.mxu1 %v5989_v55 }
 0x340   : > { %3633 = vmatmul.bf16.gmra.mxu3 %v7447_v47  ;;  %3666 = vmatmul.bf16.gmra.mxu0 %v7423_v13 }
 0x341   : > { %v3543_v46 = vpop.f32.mrf.mxu1  ;;  %3768 = vmatpush.bf16.msrb.mxu3 %v5285_v14  ;;  %v5238_v14 = vld [vmem:[#allocation5 + $0x44] sm:$0xf0] }
 0x342   : > { %v3544_v33 = vadd.f32 %v3543_v46, %v3506_v56  ;;  %v6294_v56 = vld [vmem:[#allocation5 + $0x884] sm:$0xf0]  ;;  %v6568_v46 = vld [vmem:[#allocation5 + $0x334] sm:$0xf] }
 0x343   : > { %v3472_v31 = vpop.f32.mrf.mxu3  ;;  %v5637_v4 = vor.u32 %v6568_v46, %v5634_v32  ;;  %v5590_v46 = vld [vmem:[#allocation5 + $0x304] sm:$0xf0] }
 0x344   : > { %v7808_v9 = vadd.f32 %v3581_v60, %v3544_v33  ;;  %3704 = vmatmul.bf16.gmra.mxu1 %v7402_v57  ;;  %v6733_v60 = vld [vmem:[#allocation5 + $0x85c] sm:$0xf]  ;;  %v5593_v32 = vor.u32 %v6557_v26, %v5590_v46 }
 0x345   : > { %v3507_v41 = vpop.f32.mrf.mxu0  ;;  %v6297_v33 = vor.u32 %v6733_v60, %v6294_v56  ;;  %3806 = vmatpush.bf16.msrb.mxu0 %v5637_v4 }
 0x346   : > { %8642 = vst [vmem:[#allocation63_spill] sm:$0xff] %v7808_v9  ;;  %4436 = vrot.lane.b32.xlu0 %v7808_v9, %s6972_s21  ;;  %v3583_v19 = vpop.f32.mrf.mxu2  ;;  %v3508_v48 = vadd.f32 %v3507_v41, %v3469_v51  ;;  %v6618_v9 = vld [vmem:[#allocation5 + $0x4c0] sm:$0xf0] }
 0x347   : > { %3883 = vmatpush.bf16.msrb.mxu2 %v6297_v33 }
 0x349   : > { %v3545_v7 = vpop.f32.mrf.mxu1  ;;  %3807 = vmatpush.bf16.msrb.mxu0 %v5593_v32 }
 0x34a   : > { %v3546_v58 = vadd.f32 %v3545_v7, %v3508_v48  ;;  %v5241_v48 = vor.u32 %v6469_v62, %v5238_v14  ;;  %v6645_v14 = vld [vmem:[#allocation5 + $0x59c] sm:$0xf] }
 0x34b   : > { %6437 = vmatmul.msk.bf16.gmra.mxu2 %vm631_vm3, %v7411_v63  ;;  %v3474_v1 = vpop.f32.mrf.mxu3 }
 0x34c   : > { %v7815_v3 = vadd.f32 %v3583_v19, %v3546_v58  ;;  %3769 = vmatpush.bf16.msrb.mxu3 %v5241_v48  ;;  %v5552_v48 = vld [vmem:[#allocation5 + $0x288] sm:$0xf] }
 0x34d   : > { %v3510_v41 = vpop.f32.mrf.mxu0 }
 0x34e   : > { %8643 = vst [vmem:[#allocation64_spill] sm:$0xff] %v7815_v3  ;;  %4448 = vrot.lane.b32.xlu0 %v7815_v3, %s6972_s21  ;;  %v3586_v51 = vpop.f32.mrf.mxu2  ;;  %v3511_v19 = vadd.f32 %v3510_v41, %v3472_v31  ;;  %v5942_v41 = vld [vmem:[#allocation5 + $0x5c4] sm:$0xf0]  ;;  %v5860_v3 = vld [vmem:[#allocation5 + $0x4f0] sm:$0xf] }
 0x350   : > { %3638 = vmatmul.bf16.gmra.mxu3 %v7486_v49  ;;  %3671 = vmatmul.bf16.gmra.mxu0 %v7452_v54 }
 0x351   : > { %v3548_v7 = vpop.f32.mrf.mxu1 }
 0x352   : > { %v3549_v58 = vadd.f32 %v3548_v7, %v3511_v19  ;;  %v5945_v19 = vor.u32 %v6645_v14, %v5942_v41  ;;  %v6552_v7 = vld [vmem:[#allocation5 + $0x2b0] sm:$0xf0] }
 0x353   : > { %v3477_v60 = vpop.f32.mrf.mxu3  ;;  %v5553_v26 = vor.u32 %v6552_v7, %v5552_v48  ;;  %v6640_v14 = vld [vmem:[#allocation5 + $0x570] sm:$0xf0] }
 0x354   : > { %v7821_v56 = vadd.f32 %v3586_v51, %v3549_v58  ;;  %3709 = vmatmul.bf16.gmra.mxu1 %v7459_v16 }
 0x355   : > { %v3512_v33 = vpop.f32.mrf.mxu0  ;;  %3845 = vmatpush.bf16.msrb.mxu1 %v5945_v19  ;;  %3914 = vmatpush.bf16.msra.mxu3 %v5553_v26  ;;  %v6728_v19 = vld [vmem:[#allocation5 + $0x830] sm:$0xf0] }
 0x356   : > { %8644 = vst [vmem:[#allocation65_spill] sm:$0xff] %v7821_v56  ;;  %4460 = vrot.lane.b32.xlu0 %v7821_v56, %s6972_s21  ;;  %v3588_v31 = vpop.f32.mrf.mxu2  ;;  %v3513_v50 = vadd.f32 %v3512_v33, %v3474_v1  ;;  %v5508_v56 = vld [vmem:[#allocation5 + $0x230] sm:$0xf] }
 0x359   : > { %v3550_v4 = vpop.f32.mrf.mxu1 }
 0x35a   : > { %v3551_v55 = vadd.f32 %v3550_v4, %v3513_v50  ;;  %v7837_v4 = vld [vmem:[#allocation5 + $0x968] sm:$0xff] }
 0x35b   : > { %6438 = vmatmul.msk.bf16.gmra.mxu2 %vm631_vm3, %v7464_v25  ;;  %v3479_v62 = vpop.f32.mrf.mxu3  ;;  %v2038_v41 = vunpack.c.l.b16 %v7837_v4 }
 0x35c   : > { %v7828_v51 = vadd.f32 %v3588_v31, %v3551_v55  ;;  %v5904_v55 = vld [vmem:[#allocation5 + $0x548] sm:$0xf] }
 0x35d   : > { %v3515_v46 = vpop.f32.mrf.mxu0  ;;  %v5905_v48 = vor.u32 %v6640_v14, %v5904_v55 }
 0x35e   : > { %8645 = vst [vmem:[#allocation66_spill] sm:$0xff] %v7828_v51  ;;  %4472 = vrot.lane.b32.xlu0 %v7828_v51, %s6972_s21  ;;  %v3591_v58 = vpop.f32.mrf.mxu2  ;;  %v3516_v1 = vadd.f32 %v3515_v46, %v3477_v60  ;;  %v6256_v60 = vld [vmem:[#allocation5 + $0x808] sm:$0xf] }
 0x35f   : > { %v6257_v26 = vor.u32 %v6728_v19, %v6256_v60  ;;  %3952 = vmatpush.bf16.msra.mxu0 %v5905_v48  ;;  %v6629_v19 = vld [vmem:[#allocation5 + $0x518] sm:$0xf0] }
 0x360   : > { %3643 = vmatmul.bf16.gmra.mxu3 %v7501_v21  ;;  %3676 = vmatmul.bf16.gmra.mxu0 %v7490_v53 }
 0x361   : > { %v3553_v32 = vpop.f32.mrf.mxu1  ;;  %3990 = vmatpush.bf16.msra.mxu1 %v6257_v26 }
 0x362   : > { %v3554_v33 = vadd.f32 %v3553_v32, %v3516_v1  ;;  %v2346_v1 = vpack.c.b16 %v2038_v41, %v2038_v41  ;;  %v5861_v41 = vor.u32 %v6629_v19, %v5860_v3  ;;  %v6530_v3 = vld [vmem:[#allocation5 + $0x200] sm:$0xf0] }
 0x363   : > { %v3482_v31 = vpop.f32.mrf.mxu3 }
 0x364   : > { %v7834_v50 = vadd.f32 %v3591_v58, %v3554_v33  ;;  %3714 = vmatmul.bf16.gmra.mxu1 %v7477_v35  ;;  %v2690_v33 = vsel %vm2664_vm1, %v2346_v1, 0  ;;  %3953 = vmatpush.bf16.msra.mxu0 %v5861_v41 }
 0x365   : > { %v3517_v46 = vpop.f32.mrf.mxu0  ;;  %4032 = vmatpush.bf16.msra.mxu2 %v2690_v33 }
 0x366   : > { %8646 = vst [vmem:[#allocation67_spill] sm:$0xff] %v7834_v50  ;;  %4484 = vrot.lane.b32.xlu0 %v7834_v50, %s6972_s21  ;;  %v3593_v7 = vpop.f32.mrf.mxu2  ;;  %v3518_v58 = vadd.f32 %v3517_v46, %v3479_v62  ;;  %v6541_v50 = vld [vmem:[#allocation5 + $0x258] sm:$0xf0] }
 0x367   : > { %v5509_v60 = vor.u32 %v6541_v50, %v5508_v56  ;;  %v6212_v56 = vld [vmem:[#allocation5 + $0x7b0] sm:$0xf]  ;;  %v6717_v50 = vld [vmem:[#allocation5 + $0x7d8] sm:$0xf0] }
 0x369   : > { %v3555_v32 = vpop.f32.mrf.mxu1  ;;  %3915 = vmatpush.bf16.msra.mxu3 %v5509_v60 }
 0x36a   : > { %v3556_v51 = vadd.f32 %v3555_v32, %v3518_v58  ;;  %v5464_v58 = vld [vmem:[#allocation5 + $0x1d8] sm:$0xf]  ;;  %v6213_v32 = vor.u32 %v6717_v50, %v6212_v56 }
 0x36b   : > { %6439 = vmatmul.msk.bf16.gmra.mxu2 %vm631_vm3, %v7483_v42  ;;  %v3484_v55 = vpop.f32.mrf.mxu3  ;;  %v5465_v33 = vor.u32 %v6530_v3, %v5464_v58 }
 0x36c   : > { %v7845_v14 = vadd.f32 %v3593_v7, %v3556_v51  ;;  %3991 = vmatpush.bf16.msra.mxu1 %v6213_v32 }
 0x36d   : > { %v3520_v48 = vpop.f32.mrf.mxu0  ;;  %3916 = vmatpush.bf16.msra.mxu3 %v5465_v33 }
 0x36e   : > { %8647 = vst [vmem:[#allocation68_spill] sm:$0xff] %v7845_v14  ;;  %4496 = vrot.lane.b32.xlu0 %v7845_v14, %s6972_s21  ;;  %v3596_v62 = vpop.f32.mrf.mxu2  ;;  %v3521_v26 = vadd.f32 %v3520_v48, %v3482_v31  ;;  %v6388_v48 = vld [vmem:[#allocation5 + $0x910] sm:$0xf]  ;;  %v6168_v14 = vld [vmem:[#allocation5 + $0x758] sm:$0xf] }
 0x370   : > { %3770 = vmatmul.bf16.vlgmr.msrb.gmra.mxu3 %v7316_v23  ;;  %3681 = vmatmul.bf16.gmra.mxu0 %v7504_v28 }
 0x371   : > { %v3558_v46 = vpop.f32.mrf.mxu1 }
 0x372   : > { %v3559_v1 = vadd.f32 %v3558_v46, %v3521_v26  ;;  %v5816_v26 = vld [vmem:[#allocation5 + $0x498] sm:$0xf] }
 0x373   : > { %v3487_v51 = vpop.f32.mrf.mxu3  ;;  %v5817_v50 = vor.u32 %v6618_v9, %v5816_v26 }
 0x374   : > { %v7851_v7 = vadd.f32 %v3596_v62, %v3559_v1  ;;  %3719 = vmatmul.bf16.gmra.mxu1 %v7496_v0  ;;  %v6761_v62 = vld [vmem:[#allocation5 + $0x938] sm:$0xf0] }
 0x375   : > { %v3522_v60 = vpop.f32.mrf.mxu0  ;;  %v6389_v1 = vor.u32 %v6761_v62, %v6388_v48  ;;  %3954 = vmatpush.bf16.msra.mxu0 %v5817_v50  ;;  %v6607_v48 = vld [vmem:[#allocation5 + $0x468] sm:$0xf0] }
 0x376   : > { %8648 = vst [vmem:[#allocation69_spill] sm:$0xff] %v7851_v7  ;;  %4508 = vrot.lane.b32.xlu0 %v7851_v7, %s6972_s21  ;;  %v3598_v31 = vpop.f32.mrf.mxu2  ;;  %v3523_v19 = vadd.f32 %v3522_v60, %v3484_v55  ;;  %v6706_v7 = vld [vmem:[#allocation5 + $0x780] sm:$0xf0] }
 0x377   : > { %4033 = vmatpush.bf16.msra.mxu2 %v6389_v1  ;;  %v6169_v58 = vor.u32 %v6706_v7, %v6168_v14  ;;  %v5420_v14 = vld [vmem:[#allocation5 + $0x180] sm:$0xf]  ;;  %v6519_v7 = vld [vmem:[#allocation5 + $0x1a8] sm:$0xf0] }
 0x379   : > { %v3560_v41 = vpop.f32.mrf.mxu1  ;;  %3992 = vmatpush.bf16.msra.mxu1 %v6169_v58 }
 0x37a   : > { %v3561_v46 = vadd.f32 %v3560_v41, %v3523_v19  ;;  %v5421_v41 = vor.u32 %v6519_v7, %v5420_v14  ;;  %v6508_v14 = vld [vmem:[#allocation5 + $0x150] sm:$0xf0] }
 0x37b   : > { %6440 = vmatmul.msk.bf16.vlgmr.msrb.gmra.mxu2 %vm631_vm3, %v7297_v10  ;;  %v3489_v56 = vpop.f32.mrf.mxu3 }
 0x37c   : > { %v7858_v38 = vadd.f32 %v3598_v31, %v3561_v46  ;;  %v5772_v31 = vld [vmem:[#allocation5 + $0x440] sm:$0xf]  ;;  %3917 = vmatpush.bf16.msra.mxu3 %v5421_v41 }
 0x37d   : > { %v3525_v32 = vpop.f32.mrf.mxu0  ;;  %v5773_v62 = vor.u32 %v6607_v48, %v5772_v31 }
 0x37e   : > { %8649 = vst [vmem:[#allocation70_spill] sm:$0xff] %v7858_v38  ;;  %4520 = vrot.lane.b32.xlu0 %v7858_v38, %s6972_s21  ;;  %v3601_v55 = vpop.f32.mrf.mxu2  ;;  %v3526_v3 = vadd.f32 %v3525_v32, %v3487_v51  ;;  %v6124_v32 = vld [vmem:[#allocation5 + $0x700] sm:$0xf] }
 0x37f   : > { %3955 = vmatpush.bf16.msra.mxu0 %v5773_v62 }
 0x380   : > { %3775 = vmatmul.bf16.gmra.mxu3 %v7362_v61  ;;  %3808 = vmatmul.bf16.vlgmr.msrb.gmra.mxu0 %v7319_v27 }
 0x381   : > { %v3563_v33 = vpop.f32.mrf.mxu1 }
 0x382   : > { %v3564_v60 = vadd.f32 %v3563_v33, %v3526_v3  ;;  %v6695_v3 = vld [vmem:[#allocation5 + $0x728] sm:$0xf0]  ;;  %v5376_v33 = vld [vmem:[#allocation5 + $0x128] sm:$0xf] }
 0x383   : > { %v3492_v9 = vpop.f32.mrf.mxu3  ;;  %v5377_v31 = vor.u32 %v6508_v14, %v5376_v33  ;;  %v6684_v33 = vld [vmem:[#allocation5 + $0x6d0] sm:$0xf0] }
 0x384   : > { %v7864_v19 = vadd.f32 %v3601_v55, %v3564_v60  ;;  %3846 = vmatmul.bf16.vlgmr.msrb.gmra.mxu1 %v7304_v12  ;;  %v6125_v60 = vor.u32 %v6695_v3, %v6124_v32  ;;  %v6596_v32 = vld [vmem:[#allocation5 + $0x410] sm:$0xf0]  ;;  %v6080_v3 = vld [vmem:[#allocation5 + $0x6a8] sm:$0xf] }
 0x385   : > { %v3527_v26 = vpop.f32.mrf.mxu0  ;;  %3918 = vmatpush.bf16.msra.mxu3 %v5377_v31  ;;  %v6081_v14 = vor.u32 %v6684_v33, %v6080_v3 }
 0x386   : > { %8650 = vst [vmem:[#allocation71_spill] sm:$0xff] %v7864_v19  ;;  %4532 = vrot.lane.b32.xlu0 %v7864_v19, %s6972_s21  ;;  %v3603_v51 = vpop.f32.mrf.mxu2  ;;  %v3528_v46 = vadd.f32 %v3527_v26, %v3489_v56  ;;  %3993 = vmatpush.bf16.msra.mxu1 %v6125_v60 }
 0x389   : > { %v3565_v1 = vpop.f32.mrf.mxu1 }
 0x38a   : > { %v3566_v50 = vadd.f32 %v3565_v1, %v3528_v46  ;;  %v6344_v46 = vld [vmem:[#allocation5 + $0x8b8] sm:$0xf]  ;;  %v6750_v1 = vld [vmem:[#allocation5 + $0x8e0] sm:$0xf0]  ;;  %3994 = vmatpush.bf16.msra.mxu1 %v6081_v14 }
 0x38b   : > { %6441 = vmatmul.msk.bf16.gmra.mxu2 %vm631_vm3, %v7326_v39  ;;  %v3494_v58 = vpop.f32.mrf.mxu3  ;;  %v5288_v14 = vld [vmem:[#allocation5 + $0x78] sm:$0xf] }
 0x38c   : > { %v7871_v55 = vadd.f32 %v3603_v51, %v3566_v50  ;;  %v5728_v50 = vld [vmem:[#allocation5 + $0x3e8] sm:$0xf]  ;;  %v6345_v58 = vor.u32 %v6750_v1, %v6344_v46  ;;  %v6585_v1 = vld [vmem:[#allocation5 + $0x3b8] sm:$0xf0] }
 0x38d   : > { %v3530_v56 = vpop.f32.mrf.mxu0  ;;  %v5729_v60 = vor.u32 %v6596_v32, %v5728_v50 }
 0x38e   : > { %8651 = vst [vmem:[#allocation72_spill] sm:$0xff] %v7871_v55  ;;  %4544 = vrot.lane.b32.xlu0 %v7871_v55, %s6972_s21  ;;  %v3606_v7 = vpop.f32.mrf.mxu2  ;;  %v3531_v41 = vadd.f32 %v3530_v56, %v3492_v9  ;;  %4034 = vmatpush.bf16.msra.mxu2 %v6345_v58 }
 0x38f   : > { %3956 = vmatpush.bf16.msra.mxu0 %v5729_v60  ;;  %v6673_v60 = vld [vmem:[#allocation5 + $0x678] sm:$0xf0] }
 0x390   : > { %3780 = vmatmul.bf16.gmra.mxu3 %v7417_v6  ;;  %3813 = vmatmul.bf16.gmra.mxu0 %v7367_v45 }
 0x391   : > { %v3568_v48 = vpop.f32.mrf.mxu1 }
 0x392   : > { %v3569_v62 = vadd.f32 %v3568_v48, %v3531_v41  ;;  %v5332_v41 = vld [vmem:[#allocation5 + $0xd0] sm:$0xf]  ;;  %v6497_v48 = vld [vmem:[#allocation5 + $0xf8] sm:$0xf0] }
 0x393   : > { %v3619_v51 = vpop.f32.mrf.mxu3  ;;  %v5333_v46 = vor.u32 %v6497_v48, %v5332_v41 }
 0x394   : > { %v7877_v26 = vadd.f32 %v3606_v7, %v3569_v62  ;;  %3851 = vmatmul.bf16.gmra.mxu1 %v7346_v52  ;;  %v5684_v62 = vld [vmem:[#allocation5 + $0x390] sm:$0xf] }
 0x395   : > { %v3532_v31 = vpop.f32.mrf.mxu0  ;;  %v5685_v19 = vor.u32 %v6585_v1, %v5684_v62  ;;  %3919 = vmatpush.bf16.msra.mxu3 %v5333_v46  ;;  %v6300_v1 = vld [vmem:[#allocation5 + $0x860] sm:$0xf] }
 0x396   : > { %8652 = vst [vmem:[#allocation73_spill] sm:$0xff] %v7877_v26  ;;  %4556 = vrot.lane.b32.xlu0 %v7877_v26, %s6972_s21  ;;  %v3608_v9 = vpop.f32.mrf.mxu2 }
 0x397   : > { %3957 = vmatpush.bf16.msra.mxu0 %v5685_v19  ;;  %v6036_v9 = vld [vmem:[#allocation5 + $0x650] sm:$0xf] }
 0x398   : > { %v6037_v31 = vor.u32 %v6673_v60, %v6036_v9  ;;  %v6574_v9 = vld [vmem:[#allocation5 + $0x360] sm:$0xf0]  ;;  %v5992_v60 = vld [vmem:[#allocation5 + $0x5f8] sm:$0xf] }
 0x399   : > { %v3570_v7 = vpop.f32.mrf.mxu1 }
 0x39a   : > { %v6486_v7 = vld [vmem:[#allocation5 + $0xa0] sm:$0xf0]  ;;  %3995 = vmatpush.bf16.msra.mxu1 %v6037_v31 }
 0x39b   : > { %6442 = vmatmul.msk.bf16.gmra.mxu2 %vm631_vm3, %v7382_v29  ;;  %v3621_v56 = vpop.f32.mrf.mxu3 }
 0x39d   : > { %v3657_v26 = vpop.f32.mrf.mxu0 }
 0x39e   : > { %v3733_v55 = vpop.f32.mrf.mxu2  ;;  %v3658_v50 = vadd.f32 %v3657_v26, %v3619_v51  ;;  %v5289_v51 = vor.u32 %v6486_v7, %v5288_v14  ;;  %v5244_v7 = vld [vmem:[#allocation5 + $0x20] sm:$0xf] }
 0x3a0   : > { %3785 = vmatmul.bf16.gmra.mxu3 %v7447_v47  ;;  %3818 = vmatmul.bf16.gmra.mxu0 %v7423_v13 }
 0x3a1   : > { %v3695_v58 = vpop.f32.mrf.mxu1  ;;  %3920 = vmatpush.bf16.msra.mxu3 %v5289_v51  ;;  %v6475_v51 = vld [vmem:[#allocation5 + $0x48] sm:$0xf0] }
 0x3a2   : > { %v3696_v32 = vadd.f32 %v3695_v58, %v3658_v50  ;;  %v6739_v50 = vld [vmem:[#allocation5 + $0x888] sm:$0xf0]  ;;  %v5640_v58 = vld [vmem:[#allocation5 + $0x338] sm:$0xf] }
 0x3a3   : > { %v3624_v3 = vpop.f32.mrf.mxu3  ;;  %v5641_v31 = vor.u32 %v6574_v9, %v5640_v58  ;;  %v6563_v58 = vld [vmem:[#allocation5 + $0x308] sm:$0xf0] }
 0x3a4   : > { %v3734_v33 = vadd.f32 %v3733_v55, %v3696_v32  ;;  %3856 = vmatmul.bf16.gmra.mxu1 %v7402_v57  ;;  %v6301_v32 = vor.u32 %v6739_v50, %v6300_v1  ;;  %v5596_v50 = vld [vmem:[#allocation5 + $0x2e0] sm:$0xf] }
 0x3a5   : > { %v3659_v26 = vpop.f32.mrf.mxu0  ;;  %3958 = vmatpush.bf16.msra.mxu0 %v5641_v31  ;;  %v5597_v9 = vor.u32 %v6563_v58, %v5596_v50 }
 0x3a6   : > { %4438 = vrot.lane.b32.xlu1 %v3734_v33, %s6972_s21  ;;  %v3735_v41 = vpop.f32.mrf.mxu2  ;;  %v3660_v19 = vadd.f32 %v3659_v26, %v3621_v56  ;;  %v6662_v33 = vld [vmem:[#allocation5 + $0x620] sm:$0xf0]  ;;  %4035 = vmatpush.bf16.msra.mxu2 %v6301_v32 }
 0x3a7   : > { %v5993_v56 = vor.u32 %v6662_v33, %v5992_v60 }
 0x3a9   : > { %v3697_v48 = vpop.f32.mrf.mxu1  ;;  %3996 = vmatpush.bf16.msra.mxu1 %v5993_v56  ;;  %3959 = vmatpush.bf16.msra.mxu0 %v5597_v9 }
 0x3aa   : > { %v3698_v62 = vadd.f32 %v3697_v48, %v3660_v19  ;;  %v5245_v19 = vor.u32 %v6475_v51, %v5244_v7  ;;  %v5948_v51 = vld [vmem:[#allocation5 + $0x5a0] sm:$0xf] }
 0x3ab   : > { %6443 = vmatmul.msk.bf16.gmra.mxu2 %vm631_vm3, %v7411_v63  ;;  %v3626_v55 = vpop.f32.mrf.mxu3 }
 0x3ac   : > { %v3736_v46 = vadd.f32 %v3735_v41, %v3698_v62  ;;  %3921 = vmatpush.bf16.msra.mxu3 %v5245_v19 }
 0x3ad   : > { %v3662_v26 = vpop.f32.mrf.mxu0 }
 0x3ae   : > { %4450 = vrot.lane.b32.xlu1 %v3736_v46, %s6972_s21  ;;  %v3738_v14 = vpop.f32.mrf.mxu2  ;;  %v3663_v48 = vadd.f32 %v3662_v26, %v3624_v3  ;;  %v6547_v26 = vld [vmem:[#allocation5 + $0x28c] sm:$0xf] }
 0x3b0   : > { %3790 = vmatmul.bf16.gmra.mxu3 %v7486_v49  ;;  %3823 = vmatmul.bf16.gmra.mxu0 %v7452_v54 }
 0x3b1   : > { %v3700_v41 = vpop.f32.mrf.mxu1 }
 0x3b2   : > { %v3701_v62 = vadd.f32 %v3700_v41, %v3663_v48  ;;  %v5554_v48 = vld [vmem:[#allocation5 + $0x2b4] sm:$0xf0] }
 0x3b3   : > { %v3629_v1 = vpop.f32.mrf.mxu3 }
 0x3b4   : > { %v3739_v46 = vadd.f32 %v3738_v14, %v3701_v62  ;;  %3861 = vmatmul.bf16.gmra.mxu1 %v7459_v16  ;;  %v6651_v14 = vld [vmem:[#allocation5 + $0x5c8] sm:$0xf0]  ;;  %v5557_v62 = vor.u32 %v6547_v26, %v5554_v48 }
 0x3b5   : > { %v3664_v3 = vpop.f32.mrf.mxu0  ;;  %v5949_v19 = vor.u32 %v6651_v14, %v5948_v51  ;;  %v6258_v51 = vld [vmem:[#allocation5 + $0x834] sm:$0xf0] }
 0x3b6   : > { %4462 = vrot.lane.b32.xlu1 %v3739_v46, %s6972_s21  ;;  %v3740_v32 = vpop.f32.mrf.mxu2  ;;  %v3665_v60 = vadd.f32 %v3664_v3, %v3626_v55  ;;  %4066 = vmatpush.bf16.msrb.mxu3 %v5557_v62  ;;  %v2039_v3 = vunpack.c.h.b16 %v7837_v4 }
 0x3b7   : > { %3997 = vmatpush.bf16.msra.mxu1 %v5949_v19 }
 0x3b8   : > { %v2347_v14 = vpack.c.b16 %v2039_v3, %v2039_v3  ;;  %v5862_v3 = vld [vmem:[#allocation5 + $0x51c] sm:$0xf0] }
 0x3b9   : > { %v3702_v33 = vpop.f32.mrf.mxu1 }
 0x3ba   : > { %v3703_v31 = vadd.f32 %v3702_v33, %v3665_v60  ;;  %v6635_v60 = vld [vmem:[#allocation5 + $0x54c] sm:$0xf]  ;;  %v5906_v33 = vld [vmem:[#allocation5 + $0x574] sm:$0xf0]  ;;  %v2693_v62 = vsel %vm2664_vm1, %v2347_v14, 0 }
 0x3bb   : > { %6444 = vmatmul.msk.bf16.gmra.mxu2 %vm631_vm3, %v7464_v25  ;;  %v3631_v56 = vpop.f32.mrf.mxu3 }
 0x3bc   : > { %v3741_v7 = vadd.f32 %v3740_v32, %v3703_v31  ;;  %v6723_v31 = vld [vmem:[#allocation5 + $0x80c] sm:$0xf]  ;;  %4184 = vmatpush.bf16.msrb.mxu2 %v2693_v62  ;;  %v6525_v62 = vld [vmem:[#allocation5 + $0x1dc] sm:$0xf] }
 0x3bd   : > { %v3667_v46 = vpop.f32.mrf.mxu0  ;;  %v6261_v26 = vor.u32 %v6723_v31, %v6258_v51 }
 0x3be   : > { %4474 = vrot.lane.b32.xlu1 %v3741_v7, %s6972_s21  ;;  %v3743_v41 = vpop.f32.mrf.mxu2  ;;  %v3668_v50 = vadd.f32 %v3667_v46, %v3629_v1  ;;  %v5909_v7 = vor.u32 %v6635_v60, %v5906_v33 }
 0x3bf   : > { %4142 = vmatpush.bf16.msrb.mxu1 %v6261_v26 }
 0x3c0   : > { %3795 = vmatmul.bf16.gmra.mxu3 %v7501_v21  ;;  %3828 = vmatmul.bf16.gmra.mxu0 %v7490_v53 }
 0x3c1   : > { %v3705_v55 = vpop.f32.mrf.mxu1  ;;  %4104 = vmatpush.bf16.msrb.mxu0 %v5909_v7 }
 0x3c2   : > { %v3706_v58 = vadd.f32 %v3705_v55, %v3668_v50  ;;  %v6536_v55 = vld [vmem:[#allocation5 + $0x234] sm:$0xf] }
 0x3c3   : > { %v3634_v9 = vpop.f32.mrf.mxu3 }
 0x3c4   : > { %v3744_v32 = vadd.f32 %v3743_v41, %v3706_v58  ;;  %3866 = vmatmul.bf16.gmra.mxu1 %v7477_v35  ;;  %v5510_v58 = vld [vmem:[#allocation5 + $0x25c] sm:$0xf0] }
 0x3c5   : > { %v3669_v19 = vpop.f32.mrf.mxu0  ;;  %v5513_v60 = vor.u32 %v6536_v55, %v5510_v58 }
 0x3c6   : > { %4486 = vrot.lane.b32.xlu1 %v3744_v32, %s6972_s21  ;;  %v3745_v1 = vpop.f32.mrf.mxu2  ;;  %v3670_v48 = vadd.f32 %v3669_v19, %v3631_v56  ;;  %v6624_v32 = vld [vmem:[#allocation5 + $0x4f4] sm:$0xf] }
 0x3c7   : > { %v5865_v56 = vor.u32 %v6624_v32, %v5862_v3  ;;  %4067 = vmatpush.bf16.msrb.mxu3 %v5513_v60  ;;  %v6712_v19 = vld [vmem:[#allocation5 + $0x7b4] sm:$0xf]  ;;  %v6390_v3 = vld [vmem:[#allocation5 + $0x93c] sm:$0xf0] }
 0x3c8   : > { %v6756_v60 = vld [vmem:[#allocation5 + $0x914] sm:$0xf] }
 0x3c9   : > { %v3707_v41 = vpop.f32.mrf.mxu1  ;;  %4105 = vmatpush.bf16.msrb.mxu0 %v5865_v56  ;;  %v6613_v56 = vld [vmem:[#allocation5 + $0x49c] sm:$0xf] }
 0x3ca   : > { %v3708_v46 = vadd.f32 %v3707_v41, %v3670_v48  ;;  %v6214_v48 = vld [vmem:[#allocation5 + $0x7dc] sm:$0xf0] }
 0x3cb   : > { %6445 = vmatmul.msk.bf16.gmra.mxu2 %vm631_vm3, %v7483_v42  ;;  %v3636_v4 = vpop.f32.mrf.mxu3  ;;  %v6217_v41 = vor.u32 %v6712_v19, %v6214_v48  ;;  %v6701_v19 = vld [vmem:[#allocation5 + $0x75c] sm:$0xf] }
 0x3cc   : > { %v3746_v50 = vadd.f32 %v3745_v1, %v3708_v46  ;;  %v5466_v46 = vld [vmem:[#allocation5 + $0x204] sm:$0xf0] }
 0x3cd   : > { %v3672_v31 = vpop.f32.mrf.mxu0  ;;  %4143 = vmatpush.bf16.msrb.mxu1 %v6217_v41 }
 0x3ce   : > { %4498 = vrot.lane.b32.xlu1 %v3746_v50, %s6972_s21  ;;  %v3748_v33 = vpop.f32.mrf.mxu2  ;;  %v3673_v7 = vadd.f32 %v3672_v31, %v3634_v9  ;;  %v5469_v9 = vor.u32 %v6525_v62, %v5466_v46  ;;  %v6393_v31 = vor.u32 %v6756_v60, %v6390_v3  ;;  %v5422_v60 = vld [vmem:[#allocation5 + $0x1ac] sm:$0xf0]  ;;  %v6602_v3 = vld [vmem:[#allocation5 + $0x444] sm:$0xf] }
 0x3d0   : > { %3922 = vmatmul.bf16.vlgmr.msra.gmra.mxu3 %v7316_v23  ;;  %3833 = vmatmul.bf16.gmra.mxu0 %v7504_v28 }
 0x3d1   : > { %v3710_v51 = vpop.f32.mrf.mxu1  ;;  %4068 = vmatpush.bf16.msrb.mxu3 %v5469_v9  ;;  %4185 = vmatpush.bf16.msrb.mxu2 %v6393_v31 }
 0x3d2   : > { %v3711_v14 = vadd.f32 %v3710_v51, %v3673_v7  ;;  %v5818_v7 = vld [vmem:[#allocation5 + $0x4c4] sm:$0xf0] }
 0x3d3   : > { %v3639_v1 = vpop.f32.mrf.mxu3 }
 0x3d4   : > { %v3749_v26 = vadd.f32 %v3748_v33, %v3711_v14  ;;  %3871 = vmatmul.bf16.gmra.mxu1 %v7496_v0  ;;  %v5821_v14 = vor.u32 %v6613_v56, %v5818_v7 }
 0x3d5   : > { %v3674_v55 = vpop.f32.mrf.mxu0 }
 0x3d6   : > { %4510 = vrot.lane.b32.xlu1 %v3749_v26, %s6972_s21  ;;  %v3750_v50 = vpop.f32.mrf.mxu2  ;;  %v3675_v58 = vadd.f32 %v3674_v55, %v3636_v4  ;;  %v6170_v26 = vld [vmem:[#allocation5 + $0x784] sm:$0xf0]  ;;  %4106 = vmatpush.bf16.msrb.mxu0 %v5821_v14 }
 0x3d7   : > { %v6173_v62 = vor.u32 %v6701_v19, %v6170_v26 }
 0x3d9   : > { %v3712_v32 = vpop.f32.mrf.mxu1  ;;  %4144 = vmatpush.bf16.msrb.mxu1 %v6173_v62 }
 0x3da   : > { %v3713_v33 = vadd.f32 %v3712_v32, %v3675_v58 }
 0x3db   : > { %6446 = vmatmul.msk.bf16.vlgmr.msra.gmra.mxu2 %vm631_vm3, %v7297_v10  ;;  %v3641_v51 = vpop.f32.mrf.mxu3 }
 0x3dc   : > { %v3751_v48 = vadd.f32 %v3750_v50, %v3713_v33  ;;  %v6514_v50 = vld [vmem:[#allocation5 + $0x184] sm:$0xf]  ;;  %v5774_v33 = vld [vmem:[#allocation5 + $0x46c] sm:$0xf0] }
 0x3dd   : > { %v3677_v41 = vpop.f32.mrf.mxu0  ;;  %v5425_v56 = vor.u32 %v6514_v50, %v5422_v60  ;;  %v5777_v7 = vor.u32 %v6602_v3, %v5774_v33 }
 0x3de   : > { %4522 = vrot.lane.b32.xlu1 %v3751_v48, %s6972_s21  ;;  %v3753_v4 = vpop.f32.mrf.mxu2  ;;  %v3678_v46 = vadd.f32 %v3677_v41, %v3639_v1  ;;  %v6126_v41 = vld [vmem:[#allocation5 + $0x72c] sm:$0xf0] }
 0x3df   : > { %4069 = vmatpush.bf16.msrb.mxu3 %v5425_v56  ;;  %4107 = vmatpush.bf16.msrb.mxu0 %v5777_v7  ;;  %v6745_v7 = vld [vmem:[#allocation5 + $0x8bc] sm:$0xf] }
 0x3e0   : > { %3927 = vmatmul.bf16.gmra.mxu3 %v7362_v61  ;;  %3960 = vmatmul.bf16.vlgmr.msra.gmra.mxu0 %v7319_v27 }
 0x3e1   : > { %v3715_v9 = vpop.f32.mrf.mxu1 }
 0x3e2   : > { %v3716_v55 = vadd.f32 %v3715_v9, %v3678_v46  ;;  %v6503_v46 = vld [vmem:[#allocation5 + $0x12c] sm:$0xf] }
 0x3e3   : > { %v3644_v58 = vpop.f32.mrf.mxu3 }
 0x3e4   : > { %v3754_v32 = vadd.f32 %v3753_v4, %v3716_v55  ;;  %3998 = vmatmul.bf16.vlgmr.msra.gmra.mxu1 %v7304_v12  ;;  %v6690_v4 = vld [vmem:[#allocation5 + $0x704] sm:$0xf]  ;;  %v5378_v55 = vld [vmem:[#allocation5 + $0x154] sm:$0xf0] }
 0x3e5   : > { %v3679_v1 = vpop.f32.mrf.mxu0  ;;  %v6129_v9 = vor.u32 %v6690_v4, %v6126_v41  ;;  %v5381_v50 = vor.u32 %v6503_v46, %v5378_v55 }
 0x3e6   : > { %4534 = vrot.lane.b32.xlu1 %v3754_v32, %s6972_s21  ;;  %v3755_v31 = vpop.f32.mrf.mxu2  ;;  %v3680_v14 = vadd.f32 %v3679_v1, %v3641_v51  ;;  %v6346_v1 = vld [vmem:[#allocation5 + $0x8e4] sm:$0xf0] }
 0x3e7   : > { %4145 = vmatpush.bf16.msrb.mxu1 %v6129_v9  ;;  %4070 = vmatpush.bf16.msrb.mxu3 %v5381_v50  ;;  %v5334_v50 = vld [vmem:[#allocation5 + $0xfc] sm:$0xf0] }
 0x3e9   : > { %v3717_v19 = vpop.f32.mrf.mxu1 }
 0x3ea   : > { %v3718_v26 = vadd.f32 %v3717_v19, %v3680_v14  ;;  %v6591_v14 = vld [vmem:[#allocation5 + $0x3ec] sm:$0xf]  ;;  %v6349_v19 = vor.u32 %v6745_v7, %v6346_v1 }
 0x3eb   : > { %6447 = vmatmul.msk.bf16.gmra.mxu2 %vm631_vm3, %v7326_v39  ;;  %v3646_v48 = vpop.f32.mrf.mxu3 }
 0x3ec   : > { %v3756_v62 = vadd.f32 %v3755_v31, %v3718_v26  ;;  %v5730_v26 = vld [vmem:[#allocation5 + $0x414] sm:$0xf0]  ;;  %v6679_v48 = vld [vmem:[#allocation5 + $0x6ac] sm:$0xf]  ;;  %4186 = vmatpush.bf16.msrb.mxu2 %v6349_v19 }
 0x3ed   : > { %v3682_v60 = vpop.f32.mrf.mxu0  ;;  %v5733_v4 = vor.u32 %v6591_v14, %v5730_v26  ;;  %v7929_v26 = vpop.permute.xlu0 %4436 }
 0x3ee   : > { %4546 = vrot.lane.b32.xlu1 %v3756_v62, %s6972_s21  ;;  %v3758_v32 = vpop.f32.mrf.mxu2  ;;  %v3683_v51 = vadd.f32 %v3682_v60, %v3644_v58  ;;  %v6082_v62 = vld [vmem:[#allocation5 + $0x6d4] sm:$0xf0]  ;;  %v6580_v60 = vld [vmem:[#allocation5 + $0x394] sm:$0xf] }
 0x3ef   : > { %v6085_v41 = vor.u32 %v6679_v48, %v6082_v62  ;;  %4108 = vmatpush.bf16.msrb.mxu0 %v5733_v4  ;;  %v6038_v4 = vld [vmem:[#allocation5 + $0x67c] sm:$0xf0] }
 0x3f0   : > { %3932 = vmatmul.bf16.gmra.mxu3 %v7417_v6  ;;  %3965 = vmatmul.bf16.gmra.mxu0 %v7367_v45 }
 0x3f1   : > { %v3720_v3 = vpop.f32.mrf.mxu1  ;;  %4146 = vmatpush.bf16.msrb.mxu1 %v6085_v41  ;;  %v6481_v41 = vld [vmem:[#allocation5 + $0x7c] sm:$0xf] }
 0x3f2   : > { %v3721_v56 = vadd.f32 %v3720_v3, %v3683_v51  ;;  %v5686_v3 = vld [vmem:[#allocation5 + $0x3bc] sm:$0xf0] }
 0x3f3   : > { %v3771_v33 = vpop.f32.mrf.mxu3  ;;  %v5689_v7 = vor.u32 %v6580_v60, %v5686_v3 }
 0x3f4   : > { %v3759_v31 = vadd.f32 %v3758_v32, %v3721_v56  ;;  %4003 = vmatmul.bf16.gmra.mxu1 %v7346_v52  ;;  %v6492_v32 = vld [vmem:[#allocation5 + $0xd4] sm:$0xf] }
 0x3f5   : > { %v3684_v46 = vpop.f32.mrf.mxu0  ;;  %v5337_v51 = vor.u32 %v6492_v32, %v5334_v50  ;;  %4109 = vmatpush.bf16.msrb.mxu0 %v5689_v7 }
 0x3f6   : > { %4558 = vrot.lane.b32.xlu1 %v3759_v31, %s6972_s21  ;;  %v3760_v58 = vpop.f32.mrf.mxu2 }
 0x3f7   : > { %4071 = vmatpush.bf16.msrb.mxu3 %v5337_v51  ;;  %v6668_v58 = vld [vmem:[#allocation5 + $0x654] sm:$0xf] }
 0x3f8   : > { %v6041_v46 = vor.u32 %v6668_v58, %v6038_v4  ;;  %v6657_v4 = vld [vmem:[#allocation5 + $0x5fc] sm:$0xf] }
 0x3f9   : > { %v3722_v9 = vpop.f32.mrf.mxu1 }
 0x3fa   : > { %v5290_v9 = vld [vmem:[#allocation5 + $0xa4] sm:$0xf0]  ;;  %4147 = vmatpush.bf16.msrb.mxu1 %v6041_v46 }
 0x3fb   : > { %6448 = vmatmul.msk.bf16.gmra.mxu2 %vm631_vm3, %v7382_v29  ;;  %v3773_v55 = vpop.f32.mrf.mxu3  ;;  %v5293_v32 = vor.u32 %v6481_v41, %v5290_v9  ;;  %v5994_v41 = vld [vmem:[#allocation5 + $0x624] sm:$0xf0] }
 0x3fc   : > { %v5997_v9 = vor.u32 %v6657_v4, %v5994_v41 }
 0x3fd   : > { %v3809_v31 = vpop.f32.mrf.mxu0  ;;  %4072 = vmatpush.bf16.msrb.mxu3 %v5293_v32  ;;  %v6470_v32 = vld [vmem:[#allocation5 + $0x24] sm:$0xf] }
 0x3fe   : > { %v3885_v56 = vpop.f32.mrf.mxu2  ;;  %v3810_v1 = vadd.f32 %v3809_v31, %v3771_v33  ;;  %v6734_v31 = vld [vmem:[#allocation5 + $0x864] sm:$0xf]  ;;  %4148 = vmatpush.bf16.msrb.mxu1 %v5997_v9 }
 0x400   : > { %3937 = vmatmul.bf16.gmra.mxu3 %v7447_v47  ;;  %3970 = vmatmul.bf16.gmra.mxu0 %v7423_v13 }
 0x401   : > { %v3847_v14 = vpop.f32.mrf.mxu1 }
 0x402   : > { %v3848_v19 = vadd.f32 %v3847_v14, %v3810_v1  ;;  %v6302_v1 = vld [vmem:[#allocation5 + $0x88c] sm:$0xf0]  ;;  %v6569_v14 = vld [vmem:[#allocation5 + $0x33c] sm:$0xf] }
 0x403   : > { %v3776_v48 = vpop.f32.mrf.mxu3  ;;  %v6305_v58 = vor.u32 %v6734_v31, %v6302_v1 }
 0x404   : > { %v3886_v62 = vadd.f32 %v3885_v56, %v3848_v19  ;;  %4008 = vmatmul.bf16.gmra.mxu1 %v7402_v57  ;;  %v7935_v19 = vpop.permute.xlu0 %4448 }
 0x405   : > { %v3811_v50 = vpop.f32.mrf.mxu0  ;;  %4187 = vmatpush.bf16.msrb.mxu2 %v6305_v58 }
 0x406   : > { %4440 = vrot.lane.b32.xlu2 %v3886_v62, %s6972_s21  ;;  %v3887_v33 = vpop.f32.mrf.mxu2  ;;  %v3812_v60 = vadd.f32 %v3811_v50, %v3773_v55  ;;  %v5642_v62 = vld [vmem:[#allocation5 + $0x364] sm:$0xf0]  ;;  %v5246_v50 = vld [vmem:[#allocation5 + $0x4c] sm:$0xf0] }
 0x407   : > { %v5645_v46 = vor.u32 %v6569_v14, %v5642_v62  ;;  %v6558_v14 = vld [vmem:[#allocation5 + $0x2e4] sm:$0xf]  ;;  %v5598_v62 = vld [vmem:[#allocation5 + $0x30c] sm:$0xf0] }
 0x408   : > { %v5601_v4 = vor.u32 %v6558_v14, %v5598_v62 }
 0x409   : > { %v3849_v51 = vpop.f32.mrf.mxu1  ;;  %4110 = vmatpush.bf16.msrb.mxu0 %v5645_v46 }
 0x40a   : > { %v3850_v3 = vadd.f32 %v3849_v51, %v3812_v60  ;;  %v5249_v51 = vor.u32 %v6470_v32, %v5246_v50 }
 0x40b   : > { %6449 = vmatmul.msk.bf16.gmra.mxu2 %vm631_vm3, %v7411_v63  ;;  %v3778_v56 = vpop.f32.mrf.mxu3 }
 0x40c   : > { %v3888_v7 = vadd.f32 %v3887_v33, %v3850_v3  ;;  %4073 = vmatpush.bf16.msrb.mxu3 %v5249_v51  ;;  %v6646_v51 = vld [vmem:[#allocation5 + $0x5a4] sm:$0xf] }
 0x40d   : > { %v3814_v60 = vpop.f32.mrf.mxu0  ;;  %4111 = vmatpush.bf16.msrb.mxu0 %v5601_v4 }
 0x40e   : > { %4452 = vrot.lane.b32.xlu2 %v3888_v7, %s6972_s21  ;;  %v3890_v55 = vpop.f32.mrf.mxu2  ;;  %v3815_v33 = vadd.f32 %v3814_v60, %v3776_v48  ;;  %v7942_v48 = vpop.permute.xlu0 %4460 }
 0x410   : > { %3942 = vmatmul.bf16.gmra.mxu3 %v7486_v49  ;;  %3975 = vmatmul.bf16.gmra.mxu0 %v7452_v54 }
 0x411   : > { %v3852_v3 = vpop.f32.mrf.mxu1 }
 0x412   : > { %v3853_v31 = vadd.f32 %v3852_v3, %v3815_v33  ;;  %v5950_v33 = vld [vmem:[#allocation5 + $0x5cc] sm:$0xf0] }
 0x413   : > { %v3781_v1 = vpop.f32.mrf.mxu3  ;;  %v5560_v3 = vld [vmem:[#allocation5 + $0x290] sm:$0xf] }
 0x414   : > { %v3891_v7 = vadd.f32 %v3890_v55, %v3853_v31  ;;  %4013 = vmatmul.bf16.gmra.mxu1 %v7459_v16  ;;  %v5953_v31 = vor.u32 %v6646_v51, %v5950_v33  ;;  %v5912_v33 = vld [vmem:[#allocation5 + $0x550] sm:$0xf] }
 0x415   : > { %v3816_v41 = vpop.f32.mrf.mxu0 }
 0x416   : > { %4464 = vrot.lane.b32.xlu2 %v3891_v7, %s6972_s21  ;;  %v3892_v58 = vpop.f32.mrf.mxu2  ;;  %v3817_v46 = vadd.f32 %v3816_v41, %v3778_v56  ;;  %v6553_v7 = vld [vmem:[#allocation5 + $0x2b8] sm:$0xf0]  ;;  %4149 = vmatpush.bf16.msrb.mxu1 %v5953_v31 }
 0x417   : > { %v5561_v62 = vor.u32 %v6553_v7, %v5560_v3  ;;  %v6641_v3 = vld [vmem:[#allocation5 + $0x578] sm:$0xf0]  ;;  %v6264_v7 = vld [vmem:[#allocation5 + $0x810] sm:$0xf] }
 0x418   : > { %v7944_v9 = vpop.permute.xlu1 %4438 }
 0x419   : > { %v3854_v32 = vpop.f32.mrf.mxu1  ;;  %4218 = vmatpush.bf16.msra.mxu3 %v5561_v62 }
 0x41a   : > { %v3855_v50 = vadd.f32 %v3854_v32, %v3817_v46  ;;  %v7952_v46 = vpop.permute.xlu0 %4472 }
 0x41b   : > { %6450 = vmatmul.msk.bf16.gmra.mxu2 %vm631_vm3, %v7464_v25  ;;  %v3783_v55 = vpop.f32.mrf.mxu3 }
 0x41c   : > { %v3893_v60 = vadd.f32 %v3892_v58, %v3855_v50 }
 0x41d   : > { %v3819_v4 = vpop.f32.mrf.mxu0 }
 0x41e   : > { %4476 = vrot.lane.b32.xlu2 %v3893_v60, %s6972_s21  ;;  %v3895_v14 = vpop.f32.mrf.mxu2  ;;  %v3820_v56 = vadd.f32 %v3819_v4, %v3781_v1  ;;  %v1105_v60 = vld [vmem:[#allocation5 + $0x970] sm:$0xf]  ;;  %v5913_v1 = vor.u32 %v6641_v3, %v5912_v33  ;;  %v6729_v4 = vld [vmem:[#allocation5 + $0x838] sm:$0xf0]  ;;  %v5516_v3 = vld [vmem:[#allocation5 + $0x238] sm:$0xf] }
 0x41f   : > { %v2040_v31 = vunpack.c.l.b16 %v1105_v60  ;;  %v6265_v40 = vor.u32 %v6729_v4, %v6264_v7  ;;  %v6542_v7 = vld [vmem:[#allocation5 + $0x260] sm:$0xf0] }
 0x420   : > { %v7949_v41 = vpop.permute.xlu1 %4450  ;;  %3947 = vmatmul.bf16.gmra.mxu3 %v7501_v21  ;;  %3980 = vmatmul.bf16.gmra.mxu0 %v7490_v53 }
 0x421   : > { %v3857_v32 = vpop.f32.mrf.mxu1  ;;  %v2348_v62 = vpack.c.b16 %v2040_v31, %v2040_v31  ;;  %4256 = vmatpush.bf16.msra.mxu0 %v5913_v1  ;;  %4294 = vmatpush.bf16.msra.mxu1 %v6265_v40  ;;  %v5517_v31 = vor.u32 %v6542_v7, %v5516_v3  ;;  %v6718_v7 = vld [vmem:[#allocation5 + $0x7e0] sm:$0xf0] }
 0x422   : > { %v3858_v58 = vadd.f32 %v3857_v32, %v3820_v56  ;;  %v7960_v60 = vpop.permute.xlu0 %4484 }
 0x423   : > { %v3786_v50 = vpop.f32.mrf.mxu3  ;;  %4219 = vmatpush.bf16.msra.mxu3 %v5517_v31 }
 0x424   : > { %v3896_v51 = vadd.f32 %v3895_v14, %v3858_v58  ;;  %4018 = vmatmul.bf16.gmra.mxu1 %v7477_v35  ;;  %v2696_v58 = vsel %vm2664_vm1, %v2348_v62, 0  ;;  %vm4568_vm1 = vcmask 785408  }
 0x425   : > { %v3821_v21 = vpop.f32.mrf.mxu0  ;;  %4336 = vmatpush.bf16.msra.mxu2 %v2696_v58  ;;  %v6630_v58 = vld [vmem:[#allocation5 + $0x520] sm:$0xf0] }
 0x426   : > { %4488 = vrot.lane.b32.xlu2 %v3896_v51, %s6972_s21  ;;  %v3897_v38 = vpop.f32.mrf.mxu2  ;;  %v3822_v56 = vadd.f32 %v3821_v21, %v3783_v55 }
 0x428   : > { %v7957_v32 = vpop.permute.xlu1 %4462 }
 0x429   : > { %v3859_v14 = vpop.f32.mrf.mxu1 }
 0x42a   : > { %v3860_v35 = vadd.f32 %v3859_v14, %v3822_v56 }
 0x42b   : > { %6451 = vmatmul.msk.bf16.gmra.mxu2 %vm631_vm3, %v7483_v42  ;;  %v3788_v51 = vpop.f32.mrf.mxu3 }
 0x42c   : > { %v3898_v33 = vadd.f32 %v3897_v38, %v3860_v35  ;;  %v4497_v35 = vpop.permute.xlu0 %4496  ;;  %v5868_v38 = vld [vmem:[#allocation5 + $0x4f8] sm:$0xf] }
 0x42d   : > { %v3824_v55 = vpop.f32.mrf.mxu0 }
 0x42e   : > { %4500 = vrot.lane.b32.xlu2 %v3898_v33, %s6972_s21  ;;  %v3900_v21 = vpop.f32.mrf.mxu2  ;;  %v3825_v40 = vadd.f32 %v3824_v55, %v3786_v50  ;;  %v6220_v33 = vld [vmem:[#allocation5 + $0x7b8] sm:$0xf]  ;;  %v5869_v50 = vor.u32 %v6630_v58, %v5868_v38 }
 0x42f   : > { %v6221_v55 = vor.u32 %v6718_v7, %v6220_v33  ;;  %v6762_v33 = vld [vmem:[#allocation5 + $0x940] sm:$0xf0] }
 0x430   : > { %v7965_v1 = vpop.permute.xlu1 %4474  ;;  %4074 = vmatmul.bf16.vlgmr.msrb.gmra.mxu3 %v7316_v23  ;;  %3985 = vmatmul.bf16.gmra.mxu0 %v7504_v28  ;;  %v6531_v28 = vld [vmem:[#allocation5 + $0x208] sm:$0xf0] }
 0x431   : > { %v3862_v4 = vpop.f32.mrf.mxu1  ;;  %4257 = vmatpush.bf16.msra.mxu0 %v5869_v50  ;;  %4295 = vmatpush.bf16.msra.mxu1 %v6221_v55 }
 0x432   : > { %v3863_v62 = vadd.f32 %v3862_v4, %v3825_v40 }
 0x433   : > { %v3791_v56 = vpop.f32.mrf.mxu3 }
 0x434   : > { %v3901_v14 = vadd.f32 %v3900_v21, %v3863_v62  ;;  %4023 = vmatmul.bf16.gmra.mxu1 %v7496_v0  ;;  %v5472_v0 = vld [vmem:[#allocation5 + $0x1e0] sm:$0xf] }
 0x435   : > { %v3826_v31 = vpop.f32.mrf.mxu0  ;;  %v5473_v58 = vor.u32 %v6531_v28, %v5472_v0  ;;  %v5824_v28 = vld [vmem:[#allocation5 + $0x4a0] sm:$0xf] }
 0x436   : > { %4512 = vrot.lane.b32.xlu2 %v3901_v14, %s6972_s21  ;;  %v3902_v3 = vpop.f32.mrf.mxu2  ;;  %v3827_v23 = vadd.f32 %v3826_v31, %v3788_v51  ;;  %v6396_v14 = vld [vmem:[#allocation5 + $0x918] sm:$0xf]  ;;  %v4509_v51 = vpop.permute.xlu0 %4508 }
 0x437   : > { %v6397_v50 = vor.u32 %v6762_v33, %v6396_v14  ;;  %4220 = vmatpush.bf16.msra.mxu3 %v5473_v58  ;;  %v6707_v33 = vld [vmem:[#allocation5 + $0x788] sm:$0xf0] }
 0x438   : > { %v7971_v42 = vpop.permute.xlu1 %4486 }
 0x439   : > { %v3864_v40 = vpop.f32.mrf.mxu1  ;;  %4337 = vmatpush.bf16.msra.mxu2 %v6397_v50  ;;  %v6520_v50 = vld [vmem:[#allocation5 + $0x1b0] sm:$0xf0] }
 0x43a   : > { %v3865_v21 = vadd.f32 %v3864_v40, %v3827_v23 }
 0x43b   : > { %6452 = vmatmul.msk.bf16.vlgmr.msrb.gmra.mxu2 %vm631_vm3, %v7297_v10  ;;  %v3793_v4 = vpop.f32.mrf.mxu3 }
 0x43c   : > { %v3903_v62 = vadd.f32 %v3902_v3, %v3865_v21 }
 0x43d   : > { %v3829_v7 = vpop.f32.mrf.mxu0 }
 0x43e   : > { %4524 = vrot.lane.b32.xlu2 %v3903_v62, %s6972_s21  ;;  %v3905_v38 = vpop.f32.mrf.mxu2  ;;  %v3830_v31 = vadd.f32 %v3829_v7, %v3791_v56  ;;  %v6619_v56 = vld [vmem:[#allocation5 + $0x4c8] sm:$0xf0]  ;;  %v6176_v62 = vld [vmem:[#allocation5 + $0x760] sm:$0xf]  ;;  %v5428_v7 = vld [vmem:[#allocation5 + $0x188] sm:$0xf] }
 0x43f   : > { %v5825_v58 = vor.u32 %v6619_v56, %v5824_v28  ;;  %v4569_v56 = vsel %vm4568_vm1, %v7929_v26, %v7944_v9 }
 0x440   : > { %v7976_v55 = vpop.permute.xlu1 %4498  ;;  %4079 = vmatmul.bf16.gmra.mxu3 %v7362_v61  ;;  %4112 = vmatmul.bf16.vlgmr.msrb.gmra.mxu0 %v7319_v27  ;;  %v4521_v27 = vpop.permute.xlu0 %4520 }
 0x441   : > { %v3867_v23 = vpop.f32.mrf.mxu1  ;;  %v4594_v0 = vsel %vm4568_vm1, %v4497_v35, %v7976_v55  ;;  %4258 = vmatpush.bf16.msra.mxu0 %v5825_v58 }
 0x442   : > { %v3868_v3 = vadd.f32 %v3867_v23, %v3830_v31  ;;  %v5429_v23 = vor.u32 %v6520_v50, %v5428_v7  ;;  %v6608_v7 = vld [vmem:[#allocation5 + $0x470] sm:$0xf0] }
 0x443   : > { %v3796_v40 = vpop.f32.mrf.mxu3 }
 0x444   : > { %v3906_v21 = vadd.f32 %v3905_v38, %v3868_v3  ;;  %4150 = vmatmul.bf16.vlgmr.msrb.gmra.mxu1 %v7304_v12  ;;  %v6177_v38 = vor.u32 %v6707_v33, %v6176_v62  ;;  %v7986_v3 = vmax.f32 %v7555_v15, %v4594_v0  ;;  %4221 = vmatpush.bf16.msra.mxu3 %v5429_v23  ;;  %v5780_v33 = vld [vmem:[#allocation5 + $0x448] sm:$0xf] }
 0x445   : > { %v3831_v31 = vpop.f32.mrf.mxu0  ;;  %v5781_v50 = vor.u32 %v6608_v7, %v5780_v33 }
 0x446   : > { %4536 = vrot.lane.b32.xlu2 %v3906_v21, %s6972_s21  ;;  %v3907_v14 = vpop.f32.mrf.mxu2  ;;  %v3832_v12 = vadd.f32 %v3831_v31, %v3793_v4  ;;  %v7990_v21 = vld [vmem:[#allocation7] sm:$0x3f]  ;;  %4296 = vmatpush.bf16.msra.mxu1 %v6177_v38  ;;  %v2748_v4 = vadd.f32 %v7519_v20, %v7517_v18  ;;  %v4793_v0 = vrot.slane %v7986_v3, 2 }
 0x447   : > { %v8009_v26 = vperm.slane %v7990_v21, 0  ;;  %v6696_v31 = vld [vmem:[#allocation5 + $0x730] sm:$0xf0]  ;;  %4259 = vmatpush.bf16.msra.mxu0 %v5781_v50  ;;  %v6352_v50 = vld [vmem:[#allocation5 + $0x8c0] sm:$0xf] }
 0x448   : > { %v7988_v35 = vpop.permute.xlu1 %4510  ;;  %v2786_v38 = vadd.f32 %v7524_v22, %v2748_v4  ;;  %v4574_v22 = vsel %vm4568_vm1, %v7935_v19, %v7949_v41 }
 0x449   : > { %v3869_v61 = vpop.f32.mrf.mxu1  ;;  %v4599_v28 = vsel %vm4568_vm1, %v4509_v51, %v7988_v35 }
 0x44a   : > { %v3870_v62 = vadd.f32 %v3869_v61, %v3832_v12  ;;  %v4726_v15 = vmax.f32 %v7562_v59, %v4599_v28  ;;  %v4690_v61 = vmax.f32 %v7513_v37, %v4569_v56  ;;  %v6132_v59 = vld [vmem:[#allocation5 + $0x708] sm:$0xf] }
 0x44b   : > { %6453 = vmatmul.msk.bf16.gmra.mxu2 %vm631_vm3, %v7326_v39  ;;  %v3798_v51 = vpop.f32.mrf.mxu3  ;;  %v6133_v28 = vor.u32 %v6696_v31, %v6132_v59  ;;  %v5384_v59 = vld [vmem:[#allocation5 + $0x130] sm:$0xf] }
 0x44c   : > { %v3908_v58 = vadd.f32 %v3907_v14, %v3870_v62  ;;  %v4794_v12 = vrot.slane %v4726_v15, 2 }
 0x44d   : > { %v3834_v23 = vpop.f32.mrf.mxu0  ;;  %4297 = vmatpush.bf16.msra.mxu1 %v6133_v28  ;;  %v5736_v28 = vld [vmem:[#allocation5 + $0x3f0] sm:$0xf] }
 0x44e   : > { %v4795_v18 = vsel %vm4792_vm7, %v4793_v0, %v4794_v12  ;;  %4548 = vrot.lane.b32.xlu2 %v3908_v58, %s6972_s21  ;;  %v3910_v20 = vpop.f32.mrf.mxu2  ;;  %v3835_v62 = vadd.f32 %v3834_v23, %v3796_v40  ;;  %v4533_v0 = vpop.permute.xlu0 %4532  ;;  %v2824_v58 = vadd.f32 %v7522_v24, %v2786_v38  ;;  %v6751_v23 = vld [vmem:[#allocation5 + $0x8e8] sm:$0xf0]  ;;  %v6597_v24 = vld [vmem:[#allocation5 + $0x418] sm:$0xf0] }
 0x44f   : > { %v4895_v14 = vmax.f32 %v4690_v61, %v4795_v18  ;;  %v6509_v18 = vld [vmem:[#allocation5 + $0x158] sm:$0xf0] }
 0x450   : > { %v8016_v15 = vpop.permute.xlu1 %4522  ;;  %4084 = vmatmul.bf16.gmra.mxu3 %v7417_v6  ;;  %4117 = vmatmul.bf16.gmra.mxu0 %v7367_v45  ;;  %v4696_v19 = vmax.f32 %v2824_v58, %v4574_v22 }
 0x451   : > { %v4945_v37 = vadd.f32 %v8009_v26, %v4895_v14  ;;  %v3872_v56 = vpop.f32.mrf.mxu1  ;;  %v4604_v51 = vsel %vm4568_vm1, %v4521_v27, %v8016_v15  ;;  %v5385_v14 = vor.u32 %v6509_v18, %v5384_v59 }
 0x452   : > { %v3873_v40 = vadd.f32 %v3872_v56, %v3835_v62  ;;  %v4732_v4 = vmax.f32 %v7566_v36, %v4604_v51  ;;  %v6088_v56 = vld [vmem:[#allocation5 + $0x6b0] sm:$0xf]  ;;  %v6685_v51 = vld [vmem:[#allocation5 + $0x6d8] sm:$0xf0] }
 0x453   : > { %v4981_v27 = vmax.f32 %v4945_v37, 0.0  ;;  %v3923_v61 = vpop.f32.mrf.mxu3  ;;  %v5737_v37 = vor.u32 %v6597_v24, %v5736_v28  ;;  %4222 = vmatpush.bf16.msra.mxu3 %v5385_v14  ;;  %v6586_v28 = vld [vmem:[#allocation5 + $0x3c0] sm:$0xf0] }
 0x454   : > { %v3911_v33 = vadd.f32 %v3910_v20, %v3873_v40  ;;  %v4811_v7 = vrot.slane %v4732_v4, 2  ;;  %4155 = vmatmul.bf16.gmra.mxu1 %v7346_v52  ;;  %v6353_v20 = vor.u32 %v6751_v23, %v6352_v50  ;;  %v6089_v40 = vor.u32 %v6685_v51, %v6088_v56 }
 0x455   : > { %5017 = vst [vmem:[%s8028_s22] sm:$0xff] %v4981_v27  ;;  %v3836_v62 = vpop.f32.mrf.mxu0  ;;  %4260 = vmatpush.bf16.msra.mxu0 %v5737_v37  ;;  %v4579_v27 = vsel %vm4568_vm1, %v7942_v48, %v7957_v32  ;;  %v5692_v48 = vld [vmem:[#allocation5 + $0x398] sm:$0xf] }
 0x456   : > { %v4812_v31 = vsel %vm4792_vm7, %v4794_v12, %v4811_v7  ;;  %4560 = vrot.lane.b32.xlu2 %v3911_v33, %s6972_s21  ;;  %v3912_v36 = vpop.f32.mrf.mxu2  ;;  %4338 = vmatpush.bf16.msra.mxu2 %v6353_v20  ;;  %v4702_v14 = vmax.f32 %v7530_v8, %v4579_v27 }
 0x457   : > { %v4901_v38 = vmax.f32 %v4696_v19, %v4812_v31  ;;  %4298 = vmatpush.bf16.msra.mxu1 %v6089_v40  ;;  %v2753_v19 = vadd.f32 %v7543_v17, %v7539_v30  ;;  %v5340_v31 = vld [vmem:[#allocation5 + $0xd8] sm:$0xf]  ;;  %v4545_v36 = vpop.permute.xlu0 %4544 }
 0x458   : > { %v8037_v22 = vpop.permute.xlu1 %4534 }
 0x459   : > { %v4951_v4 = vadd.f32 %v8009_v26, %v4901_v38  ;;  %v3874_v12 = vpop.f32.mrf.mxu1  ;;  %v4609_v58 = vsel %vm4568_vm1, %v4533_v0, %v8037_v22  ;;  %v6498_v0 = vld [vmem:[#allocation5 + $0x100] sm:$0xf0]  ;;  %v5693_v38 = vor.u32 %v6586_v28, %v5692_v48  ;;  %v2791_v30 = vadd.f32 %v7541_v5, %v2753_v19  ;;  %v6044_v19 = vld [vmem:[#allocation5 + $0x658] sm:$0xf] }
 0x45a   : > { %v4738_v33 = vmax.f32 %v7573_v11, %v4609_v58  ;;  %v5341_v23 = vor.u32 %v6498_v0, %v5340_v31  ;;  %v4584_v5 = vsel %vm4568_vm1, %v7952_v46, %v7965_v1  ;;  %v6487_v46 = vld [vmem:[#allocation5 + $0xa8] sm:$0xf0] }
 0x45b   : > { %v4987_v59 = vmax.f32 %v4951_v4, 0.0  ;;  %6454 = vmatmul.msk.bf16.gmra.mxu2 %vm631_vm3, %v7382_v29  ;;  %v3925_v18 = vpop.f32.mrf.mxu3  ;;  %4261 = vmatpush.bf16.msra.mxu0 %v5693_v38  ;;  %v2829_v4 = vadd.f32 %v7535_v2, %v2791_v30 }
 0x45c   : > { %v4823_v50 = vrot.slane %v4738_v33, 2  ;;  %4223 = vmatpush.bf16.msra.mxu3 %v5341_v23 }
 0x45d   : > { %5024 = vst [vmem:[%s8028_s22 + $0x30] sm:$0xff] %v4987_v59  ;;  %v3961_v62 = vpop.f32.mrf.mxu0  ;;  %v6674_v59 = vld [vmem:[#allocation5 + $0x680] sm:$0xf0]  ;;  %v4708_v31 = vmax.f32 %v2829_v4, %v4584_v5 }
 0x45e   : > { %v4824_v11 = vsel %vm4792_vm7, %v4811_v7, %v4823_v50  ;;  %v4037_v24 = vpop.f32.mrf.mxu2  ;;  %v3962_v20 = vadd.f32 %v3961_v62, %v3923_v61  ;;  %v6045_v0 = vor.u32 %v6674_v59, %v6044_v19  ;;  %v4589_v62 = vsel %vm4568_vm1, %v7960_v60, %v7971_v42  ;;  %v6575_v19 = vld [vmem:[#allocation5 + $0x368] sm:$0xf0] }
 0x45f   : > { %v4907_v17 = vmax.f32 %v4702_v14, %v4824_v11  ;;  %v4557_v2 = vpop.permute.xlu0 %4556  ;;  %v4714_v4 = vmax.f32 %v7550_v34, %v4589_v62  ;;  %v6476_v34 = vld [vmem:[#allocation5 + $0x50] sm:$0xf0] }
 0x460   : > { %v8054_v37 = vpop.permute.xlu2 %4440  ;;  %v8056_v56 = vpop.permute.xlu1 %4546  ;;  %4089 = vmatmul.bf16.gmra.mxu3 %v7447_v47  ;;  %4122 = vmatmul.bf16.gmra.mxu0 %v7423_v13 }
 0x461   : > { %v4957_v8 = vadd.f32 %v8009_v26, %v4907_v17  ;;  %v3999_v51 = vpop.f32.mrf.mxu1  ;;  %v4614_v7 = vsel %vm4568_vm1, %v4545_v36, %v8056_v56  ;;  %v5296_v36 = vld [vmem:[#allocation5 + $0x80] sm:$0xf]  ;;  %4299 = vmatpush.bf16.msra.mxu1 %v6045_v0 }
 0x462   : > { %v4000_v40 = vadd.f32 %v3999_v51, %v3962_v20  ;;  %v4744_v61 = vmax.f32 %v7577_v43, %v4614_v7  ;;  %v5297_v23 = vor.u32 %v6487_v46, %v5296_v36  ;;  %v6000_v0 = vld [vmem:[#allocation5 + $0x600] sm:$0xf]  ;;  %v6663_v36 = vld [vmem:[#allocation5 + $0x628] sm:$0xf0]  ;;  %v5252_v46 = vld [vmem:[#allocation5 + $0x28] sm:$0xf] }
 0x463   : > { %v4993_v12 = vmax.f32 %v4957_v8, 0.0  ;;  %v3928_v58 = vpop.f32.mrf.mxu3 }
 0x464   : > { %v4038_v27 = vadd.f32 %v4037_v24, %v4000_v40  ;;  %v4835_v33 = vrot.slane %v4744_v61, 2  ;;  %4160 = vmatmul.bf16.gmra.mxu1 %v7402_v57  ;;  %4224 = vmatpush.bf16.msra.mxu3 %v5297_v23  ;;  %v6308_v40 = vld [vmem:[#allocation5 + $0x868] sm:$0xf]  ;;  %v6740_v61 = vld [vmem:[#allocation5 + $0x890] sm:$0xf0]  ;;  %v6001_v23 = vor.u32 %v6663_v36, %v6000_v0 }
 0x465   : > { %5030 = vst [vmem:[%s8028_s22 + $0x60] sm:$0xff] %v4993_v12  ;;  %v3963_v28 = vpop.f32.mrf.mxu0  ;;  %v6309_v12 = vor.u32 %v6740_v61, %v6308_v40  ;;  %v8653_v36 = vld [vmem:[#allocation17_spill] sm:$0xff] }
 0x466   : > { %v4836_v14 = vsel %vm4792_vm7, %v4823_v50, %v4835_v33  ;;  %4442 = vrot.lane.b32.xlu0 %v4038_v27, %s6972_s21  ;;  %v4039_v43 = vpop.f32.mrf.mxu2  ;;  %v3964_v11 = vadd.f32 %v3963_v28, %v3925_v18  ;;  %v5648_v27 = vld [vmem:[#allocation5 + $0x340] sm:$0xf]  ;;  %4300 = vmatpush.bf16.msra.mxu1 %v6001_v23 }
 0x467   : > { %v4913_v48 = vmax.f32 %v4708_v31, %v4836_v14  ;;  %v5649_v31 = vor.u32 %v6575_v19, %v5648_v27  ;;  %4339 = vmatpush.bf16.msra.mxu2 %v6309_v12  ;;  %v6564_v12 = vld [vmem:[#allocation5 + $0x310] sm:$0xf0]  ;;  %v5956_v27 = vld [vmem:[#allocation5 + $0x5a8] sm:$0xf] }
 0x468   : > { %v8072_v24 = vpop.permute.xlu2 %4452  ;;  %v8074_v38 = vpop.permute.xlu1 %4558 }
 0x469   : > { %v4963_v30 = vadd.f32 %v8009_v26, %v4913_v48  ;;  %v4001_v17 = vpop.f32.mrf.mxu1  ;;  %v4619_v50 = vsel %vm4568_vm1, %v4557_v2, %v8074_v38  ;;  %4262 = vmatpush.bf16.msra.mxu0 %v5649_v31 }
 0x46a   : > { %v4002_v20 = vadd.f32 %v4001_v17, %v3964_v11  ;;  %v4750_v8 = vmax.f32 %v7582_v44, %v4619_v50 }
 0x46b   : > { %v4999_v18 = vmax.f32 %v4963_v30, 0.0  ;;  %6455 = vmatmul.msk.bf16.gmra.mxu2 %vm631_vm3, %v7411_v63  ;;  %v3930_v51 = vpop.f32.mrf.mxu3 }
 0x46c   : > { %v4040_v7 = vadd.f32 %v4039_v43, %v4002_v20  ;;  %v4847_v5 = vrot.slane %v4750_v8, 2 }
 0x46d   : > { %5036 = vst [vmem:[%s8028_s22 + $0x90] sm:$0xff] %v4999_v18  ;;  %v3966_v43 = vpop.f32.mrf.mxu0 }
 0x46e   : > { %v4848_v60 = vsel %vm4792_vm7, %v4835_v33, %v4847_v5  ;;  %v4925_v59 = vmax.f32 %v7986_v3, %v4847_v5  ;;  %4454 = vrot.lane.b32.xlu0 %v4040_v7, %s6972_s21  ;;  %v4042_v44 = vpop.f32.mrf.mxu2  ;;  %v3967_v48 = vadd.f32 %v3966_v43, %v3928_v58  ;;  %v5253_v3 = vor.u32 %v6476_v34, %v5252_v46  ;;  %v8654_v34 = vld [vmem:[#allocation14_spill] sm:$0xff] }
 0x46f   : > { %v4919_v14 = vmax.f32 %v4714_v4, %v4848_v60  ;;  %v5604_v4 = vld [vmem:[#allocation5 + $0x2e8] sm:$0xf] }
 0x470   : > { %v4975_v2 = vadd.f32 %v8009_v26, %v4925_v59  ;;  %v8091_v28 = vpop.permute.xlu2 %4464  ;;  %4094 = vmatmul.bf16.gmra.mxu3 %v7486_v49  ;;  %4127 = vmatmul.bf16.gmra.mxu0 %v7452_v54  ;;  %v5605_v60 = vor.u32 %v6564_v12, %v5604_v4  ;;  %v6652_v59 = vld [vmem:[#allocation5 + $0x5d0] sm:$0xf0] }
 0x471   : > { %v4969_v33 = vadd.f32 %v8009_v26, %v4919_v14  ;;  %v4004_v11 = vpop.f32.mrf.mxu1  ;;  %4225 = vmatpush.bf16.msra.mxu3 %v5253_v3  ;;  %v5957_v31 = vor.u32 %v6652_v59, %v5956_v27  ;;  %v8659_v59 = vld [vmem:[#allocation18_spill] sm:$0xff] }
 0x472   : > { %v5011_v30 = vmax.f32 %v4975_v2, 0.0  ;;  %v4005_v17 = vadd.f32 %v4004_v11, %v3967_v48  ;;  %4263 = vmatpush.bf16.msra.mxu0 %v5605_v60 }
 0x473   : > { %v5005_v50 = vmax.f32 %v4969_v33, 0.0  ;;  %v3933_v62 = vpop.f32.mrf.mxu3  ;;  %4301 = vmatpush.bf16.msra.mxu1 %v5957_v31 }
 0x474   : > { %5048 = vst [vmem:[%s8028_s22 + $0xf0] sm:$0x3] %v5011_v30  ;;  %v4043_v58 = vadd.f32 %v4042_v44, %v4005_v17  ;;  %4165 = vmatmul.bf16.gmra.mxu1 %v7459_v16  ;;  %v8655_v17 = vld [vmem:[#allocation15_spill] sm:$0xff] }
 0x475   : > { %5042 = vst [vmem:[%s8028_s22 + $0xc0] sm:$0xff] %v5005_v50  ;;  %v3968_v8 = vpop.f32.mrf.mxu0 }
 0x476   : > { %4466 = vrot.lane.b32.xlu0 %v4043_v58, %s6972_s21  ;;  %v4044_v20 = vpop.f32.mrf.mxu2  ;;  %v3969_v18 = vadd.f32 %v3968_v8, %v3930_v51 }
 0x478   : > { %v8100_v26 = vpop.permute.xlu2 %4476 }
 0x479   : > { %v4006_v7 = vpop.f32.mrf.mxu1 }
 0x47a   : > { %v4007_v5 = vadd.f32 %v4006_v7, %v3969_v18  ;;  %v8656_v18 = vld [vmem:[#allocation24_spill] sm:$0xff] }
 0x47b   : > { %6456 = vmatmul.msk.bf16.gmra.mxu2 %vm631_vm3, %v7464_v25  ;;  %v3935_v40 = vpop.f32.mrf.mxu3 }
 0x47c   : > { %v4045_v61 = vadd.f32 %v4044_v20, %v4007_v5 }
 0x47d   : > { %v3971_v44 = vpop.f32.mrf.mxu0 }
 0x47e   : > { %4478 = vrot.lane.b32.xlu0 %v4045_v61, %s6972_s21  ;;  %v4047_v19 = vpop.f32.mrf.mxu2  ;;  %v3972_v51 = vadd.f32 %v3971_v44, %v3933_v62  ;;  %v8657_v61 = vld [vmem:[#allocation11_spill] sm:$0xff] }
 0x480   : > { %v8105_v0 = vpop.permute.xlu2 %4488  ;;  %4099 = vmatmul.bf16.gmra.mxu3 %v8653_v36  ;;  %4132 = vmatmul.bf16.gmra.mxu0 %v7490_v53 }
 0x481   : > { %v4009_v46 = vpop.f32.mrf.mxu1 }
 0x482   : > { %v4010_v14 = vadd.f32 %v4009_v46, %v3972_v51 }
 0x483   : > { %v3938_v43 = vpop.f32.mrf.mxu3 }
 0x484   : > { %v4048_v23 = vadd.f32 %v4047_v19, %v4010_v14  ;;  %4170 = vmatmul.bf16.gmra.mxu1 %v8654_v34  ;;  %v8658_v19 = vld [vmem:[#allocation25_spill] sm:$0xff]  ;;  %v8660_v14 = vld [vmem:[#allocation16_spill] sm:$0xff] }
 0x485   : > { %v3973_v48 = vpop.f32.mrf.mxu0 }
 0x486   : > { %4490 = vrot.lane.b32.xlu0 %v4048_v23, %s6972_s21  ;;  %v4049_v2 = vpop.f32.mrf.mxu2  ;;  %v3974_v3 = vadd.f32 %v3973_v48, %v3935_v40 }
 0x488   : > { %v8111_v33 = vpop.permute.xlu2 %4500 }
 0x489   : > { %v4011_v11 = vpop.f32.mrf.mxu1  ;;  %v4595_v58 = vsel %vm4568_vm1, %v7976_v55, %v8111_v33  ;;  %v4570_v55 = vsel %vm4568_vm1, %v7944_v9, %v8054_v37 }
 0x48a   : > { %v4012_v30 = vadd.f32 %v4011_v11, %v3974_v3  ;;  %v8120_v7 = vmax.f32 %v8656_v18, %v4595_v58 }
 0x48b   : > { %6457 = vmatmul.msk.bf16.gmra.mxu2 %vm631_vm3, %v8655_v17  ;;  %v3940_v50 = vpop.f32.mrf.mxu3 }
 0x48c   : > { %v4050_v62 = vadd.f32 %v4049_v2, %v4012_v30  ;;  %v4796_v31 = vrot.slane %v8120_v7, 2 }
 0x48d   : > { %v3976_v8 = vpop.f32.mrf.mxu0 }
 0x48e   : > { %4502 = vrot.lane.b32.xlu0 %v4050_v62, %s6972_s21  ;;  %v4052_v20 = vpop.f32.mrf.mxu2  ;;  %v3977_v5 = vadd.f32 %v3976_v8, %v3938_v43  ;;  %v8661_v43 = vld [vmem:[#allocation19_spill] sm:$0xff]  ;;  %v4575_v8 = vsel %vm4568_vm1, %v7949_v41, %v8072_v24 }
 0x48f   : > { %v4691_v23 = vmax.f32 %v8661_v43, %v4570_v55 }
 0x490   : > { %v8122_v40 = vpop.permute.xlu2 %4512  ;;  %4226 = vmatmul.bf16.vlgmr.msra.gmra.mxu3 %v8657_v61  ;;  %4137 = vmatmul.bf16.gmra.mxu0 %v8659_v59 }
 0x491   : > { %v4014_v4 = vpop.f32.mrf.mxu1  ;;  %v4600_v12 = vsel %vm4568_vm1, %v7988_v35, %v8122_v40  ;;  %v8137_v35 = vperm.slane %v7990_v21, 1 }
 0x492   : > { %v4015_v27 = vadd.f32 %v4014_v4, %v3977_v5  ;;  %v4727_v60 = vmax.f32 %v8658_v19, %v4600_v12  ;;  %v8662_v5 = vld [vmem:[#allocation26_spill] sm:$0xff] }
 0x493   : > { %v3943_v44 = vpop.f32.mrf.mxu3 }
 0x494   : > { %v4053_v51 = vadd.f32 %v4052_v20, %v4015_v27  ;;  %v4797_v46 = vrot.slane %v4727_v60, 2  ;;  %4175 = vmatmul.bf16.gmra.mxu1 %v8660_v14  ;;  %v8663_v27 = vld [vmem:[#allocation20_spill] sm:$0xff] }
 0x495   : > { %v3978_v3 = vpop.f32.mrf.mxu0  ;;  %v4697_v19 = vmax.f32 %v8663_v27, %v4575_v8 }
 0x496   : > { %v4798_v2 = vsel %vm4792_vm7, %v4796_v31, %v4797_v46  ;;  %4514 = vrot.lane.b32.xlu0 %v4053_v51, %s6972_s21  ;;  %v4054_v9 = vpop.f32.mrf.mxu2  ;;  %v3979_v11 = vadd.f32 %v3978_v3, %v3940_v50  ;;  %v8665_v3 = vld [vmem:[#allocation27_spill] sm:$0xff] }
 0x497   : > { %v4896_v48 = vmax.f32 %v4691_v23, %v4798_v2  ;;  %v8664_v23 = vld [vmem:[#allocation13_spill] sm:$0xff] }
 0x498   : > { %v8141_v30 = vpop.permute.xlu2 %4524 }
 0x499   : > { %v4946_v62 = vadd.f32 %v8137_v35, %v4896_v48  ;;  %v4016_v58 = vpop.f32.mrf.mxu1  ;;  %v4605_v20 = vsel %vm4568_vm1, %v8016_v15, %v8141_v30 }
 0x49a   : > { %v4017_v18 = vadd.f32 %v4016_v58, %v3979_v11  ;;  %v4733_v61 = vmax.f32 %v8662_v5, %v4605_v20  ;;  %v8668_v5 = vld [vmem:[#allocation21_spill] sm:$0xff] }
 0x49b   : > { %v4982_v4 = vmax.f32 %v4946_v62, 0.0  ;;  %6458 = vmatmul.msk.bf16.vlgmr.msra.gmra.mxu2 %vm631_vm3, %v7297_v10  ;;  %v3945_v50 = vpop.f32.mrf.mxu3 }
 0x49c   : > { %v4055_v12 = vadd.f32 %v4054_v9, %v4017_v18  ;;  %v4813_v55 = vrot.slane %v4733_v61, 2  ;;  %v8667_v18 = vld [vmem:[#allocation10_spill] sm:$0xff] }
 0x49d   : > { %5018 = vst [vmem:[%s8028_s22 + $0x8] sm:$0xff] %v4982_v4  ;;  %v3981_v41 = vpop.f32.mrf.mxu0 }
 0x49e   : > { %v4814_v60 = vsel %vm4792_vm7, %v4797_v46, %v4813_v55  ;;  %4526 = vrot.lane.b32.xlu0 %v4055_v12, %s6972_s21  ;;  %v4057_v15 = vpop.f32.mrf.mxu2  ;;  %v3982_v51 = vadd.f32 %v3981_v41, %v3943_v44  ;;  %v4580_v46 = vsel %vm4568_vm1, %v7957_v32, %v8091_v28  ;;  %v8666_v44 = vld [vmem:[#allocation12_spill] sm:$0xff] }
 0x49f   : > { %v4902_v31 = vmax.f32 %v4697_v19, %v4814_v60  ;;  %v4703_v61 = vmax.f32 %v8668_v5, %v4580_v46  ;;  %v8670_v46 = vld [vmem:[#allocation22_spill] sm:$0xff] }
 0x4a0   : > { %v8157_v43 = vpop.permute.xlu2 %4536  ;;  %4231 = vmatmul.bf16.gmra.mxu3 %v8664_v23  ;;  %4264 = vmatmul.bf16.vlgmr.msra.gmra.mxu0 %v8666_v44 }
 0x4a1   : > { %v4952_v10 = vadd.f32 %v8137_v35, %v4902_v31  ;;  %v4019_v2 = vpop.f32.mrf.mxu1  ;;  %v4610_v9 = vsel %vm4568_vm1, %v8037_v22, %v8157_v43 }
 0x4a2   : > { %v4020_v48 = vadd.f32 %v4019_v2, %v3982_v51  ;;  %v4739_v11 = vmax.f32 %v8665_v3, %v4610_v9  ;;  %v8669_v51 = vld [vmem:[#allocation28_spill] sm:$0xff] }
 0x4a3   : > { %v4988_v62 = vmax.f32 %v4952_v10, 0.0  ;;  %v3948_v58 = vpop.f32.mrf.mxu3 }
 0x4a4   : > { %v4058_v20 = vadd.f32 %v4057_v15, %v4020_v48  ;;  %v4825_v8 = vrot.slane %v4739_v11, 2  ;;  %4302 = vmatmul.bf16.vlgmr.msra.gmra.mxu1 %v8667_v18 }
 0x4a5   : > { %5025 = vst [vmem:[%s8028_s22 + $0x38] sm:$0xff] %v4988_v62  ;;  %v3983_v12 = vpop.f32.mrf.mxu0 }
 0x4a6   : > { %v4826_v22 = vsel %vm4792_vm7, %v4813_v55, %v4825_v8  ;;  %4538 = vrot.lane.b32.xlu0 %v4058_v20, %s6972_s21  ;;  %v4059_v4 = vpop.f32.mrf.mxu2  ;;  %v3984_v27 = vadd.f32 %v3983_v12, %v3945_v50  ;;  %v4585_v55 = vsel %vm4568_vm1, %v7965_v1, %v8100_v26  ;;  %v8672_v12 = vld [vmem:[#allocation23_spill] sm:$0xff] }
 0x4a7   : > { %v4908_v32 = vmax.f32 %v4703_v61, %v4826_v22  ;;  %v4709_v48 = vmax.f32 %v8670_v46, %v4585_v55  ;;  %v8671_v61 = vld [vmem:[#allocation29_spill] sm:$0xff] }
 0x4a8   : > { %v8174_v19 = vpop.permute.xlu2 %4548 }
 0x4a9   : > { %v4958_v60 = vadd.f32 %v8137_v35, %v4908_v32  ;;  %v4021_v15 = vpop.f32.mrf.mxu1  ;;  %v4615_v31 = vsel %vm4568_vm1, %v8056_v56, %v8174_v19 }
 0x4aa   : > { %v4022_v41 = vadd.f32 %v4021_v15, %v3984_v27  ;;  %v4745_v23 = vmax.f32 %v8669_v51, %v4615_v31 }
 0x4ab   : > { %v4994_v10 = vmax.f32 %v4958_v60, 0.0  ;;  %6459 = vmatmul.msk.bf16.gmra.mxu2 %vm631_vm3, %v7326_v39  ;;  %v3950_v50 = vpop.f32.mrf.mxu3 }
 0x4ac   : > { %v4060_v2 = vadd.f32 %v4059_v4, %v4022_v41  ;;  %v4837_v9 = vrot.slane %v4745_v23, 2 }
 0x4ad   : > { %5031 = vst [vmem:[%s8028_s22 + $0x68] sm:$0xff] %v4994_v10  ;;  %v3986_v1 = vpop.f32.mrf.mxu0 }
 0x4ae   : > { %v4838_v3 = vsel %vm4792_vm7, %v4825_v8, %v4837_v9  ;;  %4550 = vrot.lane.b32.xlu0 %v4060_v2, %s6972_s21  ;;  %v4062_v56 = vpop.f32.mrf.mxu2  ;;  %v3987_v44 = vadd.f32 %v3986_v1, %v3948_v58  ;;  %v4590_v8 = vsel %vm4568_vm1, %v7971_v42, %v8105_v0 }
 0x4af   : > { %v4914_v11 = vmax.f32 %v4709_v48, %v4838_v3  ;;  %v4715_v27 = vmax.f32 %v8672_v12, %v4590_v8 }
 0x4b0   : > { %v8190_v62 = vpop.permute.xlu2 %4560  ;;  %4236 = vmatmul.bf16.gmra.mxu3 %v7417_v6  ;;  %4269 = vmatmul.bf16.gmra.mxu0 %v7367_v45 }
 0x4b1   : > { %v4964_v39 = vadd.f32 %v8137_v35, %v4914_v11  ;;  %v4024_v20 = vpop.f32.mrf.mxu1  ;;  %v4620_v18 = vsel %vm4568_vm1, %v8074_v38, %v8190_v62 }
 0x4b2   : > { %v4025_v5 = vadd.f32 %v4024_v20, %v3987_v44  ;;  %v4751_v22 = vmax.f32 %v8671_v61, %v4620_v18 }
 0x4b3   : > { %v5000_v58 = vmax.f32 %v4964_v39, 0.0  ;;  %v4075_v4 = vpop.f32.mrf.mxu3 }
 0x4b4   : > { %v4063_v32 = vadd.f32 %v4062_v56, %v4025_v5  ;;  %v4849_v6 = vrot.slane %v4751_v22, 2  ;;  %4307 = vmatmul.bf16.gmra.mxu1 %v7346_v52 }
 0x4b5   : > { %5037 = vst [vmem:[%s8028_s22 + $0x98] sm:$0xff] %v5000_v58  ;;  %v3988_v45 = vpop.f32.mrf.mxu0 }
 0x4b6   : > { %v4850_v38 = vsel %vm4792_vm7, %v4837_v9, %v4849_v6  ;;  %v4926_v42 = vmax.f32 %v8120_v7, %v4849_v6  ;;  %4562 = vrot.lane.b32.xlu0 %v4063_v32, %s6972_s21  ;;  %v4064_v60 = vpop.f32.mrf.mxu2 }
 0x4b7   : > { %v4920_v15 = vmax.f32 %v4715_v27, %v4850_v38 }
 0x4b8   : > { %v4976_v31 = vadd.f32 %v8137_v35, %v4926_v42 }
 0x4b9   : > { %v4970_v55 = vadd.f32 %v8137_v35, %v4920_v15  ;;  %v4026_v41 = vpop.f32.mrf.mxu1 }
 0x4ba   : > { %v5012_v52 = vmax.f32 %v4976_v31, 0.0 }
 0x4bb   : > { %v5006_v51 = vmax.f32 %v4970_v55, 0.0  ;;  %6460 = vmatmul.msk.bf16.gmra.mxu2 %vm631_vm3, %v7382_v29  ;;  %v4077_v23 = vpop.f32.mrf.mxu3 }
 0x4bc   : > { %5049 = vst [vmem:[%s8028_s22 + $0xf8] sm:$0x3] %v5012_v52 }
 0x4bd   : > { %5043 = vst [vmem:[%s8028_s22 + $0xc8] sm:$0xff] %v5006_v51  ;;  %v4113_v7 = vpop.f32.mrf.mxu0 }
 0x4be   : > { %v4189_v10 = vpop.f32.mrf.mxu2  ;;  %v4114_v50 = vadd.f32 %v4113_v7, %v4075_v4 }
 0x4c0   : > { %4241 = vmatmul.bf16.gmra.mxu3 %v7447_v47  ;;  %4274 = vmatmul.bf16.gmra.mxu0 %v7423_v13 }
 0x4c1   : > { %v4151_v2 = vpop.f32.mrf.mxu1 }
 0x4c2   : > { %v4152_v9 = vadd.f32 %v4151_v2, %v4114_v50 }
 0x4c3   : > { %v4080_v46 = vpop.f32.mrf.mxu3 }
 0x4c4   : > { %v4190_v35 = vadd.f32 %v4189_v10, %v4152_v9  ;;  %4312 = vmatmul.bf16.gmra.mxu1 %v7402_v57 }
 0x4c5   : > { %v4115_v29 = vpop.f32.mrf.mxu0 }
 0x4c6   : > { %4444 = vrot.lane.b32.xlu1 %v4190_v35, %s6972_s21  ;;  %v4191_v48 = vpop.f32.mrf.mxu2  ;;  %v4116_v3 = vadd.f32 %v4115_v29, %v4077_v23 }
 0x4c9   : > { %v4153_v56 = vpop.f32.mrf.mxu1 }
 0x4ca   : > { %v4154_v11 = vadd.f32 %v4153_v56, %v4116_v3 }
 0x4cb   : > { %6461 = vmatmul.msk.bf16.gmra.mxu2 %vm631_vm3, %v7411_v63  ;;  %v4082_v1 = vpop.f32.mrf.mxu3 }
 0x4cc   : > { %v4192_v47 = vadd.f32 %v4191_v48, %v4154_v11 }
 0x4cd   : > { %v4118_v13 = vpop.f32.mrf.mxu0 }
 0x4ce   : > { %4456 = vrot.lane.b32.xlu1 %v4192_v47, %s6972_s21  ;;  %v4194_v44 = vpop.f32.mrf.mxu2  ;;  %v4119_v39 = vadd.f32 %v4118_v13, %v4080_v46 }
 0x4d0   : > { %4246 = vmatmul.bf16.gmra.mxu3 %v7486_v49  ;;  %4279 = vmatmul.bf16.gmra.mxu0 %v7452_v54 }
 0x4d1   : > { %v4156_v57 = vpop.f32.mrf.mxu1 }
 0x4d2   : > { %v4157_v20 = vadd.f32 %v4156_v57, %v4119_v39 }
 0x4d3   : > { %v4085_v18 = vpop.f32.mrf.mxu3 }
 0x4d4   : > { %v4195_v8 = vadd.f32 %v4194_v44, %v4157_v20  ;;  %4317 = vmatmul.bf16.gmra.mxu1 %v7459_v16 }
 0x4d5   : > { %v4120_v5 = vpop.f32.mrf.mxu0 }
 0x4d6   : > { %4468 = vrot.lane.b32.xlu1 %v4195_v8, %s6972_s21  ;;  %v4196_v63 = vpop.f32.mrf.mxu2  ;;  %v4121_v61 = vadd.f32 %v4120_v5, %v4082_v1  ;;  %v8673_v8 = vld [vmem:[#allocation35_spill] sm:$0xff] }
 0x4d8   : > { %v8225_v22 = vpop.permute.xlu0 %4442 }
 0x4d9   : > { %v4158_v58 = vpop.f32.mrf.mxu1 }
 0x4da   : > { %v4159_v4 = vadd.f32 %v4158_v58, %v4121_v61 }
 0x4db   : > { %6462 = vmatmul.msk.bf16.gmra.mxu2 %vm631_vm3, %v7464_v25  ;;  %v4087_v49 = vpop.f32.mrf.mxu3 }
 0x4dc   : > { %v4197_v32 = vadd.f32 %v4196_v63, %v4159_v4 }
 0x4dd   : > { %v4123_v6 = vpop.f32.mrf.mxu0 }
 0x4de   : > { %4480 = vrot.lane.b32.xlu1 %v4197_v32, %s6972_s21  ;;  %v4199_v54 = vpop.f32.mrf.mxu2  ;;  %v4124_v12 = vadd.f32 %v4123_v6, %v4085_v18  ;;  %v8674_v32 = vld [vmem:[#allocation36_spill] sm:$0xff] }
 0x4e0   : > { %v8230_v16 = vpop.permute.xlu0 %4454  ;;  %4251 = vmatmul.bf16.gmra.mxu3 %v8653_v36  ;;  %4284 = vmatmul.bf16.gmra.mxu0 %v7490_v53 }
 0x4e1   : > { %v4161_v27 = vpop.f32.mrf.mxu1 }
 0x4e2   : > { %v4162_v38 = vadd.f32 %v4161_v27, %v4124_v12 }
 0x4e3   : > { %v4090_v42 = vpop.f32.mrf.mxu3 }
 0x4e4   : > { %v4200_v60 = vadd.f32 %v4199_v54, %v4162_v38  ;;  %4322 = vmatmul.bf16.gmra.mxu1 %v8654_v34 }
 0x4e5   : > { %v4125_v15 = vpop.f32.mrf.mxu0 }
 0x4e6   : > { %4492 = vrot.lane.b32.xlu1 %v4200_v60, %s6972_s21  ;;  %v4201_v25 = vpop.f32.mrf.mxu2  ;;  %v4126_v45 = vadd.f32 %v4125_v15, %v4087_v49  ;;  %v4571_v49 = vsel %vm4568_vm1, %v8054_v37, %v8225_v22 }
 0x4e8   : > { %v8236_v31 = vpop.permute.xlu0 %4466 }
 0x4e9   : > { %v4163_v55 = vpop.f32.mrf.mxu1 }
 0x4ea   : > { %v4164_v41 = vadd.f32 %v4163_v55, %v4126_v45 }
 0x4eb   : > { %6463 = vmatmul.msk.bf16.gmra.mxu2 %vm631_vm3, %v8655_v17  ;;  %v4092_v36 = vpop.f32.mrf.mxu3  ;;  %vm5022_vm3 = vcmask 261120  }
 0x4ec   : > { %v4202_v52 = vadd.f32 %v4201_v25, %v4164_v41  ;;  %v8270_v25 = vperm.slane %v7990_v21, 2  ;;  %v4576_v21 = vsel %vm4568_vm1, %v8072_v24, %v8230_v16 }
 0x4ed   : > { %v4128_v51 = vpop.f32.mrf.mxu0 }
 0x4ee   : > { %4504 = vrot.lane.b32.xlu1 %v4202_v52, %s6972_s21  ;;  %v4204_v53 = vpop.f32.mrf.mxu2  ;;  %v4129_v23 = vadd.f32 %v4128_v51, %v4090_v42  ;;  %v8675_v42 = vld [vmem:[#allocation30_spill] sm:$0xff] }
 0x4ef   : > { %v4692_v60 = vmax.f32 %v8675_v42, %v4571_v49 }
 0x4f0   : > { %v8241_v34 = vpop.permute.xlu0 %4478  ;;  %4289 = vmatmul.bf16.gmra.mxu0 %v8659_v59 }
 0x4f1   : > { %v4166_v10 = vpop.f32.mrf.mxu1 }
 0x4f2   : > { %v4167_v7 = vadd.f32 %v4166_v10, %v4129_v23  ;;  %v8676_v23 = vld [vmem:[#allocation37_spill] sm:$0xff] }
 0x4f3   : > { %v4095_v50 = vpop.f32.mrf.mxu3 }
 0x4f4   : > { %v4205_v2 = vadd.f32 %v4204_v53, %v4167_v7  ;;  %4327 = vmatmul.bf16.gmra.mxu1 %v8660_v14 }
 0x4f5   : > { %v4130_v9 = vpop.f32.mrf.mxu0 }
 0x4f6   : > { %4516 = vrot.lane.b32.xlu1 %v4205_v2, %s6972_s21  ;;  %v4206_v17 = vpop.f32.mrf.mxu2  ;;  %v4131_v46 = vadd.f32 %v4130_v9, %v4092_v36  ;;  %v8677_v9 = vld [vmem:[#allocation31_spill] sm:$0xff] }
 0x4f8   : > { %v8246_v35 = vpop.permute.xlu0 %4490 }
 0x4f9   : > { %v4168_v48 = vpop.f32.mrf.mxu1 }
 0x4fa   : > { %v4169_v29 = vadd.f32 %v4168_v48, %v4131_v46  ;;  %v4698_v46 = vmax.f32 %v8677_v9, %v4576_v21 }
 0x4fb   : > { %v4097_v3 = vpop.f32.mrf.mxu3 }
 0x4fc   : > { %v4207_v56 = vadd.f32 %v4206_v17, %v4169_v29 }
 0x4fd   : > { %v4133_v1 = vpop.f32.mrf.mxu0 }
 0x4fe   : > { %4528 = vrot.lane.b32.xlu1 %v4207_v56, %s6972_s21  ;;  %v4209_v11 = vpop.f32.mrf.mxu2  ;;  %v4134_v59 = vadd.f32 %v4133_v1, %v4095_v50 }
 0x500   : > { %v8249_v47 = vpop.permute.xlu0 %4502 }
 0x501   : > { %v4171_v44 = vpop.f32.mrf.mxu1  ;;  %v4596_v57 = vsel %vm4568_vm1, %v8111_v33, %v8249_v47 }
 0x502   : > { %v4172_v14 = vadd.f32 %v4171_v44, %v4134_v59  ;;  %v8256_v63 = vmax.f32 %v8673_v8, %v4596_v57  ;;  %v4581_v59 = vsel %vm4568_vm1, %v8091_v28, %v8236_v31  ;;  %v8678_v44 = vld [vmem:[#allocation38_spill] sm:$0xff] }
 0x503   : > { %v4100_v13 = vpop.f32.mrf.mxu3 }
 0x504   : > { %v4210_v39 = vadd.f32 %v4209_v11, %v4172_v14  ;;  %v4799_v12 = vrot.slane %v8256_v63, 2 }
 0x505   : > { %v4135_v18 = vpop.f32.mrf.mxu0 }
 0x506   : > { %4540 = vrot.lane.b32.xlu1 %v4210_v39, %s6972_s21  ;;  %v4211_v20 = vpop.f32.mrf.mxu2  ;;  %v4136_v5 = vadd.f32 %v4135_v18, %v4097_v3 }
 0x508   : > { %v8258_v61 = vpop.permute.xlu0 %4514 }
 0x509   : > { %v4173_v58 = vpop.f32.mrf.mxu1  ;;  %v4601_v4 = vsel %vm4568_vm1, %v8122_v40, %v8258_v61 }
 0x50a   : > { %v4174_v33 = vadd.f32 %v4173_v58, %v4136_v5  ;;  %v4728_v54 = vmax.f32 %v8674_v32, %v4601_v4 }
 0x50b   : > { %v4102_v6 = vpop.f32.mrf.mxu3 }
 0x50c   : > { %v4212_v27 = vadd.f32 %v4211_v20, %v4174_v33  ;;  %v4800_v38 = vrot.slane %v4728_v54, 2  ;;  %v8679_v20 = vld [vmem:[#allocation32_spill] sm:$0xff]  ;;  %v4586_v54 = vsel %vm4568_vm1, %v8100_v26, %v8241_v34 }
 0x50d   : > { %v4138_v45 = vpop.f32.mrf.mxu0  ;;  %v4704_v18 = vmax.f32 %v8679_v20, %v4581_v59 }
 0x50e   : > { %v4801_v15 = vsel %vm4792_vm7, %v4799_v12, %v4800_v38  ;;  %4552 = vrot.lane.b32.xlu1 %v4212_v27, %s6972_s21  ;;  %v4214_v40 = vpop.f32.mrf.mxu2  ;;  %v4139_v55 = vadd.f32 %v4138_v45, %v4100_v13  ;;  %v8680_v12 = vld [vmem:[#allocation39_spill] sm:$0xff] }
 0x50f   : > { %v4897_v37 = vmax.f32 %v4692_v60, %v4801_v15 }
 0x510   : > { %v8274_v41 = vpop.permute.xlu0 %4526 }
 0x511   : > { %v4947_v36 = vadd.f32 %v8270_v25, %v4897_v37  ;;  %v4176_v52 = vpop.f32.mrf.mxu1  ;;  %v4606_v53 = vsel %vm4568_vm1, %v8141_v30, %v8274_v41 }
 0x512   : > { %v4177_v51 = vadd.f32 %v4176_v52, %v4139_v55  ;;  %v4734_v10 = vmax.f32 %v8676_v23, %v4606_v53  ;;  %v4591_v23 = vsel %vm4568_vm1, %v8105_v0, %v8246_v35 }
 0x513   : > { %v4983_v7 = vmax.f32 %v4947_v36, 0.0  ;;  %v4227_v50 = vpop.f32.mrf.mxu3 }
 0x514   : > { %v4215_v2 = vadd.f32 %v4214_v40, %v4177_v51  ;;  %v4815_v17 = vrot.slane %v4734_v10, 2  ;;  %v8681_v40 = vld [vmem:[#allocation33_spill] sm:$0xff] }
 0x515   : > { %5019 = vst [vmem:[%s8028_s22 + $0x10] sm:$0xff] %v4983_v7  ;;  %v4140_v3 = vpop.f32.mrf.mxu0  ;;  %v4710_v37 = vmax.f32 %v8681_v40, %v4586_v54  ;;  %v8682_v7 = vld [vmem:[#allocation40_spill] sm:$0xff] }
 0x516   : > { %v4816_v48 = vsel %vm4792_vm7, %v4800_v38, %v4815_v17  ;;  %4564 = vrot.lane.b32.xlu1 %v4215_v2, %s6972_s21  ;;  %v4216_v30 = vpop.f32.mrf.mxu2 }
 0x517   : > { %v4903_v29 = vmax.f32 %v4698_v46, %v4816_v48  ;;  %v8683_v48 = vld [vmem:[#allocation34_spill] sm:$0xff] }
 0x518   : > { %v8288_v56 = vpop.permute.xlu0 %4538  ;;  %v4716_v30 = vmax.f32 %v8683_v48, %v4591_v23 }
 0x519   : > { %v4953_v24 = vadd.f32 %v8270_v25, %v4903_v29  ;;  %v4178_v11 = vpop.f32.mrf.mxu1  ;;  %v4611_v1 = vsel %vm4568_vm1, %v8157_v43, %v8288_v56 }
 0x51a   : > { %v4740_v14 = vmax.f32 %v8678_v44, %v4611_v1 }
 0x51b   : > { %v4989_v13 = vmax.f32 %v4953_v24, 0.0  ;;  %v4229_v39 = vpop.f32.mrf.mxu3 }
 0x51c   : > { %v4827_v57 = vrot.slane %v4740_v14, 2 }
 0x51d   : > { %5026 = vst [vmem:[%s8028_s22 + $0x40] sm:$0xff] %v4989_v13  ;;  %v4265_v4 = vpop.f32.mrf.mxu0 }
 0x51e   : > { %v4828_v8 = vsel %vm4792_vm7, %v4815_v17, %v4827_v57  ;;  %v4341_v5 = vpop.f32.mrf.mxu2  ;;  %v4266_v49 = vadd.f32 %v4265_v4, %v4227_v50 }
 0x51f   : > { %v4909_v58 = vmax.f32 %v4704_v18, %v4828_v8 }
 0x520   : > { %v8301_v43 = vpop.permute.xlu0 %4550 }
 0x521   : > { %v4959_v33 = vadd.f32 %v8270_v25, %v4909_v58  ;;  %v4303_v28 = vpop.f32.mrf.mxu1  ;;  %v4616_v32 = vsel %vm4568_vm1, %v8174_v19, %v8301_v43 }
 0x522   : > { %v4304_v6 = vadd.f32 %v4303_v28, %v4266_v49  ;;  %v4746_v27 = vmax.f32 %v8680_v12, %v4616_v32 }
 0x523   : > { %v4995_v38 = vmax.f32 %v4959_v33, 0.0  ;;  %v4232_v42 = vpop.f32.mrf.mxu3 }
 0x524   : > { %v4342_v60 = vadd.f32 %v4341_v5, %v4304_v6  ;;  %v4839_v15 = vrot.slane %v4746_v27, 2 }
 0x525   : > { %5032 = vst [vmem:[%s8028_s22 + $0x70] sm:$0xff] %v4995_v38  ;;  %v4267_v36 = vpop.f32.mrf.mxu0 }
 0x526   : > { %v4840_v45 = vsel %vm4792_vm7, %v4827_v57, %v4839_v15  ;;  %4446 = vrot.lane.b32.xlu2 %v4342_v60, %s6972_s21  ;;  %v4343_v55 = vpop.f32.mrf.mxu2  ;;  %v4268_v52 = vadd.f32 %v4267_v36, %v4229_v39 }
 0x527   : > { %v4915_v19 = vmax.f32 %v4710_v37, %v4840_v45 }
 0x528   : > { %v8315_v26 = vpop.permute.xlu0 %4562 }
 0x529   : > { %v4965_v53 = vadd.f32 %v8270_v25, %v4915_v19  ;;  %v4305_v21 = vpop.f32.mrf.mxu1  ;;  %v4621_v51 = vsel %vm4568_vm1, %v8190_v62, %v8315_v26 }
 0x52a   : > { %v4306_v10 = vadd.f32 %v4305_v21, %v4268_v52  ;;  %v4752_v50 = vmax.f32 %v8682_v7, %v4621_v51 }
 0x52b   : > { %v5001_v2 = vmax.f32 %v4965_v53, 0.0  ;;  %v4234_v17 = vpop.f32.mrf.mxu3 }
 0x52c   : > { %v4344_v9 = vadd.f32 %v4343_v55, %v4306_v10  ;;  %v4851_v46 = vrot.slane %v4752_v50, 2 }
 0x52d   : > { %5038 = vst [vmem:[%s8028_s22 + $0xa0] sm:$0xff] %v5001_v2  ;;  %v4270_v24 = vpop.f32.mrf.mxu0 }
 0x52e   : > { %v4852_v29 = vsel %vm4792_vm7, %v4839_v15, %v4851_v46  ;;  %v4927_v62 = vmax.f32 %v8256_v63, %v4851_v46  ;;  %4458 = vrot.lane.b32.xlu2 %v4344_v9, %s6972_s21  ;;  %v4346_v3 = vpop.f32.mrf.mxu2  ;;  %v4271_v1 = vadd.f32 %v4270_v24, %v4232_v42 }
 0x52f   : > { %v4921_v0 = vmax.f32 %v4716_v30, %v4852_v29 }
 0x530   : > { %v4977_v11 = vadd.f32 %v8270_v25, %v4927_v62 }
 0x531   : > { %v4971_v59 = vadd.f32 %v8270_v25, %v4921_v0  ;;  %v4308_v44 = vpop.f32.mrf.mxu1 }
 0x532   : > { %v5013_v14 = vmax.f32 %v4977_v11, 0.0  ;;  %v4309_v13 = vadd.f32 %v4308_v44, %v4271_v1 }
 0x533   : > { %v5007_v39 = vmax.f32 %v4971_v59, 0.0  ;;  %v4237_v57 = vpop.f32.mrf.mxu3 }
 0x534   : > { %5050 = vst [vmem:[%s8028_s22 + $0x100] sm:$0x3] %v5013_v14  ;;  %v4347_v20 = vadd.f32 %v4346_v3, %v4309_v13 }
 0x535   : > { %5044 = vst [vmem:[%s8028_s22 + $0xd0] sm:$0xff] %v5007_v39  ;;  %v4272_v18 = vpop.f32.mrf.mxu0 }
 0x536   : > { %4470 = vrot.lane.b32.xlu2 %v4347_v20, %s6972_s21  ;;  %v4348_v63 = vpop.f32.mrf.mxu2  ;;  %v4273_v8 = vadd.f32 %v4272_v18, %v4234_v17 }
 0x538   : > { %v8335_v5 = vpop.permute.xlu1 %4444 }
 0x539   : > { %v4310_v58 = vpop.f32.mrf.mxu1 }
 0x53a   : > { %v4311_v4 = vadd.f32 %v4310_v58, %v4273_v8 }
 0x53b   : > { %v4239_v49 = vpop.f32.mrf.mxu3 }
 0x53c   : > { %v4349_v33 = vadd.f32 %v4348_v63, %v4311_v4  ;;  %v4572_v4 = vsel %vm4568_vm1, %v8225_v22, %v8335_v5 }
 0x53d   : > { %v4275_v28 = vpop.f32.mrf.mxu0 }
 0x53e   : > { %4482 = vrot.lane.b32.xlu2 %v4349_v33, %s6972_s21  ;;  %v4351_v25 = vpop.f32.mrf.mxu2  ;;  %v4276_v32 = vadd.f32 %v4275_v28, %v4237_v57  ;;  %v8684_v57 = vld [vmem:[#allocation46_spill] sm:$0xff] }
 0x540   : > { %v8338_v54 = vpop.permute.xlu1 %4456 }
 0x541   : > { %v4313_v6 = vpop.f32.mrf.mxu1 }
 0x542   : > { %v4314_v12 = vadd.f32 %v4313_v6, %v4276_v32 }
 0x543   : > { %v4242_v27 = vpop.f32.mrf.mxu3 }
 0x544   : > { %v4352_v38 = vadd.f32 %v4351_v25, %v4314_v12  ;;  %v8686_v12 = vld [vmem:[#allocation41_spill] sm:$0xff] }
 0x545   : > { %v4277_v60 = vpop.f32.mrf.mxu0 }
 0x546   : > { %4494 = vrot.lane.b32.xlu2 %v4352_v38, %s6972_s21  ;;  %v4353_v42 = vpop.f32.mrf.mxu2  ;;  %v4278_v15 = vadd.f32 %v4277_v60, %v4239_v49  ;;  %v8685_v49 = vld [vmem:[#allocation47_spill] sm:$0xff]  ;;  %v8370_v38 = vld [vmem:[#allocation7] sm:$0x3f] }
 0x548   : > { %v8341_v40 = vpop.permute.xlu1 %4468 }
 0x549   : > { %v4315_v37 = vpop.f32.mrf.mxu1 }
 0x54a   : > { %v4316_v45 = vadd.f32 %v4315_v37, %v4278_v15 }
 0x54b   : > { %v4244_v55 = vpop.f32.mrf.mxu3 }
 0x54c   : > { %v4354_v19 = vadd.f32 %v4353_v42, %v4316_v45  ;;  %v8373_v42 = vperm.slane %v8370_v38, 3 }
 0x54d   : > { %v4280_v52 = vpop.f32.mrf.mxu0 }
 0x54e   : > { %4506 = vrot.lane.b32.xlu2 %v4354_v19, %s6972_s21  ;;  %v4356_v36 = vpop.f32.mrf.mxu2  ;;  %v4281_v53 = vadd.f32 %v4280_v52, %v4242_v27  ;;  %v4693_v27 = vmax.f32 %v8686_v12, %v4572_v4  ;;  %v4577_v52 = vsel %vm4568_vm1, %v8230_v16, %v8338_v54  ;;  %v8691_v4 = vld [vmem:[#allocation50_spill] sm:$0xff] }
 0x550   : > { %v8344_v21 = vpop.permute.xlu1 %4480 }
 0x551   : > { %v4318_v51 = vpop.f32.mrf.mxu1 }
 0x552   : > { %v4319_v23 = vadd.f32 %v4318_v51, %v4281_v53  ;;  %v8687_v51 = vld [vmem:[#allocation48_spill] sm:$0xff] }
 0x553   : > { %v4247_v10 = vpop.f32.mrf.mxu3 }
 0x554   : > { %v4357_v7 = vadd.f32 %v4356_v36, %v4319_v23 }
 0x555   : > { %v4282_v2 = vpop.f32.mrf.mxu0 }
 0x556   : > { %4518 = vrot.lane.b32.xlu2 %v4357_v7, %s6972_s21  ;;  %v4358_v50 = vpop.f32.mrf.mxu2  ;;  %v4283_v17 = vadd.f32 %v4282_v2, %v4244_v55  ;;  %v8688_v2 = vld [vmem:[#allocation42_spill] sm:$0xff] }
 0x558   : > { %v8347_v9 = vpop.permute.xlu1 %4492 }
 0x559   : > { %v4320_v46 = vpop.f32.mrf.mxu1 }
 0x55a   : > { %v4321_v48 = vadd.f32 %v4320_v46, %v4283_v17  ;;  %v4699_v17 = vmax.f32 %v8688_v2, %v4577_v52 }
 0x55b   : > { %v4249_v30 = vpop.f32.mrf.mxu3 }
 0x55c   : > { %v4359_v29 = vadd.f32 %v4358_v50, %v4321_v48 }
 0x55d   : > { %v4285_v3 = vpop.f32.mrf.mxu0 }
 0x55e   : > { %4530 = vrot.lane.b32.xlu2 %v4359_v29, %s6972_s21  ;;  %v4361_v62 = vpop.f32.mrf.mxu2  ;;  %v4286_v0 = vadd.f32 %v4285_v3, %v4247_v10 }
 0x560   : > { %v8350_v24 = vpop.permute.xlu1 %4504 }
 0x561   : > { %v4323_v11 = vpop.f32.mrf.mxu1  ;;  %v4597_v14 = vsel %vm4568_vm1, %v8249_v47, %v8350_v24 }
 0x562   : > { %v4324_v1 = vadd.f32 %v4323_v11, %v4286_v0  ;;  %v8357_v20 = vmax.f32 %v8684_v57, %v4597_v14  ;;  %v4582_v0 = vsel %vm4568_vm1, %v8236_v31, %v8341_v40  ;;  %v8689_v11 = vld [vmem:[#allocation49_spill] sm:$0xff]  ;;  %v8690_v14 = vld [vmem:[#allocation43_spill] sm:$0xff] }
 0x563   : > { %v4252_v59 = vpop.f32.mrf.mxu3 }
 0x564   : > { %v4362_v44 = vadd.f32 %v4361_v62, %v4324_v1  ;;  %v4802_v28 = vrot.slane %v8357_v20, 2 }
 0x565   : > { %v4287_v39 = vpop.f32.mrf.mxu0 }
 0x566   : > { %4542 = vrot.lane.b32.xlu2 %v4362_v44, %s6972_s21  ;;  %v4363_v13 = vpop.f32.mrf.mxu2  ;;  %v4288_v63 = vadd.f32 %v4287_v39, %v4249_v30 }
 0x568   : > { %v8359_v18 = vpop.permute.xlu1 %4516 }
 0x569   : > { %v4325_v8 = vpop.f32.mrf.mxu1  ;;  %v4602_v58 = vsel %vm4568_vm1, %v8258_v61, %v8359_v18 }
 0x56a   : > { %v4326_v47 = vadd.f32 %v4325_v8, %v4288_v63  ;;  %v4729_v33 = vmax.f32 %v8685_v49, %v4602_v58  ;;  %v4587_v58 = vsel %vm4568_vm1, %v8241_v34, %v8344_v21 }
 0x56b   : > { %v4254_v25 = vpop.f32.mrf.mxu3 }
 0x56c   : > { %v4364_v32 = vadd.f32 %v4363_v13, %v4326_v47  ;;  %v4803_v6 = vrot.slane %v4729_v33, 2  ;;  %v4705_v13 = vmax.f32 %v8690_v14, %v4582_v0  ;;  %v8692_v25 = vld [vmem:[#allocation44_spill] sm:$0xff]  ;;  %v8698_v0 = vld [vmem:[#allocation58_spill] sm:$0xff] }
 0x56d   : > { %v4290_v15 = vpop.f32.mrf.mxu0 }
 0x56e   : > { %v4804_v61 = vsel %vm4792_vm7, %v4802_v28, %v4803_v6  ;;  %4554 = vrot.lane.b32.xlu2 %v4364_v32, %s6972_s21  ;;  %v4366_v22 = vpop.f32.mrf.mxu2  ;;  %v4291_v37 = vadd.f32 %v4290_v15, %v4252_v59  ;;  %v4711_v28 = vmax.f32 %v8692_v25, %v4587_v58  ;;  %v8701_v25 = vld [vmem:[#allocation70_spill] sm:$0xff] }
 0x56f   : > { %v4898_v60 = vmax.f32 %v4693_v27, %v4804_v61  ;;  %v4592_v61 = vsel %vm4568_vm1, %v8246_v35, %v8347_v9 }
 0x570   : > { %v8377_v45 = vpop.permute.xlu1 %4528 }
 0x571   : > { %v4948_v55 = vadd.f32 %v8373_v42, %v4898_v60  ;;  %v4328_v19 = vpop.f32.mrf.mxu1  ;;  %v4607_v36 = vsel %vm4568_vm1, %v8274_v41, %v8377_v45 }
 0x572   : > { %v4329_v53 = vadd.f32 %v4328_v19, %v4291_v37  ;;  %v4735_v23 = vmax.f32 %v8687_v51, %v4607_v36 }
 0x573   : > { %v4984_v10 = vmax.f32 %v4948_v55, 0.0  ;;  %v8694_v55 = vld [vmem:[#allocation45_spill] sm:$0xff] }
 0x574   : > { %v4367_v7 = vadd.f32 %v4366_v22, %v4329_v53  ;;  %v4817_v50 = vrot.slane %v4735_v23, 2  ;;  %v8693_v22 = vld [vmem:[#allocation51_spill] sm:$0xff]  ;;  %v4717_v19 = vmax.f32 %v8694_v55, %v4592_v61 }
 0x575   : > { %5020 = vst [vmem:[%s8028_s22 + $0x18] sm:$0xff] %v4984_v10  ;;  %v4292_v30 = vpop.f32.mrf.mxu0 }
 0x576   : > { %v4818_v46 = vsel %vm4792_vm7, %v4803_v6, %v4817_v50  ;;  %4566 = vrot.lane.b32.xlu2 %v4367_v7, %s6972_s21  ;;  %v4368_v48 = vpop.f32.mrf.mxu2 }
 0x577   : > { %v4904_v41 = vmax.f32 %v4699_v17, %v4818_v46  ;;  %v8696_v48 = vld [vmem:[#allocation57_spill] sm:$0xff] }
 0x578   : > { %v8391_v29 = vpop.permute.xlu1 %4540 }
 0x579   : > { %v4954_v16 = vadd.f32 %v8373_v42, %v4904_v41  ;;  %v4330_v62 = vpop.f32.mrf.mxu1  ;;  %v4612_v3 = vsel %vm4568_vm1, %v8288_v56, %v8391_v29 }
 0x57a   : > { %v4741_v1 = vmax.f32 %v8689_v11, %v4612_v3 }
 0x57b   : > { %v4990_v59 = vmax.f32 %v4954_v16, 0.0  ;;  %v8697_v16 = vld [vmem:[#allocation69_spill] sm:$0xff] }
 0x57c   : > { %v4829_v44 = vrot.slane %v4741_v1, 2 }
 0x57d   : > { %5027 = vst [vmem:[%s8028_s22 + $0x48] sm:$0xff] %v4990_v59  ;;  %v8699_v59 = vld [vmem:[#allocation63_spill] sm:$0xff] }
 0x57e   : > { %v4830_v39 = vsel %vm4792_vm7, %v4817_v50, %v4829_v44 }
 0x57f   : > { %v4910_v57 = vmax.f32 %v4705_v13, %v4830_v39  ;;  %v8459_v13 = vperm.slane %v8370_v38, 5 }
 0x580   : > { %v4447_v63 = vpop.permute.xlu2 %4446  ;;  %v8404_v8 = vpop.permute.xlu1 %4552 }
 0x581   : > { %v4960_v56 = vadd.f32 %v8373_v42, %v4910_v57  ;;  %v4617_v31 = vsel %vm4568_vm1, %v8301_v43, %v8404_v8  ;;  %v4573_v3 = vsel %vm4568_vm1, %v8335_v5, %v4447_v63  ;;  %v8700_v57 = vld [vmem:[#allocation52_spill] sm:$0xff] }
 0x582   : > { %v4747_v47 = vmax.f32 %v8691_v4, %v4617_v31 }
 0x583   : > { %v4996_v49 = vmax.f32 %v4960_v56, 0.0  ;;  %v8463_v56 = vperm.slane %v8370_v38, 4 }
 0x584   : > { %v4841_v33 = vrot.slane %v4747_v47, 2 }
 0x585   : > { %5033 = vst [vmem:[%s8028_s22 + $0x78] sm:$0xff] %v4996_v49 }
 0x586   : > { %v4842_v32 = vsel %vm4792_vm7, %v4829_v44, %v4841_v33  ;;  %v4695_v44 = vmax.f32 %v8699_v59, %v4447_v63 }
 0x587   : > { %v4916_v6 = vmax.f32 %v4711_v28, %v4842_v32 }
 0x588   : > { %v4459_v12 = vpop.permute.xlu2 %4458  ;;  %v8417_v27 = vpop.permute.xlu1 %4564 }
 0x589   : > { %v4966_v43 = vadd.f32 %v8373_v42, %v4916_v6  ;;  %v4622_v34 = vsel %vm4568_vm1, %v8315_v26, %v8417_v27  ;;  %v4578_v28 = vsel %vm4568_vm1, %v8338_v54, %v4459_v12  ;;  %v8702_v6 = vld [vmem:[#allocation59_spill] sm:$0xff] }
 0x58a   : > { %v4753_v60 = vmax.f32 %v8693_v22, %v4622_v34  ;;  %v8703_v22 = vld [vmem:[#allocation64_spill] sm:$0xff] }
 0x58b   : > { %v5002_v15 = vmax.f32 %v4966_v43, 0.0 }
 0x58c   : > { %v4853_v37 = vrot.slane %v4753_v60, 2  ;;  %v4701_v60 = vmax.f32 %v8703_v22, %v4459_v12 }
 0x58d   : > { %5039 = vst [vmem:[%s8028_s22 + $0xa8] sm:$0xff] %v5002_v15 }
 0x58e   : > { %v4854_v36 = vsel %vm4792_vm7, %v4841_v33, %v4853_v37  ;;  %v4928_v52 = vmax.f32 %v8357_v20, %v4853_v37  ;;  %v8695_v20 = vld [vmem:[#allocation68_spill] sm:$0xff]  ;;  %v8704_v37 = vld [vmem:[#allocation53_spill] sm:$0xff] }
 0x58f   : > { %v4922_v53 = vmax.f32 %v4717_v19, %v4854_v36  ;;  %v4700_v55 = vmax.f32 %v8704_v37, %v4578_v28 }
 0x590   : > { %v4978_v51 = vadd.f32 %v8373_v42, %v4928_v52  ;;  %v8432_v26 = vpop.permute.xlu2 %4470 }
 0x591   : > { %v4972_v23 = vadd.f32 %v8373_v42, %v4922_v53 }
 0x592   : > { %v5014_v10 = vmax.f32 %v4978_v51, 0.0 }
 0x593   : > { %v5008_v35 = vmax.f32 %v4972_v23, 0.0  ;;  %v8705_v23 = vld [vmem:[#allocation71_spill] sm:$0xff] }
 0x594   : > { %5051 = vst [vmem:[%s8028_s22 + $0x108] sm:$0x3] %v5014_v10 }
 0x595   : > { %5045 = vst [vmem:[%s8028_s22 + $0xd8] sm:$0xff] %v5008_v35  ;;  %v4583_v35 = vsel %vm4568_vm1, %v8341_v40, %v8432_v26 }
 0x598   : > { %v8437_v7 = vpop.permute.xlu2 %4482 }
 0x5a0   : > { %v8439_v50 = vpop.permute.xlu2 %4494 }
 0x5a1   : > { %v4593_v22 = vsel %vm4568_vm1, %v8347_v9, %v8439_v50 }
 0x5a8   : > { %v4507_v2 = vpop.permute.xlu2 %4506 }
 0x5a9   : > { %v4598_v17 = vsel %vm4568_vm1, %v8350_v24, %v4507_v2  ;;  %v8444_v46 = vmax.f32 %v8695_v20, %v4507_v2 }
 0x5aa   : > { %v8447_v41 = vmax.f32 %v8696_v48, %v4598_v17  ;;  %v8706_v17 = vld [vmem:[#allocation60_spill] sm:$0xff] }
 0x5ab   : > { %v4808_v1 = vrot.slane %v8444_v46, 2 }
 0x5ac   : > { %v4805_v14 = vrot.slane %v8447_v41, 2 }
 0x5b0   : > { %v4519_v30 = vpop.permute.xlu2 %4518 }
 0x5b1   : > { %v4603_v42 = vsel %vm4568_vm1, %v8359_v18, %v4519_v30  ;;  %v4731_v62 = vmax.f32 %v8697_v16, %v4519_v30  ;;  %v4694_v18 = vmax.f32 %v8700_v57, %v4573_v3  ;;  %v8708_v3 = vld [vmem:[#allocation54_spill] sm:$0xff]  ;;  %v4588_v57 = vsel %vm4568_vm1, %v8344_v21, %v8437_v7 }
 0x5b2   : > { %v4730_v11 = vmax.f32 %v8698_v0, %v4603_v42  ;;  %v8707_v42 = vld [vmem:[#allocation65_spill] sm:$0xff]  ;;  %v4706_v0 = vmax.f32 %v8708_v3, %v4583_v35 }
 0x5b3   : > { %v4809_v24 = vrot.slane %v4731_v62, 2  ;;  %v4707_v16 = vmax.f32 %v8707_v42, %v8432_v26 }
 0x5b4   : > { %v4806_v39 = vrot.slane %v4730_v11, 2 }
 0x5b5   : > { %v4810_v5 = vsel %vm4792_vm7, %v4808_v1, %v4809_v24 }
 0x5b6   : > { %v4807_v31 = vsel %vm4792_vm7, %v4805_v14, %v4806_v39  ;;  %v4900_v58 = vmax.f32 %v4695_v44, %v4810_v5  ;;  %v8709_v14 = vld [vmem:[#allocation72_spill] sm:$0xff]  ;;  %v8710_v5 = vld [vmem:[#allocation61_spill] sm:$0xff] }
 0x5b7   : > { %v4899_v4 = vmax.f32 %v4694_v18, %v4807_v31 }
 0x5b8   : > { %v4950_v63 = vadd.f32 %v8459_v13, %v4900_v58  ;;  %v4531_v47 = vpop.permute.xlu2 %4530 }
 0x5b9   : > { %v4949_v49 = vadd.f32 %v8463_v56, %v4899_v4  ;;  %v4608_v33 = vsel %vm4568_vm1, %v8377_v45, %v4531_v47  ;;  %v4737_v38 = vmax.f32 %v8701_v25, %v4531_v47 }
 0x5ba   : > { %v4986_v32 = vmax.f32 %v4950_v63, 0.0  ;;  %v4736_v43 = vmax.f32 %v8702_v6, %v4608_v33  ;;  %v8711_v63 = vld [vmem:[#allocation66_spill] sm:$0xff]  ;;  %v8712_v33 = vld [vmem:[#allocation55_spill] sm:$0xff] }
 0x5bb   : > { %v4985_v34 = vmax.f32 %v4949_v49, 0.0  ;;  %v4821_v61 = vrot.slane %v4737_v38, 2  ;;  %v4713_v47 = vmax.f32 %v8711_v63, %v8437_v7  ;;  %v4712_v25 = vmax.f32 %v8712_v33, %v4588_v57 }
 0x5bc   : > { %5023 = vst.msk [vmem:[%s8028_s22 + $0x28] sm:$0xff] %vm5022_vm3, %v4986_v32  ;;  %v4819_v15 = vrot.slane %v4736_v43, 2 }
 0x5bd   : > { %5021 = vst [vmem:[%s8028_s22 + $0x20] sm:$0xff] %v4985_v34  ;;  %v4822_v45 = vsel %vm4792_vm7, %v4809_v24, %v4821_v61  ;;  %v8713_v34 = vld [vmem:[#allocation73_spill] sm:$0xff] }
 0x5be   : > { %v4820_v19 = vsel %vm4792_vm7, %v4806_v39, %v4819_v15  ;;  %v4906_v36 = vmax.f32 %v4701_v60, %v4822_v45 }
 0x5bf   : > { %v4905_v54 = vmax.f32 %v4700_v55, %v4820_v19  ;;  %v8715_v19 = vld [vmem:[#allocation67_spill] sm:$0xff] }
 0x5c0   : > { %v4956_v52 = vadd.f32 %v8459_v13, %v4906_v36  ;;  %v4543_v53 = vpop.permute.xlu2 %4542  ;;  %v4719_v36 = vmax.f32 %v8715_v19, %v8439_v50 }
 0x5c1   : > { %v4955_v51 = vadd.f32 %v8463_v56, %v4905_v54  ;;  %v4613_v12 = vsel %vm4568_vm1, %v8391_v29, %v4543_v53  ;;  %v4743_v10 = vmax.f32 %v8705_v23, %v4543_v53 }
 0x5c2   : > { %v4992_v2 = vmax.f32 %v4956_v52, 0.0  ;;  %v4742_v20 = vmax.f32 %v8706_v17, %v4613_v12  ;;  %v8716_v52 = vld [vmem:[#allocation56_spill] sm:$0xff] }
 0x5c3   : > { %v4991_v48 = vmax.f32 %v4955_v51, 0.0  ;;  %v4833_v30 = vrot.slane %v4743_v10, 2  ;;  %v4718_v53 = vmax.f32 %v8716_v52, %v4593_v22 }
 0x5c4   : > { %5029 = vst.msk [vmem:[%s8028_s22 + $0x58] sm:$0xff] %vm5022_vm3, %v4992_v2  ;;  %v4831_v62 = vrot.slane %v4742_v20, 2 }
 0x5c5   : > { %5028 = vst [vmem:[%s8028_s22 + $0x50] sm:$0xff] %v4991_v48  ;;  %v4834_v29 = vsel %vm4792_vm7, %v4821_v61, %v4833_v30 }
 0x5c6   : > { %v4832_v11 = vsel %vm4792_vm7, %v4819_v15, %v4831_v62  ;;  %v4912_v40 = vmax.f32 %v4707_v16, %v4834_v29  ;;  %v8714_v15 = vld [vmem:[#allocation62_spill] sm:$0xff] }
 0x5c7   : > { %v4911_v1 = vmax.f32 %v4706_v0, %v4832_v11 }
 0x5c8   : > { %v4962_v24 = vadd.f32 %v8459_v13, %v4912_v40  ;;  %v4555_v59 = vpop.permute.xlu2 %4554 }
 0x5c9   : > { %v4961_v44 = vadd.f32 %v8463_v56, %v4911_v1  ;;  %v4618_v26 = vsel %vm4568_vm1, %v8404_v8, %v4555_v59  ;;  %v4749_v39 = vmax.f32 %v8709_v14, %v4555_v59 }
 0x5ca   : > { %v4998_v18 = vmax.f32 %v4962_v24, 0.0  ;;  %v4748_v31 = vmax.f32 %v8710_v5, %v4618_v26 }
 0x5cb   : > { %v4997_v58 = vmax.f32 %v4961_v44, 0.0  ;;  %v4845_v4 = vrot.slane %v4749_v39, 2 }
 0x5cc   : > { %5035 = vst.msk [vmem:[%s8028_s22 + $0x88] sm:$0xff] %vm5022_vm3, %v4998_v18  ;;  %v4843_v49 = vrot.slane %v4748_v31, 2 }
 0x5cd   : > { %5034 = vst [vmem:[%s8028_s22 + $0x80] sm:$0xff] %v4997_v58  ;;  %v4846_v8 = vsel %vm4792_vm7, %v4833_v30, %v4845_v4 }
 0x5ce   : > { %v4844_v38 = vsel %vm4792_vm7, %v4831_v62, %v4843_v49  ;;  %v4918_v21 = vmax.f32 %v4713_v47, %v4846_v8 }
 0x5cf   : > { %v4917_v28 = vmax.f32 %v4712_v25, %v4844_v38 }
 0x5d0   : > { %v4968_v32 = vadd.f32 %v8459_v13, %v4918_v21  ;;  %v4567_v6 = vpop.permute.xlu2 %4566 }
 0x5d1   : > { %v4967_v43 = vadd.f32 %v8463_v56, %v4917_v28  ;;  %v4623_v7 = vsel %vm4568_vm1, %v8417_v27, %v4567_v6  ;;  %v4755_v61 = vmax.f32 %v8713_v34, %v4567_v6 }
 0x5d2   : > { %v5004_v60 = vmax.f32 %v4968_v32, 0.0  ;;  %v4754_v37 = vmax.f32 %v8714_v15, %v4623_v7 }
 0x5d3   : > { %v5003_v55 = vmax.f32 %v4967_v43, 0.0  ;;  %v4857_v45 = vrot.slane %v4755_v61, 2 }
 0x5d4   : > { %5041 = vst.msk [vmem:[%s8028_s22 + $0xb8] sm:$0xff] %vm5022_vm3, %v5004_v60  ;;  %v4855_v54 = vrot.slane %v4754_v37, 2 }
 0x5d5   : > { %5040 = vst [vmem:[%s8028_s22 + $0xb0] sm:$0xff] %v5003_v55  ;;  %v4858_v27 = vsel %vm4792_vm7, %v4845_v4, %v4857_v45  ;;  %v4930_v9 = vmax.f32 %v8444_v46, %v4857_v45 }
 0x5d6   : > { %v4856_v51 = vsel %vm4792_vm7, %v4843_v49, %v4855_v54  ;;  %v4924_v12 = vmax.f32 %v4719_v36, %v4858_v27  ;;  %v4929_v23 = vmax.f32 %v8447_v41, %v4855_v54 }
 0x5d7   : > { %v4923_v50 = vmax.f32 %v4718_v53, %v4856_v51  ;;  %v4980_v10 = vadd.f32 %v8459_v13, %v4930_v9 }
 0x5d8   : > { %v4974_v35 = vadd.f32 %v8459_v13, %v4924_v12  ;;  %v4979_v2 = vadd.f32 %v8463_v56, %v4929_v23 }
 0x5d9   : > { %v4973_v17 = vadd.f32 %v8463_v56, %v4923_v50  ;;  %v5016_v20 = vmax.f32 %v4980_v10, 0.0 }
 0x5da   : > { %v5010_v48 = vmax.f32 %v4974_v35, 0.0  ;;  %v5015_v46 = vmax.f32 %v4979_v2, 0.0 }
 0x5db   : > { %v5009_v30 = vmax.f32 %v4973_v17, 0.0  ;;  %5054 = vst.msk [vmem:[%s8028_s22 + $0x118] sm:$0x3] %vm5053_vm8, %v5016_v20 }
 0x5dc   : > { %5047 = vst.msk [vmem:[%s8028_s22 + $0xe8] sm:$0xff] %vm5022_vm3, %v5010_v48 }
 0x5dd   : > { %5046 = vst [vmem:[%s8028_s22 + $0xe0] sm:$0xff] %v5009_v30 }
 0x5de   : > { %5052 = vst [vmem:[%s8028_s22 + $0x110] sm:$0x3] %v5015_v46 }
 0x5df PF: > { %p14_p4 = scmp.ge.s32.totalorder %s7042_s4, 4   ;;  %s8717_s12 = smov %s6956_s13 }
 0x5e0   : > { %s8718_s13 = smov %s6960_s14  ;;  %s8719_s14 = smov %s7053_s8 }
 0x5e1   : > { %s8720_s15 = smov %s7042_s4  ;;  %16 = sbr.rel (!%p14_p4) target bundleno = 4 (0x4), region = 115 }
 0x5e6   :  { %5076 = vsyncpa [#allocation4], 1 }
 0x5e7   :  { %5078 = vsyncpa [#allocation4 + $0x1], 1 }
 0x5e8   :  { %5079 = vsyncpa [#allocation6], 1 }

// kernel: tpu_custom_call.1
= control target key start
LH: loop header
LB: loop body
LE: loop exit
PB: predicated region body
PF: predicated region fallthrough
CT: control target
= control target key end

     0   :  { %8 = vsyncpa [#allocation4], 0  ;;  %s8557_s0 = inlined_call_operand.hbm [shape: f32[2,88,88], index: 0, kind: input, shape index: {}]   ;;  %s8558_s1 = inlined_call_operand.hbm [shape: bf16[440,1344], index: 1, kind: input, shape index: {}]   ;;  %s8559_s2 = inlined_call_operand.hbm [shape: f32[1,672], index: 2, kind: input, shape index: {}]   ;;  %s8560_s3 = inlined_call_operand.vmem [shape: f32[2,42,672], index: 3, kind: output, shape index: {}]  }
   0x1   :  { %10 = vsyncpa [#allocation4 + $0x1], 0 }
   0x2   :  { %11 = vsyncpa [#allocation6], 0  ;;  %s6996_s12 = smov 0   ;;  %s6998_s13 = smov 0  }
   0x3   :  { %s7000_s14 = smov 0   ;;  %s7002_s15 = smov 0  }
   0x4 LB: > { %s7015_s16 = sadd.s32 4294967295, %s6964_s15   ;;  %p37_p0 = scmp.ne.s32.totalorder %s6956_s13, %s6952_s12  ;;  %s6964_s15 = sphi %s7002_s15, %s8720_s15   ;;  %s6960_s14 = sphi %s7000_s14, %s8719_s14   ;;  %s6956_s13 = sphi %s6998_s13, %s8718_s13   ;;  %s6952_s12 = sphi %s6996_s12, %s8717_s12  }
   0x5   : > { %p38_p1 = scmp.eq.s32.totalorder %s7015_s16, 0  ;;  %p5142_p2 = scmp.ge.s32.totalorder %s6964_s15, 1 }
   0x6   : > { %p116_p3 = scmp.lt.s32.totalorder %s6964_s15, 3  ;;  %s127_s20 = sshll.u32 %s8558_s1, 4  ;;  %s128_s20 = int_to_ptr.hbm [resolvable:$true] %s127_s20 }
   0x7   : > { %p7023_p4 = por %p38_p1, %p37_p0  ;;  %s6966_s22 = smov [#allocation5]  }
   0x8   : > { %p7030_p5 = pnand %p5142_p2, %p116_p3  ;;  %s129_s23 = sshll.u32 %s6966_s22, 4  ;;  %s130_s23 = int_to_ptr.vmem [resolvable:$true] %s129_s23 }
   0x9   : > { %s142_s26 = sshll.u32 %s8559_s2, 4  ;;  %s6967_s27 = smov 704   ;;  %s143_s26 = int_to_ptr.hbm [resolvable:$true] %s142_s26 }
   0xa   : > { %p6777_p6 = pneg %p7030_p5  ;;  %s6968_s28 = smov 44  }
   0xb   : > { %s6969_s29 = smov [#allocation7]   ;;  %s7042_s4 = sadd.s32 1, %s6964_s15  }
   0xc   : > { %p6778_p7 = pnand %p6777_p6, %p38_p1  ;;  %s144_s30 = sshll.u32 %s6969_s29, 4  ;;  %s145_s30 = int_to_ptr.vmem [resolvable:$true] %s144_s30 }
   0xd   : > { %s24_s5 = sadd.s32 1, %s6960_s14  ;;  %s21_s6 = ssub.s32 %s6964_s15, %s7042_s4 }
   0xe   : > { %6780 = dma.hbm_to_vmem [thread:$0]  (!%p6778_p7), %s128_s20, 38720, %s130_s23, [#allocation6], %s6967_s27, %s6967_s27, %s6968_s28  }
   0xf   : > { %6783 = dma.hbm_to_vmem [thread:$0]  (!%p6778_p7), %s143_s26, 96, %s145_s30, [#allocation6]  }
  0x10   : > { %p31_p8 = scmp.ne.s32.totalorder %s6960_s14, %s6956_s13  ;;  %p22_p9 = scmp.eq.s32.totalorder %s21_s6, 0 }
  0x11   : > { %p32_p10 = scmp.eq.s32.totalorder %s6964_s15, 0  ;;  %p6790_p11 = scmp.lt.s32.totalorder %s6964_s15, 2 }
  0x12   : > { %s155_s7 = sand.u32 1, %s6960_s14   ;;  %s6764_s10 = smul.u32 88, %s6964_s15 }
  0x13   : > { %s7053_s8 = scalar_select %p22_p9, %s6960_s14, %s24_s5  }
  0x14   : > { %p33_p12 = por %p32_p10, %p31_p8  ;;  %s6763_s9 = smul.u32 88, %s155_s7 }
  0x15   : > { %s164_s19 = scalar_lea.hbm %s8557_s0, %s6764_s10  ;;  %s156_s24 = scalar_lea.sflag [#allocation4], %s155_s7 }
  0x16   : > { %p7056_p13 = pnand %p6790_p11, %p33_p12  ;;  %s159_s20 = scalar_lea.vmem [#allocation3], %s6763_s9 }
  0x17   : > { %s167_s22 = sshll.u32 %s159_s20, 4  ;;  %s165_s23 = sshll.u32 %s164_s19, 4  ;;  %s168_s22 = int_to_ptr.vmem [resolvable:$true] %s167_s22  ;;  %s166_s23 = int_to_ptr.hbm [resolvable:$true] %s165_s23 }
  0x18   : > { %s6896_s25 = sshra.s32 %s166_s23, 4  ;;  %p6900_p2 = pneg %p7056_p13  ;;  %s6897_s25 = int_to_ptr.hbm [resolvable:$true] %s6896_s25 }
  0x19   : > { %s6898_s26 = scalar_lea.hbm %s6897_s25, 88  ;;  %s6903_s28 = scalar_lea.hbm %s8557_s0, 176 }
  0x1a   : > { %p6899_p0 = scmp.ne.s32.totalorder %s6897_s25, %s6898_s26  ;;  %p6904_p7 = scmp.lt.s32.totalorder %s6897_s25, %s8557_s0 }
  0x1b   : > { %p6905_p8 = scmp.lt.s32.totalorder %s6903_s28, %s6898_s26 }
  0x1c   : > { %p6901_p3 = pnand %p6900_p2, %p6899_p0 }
  0x1d   : > { %p6906_p9 = por %p6905_p8, %p6904_p7 }
  0x1e   : > { %p6902_p6 = pneg %p6901_p3 }
  0x20   : > { %p6907_p10 = pnand %p6906_p9, %p6902_p6 }
  0x22   : > { %6910 = shalt.err (!%p6907_p10)
}
  0x23   : > { %s6970_s5 = smov 128   ;;  %s6971_s6 = smov 8  }
  0x24   : > { %6787 = dma.hbm_to_vmem [thread:$0]  (!%p7056_p13), %s166_s23, 1408, %s168_s22, %s156_s24, %s6970_s5, %s6970_s5, %s6971_s6  }
  0x25   : > { %179 = sbr.rel (%p7030_p5) target bundleno = 1503 (0x5df), region = 32 }
  0x2a   : > { %s181_s7 = sand.u32 1, %s6956_s13  }
  0x2b   : > { %s6765_s9 = smul.u32 88, %s181_s7  ;;  %s182_s10 = scalar_lea.sflag [#allocation4], %s181_s7 }
  0x2d   : > { %s7076_s12 = scalar_lea.vmem [#allocation3], %s6765_s9 }
  0x2e   : > { %6943 = dma.done.wait (%p7023_p4), %s182_s10, 1408  }
  0x2f   : > { %6945 = vsyncadd (%p7023_p4), %s182_s10, 4294965888 }
  0x30   : > { %6947 = dma.done.wait (%p38_p1), [#allocation6], 38816  }
  0x31   : > { %6949 = vsyncadd (%p38_p1), [#allocation6], 4294928480  ;;  %v5198_v0 = vld [vmem:[%s7076_s12 + $0x4] ss:$2 sm:$0xff]  ;;  %s6972_s21 = smov 96   ;;  %s6973_s17 = smov 48  }
  0x32   : > { %v5174_v1 = vld [vmem:[%s7076_s12 + $0x2] ss:$2 sm:$0xff]  ;;  %611 = vrot.lane.b32.xlu0 %v5198_v0, %s6972_s21  ;;  %v5186_v2 = vld [vmem:[%s7076_s12 + $0x3] ss:$2 sm:$0xff]  ;;  %s6974_s11 = smov 8   ;;  %s6975_s18 = smov 88  }
  0x33   : > { %409 = vrot.lane.b32.xlu1 %v5174_v1, %s6973_s17  ;;  %518 = vrot.lane.b32.xlu2 %v5186_v2, %s6974_s11  ;;  %v5199_v3 = vld [vmem:[%s7076_s12 + $0x14] ss:$2 sm:$0xff]  ;;  %v5187_v5 = vld [vmem:[%s7076_s12 + $0x13] ss:$2 sm:$0xff]  ;;  %v6724_v33 = vld [vmem:[#allocation5 + $0x810] sm:$0xf0] }
  0x34   : > { %v5175_v4 = vld [vmem:[%s7076_s12 + $0x12] ss:$2 sm:$0xff]  ;;  %v5163_v6 = vld [vmem:[%s7076_s12 + $0x11] ss:$2 sm:$0xff]  ;;  %v5162_v7 = vld [vmem:[%s7076_s12 + $0x1] ss:$2 sm:$0xff] }
  0x35   : > { %v5200_v8 = vld [vmem:[%s7076_s12 + $0x24] ss:$2 sm:$0xff]  ;;  %v5201_v10 = vld [vmem:[%s7076_s12 + $0x34] ss:$2 sm:$0xff]  ;;  %v5189_v12 = vld [vmem:[%s7076_s12 + $0x33] ss:$2 sm:$0xff] }
  0x36   : > { %v5176_v9 = vld [vmem:[%s7076_s12 + $0x22] ss:$2 sm:$0xff]  ;;  %v5177_v11 = vld [vmem:[%s7076_s12 + $0x32] ss:$2 sm:$0xff]  ;;  %v5188_v13 = vld [vmem:[%s7076_s12 + $0x23] ss:$2 sm:$0xff] }
  0x37   : > { %v5164_v14 = vld [vmem:[%s7076_s12 + $0x21] ss:$2 sm:$0xff]  ;;  %v5202_v15 = vld [vmem:[%s7076_s12 + $0x44] ss:$2 sm:$0xff]  ;;  %v5165_v16 = vld [vmem:[%s7076_s12 + $0x31] ss:$2 sm:$0xff] }
  0x38   : > { %v5203_v17 = vld [vmem:[%s7076_s12 + $0x54] ss:$2 sm:$0x3]  ;;  %v5204_v18 = vld [vmem:[%s7076_s12 + $0x5] ss:$2 sm:$0xff]  ;;  %vm262_vm0 = vcmask 1041408  }
  0x39   : > { %v663_v19 = vrot.slane %v5204_v18, 6  ;;  %v5178_v20 = vld [vmem:[%s7076_s12 + $0x42] ss:$2 sm:$0xff]  ;;  %v5179_v21 = vld [vmem:[%s7076_s12 + $0x52] ss:$2 sm:$0x3] }
  0x3a   : > { %613 = vrot.lane.b32.xlu0 %v5199_v3, %s6972_s21  ;;  %v5180_v22 = vld [vmem:[%s7076_s12 + $0x3] ss:$2 sm:$0xff]  ;;  %v5191_v25 = vld [vmem:[%s7076_s12 + $0x53] ss:$2 sm:$0x3]  ;;  %vm2664_vm1 = vcmask 1043456  }
  0x3b   : > { %411 = vrot.lane.b32.xlu1 %v5175_v4, %s6973_s17  ;;  %520 = vrot.lane.b32.xlu2 %v5187_v5, %s6974_s11  ;;  %v461_v23 = vrot.slane %v5180_v22, 6  ;;  %v5190_v24 = vld [vmem:[%s7076_s12 + $0x43] ss:$2 sm:$0xff]  ;;  %v5192_v26 = vld [vmem:[%s7076_s12 + $0x4] ss:$2 sm:$0xff]  ;;  %vm236_vm2 = vcmask 719872  }
  0x3c   : > { %v562_v27 = vrot.slane %v5192_v26, 6  ;;  %v5166_v28 = vld [vmem:[%s7076_s12 + $0x41] ss:$2 sm:$0xff]  ;;  %v5167_v30 = vld [vmem:[%s7076_s12 + $0x51] ss:$2 sm:$0x3] }
  0x3d   : > { %v5205_v29 = vld [vmem:[%s7076_s12 + $0x15] ss:$2 sm:$0xff]  ;;  %v7139_v31 = vld [vmem:[%s7076_s12 + $0x25] ss:$2 sm:$0xff]  ;;  %v7144_v35 = vld [vmem:[%s7076_s12 + $0x2] ss:$2 sm:$0xff] }
  0x3e   : > { %v6224_v32 = vld [vmem:[#allocation5 + $0x7e8] sm:$0xf]  ;;  %v664_v34 = vrot.slane %v5205_v29, 6  ;;  %v666_v37 = vrot.slane %v7139_v31, 6  ;;  %v352_v38 = vrot.slane %v7144_v35, 6  ;;  %vm631_vm3 = vcmask 457728  }
  0x3f   : > { %v6225_v36 = vor.u32 %v6724_v33, %v6224_v32  ;;  %v5181_v39 = vld [vmem:[%s7076_s12 + $0x13] ss:$2 sm:$0xff]  ;;  %v7151_v40 = vld [vmem:[%s7076_s12 + $0x23] ss:$2 sm:$0xff]  ;;  %v5193_v45 = vld [vmem:[%s7076_s12 + $0x14] ss:$2 sm:$0xff] }
  0x40   : > { %v665_v41 = vsel %vm262_vm0, %v663_v19, %v664_v34  ;;  %v667_v42 = vsel %vm262_vm0, %v664_v34, %v666_v37  ;;  %v462_v43 = vrot.slane %v5181_v39, 6  ;;  %v464_v44 = vrot.slane %v7151_v40, 6  ;;  %v6180_v46 = vld [vmem:[#allocation5 + $0x790] sm:$0xf]  ;;  %v6713_v47 = vld [vmem:[#allocation5 + $0x7b8] sm:$0xf0] }
  0x41   : > { %2774 = vmatpush.bf16.msra.mxu2 %v6225_v36  ;;  %v5520_v48 = vld [vmem:[#allocation5 + $0x268] sm:$0xf]  ;;  %v6181_v49 = vor.u32 %v6713_v47, %v6180_v46  ;;  %v6548_v50 = vld [vmem:[#allocation5 + $0x290] sm:$0xf0]  ;;  %v6136_v55 = vld [vmem:[#allocation5 + $0x738] sm:$0xf] }
  0x42   : > { %300 = vrot.lane.b32.xlu0 %v5162_v7, %s6975_s18  ;;  %v5872_v51 = vld [vmem:[#allocation5 + $0x528] sm:$0xf]  ;;  %v6636_v52 = vld [vmem:[#allocation5 + $0x550] sm:$0xf0]  ;;  %v5521_v53 = vor.u32 %v6548_v50, %v5520_v48  ;;  %v6702_v56 = vld [vmem:[#allocation5 + $0x760] sm:$0xf0]  ;;  %v465_v59 = vsel %vm262_vm0, %v462_v43, %v464_v44  ;;  %v463_v60 = vsel %vm262_vm0, %v461_v23, %v462_v43 }
  0x43   : > { %302 = vrot.lane.b32.xlu1 %v5163_v6, %s6975_s18  ;;  %615 = vrot.lane.b32.xlu2 %v5200_v8, %s6972_s21  ;;  %v5873_v54 = vor.u32 %v6636_v52, %v5872_v51  ;;  %v6137_v57 = vor.u32 %v6702_v56, %v6136_v55  ;;  %v563_v58 = vrot.slane %v5193_v45, 6  ;;  %v5169_v61 = vld [vmem:[%s7076_s12 + $0x12] ss:$2 sm:$0xff]  ;;  %v7172_v0 = vld [vmem:[%s7076_s12 + $0x22] ss:$2 sm:$0xff]  ;;  %vm429_vm4 = vcmask 64512  }
  0x44   : > { %2698 = vmatpush.bf16.msra.mxu0 %v5521_v53  ;;  %v7168_v62 = vld [vmem:[%s7076_s12 + $0x24] ss:$2 sm:$0xff]  ;;  %v353_v3 = vrot.slane %v5169_v61, 6  ;;  %v6048_v29 = vld [vmem:[#allocation5 + $0x688] sm:$0xf]  ;;  %vm536_vm5 = vcmask 785472  }
  0x45   : > { %2775 = vmatpush.bf16.msra.mxu2 %v6181_v49  ;;  %2736 = vmatpush.bf16.msra.mxu1 %v5873_v54  ;;  %v564_v63 = vsel %vm262_vm0, %v562_v27, %v563_v58  ;;  %v5476_v1 = vld [vmem:[#allocation5 + $0x210] sm:$0xf]  ;;  %v6537_v2 = vld [vmem:[#allocation5 + $0x238] sm:$0xf0]  ;;  %v565_v5 = vrot.slane %v7168_v62, 6  ;;  %v7178_v8 = vld [vmem:[#allocation5 + $0x948] sm:$0xff] }
  0x46   : > { %v5477_v4 = vor.u32 %v6537_v2, %v5476_v1  ;;  %v5828_v6 = vld [vmem:[#allocation5 + $0x4d0] sm:$0xf]  ;;  %v6625_v7 = vld [vmem:[#allocation5 + $0x4f8] sm:$0xf0]  ;;  %v5432_v18 = vld [vmem:[#allocation5 + $0x1b8] sm:$0xf] }
  0x47   : > { %v566_v22 = vsel %vm262_vm0, %v563_v58, %v565_v5  ;;  %v5388_v36 = vld [vmem:[#allocation5 + $0x160] sm:$0xf]  ;;  %v6603_v47 = vld [vmem:[#allocation5 + $0x448] sm:$0xf0]  ;;  %v6004_v48 = vld [vmem:[#allocation5 + $0x630] sm:$0xf] }
  0x48   : > { %2699 = vmatpush.bf16.msra.mxu0 %v5477_v4  ;;  %v5740_v43 = vld [vmem:[#allocation5 + $0x420] sm:$0xf]  ;;  %v6669_v49 = vld [vmem:[#allocation5 + $0x658] sm:$0xf0]  ;;  %v5344_v53 = vld [vmem:[#allocation5 + $0x108] sm:$0xf] }
  0x49   : > { %2776 = vmatpush.bf16.msra.mxu2 %v6137_v57  ;;  %v5195_v50 = vld [vmem:[%s7076_s12 + $0x34] ss:$2 sm:$0xff]  ;;  %v5741_v51 = vor.u32 %v6603_v47, %v5740_v43  ;;  %v6005_v52 = vor.u32 %v6669_v49, %v6004_v48  ;;  %v6504_v54 = vld [vmem:[#allocation5 + $0x130] sm:$0xf0]  ;;  %v6312_v55 = vld [vmem:[#allocation5 + $0x898] sm:$0xf] }
  0x4a   : > { %617 = vrot.lane.b32.xlu0 %v5201_v10, %s6972_s21  ;;  %v5829_v10 = vor.u32 %v6625_v7, %v5828_v6  ;;  %v5345_v58 = vor.u32 %v6504_v54, %v5344_v53  ;;  %v6592_v61 = vld [vmem:[#allocation5 + $0x3f0] sm:$0xf0]  ;;  %v5300_v6 = vld [vmem:[#allocation5 + $0xb0] sm:$0xf]  ;;  %v6493_v7 = vld [vmem:[#allocation5 + $0xd8] sm:$0xf0] }
  0x4b   : > { %413 = vrot.lane.b32.xlu1 %v5176_v9, %s6973_s17  ;;  %415 = vrot.lane.b32.xlu2 %v5177_v11, %s6973_s17  ;;  %v355_v9 = vrot.slane %v7172_v0, 6  ;;  %v6092_v11 = vld [vmem:[#allocation5 + $0x6e0] sm:$0xf]  ;;  %v567_v40 = vrot.slane %v5195_v50, 6  ;;  %v6471_v47 = vld [vmem:[#allocation5 + $0x28] sm:$0xf0] }
  0x4c   : > { %2737 = vmatpush.bf16.msra.mxu1 %v5829_v10  ;;  %v6268_v10 = vld [vmem:[#allocation5 + $0x840] sm:$0xf]  ;;  %v6559_v50 = vld [vmem:[#allocation5 + $0x2e8] sm:$0xf0]  ;;  %vm629_vm6 = vcmask 1048320   ;;  %vm318_vm7 = vcmask 1048256  }
  0x4d   : > { %v356_v26 = vsel %vm262_vm0, %v353_v3, %v355_v9  ;;  %v5564_v49 = vld [vmem:[#allocation5 + $0x2c0] sm:$0xf]  ;;  %vm320_vm8 = vcmask 392192   ;;  %vm427_vm9 = vcmask 1047936   ;;  %vm643_vm10 = vcmask 451584   ;;  %p219_p1 = scmp.lt.s32.totalorder %s7015_s16, 1 }
  0x4e   : > { %v5565_v53 = vor.u32 %v6559_v50, %v5564_v49  ;;  %v5185_v54 = vld [vmem:[%s7076_s12 + $0x53] ss:$2 sm:$0x3]  ;;  %vm441_vm11 = vcmask 58368   ;;  %vm242_vm12 = vcmask 713728   ;;  %vm542_vm13 = vcmask 779328  }
  0x4f   : > { %vm641_vm14 = vcmask 1042176   ;;  %v7342_v50 = vld [vmem:[%s7076_s12 + $0x1] ss:$2 sm:$0xff]  ;;  %vm330_vm15 = vcmask 1042112   ;;  %s8722_s16 = smov (!%p219_p1, %s7015_s16), 1 }
  0x50   : > { %s6766_s19 = smul.u32 288, %s8722_s16 }
  0x52   : > { %522 = vrot.lane.b32.xlu0 %v5188_v13, %s6974_s11  ;;  %v2030_v13 = vunpack.c.l.b16 %v7178_v8  ;;  %s8028_s22 = scalar_lea.vmem %s8560_s3, %s6766_s19 }
  0x53   : > { %524 = vrot.lane.b32.xlu1 %v5189_v12, %s6974_s11  ;;  %304 = vrot.lane.b32.xlu2 %v5164_v14, %s6975_s18  ;;  %v6691_v12 = vld [vmem:[#allocation5 + $0x708] sm:$0xf0] }
  0x54   : > { %v5207_v14 = vld [vmem:[%s7076_s12 + $0x35] ss:$2 sm:$0xff] }
  0x55   : > { %v668_v33 = vrot.slane %v5207_v14, 6 }
  0x57   : > { %v669_v57 = vsel %vm262_vm0, %v666_v37, %v668_v33  ;;  %v6658_v37 = vld [vmem:[#allocation5 + $0x600] sm:$0xf0] }
  0x5a   : > { %306 = vrot.lane.b32.xlu0 %v5165_v16, %s6975_s18  ;;  %v7184_v16 = vld [vmem:[%s7076_s12 + $0x45] ss:$2 sm:$0xff] }
  0x5b   : > { %619 = vrot.lane.b32.xlu1 %v5202_v15, %s6972_s21  ;;  %621 = vrot.lane.b32.xlu2 %v5203_v17, %s6972_s21  ;;  %v6093_v15 = vor.u32 %v6691_v12, %v6092_v11  ;;  %v7187_v17 = vld [vmem:[%s7076_s12 + $0x33] ss:$2 sm:$0xff]  ;;  %v670_v34 = vrot.slane %v7184_v16, 6  ;;  %v7224_v11 = vld [vmem:[%s7076_s12 + $0x44] ss:$2 sm:$0xff]  ;;  %v5301_v12 = vor.u32 %v6493_v7, %v5300_v6 }
  0x5c   : > { %v466_v35 = vrot.slane %v7187_v17, 6 }
  0x5d   : > { %2777 = vmatpush.bf16.msra.mxu2 %v6093_v15  ;;  %v671_v56 = vsel %vm262_vm0, %v668_v33, %v670_v34  ;;  %v5151_v15 = vld [vmem:[%s7076_s12 + $0x10] ss:$2 sm:$0xff] }
  0x5e   : > { %v467_v1 = vsel %vm262_vm0, %v464_v44, %v466_v35  ;;  %238 = vst.msk [vmem:[#allocation2 + $0x20] sm:$0xff] %vm236_vm2, %v5151_v15  ;;  %v5608_v33 = vld [vmem:[#allocation5 + $0x318] sm:$0xf] }
  0x62   : > { %674 = vrot.lane.b32.xlu0 %v663_v19, %s6972_s21  ;;  %v6526_v19 = vld [vmem:[#allocation5 + $0x1e0] sm:$0xf0] }
  0x63   : > { %417 = vrot.lane.b32.xlu1 %v5178_v20, %s6973_s17  ;;  %419 = vrot.lane.b32.xlu2 %v5179_v21, %s6973_s17  ;;  %v2338_v20 = vpack.c.b16 %v2030_v13, %v2030_v13  ;;  %v354_v21 = vsel %vm262_vm0, %v352_v38, %v353_v3  ;;  %v5960_v3 = vld [vmem:[#allocation5 + $0x5d8] sm:$0xf]  ;;  %v6735_v13 = vld [vmem:[#allocation5 + $0x868] sm:$0xf0] }
  0x64   : > { %v5961_v4 = vor.u32 %v6658_v37, %v5960_v3  ;;  %v6269_v14 = vor.u32 %v6735_v13, %v6268_v10  ;;  %v5153_v3 = vld [vmem:[%s7076_s12 + $0x30] ss:$2 sm:$0xff] }
  0x65   : > { %240 = vst.msk [vmem:[#allocation2 + $0x60] sm:$0xff] %vm236_vm2, %v5153_v3  ;;  %v6521_v3 = vld [vmem:[#allocation5 + $0x1bc] sm:$0xf] }
  0x6a   : > { %472 = vrot.lane.b32.xlu0 %v461_v23, %s6973_s17  ;;  %v5433_v23 = vor.u32 %v6526_v19, %v5432_v18  ;;  %v225_v18 = vld [vmem:[%s7076_s12] ss:$2 sm:$0xff] }
  0x6b   : > { %526 = vrot.lane.b32.xlu1 %v5190_v24, %s6974_s11  ;;  %528 = vrot.lane.b32.xlu2 %v5191_v25, %s6974_s11  ;;  %v5784_v24 = vld [vmem:[#allocation5 + $0x478] sm:$0xf]  ;;  %v6614_v25 = vld [vmem:[#allocation5 + $0x4a0] sm:$0xf0]  ;;  %237 = vst.msk [vmem:[#allocation2] sm:$0xff] %vm236_vm2, %v225_v18 }
  0x6c   : > { %2700 = vmatpush.bf16.msra.mxu0 %v5433_v23  ;;  %v568_v23 = vsel %vm262_vm0, %v565_v5, %v567_v40  ;;  %v5256_v5 = vld [vmem:[#allocation5 + $0x58] sm:$0xf] }
  0x72   : > { %573 = vrot.lane.b32.xlu0 %v562_v27, %s6974_s11  ;;  %v2666_v27 = vsel %vm2664_vm1, %v2338_v20, 0  ;;  %v569_v20 = vrot.slane %v7224_v11, 6 }
  0x73   : > { %308 = vrot.lane.b32.xlu1 %v5166_v28, %s6975_s18  ;;  %310 = vrot.lane.b32.xlu2 %v5167_v30, %s6975_s18  ;;  %v5785_v28 = vor.u32 %v6614_v25, %v5784_v24  ;;  %v6680_v30 = vld [vmem:[#allocation5 + $0x6b0] sm:$0xf0] }
  0x74   : > { %2816 = vmatpush.bf16.msra.mxu3 %v2666_v27  ;;  %v6049_v32 = vor.u32 %v6680_v30, %v6048_v29  ;;  %v6647_v27 = vld [vmem:[#allocation5 + $0x5a8] sm:$0xf0]  ;;  %v570_v30 = vsel %vm262_vm0, %v567_v40, %v569_v20 }
  0x75   : > { %2738 = vmatpush.bf16.msra.mxu1 %v5785_v28  ;;  %v5171_v28 = vld [vmem:[%s7076_s12 + $0x32] ss:$2 sm:$0xff]  ;;  %v5172_v29 = vld [vmem:[%s7076_s12 + $0x42] ss:$2 sm:$0xff] }
  0x76   : > { %2778 = vmatpush.bf16.msra.mxu2 %v6049_v32  ;;  %v6482_v32 = vld [vmem:[#allocation5 + $0x80] sm:$0xf0] }
  0x77   : > { %v5257_v17 = vor.u32 %v6482_v32, %v5256_v5  ;;  %v2031_v5 = vunpack.c.h.b16 %v7178_v8  ;;  %v6631_v32 = vld [vmem:[#allocation5 + $0x52c] sm:$0xf] }
  0x78   : > { %v5154_v8 = vld [vmem:[%s7076_s12 + $0x40] ss:$2 sm:$0xff] }
  0x79   : > { %2739 = vmatpush.bf16.msra.mxu1 %v5741_v51  ;;  %241 = vst.msk [vmem:[#allocation2 + $0x80] sm:$0xff] %vm236_vm2, %v5154_v8  ;;  %v5742_v8 = vld [vmem:[#allocation5 + $0x44c] sm:$0xf0] }
  0x7a   : > { %363 = vrot.lane.b32.xlu0 %v352_v38, %s6975_s18  ;;  %v6515_v38 = vld [vmem:[#allocation5 + $0x188] sm:$0xf0]  ;;  %2779 = vmatpush.bf16.msra.mxu2 %v6005_v52 }
  0x7b   : > { %676 = vrot.lane.b32.xlu1 %v665_v41, %s6972_s21  ;;  %678 = vrot.lane.b32.xlu2 %v667_v42, %s6972_s21  ;;  %v5389_v39 = vor.u32 %v6515_v38, %v5388_v36  ;;  %v6356_v41 = vld [vmem:[#allocation5 + $0x8f0] sm:$0xf]  ;;  %v6757_v42 = vld [vmem:[#allocation5 + $0x918] sm:$0xf0]  ;;  %v357_v36 = vrot.slane %v5171_v28, 6  ;;  %v359_v38 = vrot.slane %v5172_v29, 6 }
  0x7c   : > { %v6357_v46 = vor.u32 %v6757_v42, %v6356_v41  ;;  %v5209_v41 = vld [vmem:[%s7076_s12 + $0x55] ss:$2 sm:$0x3] }
  0x7d   : > { %2701 = vmatpush.bf16.msra.mxu0 %v5389_v39  ;;  %v672_v42 = vrot.slane %v5209_v41, 6  ;;  %v360_v51 = vsel %vm262_vm0, %v357_v36, %v359_v38  ;;  %v358_v52 = vsel %vm262_vm0, %v355_v9, %v357_v36  ;;  %v6719_v36 = vld [vmem:[#allocation5 + $0x7ec] sm:$0xf]  ;;  %v2339_v41 = vpack.c.b16 %v2031_v5, %v2031_v5 }
  0x7e   : > { %2817 = vmatpush.bf16.msra.mxu3 %v6357_v46  ;;  %2780 = vmatpush.bf16.msra.mxu2 %v5961_v4  ;;  %v5212_v46 = vld [vmem:[#allocation5] sm:$0xf] }
  0x7f   : > { %v5213_v48 = vor.u32 %v6471_v47, %v5212_v46  ;;  %v2669_v46 = vsel %vm2664_vm1, %v2339_v41, 0 }
  0x81   : > { %2702 = vmatpush.bf16.msra.mxu0 %v5345_v58  ;;  %v470_v58 = vrot.slane %v5185_v54, 6  ;;  %v6532_v54 = vld [vmem:[#allocation5 + $0x214] sm:$0xf] }
  0x82   : > { %474 = vrot.lane.b32.xlu0 %v463_v60, %s6973_s17  ;;  %v5696_v60 = vld [vmem:[#allocation5 + $0x3c8] sm:$0xf] }
  0x83   : > { %476 = vrot.lane.b32.xlu1 %v465_v59, %s6973_s17  ;;  %575 = vrot.lane.b32.xlu2 %v564_v63, %s6974_s11  ;;  %v6746_v59 = vld [vmem:[#allocation5 + $0x8c0] sm:$0xf0]  ;;  %v7212_v63 = vld [vmem:[%s7076_s12 + $0x43] ss:$2 sm:$0xff]  ;;  %v5697_v31 = vor.u32 %v6592_v61, %v5696_v60 }
  0x84   : > { %v6313_v2 = vor.u32 %v6746_v59, %v6312_v55  ;;  %v468_v44 = vrot.slane %v7212_v63, 6  ;;  %v5197_v55 = vld [vmem:[%s7076_s12 + $0x54] ss:$2 sm:$0x3] }
  0x85   : > { %2740 = vmatpush.bf16.msra.mxu1 %v5697_v31  ;;  %2703 = vmatpush.bf16.msra.mxu0 %v5301_v12  ;;  %v571_v0 = vrot.slane %v5197_v55, 6  ;;  %v5173_v59 = vld [vmem:[%s7076_s12 + $0x52] ss:$2 sm:$0x3] }
  0x86   : > { %2818 = vmatpush.bf16.msra.mxu3 %v6313_v2  ;;  %v469_v24 = vsel %vm262_vm0, %v466_v35, %v468_v44  ;;  %v6570_v35 = vld [vmem:[#allocation5 + $0x340] sm:$0xf0]  ;;  %v361_v60 = vrot.slane %v5173_v59, 6  ;;  %v471_v61 = vsel %vm262_vm0, %v468_v44, %v470_v58  ;;  %v5478_v55 = vld [vmem:[#allocation5 + $0x23c] sm:$0xf0] }
  0x87   : > { %v5609_v39 = vor.u32 %v6570_v35, %v5608_v33  ;;  %v5830_v58 = vld [vmem:[#allocation5 + $0x4fc] sm:$0xf0] }
  0x88   : > { %v362_v2 = vsel %vm262_vm0, %v359_v38, %v361_v60  ;;  %v6226_v38 = vld [vmem:[#allocation5 + $0x814] sm:$0xf0] }
  0x89   : > { %2704 = vmatpush.bf16.msra.mxu0 %v5257_v17  ;;  %v5874_v17 = vld [vmem:[#allocation5 + $0x554] sm:$0xf0] }
  0x8a   : > { %577 = vrot.lane.b32.xlu0 %v566_v22, %s6974_s11  ;;  %v6581_v22 = vld [vmem:[#allocation5 + $0x398] sm:$0xf0]  ;;  %2819 = vmatpush.bf16.msra.mxu3 %v6269_v14  ;;  %v5877_v35 = vor.u32 %v6631_v32, %v5874_v17 }
  0x8b   : > { %365 = vrot.lane.b32.xlu1 %v354_v21, %s6975_s18  ;;  %367 = vrot.lane.b32.xlu2 %v356_v26, %s6975_s18  ;;  %v5652_v21 = vld [vmem:[#allocation5 + $0x370] sm:$0xf]  ;;  %v5916_v26 = vld [vmem:[#allocation5 + $0x580] sm:$0xf] }
  0x8c   : > { %v5653_v25 = vor.u32 %v6581_v22, %v5652_v21  ;;  %v5917_v62 = vor.u32 %v6647_v27, %v5916_v26  ;;  %v5155_v22 = vld [vmem:[%s7076_s12 + $0x50] ss:$2 sm:$0x3] }
  0x8d   : > { %v7202_v45 = vpop.permute.xlu2 %518  ;;  %2705 = vmatpush.bf16.msra.mxu0 %v5213_v48  ;;  %243 = vst.msk [vmem:[#allocation2 + $0xa0] sm:$0x3] %vm242_vm12, %v5155_v22  ;;  %vm280_vm12 = vcmask 719874  }
  0x8e   : > { %2741 = vmatpush.bf16.msra.mxu1 %v5653_v25  ;;  %2781 = vmatpush.bf16.msra.mxu2 %v5917_v62 }
  0x91   : > { %2888 = vmatpush.bf16.msrb.mxu0 %v5877_v35 }
  0x92   : > { %680 = vrot.lane.b32.xlu0 %v669_v57, %s6972_s21  ;;  %2742 = vmatpush.bf16.msra.mxu1 %v5609_v39  ;;  %v5152_v57 = vld [vmem:[%s7076_s12 + $0x20] ss:$2 sm:$0xff] }
  0x93   : > { %682 = vrot.lane.b32.xlu1 %v671_v56, %s6972_s21  ;;  %478 = vrot.lane.b32.xlu2 %v467_v1, %s6973_s17  ;;  %v673_v56 = vsel %vm262_vm0, %v670_v34, %v672_v42  ;;  %239 = vst.msk [vmem:[#allocation2 + $0x40] sm:$0xff] %vm236_vm2, %v5152_v57  ;;  %v572_v1 = vsel %vm262_vm0, %v569_v20, %v571_v0  ;;  %v6620_v57 = vld [vmem:[#allocation5 + $0x4d4] sm:$0xf] }
  0x94   : > { %v6229_v42 = vor.u32 %v6719_v36, %v6226_v38  ;;  %2968 = vmatpush.bf16.msrb.mxu2 %v2669_v46  ;;  %v5833_v0 = vor.u32 %v6620_v57, %v5830_v58  ;;  %v6510_v36 = vld [vmem:[#allocation5 + $0x164] sm:$0xf]  ;;  %v5390_v38 = vld [vmem:[#allocation5 + $0x18c] sm:$0xf0] }
  0x95   : > { %v7228_v19 = vpop.permute.xlu2 %520  ;;  %v5393_v41 = vor.u32 %v6510_v36, %v5390_v38  ;;  %v6664_v36 = vld [vmem:[#allocation5 + $0x634] sm:$0xf] }
  0x96   : > { %2743 = vmatpush.bf16.msra.mxu1 %v5565_v53  ;;  %v263_v53 = vrot.slane %v7342_v50, 6  ;;  %2889 = vmatpush.bf16.msrb.mxu0 %v5833_v0  ;;  %v6094_v50 = vld [vmem:[#allocation5 + $0x70c] sm:$0xf0] }
  0x98   : > { %281 = vst.msk [vmem:[#allocation2 + $0xa0] sm:$0xfc] %vm280_vm12, %v263_v53  ;;  %vm383_vm12 = vcmask 392194  }
  0x9a   : > { %480 = vrot.lane.b32.xlu0 %v469_v24, %s6973_s17  ;;  %v5522_v24 = vld [vmem:[#allocation5 + $0x294] sm:$0xf0]  ;;  %2926 = vmatpush.bf16.msrb.mxu1 %v6229_v42  ;;  %v6598_v42 = vld [vmem:[#allocation5 + $0x424] sm:$0xf] }
  0x9b   : > { %579 = vrot.lane.b32.xlu1 %v568_v23, %s6974_s11  ;;  %581 = vrot.lane.b32.xlu2 %v570_v30, %s6974_s11  ;;  %v5745_v46 = vor.u32 %v6598_v42, %v5742_v8 }
  0x9d   : > { %v7250_v43 = vpop.permute.xlu2 %615 }
  0x9e   : > { %636 = vst.msk [vmem:[#allocation2 + $0x58] sm:$0xff] %vm631_vm3, %v7250_v43 }
  0xa2   : > { %369 = vrot.lane.b32.xlu0 %v358_v52, %s6975_s18 }
  0xa3   : > { %371 = vrot.lane.b32.xlu1 %v360_v51, %s6975_s18  ;;  %684 = vrot.lane.b32.xlu2 %v673_v56, %s6972_s21  ;;  %v5481_v56 = vor.u32 %v6532_v54, %v5478_v55 }
  0xa4   : > { %v612_v9 = vpop.permute.xlu0 %611 }
  0xa5   : > { %v410_v16 = vpop.permute.xlu1 %409  ;;  %632 = vst.msk [vmem:[#allocation2 + $0x18] sm:$0xff] %vm631_vm3, %v612_v9  ;;  %v7269_v34 = vpop.permute.xlu2 %415  ;;  %v719_v28 = vld [vmem:[#allocation2 + $0x58] sm:$0xff] }
  0xa6   : > { %430 = vst.msk [vmem:[#allocation2 + $0x10] sm:$0xff] %vm429_vm4, %v410_v16 }
  0xa7   : > { %537 = vst.msk [vmem:[#allocation2 + $0x10] sm:$0xff] %vm536_vm5, %v7202_v45 }
  0xa8   : > { %630 = vst.msk [vmem:[#allocation2 + $0x10] sm:$0xff] %vm629_vm6, %v612_v9 }
  0xa9   : > { %436 = vst.msk [vmem:[#allocation2 + $0x70] sm:$0xff] %vm429_vm4, %v7269_v34 }
  0xaa   : > { %482 = vrot.lane.b32.xlu0 %v471_v61, %s6973_s17 }
  0xab   : > { %583 = vrot.lane.b32.xlu1 %v572_v1, %s6974_s11  ;;  %373 = vrot.lane.b32.xlu2 %v362_v2, %s6975_s18 }
  0xac   : > { %v614_v45 = vpop.permute.xlu0 %613  ;;  %v711_v37 = vld [vmem:[#allocation2 + $0x18] sm:$0xff] }
  0xad   : > { %v412_v63 = vpop.permute.xlu1 %411  ;;  %634 = vst.msk [vmem:[#allocation2 + $0x38] sm:$0xff] %vm631_vm3, %v614_v45  ;;  %v305_v31 = vpop.permute.xlu2 %304 }
  0xae   : > { %432 = vst.msk [vmem:[#allocation2 + $0x30] sm:$0xff] %vm429_vm4, %v412_v63 }
  0xaf   : > { %538 = vst.msk [vmem:[#allocation2 + $0x30] sm:$0xff] %vm536_vm5, %v7228_v19  ;;  %v710_v44 = vld [vmem:[#allocation2 + $0x10] sm:$0xff]  ;;  %v6543_v19 = vld [vmem:[#allocation5 + $0x26c] sm:$0xf] }
  0xb0   : > { %633 = vst.msk [vmem:[#allocation2 + $0x30] sm:$0xff] %vm629_vm6, %v614_v45  ;;  %v5525_v26 = vor.u32 %v6543_v19, %v5522_v24  ;;  %v6358_v19 = vld [vmem:[#allocation5 + $0x91c] sm:$0xf0] }
  0xb1   : > { %324 = vst.msk [vmem:[#allocation2 + $0x40] sm:$0xff] %vm318_vm7, %v305_v31 }
  0xb2   : > { %325 = vst.msk [vmem:[#allocation2 + $0x48] sm:$0xff] %vm320_vm8, %v305_v31  ;;  %2850 = vmatpush.bf16.msrb.mxu3 %v5525_v26  ;;  %v6182_v31 = vld [vmem:[#allocation5 + $0x7bc] sm:$0xf0]  ;;  %v5786_v26 = vld [vmem:[#allocation5 + $0x4a4] sm:$0xf0] }
  0xb4   : > { %v715_v4 = vld [vmem:[#allocation2 + $0x38] sm:$0xff]  ;;  %v301_v7 = vpop.permute.xlu0 %300 }
  0xb5   : > { %v303_v6 = vpop.permute.xlu1 %302  ;;  %v7297_v10 = vpack.c.bf16 %v715_v4, %v711_v37  ;;  %v622_v40 = vpop.permute.xlu2 %621  ;;  %319 = vst.msk [vmem:[#allocation2] sm:$0xff] %vm318_vm7, %v301_v7  ;;  %v5434_v4 = vld [vmem:[#allocation5 + $0x1e4] sm:$0xf0] }
  0xb6   : > { %322 = vst.msk [vmem:[#allocation2 + $0x20] sm:$0xff] %vm318_vm7, %v303_v6  ;;  %2851 = vmatpush.bf16.msrb.mxu3 %v5481_v56  ;;  %v5346_v56 = vld [vmem:[#allocation5 + $0x134] sm:$0xf0] }
  0xb7   : > { %323 = vst.msk [vmem:[#allocation2 + $0x28] sm:$0xff] %vm320_vm8, %v303_v6  ;;  %v714_v11 = vld [vmem:[#allocation2 + $0x30] sm:$0xff]  ;;  %6398 = vmatmul.msk.bf16.vlgmr.msra.gmra.mxu3 %vm631_vm3, %v7297_v10 }
  0xb8   : > { %431 = vst.msk [vmem:[#allocation2 + $0x28] sm:$0xff] %vm427_vm9, %v412_v63  ;;  %v7304_v12 = vpack.c.bf16 %v714_v11, %v710_v44  ;;  %v6708_v63 = vld [vmem:[#allocation5 + $0x794] sm:$0xf]  ;;  %v5157_v6 = vld [vmem:[%s7076_s12 + $0x11] ss:$2 sm:$0xff] }
  0xb9   : > { %321 = vst.msk [vmem:[#allocation2 + $0x8] sm:$0xff] %vm320_vm8, %v301_v7  ;;  %v6185_v37 = vor.u32 %v6708_v63, %v6182_v31  ;;  %v7372_v7 = vld [vmem:[%s7076_s12 + $0x21] ss:$2 sm:$0xff]  ;;  %v264_v44 = vrot.slane %v5157_v6, 6 }
  0xba   : > { %8589 = vst [vmem:[#allocation10_spill] sm:$0xff] %v7304_v12  ;;  %2782 = vmatmul.bf16.vlgmr.msra.gmra.mxu2 %v7304_v12  ;;  %v266_v11 = vrot.slane %v7372_v7, 6 }
  0xbb   : > { %428 = vst.msk [vmem:[#allocation2 + $0x8] sm:$0xff] %vm427_vm9, %v410_v16  ;;  %2927 = vmatpush.bf16.msrb.mxu1 %v6185_v37  ;;  %v265_v5 = vsel %vm262_vm0, %v263_v53, %v264_v44 }
  0xbc   : > { %644 = vst.msk [vmem:[#allocation2 + $0xb8] sm:$0x3] %vm643_vm10, %v622_v40  ;;  %v618_v14 = vpop.permute.xlu0 %617  ;;  %v708_v21 = vld [vmem:[#allocation2] sm:$0xff]  ;;  %vm332_vm10 = vcmask 386048   ;;  %v267_v24 = vsel %vm262_vm0, %v264_v44, %v266_v11 }
  0xbd   : > { %v414_v13 = vpop.permute.xlu1 %413  ;;  %v712_v15 = vld [vmem:[#allocation2 + $0x20] sm:$0xff]  ;;  %v7311_v18 = vpop.permute.xlu2 %419  ;;  %638 = vst.msk [vmem:[#allocation2 + $0x78] sm:$0xff] %vm631_vm3, %v618_v14 }
  0xbe   : > { %433 = vst.msk [vmem:[#allocation2 + $0x48] sm:$0xff] %vm427_vm9, %v414_v13  ;;  %v7316_v23 = vpack.c.bf16 %v712_v15, %v708_v21 }
  0xbf   : > { %434 = vst.msk [vmem:[#allocation2 + $0x50] sm:$0xff] %vm429_vm4, %v414_v13  ;;  %v713_v20 = vld [vmem:[#allocation2 + $0x28] sm:$0xff] }
  0xc0   : > { %8590 = vst [vmem:[#allocation11_spill] sm:$0xff] %v7316_v23  ;;  %2706 = vmatmul.bf16.vlgmr.msra.gmra.mxu0 %v7316_v23 }
  0xc1   : > { %442 = vst.msk [vmem:[#allocation2 + $0xb0] sm:$0x3] %vm441_vm11, %v7311_v18  ;;  %vm439_vm11 = vcmask 1041792  }
  0xc2   : > { %v709_v25 = vld [vmem:[#allocation2 + $0x8] sm:$0xff]  ;;  %283 = vst.msk [vmem:[#allocation2 + $0xe0] sm:$0xff] %vm236_vm2, %v267_v24 }
  0xc3   : > { %v7319_v27 = vpack.c.bf16 %v713_v20, %v709_v25  ;;  %v6609_v20 = vld [vmem:[#allocation5 + $0x47c] sm:$0xf]  ;;  %282 = vst.msk [vmem:[#allocation2 + $0xc0] sm:$0xff] %vm236_vm2, %v265_v5  ;;  %v5698_v24 = vld [vmem:[#allocation5 + $0x3f4] sm:$0xf0] }
  0xc4   : > { %v523_v30 = vpop.permute.xlu0 %522  ;;  %v723_v33 = vld [vmem:[#allocation2 + $0x78] sm:$0xff]  ;;  %v6488_v5 = vld [vmem:[#allocation5 + $0xb4] sm:$0xf] }
  0xc5   : > { %8591 = vst [vmem:[#allocation12_spill] sm:$0xff] %v7319_v27  ;;  %2744 = vmatmul.bf16.vlgmr.msra.gmra.mxu1 %v7319_v27  ;;  %v525_v29 = vpop.permute.xlu1 %524  ;;  %v529_v62 = vpop.permute.xlu2 %528  ;;  %v7326_v39 = vpack.c.bf16 %v723_v33, %v719_v28  ;;  %v717_v1 = vld [vmem:[#allocation2 + $0x48] sm:$0xff] }
  0xc6   : > { %540 = vst.msk [vmem:[#allocation2 + $0x70] sm:$0xff] %vm536_vm5, %v525_v29  ;;  %v6697_v28 = vld [vmem:[#allocation5 + $0x73c] sm:$0xf] }
  0xc7   : > { %637 = vst.msk [vmem:[#allocation2 + $0x70] sm:$0xff] %vm629_vm6, %v618_v14  ;;  %6399 = vmatmul.msk.bf16.gmra.mxu3 %vm631_vm3, %v7326_v39 }
  0xc8   : > { %539 = vst.msk [vmem:[#allocation2 + $0x50] sm:$0xff] %vm536_vm5, %v523_v30  ;;  %v5789_v30 = vor.u32 %v6609_v20, %v5786_v26  ;;  %v6050_v26 = vld [vmem:[#allocation5 + $0x6b4] sm:$0xf0] }
  0xc9   : > { %635 = vst.msk [vmem:[#allocation2 + $0x50] sm:$0xff] %vm629_vm6, %v7250_v43 }
  0xca   : > { %543 = vst.msk [vmem:[#allocation2 + $0xb0] sm:$0x3] %vm542_vm13, %v529_v62  ;;  %vm694_vm13 = vcmask 457730   ;;  %v6138_v62 = vld [vmem:[#allocation5 + $0x764] sm:$0xf0]  ;;  %2890 = vmatpush.bf16.msrb.mxu0 %v5789_v30 }
  0xcb   : > { %642 = vst.msk [vmem:[#allocation2 + $0xb0] sm:$0x3] %vm641_vm14, %v622_v40  ;;  %v5437_v40 = vor.u32 %v6521_v3, %v5434_v4  ;;  %vm492_vm14 = vcmask 64514   ;;  %v6141_v32 = vor.u32 %v6697_v28, %v6138_v62 }
  0xcc   : > { %v307_v48 = vpop.permute.xlu0 %306 }
  0xcd   : > { %v7337_v47 = vpop.permute.xlu1 %619  ;;  %v311_v43 = vpop.permute.xlu2 %310  ;;  %326 = vst.msk [vmem:[#allocation2 + $0x60] sm:$0xff] %vm318_vm7, %v307_v48  ;;  %2852 = vmatpush.bf16.msrb.mxu3 %v5437_v40  ;;  %2928 = vmatpush.bf16.msrb.mxu1 %v6141_v32  ;;  %v5302_v32 = vld [vmem:[#allocation5 + $0xdc] sm:$0xf0] }
  0xce   : > { %v722_v49 = vld [vmem:[#allocation2 + $0x70] sm:$0xff]  ;;  %640 = vst.msk [vmem:[#allocation2 + $0x98] sm:$0xff] %vm631_vm3, %v7337_v47  ;;  %2891 = vmatpush.bf16.msrb.mxu0 %v5745_v46 }
  0xcf   : > { %327 = vst.msk [vmem:[#allocation2 + $0x68] sm:$0xff] %vm320_vm8, %v307_v48  ;;  %v6006_v46 = vld [vmem:[#allocation5 + $0x65c] sm:$0xf0] }
  0xd0   : > { %v718_v51 = vld [vmem:[#allocation2 + $0x50] sm:$0xff]  ;;  %435 = vst.msk [vmem:[#allocation2 + $0x68] sm:$0xff] %vm427_vm9, %v7269_v34  ;;  %v716_v34 = vld [vmem:[#allocation2 + $0x40] sm:$0xff] }
  0xd1   : > { %v7346_v52 = vpack.c.bf16 %v722_v49, %v718_v51  ;;  %331 = vst.msk [vmem:[#allocation2 + $0xa0] sm:$0x3] %vm330_vm15, %v311_v43  ;;  %vm591_vm15 = vcmask 785474   ;;  %2853 = vmatpush.bf16.msrb.mxu3 %v5393_v41  ;;  %v6499_v51 = vld [vmem:[#allocation5 + $0x10c] sm:$0xf] }
  0xd2   : > { %333 = vst.msk [vmem:[#allocation2 + $0xa8] sm:$0x3] %vm332_vm10, %v311_v43  ;;  %vm692_vm10 = vcmask 1048322   ;;  %v6686_v43 = vld [vmem:[#allocation5 + $0x6e4] sm:$0xf]  ;;  %v5349_v58 = vor.u32 %v6499_v51, %v5346_v56 }
  0xd3   : > { %2787 = vmatmul.bf16.gmra.mxu2 %v7346_v52  ;;  %440 = vst.msk [vmem:[#allocation2 + $0xa8] sm:$0x3] %vm439_vm11, %v7311_v18  ;;  %v6752_v18 = vld [vmem:[#allocation5 + $0x8f4] sm:$0xf]  ;;  %vm381_vm11 = vcmask 1048258   ;;  %v6097_v55 = vor.u32 %v6686_v43, %v6094_v50 }
  0xd4   : > { %v7355_v16 = vpop.permute.xlu0 %674  ;;  %v720_v59 = vld [vmem:[#allocation2 + $0x60] sm:$0xff]  ;;  %v6361_v25 = vor.u32 %v6752_v18, %v6358_v19  ;;  %v6314_v18 = vld [vmem:[#allocation5 + $0x8c4] sm:$0xf0]  ;;  %v5161_v43 = vld [vmem:[%s7076_s12 + $0x51] ss:$2 sm:$0x3] }
  0xd5   : > { %v7353_v9 = vpop.permute.xlu1 %417  ;;  %v7360_v60 = vpop.permute.xlu2 %678  ;;  %v7362_v61 = vpack.c.bf16 %v720_v59, %v716_v34  ;;  %695 = vst.msk [vmem:[#allocation2 + $0xb8] sm:$0xfc] %vm694_vm13, %v7355_v16  ;;  %v727_v13 = vld [vmem:[#allocation2 + $0x98] sm:$0xff]  ;;  %vm490_vm13 = vcmask 1047938   ;;  %2929 = vmatpush.bf16.msrb.mxu1 %v6097_v55  ;;  %2854 = vmatpush.bf16.msrb.mxu3 %v5349_v58 }
  0xd6   : > { %438 = vst.msk [vmem:[#allocation2 + $0x90] sm:$0xff] %vm429_vm4, %v7353_v9  ;;  %2969 = vmatpush.bf16.msrb.mxu2 %v6361_v25  ;;  %v5159_v59 = vld [vmem:[%s7076_s12 + $0x31] ss:$2 sm:$0xff] }
  0xd7   : > { %8592 = vst [vmem:[#allocation13_spill] sm:$0xff] %v7362_v61  ;;  %v721_v2 = vld [vmem:[#allocation2 + $0x68] sm:$0xff]  ;;  %2711 = vmatmul.bf16.gmra.mxu0 %v7362_v61  ;;  %v268_v37 = vrot.slane %v5159_v59, 6  ;;  %v6730_v59 = vld [vmem:[#allocation5 + $0x844] sm:$0xf] }
  0xd8   : > { %699 = vst.msk [vmem:[#allocation2 + $0xf8] sm:$0xff] %vm631_vm3, %v7360_v60  ;;  %v7367_v45 = vpack.c.bf16 %v721_v2, %v717_v1  ;;  %v7409_v1 = vld [vmem:[%s7076_s12 + $0x41] ss:$2 sm:$0xff] }
  0xd9   : > { %v270_v4 = vrot.slane %v7409_v1, 6  ;;  %v269_v19 = vsel %vm262_vm0, %v266_v11, %v268_v37  ;;  %v6653_v1 = vld [vmem:[#allocation5 + $0x5dc] sm:$0xf] }
  0xda   : > { %2749 = vmatmul.bf16.gmra.mxu1 %v7367_v45  ;;  %284 = vst.msk [vmem:[#allocation2 + $0x100] sm:$0xff] %vm236_vm2, %v269_v19 }
  0xdc   : > { %v473_v15 = vpop.permute.xlu0 %472  ;;  %v731_v21 = vld [vmem:[#allocation2 + $0xb8] sm:$0xff] }
  0xdd   : > { %v527_v14 = vpop.permute.xlu1 %526  ;;  %v7377_v22 = vpop.permute.xlu2 %575  ;;  %v7382_v29 = vpack.c.bf16 %v731_v21, %v727_v13  ;;  %493 = vst.msk [vmem:[#allocation2 + $0xb0] sm:$0xfc] %vm492_vm14, %v473_v15  ;;  %v6587_v21 = vld [vmem:[#allocation5 + $0x3cc] sm:$0xf]  ;;  %vm706_vm14 = vcmask 453632  }
  0xde   : > { %541 = vst.msk [vmem:[#allocation2 + $0x90] sm:$0xff] %vm536_vm5, %v527_v14  ;;  %v271_v14 = vsel %vm262_vm0, %v268_v37, %v270_v4  ;;  %v5701_v25 = vor.u32 %v6587_v21, %v5698_v24  ;;  %v5214_v21 = vld [vmem:[#allocation5 + $0x2c] sm:$0xf0] }
  0xdf   : > { %639 = vst.msk [vmem:[#allocation2 + $0x90] sm:$0xff] %vm629_vm6, %v7337_v47  ;;  %6400 = vmatmul.msk.bf16.gmra.mxu3 %vm631_vm3, %v7382_v29  ;;  %v739_v0 = vld [vmem:[#allocation2 + $0xf8] sm:$0xff] }
  0xe0   : > { %285 = vst.msk [vmem:[#allocation2 + $0x120] sm:$0xff] %vm236_vm2, %v271_v14  ;;  %2892 = vmatpush.bf16.msrb.mxu0 %v5701_v25  ;;  %vm395_vm2 = vcmask 388096  }
  0xe4   : > { %v574_v33 = vpop.permute.xlu0 %573 }
  0xe5   : > { %v309_v17 = vpop.permute.xlu1 %308  ;;  %v368_v35 = vpop.permute.xlu2 %367  ;;  %592 = vst.msk [vmem:[#allocation2 + $0xb0] sm:$0xfc] %vm591_vm15, %v574_v33  ;;  %v6576_v33 = vld [vmem:[#allocation5 + $0x374] sm:$0xf]  ;;  %vm286_vm15 = vcmask 715776  }
  0xe6   : > { %328 = vst.msk [vmem:[#allocation2 + $0x80] sm:$0xff] %vm318_vm7, %v309_v17  ;;  %v726_v53 = vld [vmem:[#allocation2 + $0x90] sm:$0xff] }
  0xe7   : > { %329 = vst.msk [vmem:[#allocation2 + $0x88] sm:$0xff] %vm320_vm8, %v309_v17  ;;  %v5305_v17 = vor.u32 %v6488_v5, %v5302_v32  ;;  %v5918_v32 = vld [vmem:[#allocation5 + $0x5ac] sm:$0xf0] }
  0xe8   : > { %437 = vst.msk [vmem:[#allocation2 + $0x88] sm:$0xff] %vm427_vm9, %v7353_v9 }
  0xe9   : > { %693 = vst.msk [vmem:[#allocation2 + $0xb0] sm:$0xfc] %vm692_vm10, %v7355_v16  ;;  %2855 = vmatpush.bf16.msrb.mxu3 %v5305_v17  ;;  %vm393_vm10 = vcmask 1044160  }
  0xea   : > { %387 = vst.msk [vmem:[#allocation2 + $0xe0] sm:$0xff] %vm318_vm7, %v368_v35 }
  0xeb   : > { %388 = vst.msk [vmem:[#allocation2 + $0xe8] sm:$0xff] %vm320_vm8, %v368_v35  ;;  %v5654_v35 = vld [vmem:[#allocation5 + $0x39c] sm:$0xf0] }
  0xec   : > { %v364_v48 = vpop.permute.xlu0 %363  ;;  %v5657_v8 = vor.u32 %v6576_v33, %v5654_v35 }
  0xed   : > { %v677_v47 = vpop.permute.xlu1 %676  ;;  %v7400_v49 = vpop.permute.xlu2 %478  ;;  %382 = vst.msk [vmem:[#allocation2 + $0xa0] sm:$0xfc] %vm381_vm11, %v364_v48  ;;  %v724_v2 = vld [vmem:[#allocation2 + $0x80] sm:$0xff] }
  0xee   : > { %697 = vst.msk [vmem:[#allocation2 + $0xd8] sm:$0xff] %vm631_vm3, %v677_v47  ;;  %2893 = vmatpush.bf16.msrb.mxu0 %v5657_v8 }
  0xef   : > { %384 = vst.msk [vmem:[#allocation2 + $0xa8] sm:$0xfc] %vm383_vm12, %v364_v48  ;;  %v725_v40 = vld [vmem:[#allocation2 + $0x88] sm:$0xff] }
  0xf0   : > { %v730_v54 = vld [vmem:[#allocation2 + $0xb0] sm:$0xff]  ;;  %491 = vst.msk [vmem:[#allocation2 + $0xa8] sm:$0xfc] %vm490_vm13, %v473_v15  ;;  %v6741_v15 = vld [vmem:[#allocation5 + $0x89c] sm:$0xf] }
  0xf1   : > { %v7402_v57 = vpack.c.bf16 %v730_v54, %v726_v53  ;;  %499 = vst.msk [vmem:[#allocation2 + $0x110] sm:$0xff] %vm429_vm4, %v7400_v49  ;;  %v6317_v20 = vor.u32 %v6741_v15, %v6314_v18  ;;  %v736_v11 = vld [vmem:[#allocation2 + $0xe0] sm:$0xff]  ;;  %v272_v53 = vrot.slane %v5161_v43, 6 }
  0xf3   : > { %2792 = vmatmul.bf16.gmra.mxu2 %v7402_v57  ;;  %v273_v58 = vsel %vm262_vm0, %v270_v4, %v272_v53  ;;  %vm504_vm0 = vcmask 60416  }
  0xf4   : > { %v475_v34 = vpop.permute.xlu0 %474  ;;  %v728_v31 = vld [vmem:[#allocation2 + $0xa0] sm:$0xff]  ;;  %2970 = vmatpush.bf16.msrb.mxu2 %v6317_v20  ;;  %287 = vst.msk [vmem:[#allocation2 + $0x140] sm:$0xf] %vm286_vm15, %v273_v58  ;;  %v6466_v20 = vld [vmem:[#allocation5 + $0x4] sm:$0xf] }
  0xf5   : > { %v735_v9 = vld [vmem:[#allocation2 + $0xd8] sm:$0xff]  ;;  %v477_v16 = vpop.permute.xlu1 %476  ;;  %v7414_v3 = vpop.permute.xlu2 %581  ;;  %v7417_v6 = vpack.c.bf16 %v728_v31, %v724_v2  ;;  %495 = vst.msk [vmem:[#allocation2 + $0xd0] sm:$0xff] %vm429_vm4, %v475_v34  ;;  %v6270_v2 = vld [vmem:[#allocation5 + $0x86c] sm:$0xf0]  ;;  %v6565_v31 = vld [vmem:[#allocation5 + $0x31c] sm:$0xf] }
  0xf6   : > { %v7411_v63 = vpack.c.bf16 %v739_v0, %v735_v9  ;;  %496 = vst.msk [vmem:[#allocation2 + $0xe8] sm:$0xff] %vm427_vm9, %v477_v16  ;;  %v6477_v0 = vld [vmem:[#allocation5 + $0x5c] sm:$0xf]  ;;  %v5258_v9 = vld [vmem:[#allocation5 + $0x84] sm:$0xf0]  ;;  %v6273_v37 = vor.u32 %v6730_v59, %v6270_v2 }
  0xf7   : > { %497 = vst.msk [vmem:[#allocation2 + $0xf0] sm:$0xff] %vm429_vm4, %v477_v16  ;;  %v729_v44 = vld [vmem:[#allocation2 + $0xa8] sm:$0xff]  ;;  %2716 = vmatmul.bf16.gmra.mxu0 %v7417_v6  ;;  %v5880_v58 = vld [vmem:[#allocation5 + $0x530] sm:$0xf] }
  0xf8   : > { %6401 = vmatmul.msk.bf16.gmra.mxu3 %vm631_vm3, %v7411_v63  ;;  %v7423_v13 = vpack.c.bf16 %v729_v44, %v725_v40  ;;  %593 = vst.msk [vmem:[#allocation2 + $0xd0] sm:$0xff] %vm536_vm5, %v7377_v22  ;;  %v6675_v22 = vld [vmem:[#allocation5 + $0x68c] sm:$0xf]  ;;  %v5610_v40 = vld [vmem:[#allocation5 + $0x344] sm:$0xf0]  ;;  %2971 = vmatpush.bf16.msrb.mxu2 %v6273_v37 }
  0xf9   : > { %696 = vst.msk [vmem:[#allocation2 + $0xd0] sm:$0xff] %vm629_vm6, %v677_v47  ;;  %v6053_v62 = vor.u32 %v6675_v22, %v6050_v26  ;;  %v5962_v44 = vld [vmem:[#allocation5 + $0x604] sm:$0xf0]  ;;  %v5613_v18 = vor.u32 %v6565_v31, %v5610_v40  ;;  %v5217_v22 = vor.u32 %v6466_v20, %v5214_v21  ;;  %v6725_v2 = vld [vmem:[#allocation5 + $0x818] sm:$0xf0] }
  0xfa   : > { %2754 = vmatmul.bf16.gmra.mxu1 %v7423_v13  ;;  %v5965_v19 = vor.u32 %v6653_v1, %v5962_v44  ;;  %v5484_v44 = vld [vmem:[#allocation5 + $0x218] sm:$0xf]  ;;  %v6714_v20 = vld [vmem:[#allocation5 + $0x7c0] sm:$0xf0] }
  0xfb   : > { %2930 = vmatpush.bf16.msrb.mxu1 %v6053_v62  ;;  %2894 = vmatpush.bf16.msrb.mxu0 %v5613_v18  ;;  %v5566_v62 = vld [vmem:[#allocation5 + $0x2ec] sm:$0xf0]  ;;  %v6626_v18 = vld [vmem:[#allocation5 + $0x500] sm:$0xf0] }
  0xfc   : > { %v578_v30 = vpop.permute.xlu0 %577 }
  0xfd   : > { %v366_v28 = vpop.permute.xlu1 %365  ;;  %v7439_v7 = vpop.permute.xlu2 %684  ;;  %594 = vst.msk [vmem:[#allocation2 + $0xf0] sm:$0xff] %vm536_vm5, %v578_v30  ;;  %v737_v50 = vld [vmem:[#allocation2 + $0xe8] sm:$0xff]  ;;  %v6554_v30 = vld [vmem:[#allocation5 + $0x2c4] sm:$0xf] }
  0xfe   : > { %385 = vst.msk [vmem:[#allocation2 + $0xc0] sm:$0xff] %vm318_vm7, %v366_v28  ;;  %v5569_v5 = vor.u32 %v6554_v30, %v5566_v62  ;;  %v5440_v30 = vld [vmem:[#allocation5 + $0x1c0] sm:$0xf]  ;;  %v6527_v62 = vld [vmem:[#allocation5 + $0x1e8] sm:$0xf0] }
  0xff   : > { %386 = vst.msk [vmem:[#allocation2 + $0xc8] sm:$0xff] %vm320_vm8, %v366_v28 }
 0x100   : > { %494 = vst.msk [vmem:[#allocation2 + $0xc8] sm:$0xff] %vm427_vm9, %v475_v34  ;;  %v734_v55 = vld [vmem:[#allocation2 + $0xd0] sm:$0xff]  ;;  %v5261_v34 = vor.u32 %v6477_v0, %v5258_v9  ;;  %2895 = vmatpush.bf16.msrb.mxu0 %v5569_v5  ;;  %v6637_v9 = vld [vmem:[#allocation5 + $0x558] sm:$0xf0]  ;;  %v6364_v5 = vld [vmem:[#allocation5 + $0x8f8] sm:$0xf] }
 0x101   : > { %698 = vst.msk [vmem:[#allocation2 + $0xf0] sm:$0xff] %vm629_vm6, %v7360_v60  ;;  %v6009_v60 = vor.u32 %v6664_v36, %v6006_v46  ;;  %v5881_v59 = vor.u32 %v6637_v9, %v5880_v58  ;;  %v6604_v9 = vld [vmem:[#allocation5 + $0x450] sm:$0xf0] }
 0x102   : > { %707 = vst.msk [vmem:[#allocation2 + $0x158] sm:$0xf] %vm706_vm14, %v7439_v7  ;;  %2856 = vmatpush.bf16.msrb.mxu3 %v5261_v34  ;;  %v6232_v34 = vld [vmem:[#allocation5 + $0x7f0] sm:$0xf] }
 0x103   : > { %2931 = vmatpush.bf16.msrb.mxu1 %v6009_v60  ;;  %v6233_v37 = vor.u32 %v6725_v2, %v6232_v34  ;;  %v6100_v34 = vld [vmem:[#allocation5 + $0x6e8] sm:$0xf] }
 0x104   : > { %v681_v42 = vpop.permute.xlu0 %680  ;;  %3040 = vmatpush.bf16.msra.mxu0 %v5881_v59 }
 0x105   : > { %v732_v38 = vld [vmem:[#allocation2 + $0xc0] sm:$0xff]  ;;  %v683_v41 = vpop.permute.xlu1 %682  ;;  %v374_v48 = vpop.permute.xlu2 %373  ;;  %701 = vst.msk [vmem:[#allocation2 + $0x118] sm:$0xff] %vm631_vm3, %v681_v42 }
 0x106   : > { %v7447_v47 = vpack.c.bf16 %v736_v11, %v732_v38  ;;  %703 = vst.msk [vmem:[#allocation2 + $0x138] sm:$0xff] %vm631_vm3, %v683_v41  ;;  %2857 = vmatpush.bf16.msrb.mxu3 %v5217_v22  ;;  %v6642_v11 = vld [vmem:[#allocation5 + $0x584] sm:$0xf]  ;;  %v5528_v38 = vld [vmem:[#allocation5 + $0x270] sm:$0xf] }
 0x107   : > { %v733_v51 = vld [vmem:[#allocation2 + $0xc8] sm:$0xff]  ;;  %396 = vst.msk [vmem:[#allocation2 + $0x148] sm:$0xf] %vm395_vm2, %v374_v48  ;;  %2932 = vmatpush.bf16.msrb.mxu1 %v5965_v19  ;;  %v5921_v33 = vor.u32 %v6642_v11, %v5918_v32  ;;  %v5441_v11 = vor.u32 %v6527_v62, %v5440_v30  ;;  %v6758_v32 = vld [vmem:[#allocation5 + $0x920] sm:$0xf0] }
 0x108   : > { %v7452_v54 = vpack.c.bf16 %v737_v50, %v733_v51  ;;  %v738_v56 = vld [vmem:[#allocation2 + $0xf0] sm:$0xff]  ;;  %2721 = vmatmul.bf16.gmra.mxu0 %v7447_v47  ;;  %394 = vst.msk [vmem:[#allocation2 + $0x140] sm:$0xf] %vm393_vm10, %v374_v48  ;;  %v6188_v19 = vld [vmem:[#allocation5 + $0x798] sm:$0xf] }
 0x109   : > { %v7459_v16 = vpack.c.bf16 %v738_v56, %v734_v55  ;;  %v751_v36 = vld [vmem:[#allocation2 + $0x158] sm:$0xf]  ;;  %v7494_v56 = vld [vmem:[#allocation5 + $0x950] sm:$0xff]  ;;  %v6189_v22 = vor.u32 %v6714_v20, %v6188_v19  ;;  %v6593_v30 = vld [vmem:[#allocation5 + $0x3f8] sm:$0xf0] }
 0x10a   : > { %2759 = vmatmul.bf16.gmra.mxu1 %v7452_v54 }
 0x10b   : > { %2797 = vmatmul.bf16.gmra.mxu2 %v7459_v16  ;;  %2933 = vmatpush.bf16.msrb.mxu1 %v5921_v33  ;;  %v6365_v33 = vor.u32 %v6758_v32, %v6364_v5  ;;  %v6681_v5 = vld [vmem:[#allocation5 + $0x6b8] sm:$0xf0] }
 0x10c   : > { %v481_v15 = vpop.permute.xlu0 %480  ;;  %v743_v24 = vld [vmem:[#allocation2 + $0x118] sm:$0xff] }
 0x10d   : > { %v747_v4 = vld [vmem:[#allocation2 + $0x138] sm:$0xff]  ;;  %v580_v14 = vpop.permute.xlu1 %579  ;;  %501 = vst.msk [vmem:[#allocation2 + $0x130] sm:$0xff] %vm429_vm4, %v481_v15  ;;  %vm597_vm4 = vcmask 781376  }
 0x10e   : > { %595 = vst.msk [vmem:[#allocation2 + $0x110] sm:$0xff] %vm536_vm5, %v580_v14  ;;  %v7464_v25 = vpack.c.bf16 %v747_v4, %v743_v24  ;;  %v6538_v4 = vld [vmem:[#allocation5 + $0x240] sm:$0xf0]  ;;  %v5836_v14 = vld [vmem:[#allocation5 + $0x4d8] sm:$0xf] }
 0x10f   : > { %700 = vst.msk [vmem:[#allocation2 + $0x110] sm:$0xff] %vm629_vm6, %v681_v42  ;;  %v7483_v42 = vpack.c.bf16 %v751_v36, %v751_v36  ;;  %v748_v40 = vld [vmem:[#allocation2 + $0x140] sm:$0xf]  ;;  %3078 = vmatpush.bf16.msra.mxu1 %v6233_v37  ;;  %v5837_v24 = vor.u32 %v6626_v18, %v5836_v14  ;;  %v6144_v36 = vld [vmem:[#allocation5 + $0x740] sm:$0xf] }
 0x110   : > { %596 = vst.msk [vmem:[#allocation2 + $0x130] sm:$0xff] %vm536_vm5, %v7414_v3  ;;  %6402 = vmatmul.msk.bf16.gmra.mxu3 %vm631_vm3, %v7464_v25  ;;  %vm704_vm5 = vcmask 1044224   ;;  %v7501_v21 = vpack.c.bf16 %v748_v40, %v748_v40 }
 0x111   : > { %702 = vst.msk [vmem:[#allocation2 + $0x130] sm:$0xff] %vm629_vm6, %v683_v41  ;;  %v6549_v41 = vld [vmem:[#allocation5 + $0x298] sm:$0xf0]  ;;  %vm502_vm6 = vcmask 1043840   ;;  %3041 = vmatpush.bf16.msra.mxu0 %v5837_v24 }
 0x112   : > { %8594 = vst [vmem:[#allocation15_spill] sm:$0xff] %v7483_v42  ;;  %v5529_v60 = vor.u32 %v6549_v41, %v5528_v38  ;;  %v6703_v38 = vld [vmem:[#allocation5 + $0x768] sm:$0xf0] }
 0x113   : > { %8596 = vst [vmem:[#allocation17_spill] sm:$0xff] %v7501_v21  ;;  %3079 = vmatpush.bf16.msra.mxu1 %v6189_v22 }
 0x114   : > { %v370_v28 = vpop.permute.xlu0 %369  ;;  %3002 = vmatpush.bf16.msra.mxu3 %v5529_v60 }
 0x115   : > { %v372_v26 = vpop.permute.xlu1 %371  ;;  %389 = vst.msk [vmem:[#allocation2 + $0x100] sm:$0xff] %vm318_vm7, %v370_v28 }
 0x116   : > { %391 = vst.msk [vmem:[#allocation2 + $0x120] sm:$0xff] %vm318_vm7, %v372_v26  ;;  %v742_v17 = vld [vmem:[#allocation2 + $0x110] sm:$0xff]  ;;  %vm4792_vm7 = vcmask 1045504  }
 0x117   : > { %392 = vst.msk [vmem:[#allocation2 + $0x128] sm:$0xff] %vm320_vm8, %v372_v26 }
 0x118   : > { %500 = vst.msk [vmem:[#allocation2 + $0x128] sm:$0xff] %vm427_vm9, %v481_v15  ;;  %v746_v3 = vld [vmem:[#allocation2 + $0x130] sm:$0xff]  ;;  %v5485_v15 = vor.u32 %v6538_v4, %v5484_v44  ;;  %v6505_v44 = vld [vmem:[#allocation5 + $0x138] sm:$0xf0] }
 0x119   : > { %v7477_v35 = vpack.c.bf16 %v746_v3, %v742_v17  ;;  %390 = vst.msk [vmem:[#allocation2 + $0x108] sm:$0xff] %vm320_vm8, %v370_v28  ;;  %v5792_v17 = vld [vmem:[#allocation5 + $0x480] sm:$0xf]  ;;  %v6615_v3 = vld [vmem:[#allocation5 + $0x4a8] sm:$0xf0]  ;;  %vm5053_vm8 = vcmask 254976  }
 0x11a   : > { %498 = vst.msk [vmem:[#allocation2 + $0x108] sm:$0xff] %vm427_vm9, %v7400_v49  ;;  %3003 = vmatpush.bf16.msra.mxu3 %v5485_v15  ;;  %v5793_v41 = vor.u32 %v6615_v3, %v5792_v17  ;;  %v6320_v4 = vld [vmem:[#allocation5 + $0x8a0] sm:$0xf]  ;;  %v6747_v15 = vld [vmem:[#allocation5 + $0x8c8] sm:$0xf0] }
 0x11b   : > { %8593 = vst [vmem:[#allocation14_spill] sm:$0xff] %v7477_v35  ;;  %2802 = vmatmul.bf16.gmra.mxu2 %v7477_v35  ;;  %v6321_v19 = vor.u32 %v6747_v15, %v6320_v4  ;;  %v6571_v4 = vld [vmem:[#allocation5 + $0x348] sm:$0xf0]  ;;  %v5968_v15 = vld [vmem:[#allocation5 + $0x5e0] sm:$0xf] }
 0x11c   : > { %v483_v8 = vpop.permute.xlu0 %482  ;;  %v740_v50 = vld [vmem:[#allocation2 + $0x100] sm:$0xff]  ;;  %3042 = vmatpush.bf16.msra.mxu0 %v5793_v41 }
 0x11d   : > { %v584_v46 = vpop.permute.xlu1 %583  ;;  %v744_v48 = vld [vmem:[#allocation2 + $0x120] sm:$0xff]  ;;  %505 = vst.msk [vmem:[#allocation2 + $0x150] sm:$0xf] %vm504_vm0, %v483_v8 }
 0x11e   : > { %598 = vst.msk [vmem:[#allocation2 + $0x150] sm:$0xf] %vm597_vm4, %v584_v46  ;;  %v7486_v49 = vpack.c.bf16 %v744_v48, %v740_v50  ;;  %3004 = vmatpush.bf16.msra.mxu3 %v5441_v11  ;;  %v6516_v50 = vld [vmem:[#allocation5 + $0x190] sm:$0xf0]  ;;  %v6056_v11 = vld [vmem:[#allocation5 + $0x690] sm:$0xf] }
 0x11f   : > { %v745_v43 = vld [vmem:[#allocation2 + $0x128] sm:$0xff]  ;;  %705 = vst.msk [vmem:[#allocation2 + $0x150] sm:$0xf] %vm704_vm5, %v7439_v7  ;;  %v2032_v7 = vunpack.c.l.b16 %v7494_v56  ;;  %v6057_v17 = vor.u32 %v6681_v5, %v6056_v11  ;;  %v6472_v11 = vld [vmem:[#allocation5 + $0x30] sm:$0xf0] }
 0x120   : > { %503 = vst.msk [vmem:[#allocation2 + $0x148] sm:$0xf] %vm502_vm6, %v483_v8  ;;  %6403 = vmatmul.msk.bf16.gmra.mxu3 %vm631_vm3, %v7483_v42  ;;  %2726 = vmatmul.bf16.gmra.mxu0 %v7486_v49  ;;  %v6145_v8 = vor.u32 %v6703_v38, %v6144_v36 }
 0x121   : > { %v741_v51 = vld [vmem:[#allocation2 + $0x108] sm:$0xff]  ;;  %v2340_v31 = vpack.c.b16 %v2032_v7, %v2032_v7  ;;  %v5748_v7 = vld [vmem:[#allocation5 + $0x428] sm:$0xf] }
 0x122   : > { %v7490_v53 = vpack.c.bf16 %v745_v43, %v741_v51  ;;  %3080 = vmatpush.bf16.msra.mxu1 %v6145_v8  ;;  %v5396_v43 = vld [vmem:[#allocation5 + $0x168] sm:$0xf]  ;;  %v5749_v2 = vor.u32 %v6604_v9, %v5748_v7  ;;  %v5264_v9 = vld [vmem:[#allocation5 + $0x60] sm:$0xf] }
 0x123   : > { %v2672_v1 = vsel %vm2664_vm1, %v2340_v31, 0  ;;  %v6692_v31 = vld [vmem:[#allocation5 + $0x710] sm:$0xf0] }
 0x124   : > { %2764 = vmatmul.bf16.gmra.mxu1 %v7490_v53  ;;  %3120 = vmatpush.bf16.msra.mxu2 %v2672_v1  ;;  %v6101_v40 = vor.u32 %v6692_v31, %v6100_v34  ;;  %v5352_v1 = vld [vmem:[#allocation5 + $0x110] sm:$0xf]  ;;  %v6483_v34 = vld [vmem:[#allocation5 + $0x88] sm:$0xf0]  ;;  %v6276_v31 = vld [vmem:[#allocation5 + $0x848] sm:$0xf] }
 0x125   : > { %3043 = vmatpush.bf16.msra.mxu0 %v5749_v2  ;;  %v5353_v14 = vor.u32 %v6505_v44, %v5352_v1  ;;  %v5616_v1 = vld [vmem:[#allocation5 + $0x320] sm:$0xf] }
 0x126   : > { %v750_v55 = vld [vmem:[#allocation2 + $0x150] sm:$0xf]  ;;  %3081 = vmatpush.bf16.msra.mxu1 %v6101_v40  ;;  %v6736_v40 = vld [vmem:[#allocation5 + $0x870] sm:$0xf0] }
 0x127   : > { %v7496_v0 = vpack.c.bf16 %v750_v55, %v750_v55  ;;  %v749_v26 = vld [vmem:[#allocation2 + $0x148] sm:$0xf]  ;;  %v5397_v55 = vor.u32 %v6516_v50, %v5396_v43  ;;  %v6582_v50 = vld [vmem:[#allocation5 + $0x3a0] sm:$0xf0]  ;;  %v6277_v44 = vor.u32 %v6736_v40, %v6276_v31 }
 0x128   : > { %v7504_v28 = vpack.c.bf16 %v749_v26, %v749_v26  ;;  %3121 = vmatpush.bf16.msra.mxu2 %v6365_v33  ;;  %v5704_v26 = vld [vmem:[#allocation5 + $0x3d0] sm:$0xf]  ;;  %v5660_v43 = vld [vmem:[#allocation5 + $0x378] sm:$0xf] }
 0x129   : > { %8595 = vst [vmem:[#allocation16_spill] sm:$0xff] %v7496_v0  ;;  %3005 = vmatpush.bf16.msra.mxu3 %v5397_v55  ;;  %v5705_v62 = vor.u32 %v6593_v30, %v5704_v26  ;;  %v6012_v55 = vld [vmem:[#allocation5 + $0x638] sm:$0xf] }
 0x12a   : > { %8597 = vst [vmem:[#allocation18_spill] sm:$0xff] %v7504_v28  ;;  %3082 = vmatpush.bf16.msra.mxu1 %v6057_v17 }
 0x12b   : > { %2807 = vmatmul.bf16.gmra.mxu2 %v7496_v0  ;;  %3044 = vmatpush.bf16.msra.mxu0 %v5705_v62  ;;  %v5220_v62 = vld [vmem:[#allocation5 + $0x8] sm:$0xf] }
 0x12c   : > { %3122 = vmatpush.bf16.msra.mxu2 %v6321_v19  ;;  %v6659_v19 = vld [vmem:[#allocation5 + $0x608] sm:$0xf0] }
 0x12d   : > { %3006 = vmatpush.bf16.msra.mxu3 %v5353_v14  ;;  %v5617_v14 = vor.u32 %v6571_v4, %v5616_v1  ;;  %v5969_v26 = vor.u32 %v6659_v19, %v5968_v15 }
 0x130   : > { %2858 = vmatmul.bf16.vlgmr.msrb.gmra.mxu3 %v7316_v23  ;;  %2731 = vmatmul.bf16.gmra.mxu0 %v7501_v21 }
 0x131   : > { %3123 = vmatpush.bf16.msra.mxu2 %v6277_v44 }
 0x134   : > { %2769 = vmatmul.bf16.gmra.mxu1 %v7504_v28 }
 0x13a   : > { %v2821_v59 = vpop.f32.mrf.mxu3 }
 0x13b   : > { %6404 = vmatmul.msk.bf16.vlgmr.msrb.gmra.mxu2 %vm631_vm3, %v7297_v10 }
 0x13d   : > { %v2707_v46 = vpop.f32.mrf.mxu0  ;;  %v2783_v51 = vpop.f32.mrf.mxu2 }
 0x140   : > { %2863 = vmatmul.bf16.gmra.mxu3 %v7362_v61  ;;  %2896 = vmatmul.bf16.vlgmr.msrb.gmra.mxu0 %v7319_v27 }
 0x142   : > { %v2745_v60 = vpop.f32.mrf.mxu1  ;;  %v7522_v24 = vpop.f32.mrf.mxu3 }
 0x143   : > { %v2746_v48 = vadd.f32 %v2745_v60, %v2707_v46  ;;  %v5308_v46 = vld [vmem:[#allocation5 + $0xb8] sm:$0xf]  ;;  %v6494_v60 = vld [vmem:[#allocation5 + $0xe0] sm:$0xf0] }
 0x144   : > { %2934 = vmatmul.bf16.vlgmr.msrb.gmra.mxu1 %v7304_v12 }
 0x145   : > { %v2784_v58 = vadd.f32 %v2783_v51, %v2746_v48  ;;  %v7517_v18 = vpop.f32.mrf.mxu0  ;;  %v7524_v22 = vpop.f32.mrf.mxu2  ;;  %v5309_v48 = vor.u32 %v6494_v60, %v5308_v46  ;;  %v5661_v51 = vor.u32 %v6582_v50, %v5660_v43  ;;  %v5572_v60 = vld [vmem:[#allocation5 + $0x2c8] sm:$0xf] }
 0x146   : > { %v5924_v43 = vld [vmem:[#allocation5 + $0x588] sm:$0xf] }
 0x147   : > { %v7513_v37 = vadd.f32 %v2821_v59, %v2784_v58  ;;  %3007 = vmatpush.bf16.msra.mxu3 %v5309_v48  ;;  %3045 = vmatpush.bf16.msra.mxu0 %v5661_v51  ;;  %v6670_v58 = vld [vmem:[#allocation5 + $0x660] sm:$0xf0]  ;;  %v5265_v59 = vor.u32 %v6483_v34, %v5264_v9  ;;  %v6560_v48 = vld [vmem:[#allocation5 + $0x2f0] sm:$0xf0]  ;;  %v5530_v9 = vld [vmem:[#allocation5 + $0x29c] sm:$0xf0] }
 0x148   : > { %v6013_v7 = vor.u32 %v6670_v58, %v6012_v55  ;;  %v5573_v51 = vor.u32 %v6560_v48, %v5572_v60  ;;  %v6648_v55 = vld [vmem:[#allocation5 + $0x5b0] sm:$0xf0] }
 0x149   : > { %v5925_v58 = vor.u32 %v6648_v55, %v5924_v43  ;;  %v5838_v55 = vld [vmem:[#allocation5 + $0x504] sm:$0xf0] }
 0x14a   : > { %v7519_v20 = vpop.f32.mrf.mxu1  ;;  %v2826_v41 = vpop.f32.mrf.mxu3  ;;  %3083 = vmatpush.bf16.msra.mxu1 %v6013_v7  ;;  %v6544_v7 = vld [vmem:[#allocation5 + $0x274] sm:$0xf] }
 0x14b   : > { %6405 = vmatmul.msk.bf16.gmra.mxu2 %vm631_vm3, %v7326_v39  ;;  %3008 = vmatpush.bf16.msra.mxu3 %v5265_v59  ;;  %v5533_v59 = vor.u32 %v6544_v7, %v5530_v9 }
 0x14c   : > { %3046 = vmatpush.bf16.msra.mxu0 %v5617_v14 }
 0x14e   : > { %3084 = vmatpush.bf16.msra.mxu1 %v5969_v26  ;;  %v2033_v26 = vunpack.c.h.b16 %v7494_v56  ;;  %v5486_v56 = vld [vmem:[#allocation5 + $0x244] sm:$0xf0] }
 0x150   : > { %2868 = vmatmul.bf16.gmra.mxu3 %v7417_v6  ;;  %2901 = vmatmul.bf16.gmra.mxu0 %v7367_v45 }
 0x151   : > { %3047 = vmatpush.bf16.msra.mxu0 %v5573_v51 }
 0x152   : > { %v7535_v2 = vpop.f32.mrf.mxu3  ;;  %3085 = vmatpush.bf16.msra.mxu1 %v5925_v58 }
 0x154   : > { %2939 = vmatmul.bf16.gmra.mxu1 %v7346_v52  ;;  %v2712_v32 = vpop.f32.mrf.mxu0 }
 0x156   : > { %v2788_v36 = vpop.f32.mrf.mxu2 }
 0x157   : > { %v2750_v33 = vpop.f32.mrf.mxu1 }
 0x158   : > { %v2751_v3 = vadd.f32 %v2750_v33, %v2712_v32  ;;  %v5221_v32 = vor.u32 %v6472_v11, %v5220_v62  ;;  %v6632_v62 = vld [vmem:[#allocation5 + $0x534] sm:$0xf]  ;;  %v5882_v11 = vld [vmem:[#allocation5 + $0x55c] sm:$0xf0] }
 0x15a   : > { %v2789_v38 = vadd.f32 %v2788_v36, %v2751_v3  ;;  %3009 = vmatpush.bf16.msra.mxu3 %v5221_v32  ;;  %v6720_v32 = vld [vmem:[#allocation5 + $0x7f4] sm:$0xf] }
 0x15b   : > { %6406 = vmatmul.msk.bf16.gmra.mxu2 %vm631_vm3, %v7382_v29 }
 0x15c   : > { %v7530_v8 = vadd.f32 %v2826_v41, %v2789_v38  ;;  %v7539_v30 = vpop.f32.mrf.mxu0 }
 0x15e   : > { %v7541_v5 = vpop.f32.mrf.mxu2  ;;  %3154 = vmatpush.bf16.msrb.mxu3 %v5533_v59 }
 0x15f   : > { %v7543_v17 = vpop.f32.mrf.mxu1 }
 0x160   : > { %2873 = vmatmul.bf16.gmra.mxu3 %v7447_v47  ;;  %2906 = vmatmul.bf16.gmra.mxu0 %v7423_v13 }
 0x162   : > { %v2831_v33 = vpop.f32.mrf.mxu3 }
 0x164   : > { %2944 = vmatmul.bf16.gmra.mxu1 %v7402_v57 }
 0x16a   : > { %v2833_v46 = vpop.f32.mrf.mxu3 }
 0x16b   : > { %6407 = vmatmul.msk.bf16.gmra.mxu2 %vm631_vm3, %v7411_v63 }
 0x170   : > { %2878 = vmatmul.bf16.gmra.mxu3 %v7486_v49  ;;  %2911 = vmatmul.bf16.gmra.mxu0 %v7452_v54 }
 0x174   : > { %2949 = vmatmul.bf16.gmra.mxu1 %v7459_v16  ;;  %v2717_v3 = vpop.f32.mrf.mxu0 }
 0x176   : > { %v2793_v36 = vpop.f32.mrf.mxu2 }
 0x177   : > { %v2755_v38 = vpop.f32.mrf.mxu1 }
 0x178   : > { %v2756_v41 = vadd.f32 %v2755_v38, %v2717_v3  ;;  %v5885_v3 = vor.u32 %v6632_v62, %v5882_v11  ;;  %v6522_v62 = vld [vmem:[#allocation5 + $0x1c4] sm:$0xf] }
 0x17a   : > { %v2794_v50 = vadd.f32 %v2793_v36, %v2756_v41  ;;  %v6234_v36 = vld [vmem:[#allocation5 + $0x81c] sm:$0xf0]  ;;  %v2341_v41 = vpack.c.b16 %v2033_v26, %v2033_v26  ;;  %3192 = vmatpush.bf16.msrb.mxu0 %v5885_v3  ;;  %v6190_v26 = vld [vmem:[#allocation5 + $0x7c4] sm:$0xf0] }
 0x17b   : > { %6408 = vmatmul.msk.bf16.gmra.mxu2 %vm631_vm3, %v7464_v25  ;;  %v2836_v44 = vpop.f32.mrf.mxu3  ;;  %v6237_v60 = vor.u32 %v6720_v32, %v6234_v36 }
 0x17c   : > { %v7550_v34 = vadd.f32 %v2831_v33, %v2794_v50  ;;  %v2719_v31 = vpop.f32.mrf.mxu0  ;;  %v2675_v48 = vsel %vm2664_vm1, %v2341_v41, 0  ;;  %v6621_v50 = vld [vmem:[#allocation5 + $0x4dc] sm:$0xf]  ;;  %v6610_v41 = vld [vmem:[#allocation5 + $0x484] sm:$0xf] }
 0x17d   : > { %3230 = vmatpush.bf16.msrb.mxu1 %v6237_v60  ;;  %3272 = vmatpush.bf16.msrb.mxu2 %v2675_v48  ;;  %v5841_v7 = vor.u32 %v6621_v50, %v5838_v55  ;;  %v5794_v48 = vld [vmem:[#allocation5 + $0x4ac] sm:$0xf0]  ;;  %v6698_v50 = vld [vmem:[#allocation5 + $0x744] sm:$0xf] }
 0x17e   : > { %v2795_v4 = vpop.f32.mrf.mxu2 }
 0x17f   : > { %v2757_v40 = vpop.f32.mrf.mxu1  ;;  %3193 = vmatpush.bf16.msrb.mxu0 %v5841_v7 }
 0x180   : > { %v2758_v1 = vadd.f32 %v2757_v40, %v2719_v31  ;;  %2883 = vmatmul.bf16.gmra.mxu3 %v7501_v21  ;;  %2916 = vmatmul.bf16.gmra.mxu0 %v7490_v53 }
 0x182   : > { %v2796_v14 = vadd.f32 %v2795_v4, %v2758_v1 }
 0x183   : > { %v2838_v43 = vpop.f32.mrf.mxu3 }
 0x184   : > { %2954 = vmatmul.bf16.gmra.mxu1 %v7477_v35  ;;  %v7555_v15 = vadd.f32 %v2833_v46, %v2796_v14  ;;  %v6533_v46 = vld [vmem:[#allocation5 + $0x21c] sm:$0xf] }
 0x185   : > { %v2722_v19 = vpop.f32.mrf.mxu0  ;;  %v5489_v51 = vor.u32 %v6533_v46, %v5486_v56  ;;  %v5797_v56 = vor.u32 %v6610_v41, %v5794_v48  ;;  %v6687_v48 = vld [vmem:[#allocation5 + $0x6ec] sm:$0xf] }
 0x187   : > { %v2760_v33 = vpop.f32.mrf.mxu1  ;;  %3155 = vmatpush.bf16.msrb.mxu3 %v5489_v51  ;;  %v6146_v51 = vld [vmem:[#allocation5 + $0x76c] sm:$0xf0]  ;;  %3194 = vmatpush.bf16.msrb.mxu0 %v5797_v56  ;;  %v6102_v56 = vld [vmem:[#allocation5 + $0x714] sm:$0xf0] }
 0x188   : > { %v2761_v38 = vadd.f32 %v2760_v33, %v2722_v19  ;;  %v6709_v19 = vld [vmem:[#allocation5 + $0x79c] sm:$0xf]  ;;  %v5442_v33 = vld [vmem:[#allocation5 + $0x1ec] sm:$0xf0]  ;;  %v6149_v55 = vor.u32 %v6698_v50, %v6146_v51  ;;  %v6500_v50 = vld [vmem:[#allocation5 + $0x114] sm:$0xf]  ;;  %v6105_v51 = vor.u32 %v6687_v48, %v6102_v56 }
 0x189   : > { %v6193_v32 = vor.u32 %v6709_v19, %v6190_v26  ;;  %v5445_v3 = vor.u32 %v6522_v62, %v5442_v33  ;;  %v6599_v19 = vld [vmem:[#allocation5 + $0x42c] sm:$0xf]  ;;  %v5750_v62 = vld [vmem:[#allocation5 + $0x454] sm:$0xf0] }
 0x18a   : > { %v5753_v33 = vor.u32 %v6599_v19, %v5750_v62  ;;  %v6742_v19 = vld [vmem:[#allocation5 + $0x8a4] sm:$0xf]  ;;  %v6588_v62 = vld [vmem:[#allocation5 + $0x3d4] sm:$0xf] }
 0x18b   : > { %6409 = vmatmul.msk.bf16.gmra.mxu2 %vm631_vm3, %v7483_v42  ;;  %3231 = vmatpush.bf16.msrb.mxu1 %v6193_v32 }
 0x18c   : > { %3156 = vmatpush.bf16.msrb.mxu3 %v5445_v3  ;;  %3195 = vmatpush.bf16.msrb.mxu0 %v5753_v33  ;;  %v5706_v33 = vld [vmem:[#allocation5 + $0x3fc] sm:$0xf0] }
 0x18d   : > { %v2724_v31 = vpop.f32.mrf.mxu0 }
 0x18e   : > { %v2798_v58 = vpop.f32.mrf.mxu2 }
 0x18f   : > { %v2799_v9 = vadd.f32 %v2798_v58, %v2761_v38  ;;  %v2762_v40 = vpop.f32.mrf.mxu1  ;;  %v6366_v38 = vld [vmem:[#allocation5 + $0x924] sm:$0xf0]  ;;  %3232 = vmatpush.bf16.msrb.mxu1 %v6149_v55  ;;  %v5354_v55 = vld [vmem:[#allocation5 + $0x13c] sm:$0xf0] }
 0x190   : > { %3010 = vmatmul.bf16.vlgmr.msra.gmra.mxu3 %v7316_v23  ;;  %2921 = vmatmul.bf16.gmra.mxu0 %v7504_v28  ;;  %v2763_v4 = vadd.f32 %v2762_v40, %v2724_v31 }
 0x191   : > { %v7562_v59 = vadd.f32 %v2836_v44, %v2799_v9  ;;  %v6753_v44 = vld [vmem:[#allocation5 + $0x8fc] sm:$0xf] }
 0x192   : > { %v6369_v60 = vor.u32 %v6753_v44, %v6366_v38 }
 0x193   : > { %v2841_v1 = vpop.f32.mrf.mxu3  ;;  %3233 = vmatpush.bf16.msrb.mxu1 %v6105_v51  ;;  %v6489_v51 = vld [vmem:[#allocation5 + $0xbc] sm:$0xf] }
 0x194   : > { %2959 = vmatmul.bf16.gmra.mxu1 %v7496_v0  ;;  %3273 = vmatpush.bf16.msrb.mxu2 %v6369_v60 }
 0x196   : > { %v2800_v14 = vpop.f32.mrf.mxu2 }
 0x197   : > { %v2801_v11 = vadd.f32 %v2800_v14, %v2763_v4  ;;  %v6511_v4 = vld [vmem:[#allocation5 + $0x16c] sm:$0xf]  ;;  %v5398_v14 = vld [vmem:[#allocation5 + $0x194] sm:$0xf0] }
 0x198   : > { %v5401_v26 = vor.u32 %v6511_v4, %v5398_v14 }
 0x199   : > { %v7566_v36 = vadd.f32 %v2838_v43, %v2801_v11 }
 0x19a   : > { %3157 = vmatpush.bf16.msrb.mxu3 %v5401_v26  ;;  %v6322_v26 = vld [vmem:[#allocation5 + $0x8cc] sm:$0xf0] }
 0x19b   : > { %6410 = vmatmul.msk.bf16.vlgmr.msra.gmra.mxu2 %vm631_vm3, %v7297_v10  ;;  %v2843_v46 = vpop.f32.mrf.mxu3 }
 0x19d   : > { %v2727_v43 = vpop.f32.mrf.mxu0 }
 0x19e   : > { %v2803_v58 = vpop.f32.mrf.mxu2 }
 0x1a0   : > { %3015 = vmatmul.bf16.gmra.mxu3 %v7362_v61  ;;  %3048 = vmatmul.bf16.vlgmr.msra.gmra.mxu0 %v7319_v27 }
 0x1a1   : > { %v2765_v7 = vpop.f32.mrf.mxu1 }
 0x1a2   : > { %v2766_v9 = vadd.f32 %v2765_v7, %v2727_v43 }
 0x1a3   : > { %v2846_v31 = vpop.f32.mrf.mxu3 }
 0x1a4   : > { %v2804_v40 = vadd.f32 %v2803_v58, %v2766_v9  ;;  %3086 = vmatmul.bf16.vlgmr.msra.gmra.mxu1 %v7304_v12 }
 0x1a5   : > { %v2729_v3 = vpop.f32.mrf.mxu0 }
 0x1a6   : > { %v7573_v11 = vadd.f32 %v2841_v1, %v2804_v40  ;;  %v2805_v32 = vpop.f32.mrf.mxu2  ;;  %v5357_v1 = vor.u32 %v6500_v50, %v5354_v55  ;;  %v5310_v55 = vld [vmem:[#allocation5 + $0xe4] sm:$0xf0] }
 0x1a8   : > { %3158 = vmatpush.bf16.msrb.mxu3 %v5357_v1  ;;  %v5313_v1 = vor.u32 %v6489_v51, %v5310_v55 }
 0x1a9   : > { %v2767_v44 = vpop.f32.mrf.mxu1 }
 0x1aa   : > { %v2768_v38 = vadd.f32 %v2767_v44, %v2729_v3  ;;  %v6058_v3 = vld [vmem:[#allocation5 + $0x6bc] sm:$0xf0] }
 0x1ab   : > { %6411 = vmatmul.msk.bf16.gmra.mxu2 %vm631_vm3, %v7326_v39  ;;  %v2848_v41 = vpop.f32.mrf.mxu3 }
 0x1ac   : > { %v2806_v60 = vadd.f32 %v2805_v32, %v2768_v38  ;;  %v6325_v32 = vor.u32 %v6742_v19, %v6322_v26  ;;  %v5709_v41 = vor.u32 %v6588_v62, %v5706_v33  ;;  %3159 = vmatpush.bf16.msrb.mxu3 %v5313_v1  ;;  %v6665_v33 = vld [vmem:[#allocation5 + $0x63c] sm:$0xf] }
 0x1ad   : > { %v2732_v7 = vpop.f32.mrf.mxu0 }
 0x1ae   : > { %v2808_v58 = vpop.f32.mrf.mxu2  ;;  %v7577_v43 = vadd.f32 %v2843_v46, %v2806_v60  ;;  %v6676_v46 = vld [vmem:[#allocation5 + $0x694] sm:$0xf]  ;;  %3274 = vmatpush.bf16.msrb.mxu2 %v6325_v32  ;;  %3196 = vmatpush.bf16.msrb.mxu0 %v5709_v41  ;;  %v5266_v41 = vld [vmem:[#allocation5 + $0x8c] sm:$0xf0] }
 0x1af   : > { %v6061_v60 = vor.u32 %v6676_v46, %v6058_v3  ;;  %v6014_v46 = vld [vmem:[#allocation5 + $0x664] sm:$0xf0]  ;;  %v6478_v3 = vld [vmem:[#allocation5 + $0x64] sm:$0xf] }
 0x1b0   : > { %3020 = vmatmul.bf16.gmra.mxu3 %v7417_v6  ;;  %3053 = vmatmul.bf16.gmra.mxu0 %v7367_v45 }
 0x1b1   : > { %v2770_v9 = vpop.f32.mrf.mxu1  ;;  %3234 = vmatpush.bf16.msrb.mxu1 %v6061_v60 }
 0x1b2   : > { %v2771_v40 = vadd.f32 %v2770_v9, %v2732_v7  ;;  %v5662_v7 = vld [vmem:[#allocation5 + $0x3a4] sm:$0xf0] }
 0x1b3   : > { %v2859_v4 = vpop.f32.mrf.mxu3 }
 0x1b4   : > { %v2809_v14 = vadd.f32 %v2808_v58, %v2771_v40  ;;  %3091 = vmatmul.bf16.gmra.mxu1 %v7346_v52  ;;  %v6577_v58 = vld [vmem:[#allocation5 + $0x37c] sm:$0xf] }
 0x1b5   : > { %v2734_v48 = vpop.f32.mrf.mxu0 }
 0x1b6   : > { %v7582_v44 = vadd.f32 %v2846_v31, %v2809_v14  ;;  %v2810_v38 = vpop.f32.mrf.mxu2  ;;  %v5665_v31 = vor.u32 %v6577_v58, %v5662_v7  ;;  %v5269_v48 = vor.u32 %v6478_v3, %v5266_v41  ;;  %v6731_v7 = vld [vmem:[#allocation5 + $0x84c] sm:$0xf] }
 0x1b7   : > { %v6017_v38 = vor.u32 %v6665_v33, %v6014_v46 }
 0x1b8   : > { %3197 = vmatpush.bf16.msrb.mxu0 %v5665_v31  ;;  %3160 = vmatpush.bf16.msrb.mxu3 %v5269_v48  ;;  %v6566_v31 = vld [vmem:[#allocation5 + $0x324] sm:$0xf] }
 0x1b9   : > { %v2772_v56 = vpop.f32.mrf.mxu1  ;;  %3235 = vmatpush.bf16.msrb.mxu1 %v6017_v38  ;;  %v5222_v38 = vld [vmem:[#allocation5 + $0x34] sm:$0xf0] }
 0x1bb   : > { %6412 = vmatmul.msk.bf16.gmra.mxu2 %vm631_vm3, %v7382_v29  ;;  %v2861_v50 = vpop.f32.mrf.mxu3 }
 0x1bd   : > { %v2897_v40 = vpop.f32.mrf.mxu0 }
 0x1be   : > { %v2973_v9 = vpop.f32.mrf.mxu2  ;;  %v2898_v14 = vadd.f32 %v2897_v40, %v2859_v4 }
 0x1c0   : > { %3025 = vmatmul.bf16.gmra.mxu3 %v7447_v47  ;;  %3058 = vmatmul.bf16.gmra.mxu0 %v7423_v13 }
 0x1c1   : > { %v2935_v19 = vpop.f32.mrf.mxu1 }
 0x1c2   : > { %v2936_v26 = vadd.f32 %v2935_v19, %v2898_v14  ;;  %v5618_v14 = vld [vmem:[#allocation5 + $0x34c] sm:$0xf0]  ;;  %v6654_v19 = vld [vmem:[#allocation5 + $0x5e4] sm:$0xf] }
 0x1c3   : > { %v2864_v62 = vpop.f32.mrf.mxu3  ;;  %v5621_v46 = vor.u32 %v6566_v31, %v5618_v14 }
 0x1c4   : > { %v7588_v32 = vadd.f32 %v2973_v9, %v2936_v26  ;;  %3096 = vmatmul.bf16.gmra.mxu1 %v7402_v57  ;;  %v6278_v9 = vld [vmem:[#allocation5 + $0x874] sm:$0xf0]  ;;  %v5970_v26 = vld [vmem:[#allocation5 + $0x60c] sm:$0xf0] }
 0x1c5   : > { %v2899_v4 = vpop.f32.mrf.mxu0  ;;  %v6281_v40 = vor.u32 %v6731_v7, %v6278_v9  ;;  %v5973_v3 = vor.u32 %v6654_v19, %v5970_v26  ;;  %3198 = vmatpush.bf16.msrb.mxu0 %v5621_v46  ;;  %v6555_v7 = vld [vmem:[#allocation5 + $0x2cc] sm:$0xf]  ;;  %v5574_v9 = vld [vmem:[#allocation5 + $0x2f4] sm:$0xf0] }
 0x1c6   : > { %8598 = vst [vmem:[#allocation19_spill] sm:$0xff] %v7588_v32  ;;  %v2975_v60 = vpop.f32.mrf.mxu2  ;;  %v2900_v56 = vadd.f32 %v2899_v4, %v2861_v50  ;;  %v6467_v50 = vld [vmem:[#allocation5 + $0xc] sm:$0xf]  ;;  %v5577_v31 = vor.u32 %v6555_v7, %v5574_v9 }
 0x1c7   : > { %3275 = vmatpush.bf16.msrb.mxu2 %v6281_v40  ;;  %v5225_v48 = vor.u32 %v6467_v50, %v5222_v38  ;;  %3236 = vmatpush.bf16.msrb.mxu1 %v5973_v3  ;;  %v6643_v50 = vld [vmem:[#allocation5 + $0x58c] sm:$0xf]  ;;  %v5536_v38 = vld [vmem:[#allocation5 + $0x278] sm:$0xf] }
 0x1c9   : > { %v2937_v51 = vpop.f32.mrf.mxu1  ;;  %3161 = vmatpush.bf16.msrb.mxu3 %v5225_v48  ;;  %3199 = vmatpush.bf16.msrb.mxu0 %v5577_v31  ;;  %v6550_v48 = vld [vmem:[#allocation5 + $0x2a0] sm:$0xf0] }
 0x1ca   : > { %v2938_v55 = vadd.f32 %v2937_v51, %v2900_v56 }
 0x1cb   : > { %6413 = vmatmul.msk.bf16.gmra.mxu2 %vm631_vm3, %v7411_v63  ;;  %v2866_v58 = vpop.f32.mrf.mxu3 }
 0x1cc   : > { %v7593_v1 = vadd.f32 %v2975_v60, %v2938_v55 }
 0x1cd   : > { %v2902_v41 = vpop.f32.mrf.mxu0 }
 0x1ce   : > { %8599 = vst [vmem:[#allocation20_spill] sm:$0xff] %v7593_v1  ;;  %v2978_v33 = vpop.f32.mrf.mxu2  ;;  %v2903_v4 = vadd.f32 %v2902_v41, %v2864_v62 }
 0x1d0   : > { %3030 = vmatmul.bf16.gmra.mxu3 %v7486_v49  ;;  %3063 = vmatmul.bf16.gmra.mxu0 %v7452_v54 }
 0x1d1   : > { %v2940_v60 = vpop.f32.mrf.mxu1 }
 0x1d2   : > { %v2941_v56 = vadd.f32 %v2940_v60, %v2903_v4  ;;  %v5537_v60 = vor.u32 %v6550_v48, %v5536_v38 }
 0x1d3   : > { %v2869_v51 = vpop.f32.mrf.mxu3 }
 0x1d4   : > { %v7597_v55 = vadd.f32 %v2978_v33, %v2941_v56  ;;  %3101 = vmatmul.bf16.gmra.mxu1 %v7459_v16  ;;  %v5926_v33 = vld [vmem:[#allocation5 + $0x5b4] sm:$0xf0]  ;;  %3306 = vmatpush.bf16.msra.mxu3 %v5537_v60 }
 0x1d5   : > { %v2904_v14 = vpop.f32.mrf.mxu0  ;;  %v5929_v41 = vor.u32 %v6643_v50, %v5926_v33  ;;  %v6726_v33 = vld [vmem:[#allocation5 + $0x820] sm:$0xf0] }
 0x1d6   : > { %8600 = vst [vmem:[#allocation21_spill] sm:$0xff] %v7597_v55  ;;  %v2980_v40 = vpop.f32.mrf.mxu2  ;;  %v2905_v62 = vadd.f32 %v2904_v14, %v2866_v58  ;;  %v7609_v14 = vld [vmem:[#allocation5 + $0x958] sm:$0xff] }
 0x1d7   : > { %3237 = vmatpush.bf16.msrb.mxu1 %v5929_v41 }
 0x1d9   : > { %v2942_v19 = vpop.f32.mrf.mxu1 }
 0x1da   : > { %v2943_v26 = vadd.f32 %v2942_v19, %v2905_v62  ;;  %v5888_v62 = vld [vmem:[#allocation5 + $0x538] sm:$0xf]  ;;  %v6638_v19 = vld [vmem:[#allocation5 + $0x560] sm:$0xf0] }
 0x1db   : > { %6414 = vmatmul.msk.bf16.gmra.mxu2 %vm631_vm3, %v7464_v25  ;;  %v2871_v46 = vpop.f32.mrf.mxu3  ;;  %v5889_v50 = vor.u32 %v6638_v19, %v5888_v62  ;;  %v5492_v62 = vld [vmem:[#allocation5 + $0x220] sm:$0xf]  ;;  %v6539_v19 = vld [vmem:[#allocation5 + $0x248] sm:$0xf0] }
 0x1dc   : > { %v7602_v3 = vadd.f32 %v2980_v40, %v2943_v26  ;;  %v2034_v26 = vunpack.c.l.b16 %v7609_v14 }
 0x1dd   : > { %v2907_v56 = vpop.f32.mrf.mxu0  ;;  %3344 = vmatpush.bf16.msra.mxu0 %v5889_v50 }
 0x1de   : > { %8601 = vst [vmem:[#allocation22_spill] sm:$0xff] %v7602_v3  ;;  %v2983_v4 = vpop.f32.mrf.mxu2  ;;  %v2908_v7 = vadd.f32 %v2907_v56, %v2869_v51  ;;  %v6240_v51 = vld [vmem:[#allocation5 + $0x7f8] sm:$0xf]  ;;  %v2342_v60 = vpack.c.b16 %v2034_v26, %v2034_v26  ;;  %v5844_v3 = vld [vmem:[#allocation5 + $0x4e0] sm:$0xf] }
 0x1df   : > { %v6241_v41 = vor.u32 %v6726_v33, %v6240_v51  ;;  %v5493_v51 = vor.u32 %v6539_v19, %v5492_v62  ;;  %v6627_v33 = vld [vmem:[#allocation5 + $0x508] sm:$0xf0] }
 0x1e0   : > { %3035 = vmatmul.bf16.gmra.mxu3 %v7501_v21  ;;  %3068 = vmatmul.bf16.gmra.mxu0 %v7490_v53  ;;  %v5845_v50 = vor.u32 %v6627_v33, %v5844_v3  ;;  %v6528_v3 = vld [vmem:[#allocation5 + $0x1f0] sm:$0xf0] }
 0x1e1   : > { %v2945_v58 = vpop.f32.mrf.mxu1  ;;  %3382 = vmatpush.bf16.msra.mxu1 %v6241_v41  ;;  %3307 = vmatpush.bf16.msra.mxu3 %v5493_v51 }
 0x1e2   : > { %v2946_v9 = vadd.f32 %v2945_v58, %v2908_v7  ;;  %v2678_v7 = vsel %vm2664_vm1, %v2342_v60, 0  ;;  %3345 = vmatpush.bf16.msra.mxu0 %v5845_v50 }
 0x1e3   : > { %v2874_v31 = vpop.f32.mrf.mxu3  ;;  %3424 = vmatpush.bf16.msra.mxu2 %v2678_v7  ;;  %v6715_v7 = vld [vmem:[#allocation5 + $0x7c8] sm:$0xf0] }
 0x1e4   : > { %v7606_v40 = vadd.f32 %v2983_v4, %v2946_v9  ;;  %3106 = vmatmul.bf16.gmra.mxu1 %v7477_v35 }
 0x1e5   : > { %v2909_v48 = vpop.f32.mrf.mxu0 }
 0x1e6   : > { %8602 = vst [vmem:[#allocation23_spill] sm:$0xff] %v7606_v40  ;;  %v2985_v38 = vpop.f32.mrf.mxu2  ;;  %v2910_v56 = vadd.f32 %v2909_v48, %v2871_v46 }
 0x1e9   : > { %v2947_v4 = vpop.f32.mrf.mxu1 }
 0x1ea   : > { %v2948_v58 = vadd.f32 %v2947_v4, %v2910_v56  ;;  %v6196_v4 = vld [vmem:[#allocation5 + $0x7a0] sm:$0xf] }
 0x1eb   : > { %6415 = vmatmul.msk.bf16.gmra.mxu2 %vm631_vm3, %v7483_v42  ;;  %v2876_v9 = vpop.f32.mrf.mxu3  ;;  %v6197_v62 = vor.u32 %v6715_v7, %v6196_v4  ;;  %v6152_v4 = vld [vmem:[#allocation5 + $0x748] sm:$0xf]  ;;  %v6704_v7 = vld [vmem:[#allocation5 + $0x770] sm:$0xf0] }
 0x1ec   : > { %v7615_v40 = vadd.f32 %v2985_v38, %v2948_v58  ;;  %v5448_v58 = vld [vmem:[#allocation5 + $0x1c8] sm:$0xf] }
 0x1ed   : > { %v2912_v46 = vpop.f32.mrf.mxu0  ;;  %v5449_v51 = vor.u32 %v6528_v3, %v5448_v58  ;;  %3383 = vmatpush.bf16.msra.mxu1 %v6197_v62  ;;  %v6153_v58 = vor.u32 %v6704_v7, %v6152_v4 }
 0x1ee   : > { %8603 = vst [vmem:[#allocation24_spill] sm:$0xff] %v7615_v40  ;;  %v2988_v26 = vpop.f32.mrf.mxu2  ;;  %v2913_v41 = vadd.f32 %v2912_v46, %v2874_v31  ;;  %v6372_v46 = vld [vmem:[#allocation5 + $0x900] sm:$0xf] }
 0x1ef   : > { %3308 = vmatpush.bf16.msra.mxu3 %v5449_v51 }
 0x1f0   : > { %3162 = vmatmul.bf16.vlgmr.msrb.gmra.mxu3 %v7316_v23  ;;  %3073 = vmatmul.bf16.gmra.mxu0 %v7504_v28 }
 0x1f1   : > { %v2950_v48 = vpop.f32.mrf.mxu1  ;;  %3384 = vmatpush.bf16.msra.mxu1 %v6153_v58 }
 0x1f2   : > { %v2951_v60 = vadd.f32 %v2950_v48, %v2913_v41  ;;  %v6759_v41 = vld [vmem:[#allocation5 + $0x928] sm:$0xf0]  ;;  %v5800_v48 = vld [vmem:[#allocation5 + $0x488] sm:$0xf] }
 0x1f3   : > { %v2879_v56 = vpop.f32.mrf.mxu3 }
 0x1f4   : > { %v7619_v38 = vadd.f32 %v2988_v26, %v2951_v60  ;;  %3111 = vmatmul.bf16.gmra.mxu1 %v7496_v0  ;;  %v6373_v26 = vor.u32 %v6759_v41, %v6372_v46  ;;  %v6616_v60 = vld [vmem:[#allocation5 + $0x4b0] sm:$0xf0]  ;;  %v5756_v46 = vld [vmem:[#allocation5 + $0x430] sm:$0xf] }
 0x1f5   : > { %v2914_v31 = vpop.f32.mrf.mxu0  ;;  %v5801_v32 = vor.u32 %v6616_v60, %v5800_v48 }
 0x1f6   : > { %8604 = vst [vmem:[#allocation25_spill] sm:$0xff] %v7619_v38  ;;  %v2990_v19 = vpop.f32.mrf.mxu2  ;;  %v2915_v33 = vadd.f32 %v2914_v31, %v2876_v9  ;;  %3425 = vmatpush.bf16.msra.mxu2 %v6373_v26 }
 0x1f7   : > { %3346 = vmatpush.bf16.msra.mxu0 %v5801_v32  ;;  %v6605_v32 = vld [vmem:[#allocation5 + $0x458] sm:$0xf0] }
 0x1f8   : > { %v5757_v26 = vor.u32 %v6605_v32, %v5756_v46 }
 0x1f9   : > { %v2952_v50 = vpop.f32.mrf.mxu1 }
 0x1fa   : > { %v2953_v55 = vadd.f32 %v2952_v50, %v2915_v33 }
 0x1fb   : > { %6416 = vmatmul.msk.bf16.vlgmr.msrb.gmra.mxu2 %vm631_vm3, %v7297_v10  ;;  %v2881_v1 = vpop.f32.mrf.mxu3  ;;  %3347 = vmatpush.bf16.msra.mxu0 %v5757_v26 }
 0x1fc   : > { %v7624_v38 = vadd.f32 %v2990_v19, %v2953_v55  ;;  %v5404_v55 = vld [vmem:[#allocation5 + $0x170] sm:$0xf]  ;;  %v6517_v19 = vld [vmem:[#allocation5 + $0x198] sm:$0xf0] }
 0x1fd   : > { %v2917_v62 = vpop.f32.mrf.mxu0  ;;  %v5405_v41 = vor.u32 %v6517_v19, %v5404_v55  ;;  %v6506_v55 = vld [vmem:[#allocation5 + $0x140] sm:$0xf0] }
 0x1fe   : > { %8605 = vst [vmem:[#allocation26_spill] sm:$0xff] %v7624_v38  ;;  %v2993_v9 = vpop.f32.mrf.mxu2  ;;  %v2918_v3 = vadd.f32 %v2917_v62, %v2879_v56  ;;  %v6108_v62 = vld [vmem:[#allocation5 + $0x6f0] sm:$0xf] }
 0x1ff   : > { %3309 = vmatpush.bf16.msra.mxu3 %v5405_v41 }
 0x200   : > { %3167 = vmatmul.bf16.gmra.mxu3 %v7362_v61  ;;  %3200 = vmatmul.bf16.vlgmr.msrb.gmra.mxu0 %v7319_v27 }
 0x201   : > { %v2955_v51 = vpop.f32.mrf.mxu1 }
 0x202   : > { %v2956_v31 = vadd.f32 %v2955_v51, %v2918_v3  ;;  %v6693_v3 = vld [vmem:[#allocation5 + $0x718] sm:$0xf0]  ;;  %v5360_v51 = vld [vmem:[#allocation5 + $0x118] sm:$0xf] }
 0x203   : > { %v2884_v33 = vpop.f32.mrf.mxu3 }
 0x204   : > { %v7628_v50 = vadd.f32 %v2993_v9, %v2956_v31  ;;  %3238 = vmatmul.bf16.vlgmr.msrb.gmra.mxu1 %v7304_v12  ;;  %v6109_v31 = vor.u32 %v6693_v3, %v6108_v62  ;;  %v6064_v62 = vld [vmem:[#allocation5 + $0x698] sm:$0xf]  ;;  %v6682_v3 = vld [vmem:[#allocation5 + $0x6c0] sm:$0xf0] }
 0x205   : > { %v2919_v60 = vpop.f32.mrf.mxu0 }
 0x206   : > { %8606 = vst [vmem:[#allocation27_spill] sm:$0xff] %v7628_v50  ;;  %v2995_v48 = vpop.f32.mrf.mxu2  ;;  %v2920_v56 = vadd.f32 %v2919_v60, %v2881_v1  ;;  %v5361_v50 = vor.u32 %v6506_v55, %v5360_v51  ;;  %3385 = vmatpush.bf16.msra.mxu1 %v6109_v31  ;;  %v6328_v60 = vld [vmem:[#allocation5 + $0x8a8] sm:$0xf]  ;;  %v6065_v31 = vor.u32 %v6682_v3, %v6064_v62 }
 0x208   : > { %3310 = vmatpush.bf16.msra.mxu3 %v5361_v50 }
 0x209   : > { %v2957_v4 = vpop.f32.mrf.mxu1 }
 0x20a   : > { %v2958_v7 = vadd.f32 %v2957_v4, %v2920_v56  ;;  %v6748_v56 = vld [vmem:[#allocation5 + $0x8d0] sm:$0xf0]  ;;  %v5712_v4 = vld [vmem:[#allocation5 + $0x3d8] sm:$0xf]  ;;  %3386 = vmatpush.bf16.msra.mxu1 %v6065_v31  ;;  %v5272_v31 = vld [vmem:[#allocation5 + $0x68] sm:$0xf] }
 0x20b   : > { %6417 = vmatmul.msk.bf16.gmra.mxu2 %vm631_vm3, %v7326_v39  ;;  %v2886_v58 = vpop.f32.mrf.mxu3 }
 0x20c   : > { %v7633_v9 = vadd.f32 %v2995_v48, %v2958_v7  ;;  %v6329_v7 = vor.u32 %v6748_v56, %v6328_v60  ;;  %v6594_v58 = vld [vmem:[#allocation5 + $0x400] sm:$0xf0]  ;;  %v6583_v60 = vld [vmem:[#allocation5 + $0x3a8] sm:$0xf0] }
 0x20d   : > { %v2922_v46 = vpop.f32.mrf.mxu0  ;;  %v5713_v51 = vor.u32 %v6594_v58, %v5712_v4 }
 0x20e   : > { %8607 = vst [vmem:[#allocation28_spill] sm:$0xff] %v7633_v9  ;;  %v2998_v19 = vpop.f32.mrf.mxu2  ;;  %v2923_v41 = vadd.f32 %v2922_v46, %v2884_v33  ;;  %3426 = vmatpush.bf16.msra.mxu2 %v6329_v7  ;;  %v5316_v46 = vld [vmem:[#allocation5 + $0xc0] sm:$0xf] }
 0x20f   : > { %3348 = vmatpush.bf16.msra.mxu0 %v5713_v51  ;;  %v6671_v51 = vld [vmem:[#allocation5 + $0x668] sm:$0xf0] }
 0x210   : > { %3172 = vmatmul.bf16.gmra.mxu3 %v7417_v6  ;;  %3205 = vmatmul.bf16.gmra.mxu0 %v7367_v45 }
 0x211   : > { %v2960_v1 = vpop.f32.mrf.mxu1 }
 0x212   : > { %v2961_v32 = vadd.f32 %v2960_v1, %v2923_v41  ;;  %v6495_v41 = vld [vmem:[#allocation5 + $0xe8] sm:$0xf0]  ;;  %v5668_v1 = vld [vmem:[#allocation5 + $0x380] sm:$0xf] }
 0x213   : > { %v3011_v26 = vpop.f32.mrf.mxu3 }
 0x214   : > { %v7637_v48 = vadd.f32 %v2998_v19, %v2961_v32  ;;  %3243 = vmatmul.bf16.gmra.mxu1 %v7346_v52  ;;  %v5317_v32 = vor.u32 %v6495_v41, %v5316_v46 }
 0x215   : > { %v2924_v55 = vpop.f32.mrf.mxu0 }
 0x216   : > { %8608 = vst [vmem:[#allocation29_spill] sm:$0xff] %v7637_v48  ;;  %v3000_v33 = vpop.f32.mrf.mxu2  ;;  %v5669_v48 = vor.u32 %v6583_v60, %v5668_v1  ;;  %3311 = vmatpush.bf16.msra.mxu3 %v5317_v32 }
 0x217   : > { %v6020_v33 = vld [vmem:[#allocation5 + $0x640] sm:$0xf] }
 0x218   : > { %3349 = vmatpush.bf16.msra.mxu0 %v5669_v48  ;;  %v6021_v55 = vor.u32 %v6671_v51, %v6020_v33  ;;  %v6572_v33 = vld [vmem:[#allocation5 + $0x350] sm:$0xf0]  ;;  %v5976_v51 = vld [vmem:[#allocation5 + $0x5e8] sm:$0xf] }
 0x219   : > { %v2962_v50 = vpop.f32.mrf.mxu1 }
 0x21a   : > { %v6484_v50 = vld [vmem:[#allocation5 + $0x90] sm:$0xf0]  ;;  %3387 = vmatpush.bf16.msra.mxu1 %v6021_v55 }
 0x21b   : > { %6418 = vmatmul.msk.bf16.gmra.mxu2 %vm631_vm3, %v7382_v29  ;;  %v3013_v19 = vpop.f32.mrf.mxu3  ;;  %v5273_v41 = vor.u32 %v6484_v50, %v5272_v31 }
 0x21d   : > { %v3049_v9 = vpop.f32.mrf.mxu0  ;;  %3312 = vmatpush.bf16.msra.mxu3 %v5273_v41  ;;  %v6473_v41 = vld [vmem:[#allocation5 + $0x38] sm:$0xf0] }
 0x21e   : > { %v3125_v56 = vpop.f32.mrf.mxu2  ;;  %v3050_v4 = vadd.f32 %v3049_v9, %v3011_v26 }
 0x220   : > { %3177 = vmatmul.bf16.gmra.mxu3 %v7447_v47  ;;  %3210 = vmatmul.bf16.gmra.mxu0 %v7423_v13 }
 0x221   : > { %v3087_v7 = vpop.f32.mrf.mxu1 }
 0x222   : > { %v3088_v58 = vadd.f32 %v3087_v7, %v3050_v4  ;;  %v6737_v4 = vld [vmem:[#allocation5 + $0x878] sm:$0xf0]  ;;  %v5624_v7 = vld [vmem:[#allocation5 + $0x328] sm:$0xf] }
 0x223   : > { %v3016_v62 = vpop.f32.mrf.mxu3  ;;  %v5625_v50 = vor.u32 %v6572_v33, %v5624_v7  ;;  %v6561_v7 = vld [vmem:[#allocation5 + $0x2f8] sm:$0xf0] }
 0x224   : > { %v7644_v3 = vadd.f32 %v3125_v56, %v3088_v58  ;;  %3248 = vmatmul.bf16.gmra.mxu1 %v7402_v57  ;;  %v6284_v56 = vld [vmem:[#allocation5 + $0x850] sm:$0xf] }
 0x225   : > { %v3051_v9 = vpop.f32.mrf.mxu0  ;;  %v6285_v58 = vor.u32 %v6737_v4, %v6284_v56  ;;  %3350 = vmatpush.bf16.msra.mxu0 %v5625_v50 }
 0x226   : > { %8609 = vst [vmem:[#allocation30_spill] sm:$0xff] %v7644_v3  ;;  %v3127_v46 = vpop.f32.mrf.mxu2  ;;  %v3052_v26 = vadd.f32 %v3051_v9, %v3013_v19  ;;  %v6660_v3 = vld [vmem:[#allocation5 + $0x610] sm:$0xf0]  ;;  %v5228_v19 = vld [vmem:[#allocation5 + $0x10] sm:$0xf] }
 0x227   : > { %v5977_v55 = vor.u32 %v6660_v3, %v5976_v51  ;;  %3427 = vmatpush.bf16.msra.mxu2 %v6285_v58  ;;  %v5580_v3 = vld [vmem:[#allocation5 + $0x2d0] sm:$0xf] }
 0x228   : > { %v5581_v33 = vor.u32 %v6561_v7, %v5580_v3 }
 0x229   : > { %v3089_v48 = vpop.f32.mrf.mxu1  ;;  %3388 = vmatpush.bf16.msra.mxu1 %v5977_v55 }
 0x22a   : > { %v3090_v1 = vadd.f32 %v3089_v48, %v3052_v26  ;;  %v5229_v26 = vor.u32 %v6473_v41, %v5228_v19  ;;  %3351 = vmatpush.bf16.msra.mxu0 %v5581_v33 }
 0x22b   : > { %6419 = vmatmul.msk.bf16.gmra.mxu2 %vm631_vm3, %v7411_v63  ;;  %v3018_v32 = vpop.f32.mrf.mxu3 }
 0x22c   : > { %v7649_v60 = vadd.f32 %v3127_v46, %v3090_v1  ;;  %3313 = vmatpush.bf16.msra.mxu3 %v5229_v26  ;;  %v6545_v26 = vld [vmem:[#allocation5 + $0x27c] sm:$0xf] }
 0x22d   : > { %v3054_v9 = vpop.f32.mrf.mxu0 }
 0x22e   : > { %8610 = vst [vmem:[#allocation31_spill] sm:$0xff] %v7649_v60  ;;  %v3130_v31 = vpop.f32.mrf.mxu2  ;;  %v3055_v48 = vadd.f32 %v3054_v9, %v3016_v62  ;;  %v5932_v9 = vld [vmem:[#allocation5 + $0x590] sm:$0xf] }
 0x230   : > { %3182 = vmatmul.bf16.gmra.mxu3 %v7486_v49  ;;  %3215 = vmatmul.bf16.gmra.mxu0 %v7452_v54 }
 0x231   : > { %v3092_v46 = vpop.f32.mrf.mxu1 }
 0x232   : > { %v3093_v1 = vadd.f32 %v3092_v46, %v3055_v48  ;;  %v5538_v46 = vld [vmem:[#allocation5 + $0x2a4] sm:$0xf0] }
 0x233   : > { %v3021_v56 = vpop.f32.mrf.mxu3 }
 0x234   : > { %v7653_v4 = vadd.f32 %v3130_v31, %v3093_v1  ;;  %3253 = vmatmul.bf16.gmra.mxu1 %v7459_v16  ;;  %v6649_v31 = vld [vmem:[#allocation5 + $0x5b8] sm:$0xf0] }
 0x235   : > { %v3056_v51 = vpop.f32.mrf.mxu0  ;;  %v5933_v48 = vor.u32 %v6649_v31, %v5932_v9  ;;  %v6721_v9 = vld [vmem:[#allocation5 + $0x7fc] sm:$0xf] }
 0x236   : > { %8611 = vst [vmem:[#allocation32_spill] sm:$0xff] %v7653_v4  ;;  %v3132_v58 = vpop.f32.mrf.mxu2  ;;  %v3057_v62 = vadd.f32 %v3056_v51, %v3018_v32  ;;  %v5541_v4 = vor.u32 %v6545_v26, %v5538_v46  ;;  %v6242_v26 = vld [vmem:[#allocation5 + $0x824] sm:$0xf0] }
 0x237   : > { %3389 = vmatpush.bf16.msra.mxu1 %v5933_v48  ;;  %v6245_v46 = vor.u32 %v6721_v9, %v6242_v26  ;;  %v5846_v9 = vld [vmem:[#allocation5 + $0x50c] sm:$0xf0] }
 0x238   : > { %3458 = vmatpush.bf16.msrb.mxu3 %v5541_v4 }
 0x239   : > { %v3094_v19 = vpop.f32.mrf.mxu1 }
 0x23a   : > { %v3095_v50 = vadd.f32 %v3094_v19, %v3057_v62  ;;  %v2035_v62 = vunpack.c.h.b16 %v7609_v14  ;;  %v6633_v19 = vld [vmem:[#allocation5 + $0x53c] sm:$0xf] }
 0x23b   : > { %6420 = vmatmul.msk.bf16.gmra.mxu2 %vm631_vm3, %v7464_v25  ;;  %v3023_v55 = vpop.f32.mrf.mxu3  ;;  %3534 = vmatpush.bf16.msrb.mxu1 %v6245_v46 }
 0x23c   : > { %v7658_v41 = vadd.f32 %v3132_v58, %v3095_v50  ;;  %v5890_v50 = vld [vmem:[#allocation5 + $0x564] sm:$0xf0]  ;;  %v2343_v48 = vpack.c.b16 %v2035_v62, %v2035_v62 }
 0x23d   : > { %v3059_v3 = vpop.f32.mrf.mxu0  ;;  %v5893_v31 = vor.u32 %v6633_v19, %v5890_v50  ;;  %v6534_v19 = vld [vmem:[#allocation5 + $0x224] sm:$0xf]  ;;  %v5494_v50 = vld [vmem:[#allocation5 + $0x24c] sm:$0xf0] }
 0x23e   : > { %8612 = vst [vmem:[#allocation33_spill] sm:$0xff] %v7658_v41  ;;  %v3135_v1 = vpop.f32.mrf.mxu2  ;;  %v3060_v7 = vadd.f32 %v3059_v3, %v3021_v56  ;;  %v5497_v62 = vor.u32 %v6534_v19, %v5494_v50 }
 0x23f   : > { %3496 = vmatpush.bf16.msrb.mxu0 %v5893_v31 }
 0x240   : > { %3187 = vmatmul.bf16.gmra.mxu3 %v7501_v21  ;;  %3220 = vmatmul.bf16.gmra.mxu0 %v7490_v53 }
 0x241   : > { %v3097_v32 = vpop.f32.mrf.mxu1  ;;  %3459 = vmatpush.bf16.msrb.mxu3 %v5497_v62 }
 0x242   : > { %v3098_v33 = vadd.f32 %v3097_v32, %v3060_v7  ;;  %v2681_v7 = vsel %vm2664_vm1, %v2343_v48, 0 }
 0x243   : > { %v3026_v51 = vpop.f32.mrf.mxu3  ;;  %3576 = vmatpush.bf16.msrb.mxu2 %v2681_v7  ;;  %v6710_v7 = vld [vmem:[#allocation5 + $0x7a4] sm:$0xf] }
 0x244   : > { %v7662_v58 = vadd.f32 %v3135_v1, %v3098_v33  ;;  %3258 = vmatmul.bf16.gmra.mxu1 %v7477_v35 }
 0x245   : > { %v3061_v3 = vpop.f32.mrf.mxu0 }
 0x246   : > { %8613 = vst [vmem:[#allocation34_spill] sm:$0xff] %v7662_v58  ;;  %v3137_v56 = vpop.f32.mrf.mxu2  ;;  %v3062_v4 = vadd.f32 %v3061_v3, %v3023_v55  ;;  %v6622_v58 = vld [vmem:[#allocation5 + $0x4e4] sm:$0xf] }
 0x247   : > { %v5849_v31 = vor.u32 %v6622_v58, %v5846_v9  ;;  %v5450_v58 = vld [vmem:[#allocation5 + $0x1f4] sm:$0xf0] }
 0x249   : > { %v3099_v1 = vpop.f32.mrf.mxu1  ;;  %3497 = vmatpush.bf16.msrb.mxu0 %v5849_v31 }
 0x24a   : > { %v3100_v32 = vadd.f32 %v3099_v1, %v3062_v4  ;;  %v6198_v1 = vld [vmem:[#allocation5 + $0x7cc] sm:$0xf0] }
 0x24b   : > { %6421 = vmatmul.msk.bf16.gmra.mxu2 %vm631_vm3, %v7483_v42  ;;  %v3028_v14 = vpop.f32.mrf.mxu3  ;;  %v6201_v19 = vor.u32 %v6710_v7, %v6198_v1  ;;  %v6699_v7 = vld [vmem:[#allocation5 + $0x74c] sm:$0xf]  ;;  %v6154_v1 = vld [vmem:[#allocation5 + $0x774] sm:$0xf0] }
 0x24c   : > { %v7669_v33 = vadd.f32 %v3137_v56, %v3100_v32  ;;  %v6523_v32 = vld [vmem:[#allocation5 + $0x1cc] sm:$0xf] }
 0x24d   : > { %v3064_v55 = vpop.f32.mrf.mxu0  ;;  %v5453_v62 = vor.u32 %v6523_v32, %v5450_v58  ;;  %3535 = vmatpush.bf16.msrb.mxu1 %v6201_v19  ;;  %v6157_v32 = vor.u32 %v6699_v7, %v6154_v1 }
 0x24e   : > { %8614 = vst [vmem:[#allocation35_spill] sm:$0xff] %v7669_v33  ;;  %v3140_v26 = vpop.f32.mrf.mxu2  ;;  %v3065_v48 = vadd.f32 %v3064_v55, %v3026_v51  ;;  %v6754_v55 = vld [vmem:[#allocation5 + $0x904] sm:$0xf] }
 0x24f   : > { %3460 = vmatpush.bf16.msrb.mxu3 %v5453_v62 }
 0x250   : > { %3314 = vmatmul.bf16.vlgmr.msra.gmra.mxu3 %v7316_v23  ;;  %3225 = vmatmul.bf16.gmra.mxu0 %v7504_v28 }
 0x251   : > { %v3102_v46 = vpop.f32.mrf.mxu1  ;;  %3536 = vmatpush.bf16.msrb.mxu1 %v6157_v32 }
 0x252   : > { %v3103_v3 = vadd.f32 %v3102_v46, %v3065_v48  ;;  %v6374_v48 = vld [vmem:[#allocation5 + $0x92c] sm:$0xf0]  ;;  %v6611_v46 = vld [vmem:[#allocation5 + $0x48c] sm:$0xf] }
 0x253   : > { %v3031_v4 = vpop.f32.mrf.mxu3 }
 0x254   : > { %v7673_v56 = vadd.f32 %v3140_v26, %v3103_v3  ;;  %3263 = vmatmul.bf16.gmra.mxu1 %v7496_v0  ;;  %v6377_v26 = vor.u32 %v6754_v55, %v6374_v48  ;;  %v5802_v3 = vld [vmem:[#allocation5 + $0x4b4] sm:$0xf0]  ;;  %v6600_v55 = vld [vmem:[#allocation5 + $0x434] sm:$0xf] }
 0x255   : > { %v3066_v51 = vpop.f32.mrf.mxu0 }
 0x256   : > { %8615 = vst [vmem:[#allocation36_spill] sm:$0xff] %v7673_v56  ;;  %v3142_v50 = vpop.f32.mrf.mxu2  ;;  %v3067_v9 = vadd.f32 %v3066_v51, %v3028_v14  ;;  %v5805_v56 = vor.u32 %v6611_v46, %v5802_v3  ;;  %3577 = vmatpush.bf16.msrb.mxu2 %v6377_v26 }
 0x258   : > { %3498 = vmatpush.bf16.msrb.mxu0 %v5805_v56  ;;  %v5758_v56 = vld [vmem:[#allocation5 + $0x45c] sm:$0xf0] }
 0x259   : > { %v3104_v31 = vpop.f32.mrf.mxu1  ;;  %v5761_v26 = vor.u32 %v6600_v55, %v5758_v56 }
 0x25a   : > { %v3105_v41 = vadd.f32 %v3104_v31, %v3067_v9 }
 0x25b   : > { %6422 = vmatmul.msk.bf16.vlgmr.msra.gmra.mxu2 %vm631_vm3, %v7297_v10  ;;  %v3033_v60 = vpop.f32.mrf.mxu3 }
 0x25c   : > { %v7678_v33 = vadd.f32 %v3142_v50, %v3105_v41  ;;  %v6512_v41 = vld [vmem:[#allocation5 + $0x174] sm:$0xf]  ;;  %v5406_v50 = vld [vmem:[#allocation5 + $0x19c] sm:$0xf0]  ;;  %3499 = vmatpush.bf16.msrb.mxu0 %v5761_v26 }
 0x25d   : > { %v3069_v19 = vpop.f32.mrf.mxu0  ;;  %v5409_v48 = vor.u32 %v6512_v41, %v5406_v50  ;;  %v5362_v41 = vld [vmem:[#allocation5 + $0x144] sm:$0xf0] }
 0x25e   : > { %8616 = vst [vmem:[#allocation37_spill] sm:$0xff] %v7678_v33  ;;  %v3145_v14 = vpop.f32.mrf.mxu2  ;;  %v3070_v58 = vadd.f32 %v3069_v19, %v3031_v4  ;;  %v6688_v19 = vld [vmem:[#allocation5 + $0x6f4] sm:$0xf] }
 0x25f   : > { %3461 = vmatpush.bf16.msrb.mxu3 %v5409_v48 }
 0x260   : > { %3319 = vmatmul.bf16.gmra.mxu3 %v7362_v61  ;;  %3352 = vmatmul.bf16.vlgmr.msra.gmra.mxu0 %v7319_v27 }
 0x261   : > { %v3107_v62 = vpop.f32.mrf.mxu1 }
 0x262   : > { %v3108_v51 = vadd.f32 %v3107_v62, %v3070_v58  ;;  %v6110_v58 = vld [vmem:[#allocation5 + $0x71c] sm:$0xf0]  ;;  %v6501_v62 = vld [vmem:[#allocation5 + $0x11c] sm:$0xf] }
 0x263   : > { %v3036_v9 = vpop.f32.mrf.mxu3 }
 0x264   : > { %v7682_v31 = vadd.f32 %v3145_v14, %v3108_v51  ;;  %3390 = vmatmul.bf16.vlgmr.msra.gmra.mxu1 %v7304_v12  ;;  %v6113_v51 = vor.u32 %v6688_v19, %v6110_v58  ;;  %v6677_v19 = vld [vmem:[#allocation5 + $0x69c] sm:$0xf]  ;;  %v6066_v58 = vld [vmem:[#allocation5 + $0x6c4] sm:$0xf0] }
 0x265   : > { %v3071_v3 = vpop.f32.mrf.mxu0 }
 0x266   : > { %8617 = vst [vmem:[#allocation38_spill] sm:$0xff] %v7682_v31  ;;  %v3147_v46 = vpop.f32.mrf.mxu2  ;;  %v3072_v4 = vadd.f32 %v3071_v3, %v3033_v60  ;;  %v5365_v31 = vor.u32 %v6501_v62, %v5362_v41  ;;  %3537 = vmatpush.bf16.msrb.mxu1 %v6113_v51  ;;  %v6743_v3 = vld [vmem:[#allocation5 + $0x8ac] sm:$0xf]  ;;  %v6069_v51 = vor.u32 %v6677_v19, %v6066_v58 }
 0x268   : > { %3462 = vmatpush.bf16.msrb.mxu3 %v5365_v31 }
 0x269   : > { %v3109_v7 = vpop.f32.mrf.mxu1 }
 0x26a   : > { %v3110_v1 = vadd.f32 %v3109_v7, %v3072_v4  ;;  %v6330_v4 = vld [vmem:[#allocation5 + $0x8d4] sm:$0xf0]  ;;  %v6589_v7 = vld [vmem:[#allocation5 + $0x3dc] sm:$0xf]  ;;  %3538 = vmatpush.bf16.msrb.mxu1 %v6069_v51  ;;  %v6479_v51 = vld [vmem:[#allocation5 + $0x6c] sm:$0xf] }
 0x26b   : > { %6423 = vmatmul.msk.bf16.gmra.mxu2 %vm631_vm3, %v7326_v39  ;;  %v3038_v32 = vpop.f32.mrf.mxu3 }
 0x26c   : > { %v7687_v14 = vadd.f32 %v3147_v46, %v3110_v1  ;;  %v6333_v1 = vor.u32 %v6743_v3, %v6330_v4  ;;  %v5714_v32 = vld [vmem:[#allocation5 + $0x404] sm:$0xf0]  ;;  %v5670_v3 = vld [vmem:[#allocation5 + $0x3ac] sm:$0xf0] }
 0x26d   : > { %v3074_v55 = vpop.f32.mrf.mxu0  ;;  %v5717_v62 = vor.u32 %v6589_v7, %v5714_v32 }
 0x26e   : > { %8618 = vst [vmem:[#allocation39_spill] sm:$0xff] %v7687_v14  ;;  %v3150_v50 = vpop.f32.mrf.mxu2  ;;  %v3075_v48 = vadd.f32 %v3074_v55, %v3036_v9  ;;  %3578 = vmatpush.bf16.msrb.mxu2 %v6333_v1  ;;  %v6490_v55 = vld [vmem:[#allocation5 + $0xc4] sm:$0xf] }
 0x26f   : > { %3500 = vmatpush.bf16.msrb.mxu0 %v5717_v62  ;;  %v6022_v62 = vld [vmem:[#allocation5 + $0x66c] sm:$0xf0] }
 0x270   : > { %3324 = vmatmul.bf16.gmra.mxu3 %v7417_v6  ;;  %3357 = vmatmul.bf16.gmra.mxu0 %v7367_v45 }
 0x271   : > { %v3112_v60 = vpop.f32.mrf.mxu1 }
 0x272   : > { %v3113_v56 = vadd.f32 %v3112_v60, %v3075_v48  ;;  %v5318_v48 = vld [vmem:[#allocation5 + $0xec] sm:$0xf0]  ;;  %v6578_v60 = vld [vmem:[#allocation5 + $0x384] sm:$0xf] }
 0x273   : > { %v3163_v26 = vpop.f32.mrf.mxu3 }
 0x274   : > { %v7691_v46 = vadd.f32 %v3150_v50, %v3113_v56  ;;  %3395 = vmatmul.bf16.gmra.mxu1 %v7346_v52  ;;  %v5321_v56 = vor.u32 %v6490_v55, %v5318_v48 }
 0x275   : > { %v3076_v41 = vpop.f32.mrf.mxu0 }
 0x276   : > { %8619 = vst [vmem:[#allocation40_spill] sm:$0xff] %v7691_v46  ;;  %v3152_v9 = vpop.f32.mrf.mxu2  ;;  %v5673_v46 = vor.u32 %v6578_v60, %v5670_v3  ;;  %3463 = vmatpush.bf16.msrb.mxu3 %v5321_v56 }
 0x277   : > { %v6666_v9 = vld [vmem:[#allocation5 + $0x644] sm:$0xf] }
 0x278   : > { %3501 = vmatpush.bf16.msrb.mxu0 %v5673_v46  ;;  %v6025_v41 = vor.u32 %v6666_v9, %v6022_v62  ;;  %v5626_v9 = vld [vmem:[#allocation5 + $0x354] sm:$0xf0]  ;;  %v6655_v62 = vld [vmem:[#allocation5 + $0x5ec] sm:$0xf] }
 0x279   : > { %v3114_v31 = vpop.f32.mrf.mxu1 }
 0x27a   : > { %v5274_v31 = vld [vmem:[#allocation5 + $0x94] sm:$0xf0]  ;;  %3539 = vmatpush.bf16.msrb.mxu1 %v6025_v41 }
 0x27b   : > { %6424 = vmatmul.msk.bf16.gmra.mxu2 %vm631_vm3, %v7382_v29  ;;  %v3165_v50 = vpop.f32.mrf.mxu3  ;;  %v5277_v48 = vor.u32 %v6479_v51, %v5274_v31 }
 0x27d   : > { %v3201_v14 = vpop.f32.mrf.mxu0  ;;  %3464 = vmatpush.bf16.msrb.mxu3 %v5277_v48  ;;  %v5230_v48 = vld [vmem:[#allocation5 + $0x3c] sm:$0xf0] }
 0x27e   : > { %v3277_v4 = vpop.f32.mrf.mxu2  ;;  %v3202_v7 = vadd.f32 %v3201_v14, %v3163_v26 }
 0x280   : > { %3329 = vmatmul.bf16.gmra.mxu3 %v7447_v47  ;;  %3362 = vmatmul.bf16.gmra.mxu0 %v7423_v13 }
 0x281   : > { %v3239_v1 = vpop.f32.mrf.mxu1 }
 0x282   : > { %v3240_v32 = vadd.f32 %v3239_v1, %v3202_v7  ;;  %v6286_v7 = vld [vmem:[#allocation5 + $0x87c] sm:$0xf0]  ;;  %v6567_v1 = vld [vmem:[#allocation5 + $0x32c] sm:$0xf] }
 0x283   : > { %v3168_v19 = vpop.f32.mrf.mxu3  ;;  %v5629_v31 = vor.u32 %v6567_v1, %v5626_v9  ;;  %v5582_v1 = vld [vmem:[#allocation5 + $0x2fc] sm:$0xf0] }
 0x284   : > { %v7698_v58 = vadd.f32 %v3277_v4, %v3240_v32  ;;  %3400 = vmatmul.bf16.gmra.mxu1 %v7402_v57  ;;  %v6732_v4 = vld [vmem:[#allocation5 + $0x854] sm:$0xf] }
 0x285   : > { %v3203_v14 = vpop.f32.mrf.mxu0  ;;  %v6289_v32 = vor.u32 %v6732_v4, %v6286_v7  ;;  %3502 = vmatpush.bf16.msrb.mxu0 %v5629_v31 }
 0x286   : > { %8620 = vst [vmem:[#allocation41_spill] sm:$0xff] %v7698_v58  ;;  %v3279_v55 = vpop.f32.mrf.mxu2  ;;  %v3204_v26 = vadd.f32 %v3203_v14, %v3165_v50  ;;  %v5978_v58 = vld [vmem:[#allocation5 + $0x614] sm:$0xf0]  ;;  %v6468_v50 = vld [vmem:[#allocation5 + $0x14] sm:$0xf] }
 0x287   : > { %v5981_v41 = vor.u32 %v6655_v62, %v5978_v58  ;;  %3579 = vmatpush.bf16.msrb.mxu2 %v6289_v32  ;;  %v6556_v58 = vld [vmem:[#allocation5 + $0x2d4] sm:$0xf] }
 0x288   : > { %v5585_v9 = vor.u32 %v6556_v58, %v5582_v1 }
 0x289   : > { %v3241_v46 = vpop.f32.mrf.mxu1  ;;  %3540 = vmatpush.bf16.msrb.mxu1 %v5981_v41 }
 0x28a   : > { %v3242_v60 = vadd.f32 %v3241_v46, %v3204_v26  ;;  %v5233_v26 = vor.u32 %v6468_v50, %v5230_v48  ;;  %3503 = vmatpush.bf16.msrb.mxu0 %v5585_v9 }
 0x28b   : > { %6425 = vmatmul.msk.bf16.gmra.mxu2 %vm631_vm3, %v7411_v63  ;;  %v3170_v56 = vpop.f32.mrf.mxu3 }
 0x28c   : > { %v7703_v3 = vadd.f32 %v3279_v55, %v3242_v60  ;;  %3465 = vmatpush.bf16.msrb.mxu3 %v5233_v26  ;;  %v5544_v26 = vld [vmem:[#allocation5 + $0x280] sm:$0xf] }
 0x28d   : > { %v3206_v14 = vpop.f32.mrf.mxu0 }
 0x28e   : > { %8621 = vst [vmem:[#allocation42_spill] sm:$0xff] %v7703_v3  ;;  %v3282_v51 = vpop.f32.mrf.mxu2  ;;  %v3207_v46 = vadd.f32 %v3206_v14, %v3168_v19  ;;  %v6644_v14 = vld [vmem:[#allocation5 + $0x594] sm:$0xf]  ;;  %v5852_v3 = vld [vmem:[#allocation5 + $0x4e8] sm:$0xf] }
 0x290   : > { %3334 = vmatmul.bf16.gmra.mxu3 %v7486_v49  ;;  %3367 = vmatmul.bf16.gmra.mxu0 %v7452_v54 }
 0x291   : > { %v3244_v55 = vpop.f32.mrf.mxu1 }
 0x292   : > { %v3245_v60 = vadd.f32 %v3244_v55, %v3207_v46  ;;  %v6551_v55 = vld [vmem:[#allocation5 + $0x2a8] sm:$0xf0] }
 0x293   : > { %v3173_v4 = vpop.f32.mrf.mxu3 }
 0x294   : > { %v7707_v7 = vadd.f32 %v3282_v51, %v3245_v60  ;;  %3405 = vmatmul.bf16.gmra.mxu1 %v7459_v16  ;;  %v5934_v51 = vld [vmem:[#allocation5 + $0x5bc] sm:$0xf0] }
 0x295   : > { %v3208_v62 = vpop.f32.mrf.mxu0  ;;  %v5937_v46 = vor.u32 %v6644_v14, %v5934_v51 }
 0x296   : > { %8622 = vst [vmem:[#allocation43_spill] sm:$0xff] %v7707_v7  ;;  %v3284_v32 = vpop.f32.mrf.mxu2  ;;  %v3209_v19 = vadd.f32 %v3208_v62, %v3170_v56  ;;  %v5545_v7 = vor.u32 %v6551_v55, %v5544_v26  ;;  %v6727_v26 = vld [vmem:[#allocation5 + $0x828] sm:$0xf0] }
 0x297   : > { %3541 = vmatpush.bf16.msrb.mxu1 %v5937_v46 }
 0x298   : > { %3610 = vmatpush.bf16.msra.mxu3 %v5545_v7 }
 0x299   : > { %v3246_v50 = vpop.f32.mrf.mxu1 }
 0x29a   : > { %v3247_v31 = vadd.f32 %v3246_v50, %v3209_v19  ;;  %v7719_v19 = vld [vmem:[#allocation5 + $0x960] sm:$0xff] }
 0x29b   : > { %6426 = vmatmul.msk.bf16.gmra.mxu2 %vm631_vm3, %v7464_v25  ;;  %v3175_v41 = vpop.f32.mrf.mxu3  ;;  %v5896_v50 = vld [vmem:[#allocation5 + $0x540] sm:$0xf]  ;;  %v2036_v14 = vunpack.c.l.b16 %v7719_v19 }
 0x29c   : > { %v7712_v48 = vadd.f32 %v3284_v32, %v3247_v31  ;;  %v6639_v31 = vld [vmem:[#allocation5 + $0x568] sm:$0xf0] }
 0x29d   : > { %v3211_v58 = vpop.f32.mrf.mxu0  ;;  %v5897_v51 = vor.u32 %v6639_v31, %v5896_v50  ;;  %v5500_v50 = vld [vmem:[#allocation5 + $0x228] sm:$0xf]  ;;  %v6540_v31 = vld [vmem:[#allocation5 + $0x250] sm:$0xf0] }
 0x29e   : > { %8623 = vst [vmem:[#allocation44_spill] sm:$0xff] %v7712_v48  ;;  %v3287_v60 = vpop.f32.mrf.mxu2  ;;  %v3212_v1 = vadd.f32 %v3211_v58, %v3173_v4  ;;  %v6248_v4 = vld [vmem:[#allocation5 + $0x800] sm:$0xf]  ;;  %v2344_v58 = vpack.c.b16 %v2036_v14, %v2036_v14 }
 0x29f   : > { %v6249_v55 = vor.u32 %v6727_v26, %v6248_v4  ;;  %3648 = vmatpush.bf16.msra.mxu0 %v5897_v51  ;;  %v5501_v4 = vor.u32 %v6540_v31, %v5500_v50  ;;  %v6628_v26 = vld [vmem:[#allocation5 + $0x510] sm:$0xf0] }
 0x2a0   : > { %3339 = vmatmul.bf16.gmra.mxu3 %v7501_v21  ;;  %3372 = vmatmul.bf16.gmra.mxu0 %v7490_v53  ;;  %v5853_v51 = vor.u32 %v6628_v26, %v5852_v3  ;;  %v6529_v3 = vld [vmem:[#allocation5 + $0x1f8] sm:$0xf0] }
 0x2a1   : > { %v3249_v56 = vpop.f32.mrf.mxu1  ;;  %3686 = vmatpush.bf16.msra.mxu1 %v6249_v55  ;;  %3611 = vmatpush.bf16.msra.mxu3 %v5501_v4 }
 0x2a2   : > { %v3250_v9 = vadd.f32 %v3249_v56, %v3212_v1  ;;  %v2684_v56 = vsel %vm2664_vm1, %v2344_v58, 0 }
 0x2a3   : > { %v3178_v62 = vpop.f32.mrf.mxu3  ;;  %3728 = vmatpush.bf16.msra.mxu2 %v2684_v56  ;;  %3649 = vmatpush.bf16.msra.mxu0 %v5853_v51  ;;  %v6716_v56 = vld [vmem:[#allocation5 + $0x7d0] sm:$0xf0] }
 0x2a4   : > { %v7716_v32 = vadd.f32 %v3287_v60, %v3250_v9  ;;  %3410 = vmatmul.bf16.gmra.mxu1 %v7477_v35 }
 0x2a5   : > { %v3213_v7 = vpop.f32.mrf.mxu0 }
 0x2a6   : > { %8624 = vst [vmem:[#allocation45_spill] sm:$0xff] %v7716_v32  ;;  %v3289_v46 = vpop.f32.mrf.mxu2  ;;  %v3214_v1 = vadd.f32 %v3213_v7, %v3175_v41 }
 0x2a9   : > { %v3251_v60 = vpop.f32.mrf.mxu1 }
 0x2aa   : > { %v3252_v9 = vadd.f32 %v3251_v60, %v3214_v1  ;;  %v6204_v60 = vld [vmem:[#allocation5 + $0x7a8] sm:$0xf] }
 0x2ab   : > { %6427 = vmatmul.msk.bf16.gmra.mxu2 %vm631_vm3, %v7483_v42  ;;  %v3180_v32 = vpop.f32.mrf.mxu3  ;;  %v6205_v50 = vor.u32 %v6716_v56, %v6204_v60  ;;  %v6160_v60 = vld [vmem:[#allocation5 + $0x750] sm:$0xf]  ;;  %v6705_v56 = vld [vmem:[#allocation5 + $0x778] sm:$0xf0] }
 0x2ac   : > { %v7725_v48 = vadd.f32 %v3289_v46, %v3252_v9  ;;  %v5456_v9 = vld [vmem:[#allocation5 + $0x1d0] sm:$0xf] }
 0x2ad   : > { %v3216_v41 = vpop.f32.mrf.mxu0  ;;  %v5457_v4 = vor.u32 %v6529_v3, %v5456_v9  ;;  %3687 = vmatpush.bf16.msra.mxu1 %v6205_v50  ;;  %v6161_v9 = vor.u32 %v6705_v56, %v6160_v60 }
 0x2ae   : > { %8625 = vst [vmem:[#allocation46_spill] sm:$0xff] %v7725_v48  ;;  %v3292_v14 = vpop.f32.mrf.mxu2  ;;  %v3217_v55 = vadd.f32 %v3216_v41, %v3178_v62  ;;  %v6380_v41 = vld [vmem:[#allocation5 + $0x908] sm:$0xf] }
 0x2af   : > { %3612 = vmatpush.bf16.msra.mxu3 %v5457_v4 }
 0x2b0   : > { %3466 = vmatmul.bf16.vlgmr.msrb.gmra.mxu3 %v7316_v23  ;;  %3377 = vmatmul.bf16.gmra.mxu0 %v7504_v28 }
 0x2b1   : > { %v3254_v7 = vpop.f32.mrf.mxu1  ;;  %3688 = vmatpush.bf16.msra.mxu1 %v6161_v9 }
 0x2b2   : > { %v3255_v58 = vadd.f32 %v3254_v7, %v3217_v55  ;;  %v6760_v55 = vld [vmem:[#allocation5 + $0x930] sm:$0xf0]  ;;  %v5808_v7 = vld [vmem:[#allocation5 + $0x490] sm:$0xf] }
 0x2b3   : > { %v3183_v1 = vpop.f32.mrf.mxu3 }
 0x2b4   : > { %v7729_v46 = vadd.f32 %v3292_v14, %v3255_v58  ;;  %3415 = vmatmul.bf16.gmra.mxu1 %v7496_v0  ;;  %v6381_v14 = vor.u32 %v6760_v55, %v6380_v41  ;;  %v6617_v58 = vld [vmem:[#allocation5 + $0x4b8] sm:$0xf0]  ;;  %v5764_v41 = vld [vmem:[#allocation5 + $0x438] sm:$0xf] }
 0x2b5   : > { %v3218_v62 = vpop.f32.mrf.mxu0  ;;  %v5809_v33 = vor.u32 %v6617_v58, %v5808_v7 }
 0x2b6   : > { %8626 = vst [vmem:[#allocation47_spill] sm:$0xff] %v7729_v46  ;;  %v3294_v31 = vpop.f32.mrf.mxu2  ;;  %v3219_v26 = vadd.f32 %v3218_v62, %v3180_v32  ;;  %3729 = vmatpush.bf16.msra.mxu2 %v6381_v14 }
 0x2b7   : > { %3650 = vmatpush.bf16.msra.mxu0 %v5809_v33  ;;  %v6606_v33 = vld [vmem:[#allocation5 + $0x460] sm:$0xf0] }
 0x2b8   : > { %v5765_v14 = vor.u32 %v6606_v33, %v5764_v41 }
 0x2b9   : > { %v3256_v51 = vpop.f32.mrf.mxu1 }
 0x2ba   : > { %v3257_v48 = vadd.f32 %v3256_v51, %v3219_v26 }
 0x2bb   : > { %6428 = vmatmul.msk.bf16.vlgmr.msrb.gmra.mxu2 %vm631_vm3, %v7297_v10  ;;  %v3185_v46 = vpop.f32.mrf.mxu3  ;;  %3651 = vmatpush.bf16.msra.mxu0 %v5765_v14 }
 0x2bc   : > { %v7734_v38 = vadd.f32 %v3294_v31, %v3257_v48  ;;  %v5412_v48 = vld [vmem:[#allocation5 + $0x178] sm:$0xf]  ;;  %v6518_v31 = vld [vmem:[#allocation5 + $0x1a0] sm:$0xf0] }
 0x2bd   : > { %v3221_v50 = vpop.f32.mrf.mxu0  ;;  %v5413_v55 = vor.u32 %v6518_v31, %v5412_v48  ;;  %v6507_v48 = vld [vmem:[#allocation5 + $0x148] sm:$0xf0] }
 0x2be   : > { %8627 = vst [vmem:[#allocation48_spill] sm:$0xff] %v7734_v38  ;;  %v3297_v32 = vpop.f32.mrf.mxu2  ;;  %v3222_v3 = vadd.f32 %v3221_v50, %v3183_v1  ;;  %v6116_v50 = vld [vmem:[#allocation5 + $0x6f8] sm:$0xf] }
 0x2bf   : > { %3613 = vmatpush.bf16.msra.mxu3 %v5413_v55 }
 0x2c0   : > { %3471 = vmatmul.bf16.gmra.mxu3 %v7362_v61  ;;  %3504 = vmatmul.bf16.vlgmr.msrb.gmra.mxu0 %v7319_v27 }
 0x2c1   : > { %v3259_v4 = vpop.f32.mrf.mxu1 }
 0x2c2   : > { %v3260_v62 = vadd.f32 %v3259_v4, %v3222_v3  ;;  %v6694_v3 = vld [vmem:[#allocation5 + $0x720] sm:$0xf0]  ;;  %v5368_v4 = vld [vmem:[#allocation5 + $0x120] sm:$0xf] }
 0x2c3   : > { %v3188_v26 = vpop.f32.mrf.mxu3 }
 0x2c4   : > { %v7738_v51 = vadd.f32 %v3297_v32, %v3260_v62  ;;  %3542 = vmatmul.bf16.vlgmr.msrb.gmra.mxu1 %v7304_v12  ;;  %v6117_v62 = vor.u32 %v6694_v3, %v6116_v50  ;;  %v6072_v50 = vld [vmem:[#allocation5 + $0x6a0] sm:$0xf]  ;;  %v6683_v3 = vld [vmem:[#allocation5 + $0x6c8] sm:$0xf0] }
 0x2c5   : > { %v3223_v58 = vpop.f32.mrf.mxu0 }
 0x2c6   : > { %8628 = vst [vmem:[#allocation49_spill] sm:$0xff] %v7738_v51  ;;  %v3299_v7 = vpop.f32.mrf.mxu2  ;;  %v3224_v1 = vadd.f32 %v3223_v58, %v3185_v46  ;;  %v5369_v51 = vor.u32 %v6507_v48, %v5368_v4  ;;  %3689 = vmatpush.bf16.msra.mxu1 %v6117_v62  ;;  %v6336_v58 = vld [vmem:[#allocation5 + $0x8b0] sm:$0xf]  ;;  %v6073_v62 = vor.u32 %v6683_v3, %v6072_v50 }
 0x2c8   : > { %3614 = vmatpush.bf16.msra.mxu3 %v5369_v51 }
 0x2c9   : > { %v3261_v60 = vpop.f32.mrf.mxu1 }
 0x2ca   : > { %v3262_v56 = vadd.f32 %v3261_v60, %v3224_v1  ;;  %v6749_v1 = vld [vmem:[#allocation5 + $0x8d8] sm:$0xf0]  ;;  %v5720_v60 = vld [vmem:[#allocation5 + $0x3e0] sm:$0xf]  ;;  %3690 = vmatpush.bf16.msra.mxu1 %v6073_v62  ;;  %v5280_v62 = vld [vmem:[#allocation5 + $0x70] sm:$0xf] }
 0x2cb   : > { %6429 = vmatmul.msk.bf16.gmra.mxu2 %vm631_vm3, %v7326_v39  ;;  %v3190_v9 = vpop.f32.mrf.mxu3 }
 0x2cc   : > { %v7743_v32 = vadd.f32 %v3299_v7, %v3262_v56  ;;  %v6337_v56 = vor.u32 %v6749_v1, %v6336_v58  ;;  %v6595_v9 = vld [vmem:[#allocation5 + $0x408] sm:$0xf0]  ;;  %v6584_v58 = vld [vmem:[#allocation5 + $0x3b0] sm:$0xf0] }
 0x2cd   : > { %v3226_v41 = vpop.f32.mrf.mxu0  ;;  %v5721_v4 = vor.u32 %v6595_v9, %v5720_v60 }
 0x2ce   : > { %8629 = vst [vmem:[#allocation50_spill] sm:$0xff] %v7743_v32  ;;  %v3302_v31 = vpop.f32.mrf.mxu2  ;;  %v3227_v55 = vadd.f32 %v3226_v41, %v3188_v26  ;;  %3730 = vmatpush.bf16.msra.mxu2 %v6337_v56  ;;  %v5324_v41 = vld [vmem:[#allocation5 + $0xc8] sm:$0xf] }
 0x2cf   : > { %3652 = vmatpush.bf16.msra.mxu0 %v5721_v4  ;;  %v6672_v4 = vld [vmem:[#allocation5 + $0x670] sm:$0xf0] }
 0x2d0   : > { %3476 = vmatmul.bf16.gmra.mxu3 %v7417_v6  ;;  %3509 = vmatmul.bf16.gmra.mxu0 %v7367_v45 }
 0x2d1   : > { %v3264_v46 = vpop.f32.mrf.mxu1 }
 0x2d2   : > { %v3265_v33 = vadd.f32 %v3264_v46, %v3227_v55  ;;  %v6496_v55 = vld [vmem:[#allocation5 + $0xf0] sm:$0xf0]  ;;  %v5676_v46 = vld [vmem:[#allocation5 + $0x388] sm:$0xf] }
 0x2d3   : > { %v3315_v14 = vpop.f32.mrf.mxu3 }
 0x2d4   : > { %v7747_v7 = vadd.f32 %v3302_v31, %v3265_v33  ;;  %3547 = vmatmul.bf16.gmra.mxu1 %v7346_v52  ;;  %v5325_v33 = vor.u32 %v6496_v55, %v5324_v41 }
 0x2d5   : > { %v3228_v48 = vpop.f32.mrf.mxu0 }
 0x2d6   : > { %8630 = vst [vmem:[#allocation51_spill] sm:$0xff] %v7747_v7  ;;  %v3304_v26 = vpop.f32.mrf.mxu2  ;;  %v5677_v7 = vor.u32 %v6584_v58, %v5676_v46  ;;  %3615 = vmatpush.bf16.msra.mxu3 %v5325_v33 }
 0x2d7   : > { %v6028_v26 = vld [vmem:[#allocation5 + $0x648] sm:$0xf] }
 0x2d8   : > { %3653 = vmatpush.bf16.msra.mxu0 %v5677_v7  ;;  %v6029_v48 = vor.u32 %v6672_v4, %v6028_v26  ;;  %v6573_v26 = vld [vmem:[#allocation5 + $0x358] sm:$0xf0]  ;;  %v5984_v4 = vld [vmem:[#allocation5 + $0x5f0] sm:$0xf] }
 0x2d9   : > { %v3266_v51 = vpop.f32.mrf.mxu1 }
 0x2da   : > { %v6485_v51 = vld [vmem:[#allocation5 + $0x98] sm:$0xf0]  ;;  %3691 = vmatpush.bf16.msra.mxu1 %v6029_v48 }
 0x2db   : > { %6430 = vmatmul.msk.bf16.gmra.mxu2 %vm631_vm3, %v7382_v29  ;;  %v3317_v31 = vpop.f32.mrf.mxu3  ;;  %v5281_v55 = vor.u32 %v6485_v51, %v5280_v62 }
 0x2dd   : > { %v3353_v32 = vpop.f32.mrf.mxu0  ;;  %3616 = vmatpush.bf16.msra.mxu3 %v5281_v55  ;;  %v6474_v55 = vld [vmem:[#allocation5 + $0x40] sm:$0xf0] }
 0x2de   : > { %v3429_v1 = vpop.f32.mrf.mxu2  ;;  %v3354_v60 = vadd.f32 %v3353_v32, %v3315_v14 }
 0x2e0   : > { %3481 = vmatmul.bf16.gmra.mxu3 %v7447_v47  ;;  %3514 = vmatmul.bf16.gmra.mxu0 %v7423_v13 }
 0x2e1   : > { %v3391_v56 = vpop.f32.mrf.mxu1 }
 0x2e2   : > { %v3392_v9 = vadd.f32 %v3391_v56, %v3354_v60  ;;  %v6738_v60 = vld [vmem:[#allocation5 + $0x880] sm:$0xf0]  ;;  %v5632_v56 = vld [vmem:[#allocation5 + $0x330] sm:$0xf] }
 0x2e3   : > { %v3320_v50 = vpop.f32.mrf.mxu3  ;;  %v5633_v51 = vor.u32 %v6573_v26, %v5632_v56  ;;  %v6562_v56 = vld [vmem:[#allocation5 + $0x300] sm:$0xf0] }
 0x2e4   : > { %v7754_v3 = vadd.f32 %v3429_v1, %v3392_v9  ;;  %3552 = vmatmul.bf16.gmra.mxu1 %v7402_v57  ;;  %v6292_v1 = vld [vmem:[#allocation5 + $0x858] sm:$0xf] }
 0x2e5   : > { %v3355_v32 = vpop.f32.mrf.mxu0  ;;  %v6293_v9 = vor.u32 %v6738_v60, %v6292_v1  ;;  %3654 = vmatpush.bf16.msra.mxu0 %v5633_v51 }
 0x2e6   : > { %8631 = vst [vmem:[#allocation52_spill] sm:$0xff] %v7754_v3  ;;  %v3431_v41 = vpop.f32.mrf.mxu2  ;;  %v3356_v14 = vadd.f32 %v3355_v32, %v3317_v31  ;;  %v6661_v3 = vld [vmem:[#allocation5 + $0x618] sm:$0xf0]  ;;  %v5236_v31 = vld [vmem:[#allocation5 + $0x18] sm:$0xf] }
 0x2e7   : > { %v5985_v48 = vor.u32 %v6661_v3, %v5984_v4  ;;  %3731 = vmatpush.bf16.msra.mxu2 %v6293_v9  ;;  %v5588_v3 = vld [vmem:[#allocation5 + $0x2d8] sm:$0xf] }
 0x2e8   : > { %v5589_v26 = vor.u32 %v6562_v56, %v5588_v3 }
 0x2e9   : > { %v3393_v7 = vpop.f32.mrf.mxu1  ;;  %3692 = vmatpush.bf16.msra.mxu1 %v5985_v48 }
 0x2ea   : > { %v3394_v46 = vadd.f32 %v3393_v7, %v3356_v14  ;;  %v5237_v14 = vor.u32 %v6474_v55, %v5236_v31  ;;  %3655 = vmatpush.bf16.msra.mxu0 %v5589_v26 }
 0x2eb   : > { %6431 = vmatmul.msk.bf16.gmra.mxu2 %vm631_vm3, %v7411_v63  ;;  %v3322_v33 = vpop.f32.mrf.mxu3 }
 0x2ec   : > { %v7759_v58 = vadd.f32 %v3431_v41, %v3394_v46  ;;  %3617 = vmatpush.bf16.msra.mxu3 %v5237_v14  ;;  %v6546_v14 = vld [vmem:[#allocation5 + $0x284] sm:$0xf] }
 0x2ed   : > { %v3358_v32 = vpop.f32.mrf.mxu0 }
 0x2ee   : > { %8632 = vst [vmem:[#allocation53_spill] sm:$0xff] %v7759_v58  ;;  %v3434_v62 = vpop.f32.mrf.mxu2  ;;  %v3359_v7 = vadd.f32 %v3358_v32, %v3320_v50  ;;  %v5940_v32 = vld [vmem:[#allocation5 + $0x598] sm:$0xf] }
 0x2f0   : > { %3486 = vmatmul.bf16.gmra.mxu3 %v7486_v49  ;;  %3519 = vmatmul.bf16.gmra.mxu0 %v7452_v54 }
 0x2f1   : > { %v3396_v41 = vpop.f32.mrf.mxu1 }
 0x2f2   : > { %v3397_v46 = vadd.f32 %v3396_v41, %v3359_v7  ;;  %v5546_v41 = vld [vmem:[#allocation5 + $0x2ac] sm:$0xf0] }
 0x2f3   : > { %v3325_v1 = vpop.f32.mrf.mxu3 }
 0x2f4   : > { %v7763_v60 = vadd.f32 %v3434_v62, %v3397_v46  ;;  %3557 = vmatmul.bf16.gmra.mxu1 %v7459_v16  ;;  %v6650_v62 = vld [vmem:[#allocation5 + $0x5c0] sm:$0xf0] }
 0x2f5   : > { %v3360_v4 = vpop.f32.mrf.mxu0  ;;  %v5941_v7 = vor.u32 %v6650_v62, %v5940_v32  ;;  %v6722_v32 = vld [vmem:[#allocation5 + $0x804] sm:$0xf] }
 0x2f6   : > { %8633 = vst [vmem:[#allocation54_spill] sm:$0xff] %v7763_v60  ;;  %v3436_v9 = vpop.f32.mrf.mxu2  ;;  %v3361_v50 = vadd.f32 %v3360_v4, %v3322_v33  ;;  %v5549_v60 = vor.u32 %v6546_v14, %v5546_v41  ;;  %v6250_v14 = vld [vmem:[#allocation5 + $0x82c] sm:$0xf0] }
 0x2f7   : > { %3693 = vmatpush.bf16.msra.mxu1 %v5941_v7  ;;  %v6253_v41 = vor.u32 %v6722_v32, %v6250_v14  ;;  %v5854_v32 = vld [vmem:[#allocation5 + $0x514] sm:$0xf0] }
 0x2f8   : > { %3762 = vmatpush.bf16.msrb.mxu3 %v5549_v60 }
 0x2f9   : > { %v3398_v31 = vpop.f32.mrf.mxu1 }
 0x2fa   : > { %v3399_v51 = vadd.f32 %v3398_v31, %v3361_v50  ;;  %v2037_v50 = vunpack.c.h.b16 %v7719_v19  ;;  %v6634_v31 = vld [vmem:[#allocation5 + $0x544] sm:$0xf] }
 0x2fb   : > { %6432 = vmatmul.msk.bf16.gmra.mxu2 %vm631_vm3, %v7464_v25  ;;  %v3327_v48 = vpop.f32.mrf.mxu3  ;;  %3838 = vmatpush.bf16.msrb.mxu1 %v6253_v41 }
 0x2fc   : > { %v7768_v55 = vadd.f32 %v3436_v9, %v3399_v51  ;;  %v5898_v51 = vld [vmem:[#allocation5 + $0x56c] sm:$0xf0]  ;;  %v2345_v7 = vpack.c.b16 %v2037_v50, %v2037_v50 }
 0x2fd   : > { %v3363_v3 = vpop.f32.mrf.mxu0  ;;  %v5901_v62 = vor.u32 %v6634_v31, %v5898_v51  ;;  %v6535_v31 = vld [vmem:[#allocation5 + $0x22c] sm:$0xf]  ;;  %v5502_v51 = vld [vmem:[#allocation5 + $0x254] sm:$0xf0] }
 0x2fe   : > { %8634 = vst [vmem:[#allocation55_spill] sm:$0xff] %v7768_v55  ;;  %v3439_v46 = vpop.f32.mrf.mxu2  ;;  %v3364_v56 = vadd.f32 %v3363_v3, %v3325_v1  ;;  %v5505_v50 = vor.u32 %v6535_v31, %v5502_v51 }
 0x2ff   : > { %3800 = vmatpush.bf16.msrb.mxu0 %v5901_v62 }
 0x300   : > { %3491 = vmatmul.bf16.gmra.mxu3 %v7501_v21  ;;  %3524 = vmatmul.bf16.gmra.mxu0 %v7490_v53 }
 0x301   : > { %v3401_v33 = vpop.f32.mrf.mxu1  ;;  %3763 = vmatpush.bf16.msrb.mxu3 %v5505_v50 }
 0x302   : > { %v3402_v26 = vadd.f32 %v3401_v33, %v3364_v56  ;;  %v2687_v56 = vsel %vm2664_vm1, %v2345_v7, 0 }
 0x303   : > { %v3330_v4 = vpop.f32.mrf.mxu3  ;;  %3880 = vmatpush.bf16.msrb.mxu2 %v2687_v56  ;;  %v6711_v56 = vld [vmem:[#allocation5 + $0x7ac] sm:$0xf] }
 0x304   : > { %v7772_v9 = vadd.f32 %v3439_v46, %v3402_v26  ;;  %3562 = vmatmul.bf16.gmra.mxu1 %v7477_v35 }
 0x305   : > { %v3365_v3 = vpop.f32.mrf.mxu0 }
 0x306   : > { %8635 = vst [vmem:[#allocation56_spill] sm:$0xff] %v7772_v9  ;;  %v3441_v1 = vpop.f32.mrf.mxu2  ;;  %v3366_v60 = vadd.f32 %v3365_v3, %v3327_v48  ;;  %v6623_v9 = vld [vmem:[#allocation5 + $0x4ec] sm:$0xf] }
 0x307   : > { %v5857_v62 = vor.u32 %v6623_v9, %v5854_v32  ;;  %v5458_v9 = vld [vmem:[#allocation5 + $0x1fc] sm:$0xf0] }
 0x309   : > { %v3403_v46 = vpop.f32.mrf.mxu1  ;;  %3801 = vmatpush.bf16.msrb.mxu0 %v5857_v62 }
 0x30a   : > { %v3404_v33 = vadd.f32 %v3403_v46, %v3366_v60  ;;  %v6206_v46 = vld [vmem:[#allocation5 + $0x7d4] sm:$0xf0] }
 0x30b   : > { %6433 = vmatmul.msk.bf16.gmra.mxu2 %vm631_vm3, %v7483_v42  ;;  %v3332_v19 = vpop.f32.mrf.mxu3  ;;  %v6209_v31 = vor.u32 %v6711_v56, %v6206_v46  ;;  %v6700_v56 = vld [vmem:[#allocation5 + $0x754] sm:$0xf]  ;;  %v6162_v46 = vld [vmem:[#allocation5 + $0x77c] sm:$0xf0] }
 0x30c   : > { %v7779_v26 = vadd.f32 %v3441_v1, %v3404_v33  ;;  %v6524_v33 = vld [vmem:[#allocation5 + $0x1d4] sm:$0xf] }
 0x30d   : > { %v3368_v48 = vpop.f32.mrf.mxu0  ;;  %v5461_v50 = vor.u32 %v6524_v33, %v5458_v9  ;;  %3839 = vmatpush.bf16.msrb.mxu1 %v6209_v31  ;;  %v6165_v33 = vor.u32 %v6700_v56, %v6162_v46 }
 0x30e   : > { %8636 = vst [vmem:[#allocation57_spill] sm:$0xff] %v7779_v26  ;;  %v3444_v14 = vpop.f32.mrf.mxu2  ;;  %v3369_v7 = vadd.f32 %v3368_v48, %v3330_v4  ;;  %v6755_v48 = vld [vmem:[#allocation5 + $0x90c] sm:$0xf] }
 0x30f   : > { %3764 = vmatpush.bf16.msrb.mxu3 %v5461_v50 }
 0x310   : > { %3618 = vmatmul.bf16.vlgmr.msra.gmra.mxu3 %v7316_v23  ;;  %3529 = vmatmul.bf16.gmra.mxu0 %v7504_v28 }
 0x311   : > { %v3406_v41 = vpop.f32.mrf.mxu1  ;;  %3840 = vmatpush.bf16.msrb.mxu1 %v6165_v33 }
 0x312   : > { %v3407_v3 = vadd.f32 %v3406_v41, %v3369_v7  ;;  %v6382_v7 = vld [vmem:[#allocation5 + $0x934] sm:$0xf0]  ;;  %v6612_v41 = vld [vmem:[#allocation5 + $0x494] sm:$0xf] }
 0x313   : > { %v3335_v60 = vpop.f32.mrf.mxu3 }
 0x314   : > { %v7783_v1 = vadd.f32 %v3444_v14, %v3407_v3  ;;  %3567 = vmatmul.bf16.gmra.mxu1 %v7496_v0  ;;  %v6385_v14 = vor.u32 %v6755_v48, %v6382_v7  ;;  %v5810_v3 = vld [vmem:[#allocation5 + $0x4bc] sm:$0xf0]  ;;  %v6601_v48 = vld [vmem:[#allocation5 + $0x43c] sm:$0xf] }
 0x315   : > { %v3370_v4 = vpop.f32.mrf.mxu0 }
 0x316   : > { %8637 = vst [vmem:[#allocation58_spill] sm:$0xff] %v7783_v1  ;;  %v3446_v51 = vpop.f32.mrf.mxu2  ;;  %v3371_v32 = vadd.f32 %v3370_v4, %v3332_v19  ;;  %v5813_v1 = vor.u32 %v6612_v41, %v5810_v3  ;;  %3881 = vmatpush.bf16.msrb.mxu2 %v6385_v14 }
 0x318   : > { %3802 = vmatpush.bf16.msrb.mxu0 %v5813_v1  ;;  %v5766_v1 = vld [vmem:[#allocation5 + $0x464] sm:$0xf0] }
 0x319   : > { %v3408_v62 = vpop.f32.mrf.mxu1  ;;  %v5769_v14 = vor.u32 %v6601_v48, %v5766_v1 }
 0x31a   : > { %v3409_v55 = vadd.f32 %v3408_v62, %v3371_v32 }
 0x31b   : > { %6434 = vmatmul.msk.bf16.vlgmr.msra.gmra.mxu2 %vm631_vm3, %v7297_v10  ;;  %v3337_v58 = vpop.f32.mrf.mxu3 }
 0x31c   : > { %v7788_v26 = vadd.f32 %v3446_v51, %v3409_v55  ;;  %v6513_v55 = vld [vmem:[#allocation5 + $0x17c] sm:$0xf]  ;;  %v5414_v51 = vld [vmem:[#allocation5 + $0x1a4] sm:$0xf0]  ;;  %3803 = vmatpush.bf16.msrb.mxu0 %v5769_v14 }
 0x31d   : > { %v3373_v31 = vpop.f32.mrf.mxu0  ;;  %v5417_v7 = vor.u32 %v6513_v55, %v5414_v51  ;;  %v5370_v55 = vld [vmem:[#allocation5 + $0x14c] sm:$0xf0] }
 0x31e   : > { %8638 = vst [vmem:[#allocation59_spill] sm:$0xff] %v7788_v26  ;;  %v3449_v19 = vpop.f32.mrf.mxu2  ;;  %v3374_v9 = vadd.f32 %v3373_v31, %v3335_v60  ;;  %v6689_v31 = vld [vmem:[#allocation5 + $0x6fc] sm:$0xf]  ;;  %v5986_v26 = vld [vmem:[#allocation5 + $0x61c] sm:$0xf0] }
 0x31f   : > { %3765 = vmatpush.bf16.msrb.mxu3 %v5417_v7 }
 0x320   : > { %3623 = vmatmul.bf16.gmra.mxu3 %v7362_v61  ;;  %3656 = vmatmul.bf16.vlgmr.msra.gmra.mxu0 %v7319_v27 }
 0x321   : > { %v3411_v50 = vpop.f32.mrf.mxu1 }
 0x322   : > { %v3412_v4 = vadd.f32 %v3411_v50, %v3374_v9  ;;  %v6118_v9 = vld [vmem:[#allocation5 + $0x724] sm:$0xf0]  ;;  %v6502_v50 = vld [vmem:[#allocation5 + $0x124] sm:$0xf] }
 0x323   : > { %v3340_v32 = vpop.f32.mrf.mxu3 }
 0x324   : > { %v7792_v62 = vadd.f32 %v3449_v19, %v3412_v4  ;;  %3694 = vmatmul.bf16.vlgmr.msra.gmra.mxu1 %v7304_v12  ;;  %v6121_v4 = vor.u32 %v6689_v31, %v6118_v9  ;;  %v6678_v31 = vld [vmem:[#allocation5 + $0x6a4] sm:$0xf]  ;;  %v6074_v9 = vld [vmem:[#allocation5 + $0x6cc] sm:$0xf0] }
 0x325   : > { %v3375_v3 = vpop.f32.mrf.mxu0 }
 0x326   : > { %8639 = vst [vmem:[#allocation60_spill] sm:$0xff] %v7792_v62  ;;  %v3451_v41 = vpop.f32.mrf.mxu2  ;;  %v3376_v60 = vadd.f32 %v3375_v3, %v3337_v58  ;;  %v5373_v62 = vor.u32 %v6502_v50, %v5370_v55  ;;  %3841 = vmatpush.bf16.msrb.mxu1 %v6121_v4  ;;  %v6744_v3 = vld [vmem:[#allocation5 + $0x8b4] sm:$0xf]  ;;  %v6077_v4 = vor.u32 %v6678_v31, %v6074_v9 }
 0x328   : > { %3766 = vmatpush.bf16.msrb.mxu3 %v5373_v62 }
 0x329   : > { %v3413_v56 = vpop.f32.mrf.mxu1 }
 0x32a   : > { %v3414_v46 = vadd.f32 %v3413_v56, %v3376_v60  ;;  %v6338_v60 = vld [vmem:[#allocation5 + $0x8dc] sm:$0xf0]  ;;  %v6590_v56 = vld [vmem:[#allocation5 + $0x3e4] sm:$0xf]  ;;  %3842 = vmatpush.bf16.msrb.mxu1 %v6077_v4  ;;  %v6480_v4 = vld [vmem:[#allocation5 + $0x74] sm:$0xf] }
 0x32b   : > { %6435 = vmatmul.msk.bf16.gmra.mxu2 %vm631_vm3, %v7326_v39  ;;  %v3342_v33 = vpop.f32.mrf.mxu3 }
 0x32c   : > { %v7797_v19 = vadd.f32 %v3451_v41, %v3414_v46  ;;  %v6341_v46 = vor.u32 %v6744_v3, %v6338_v60  ;;  %v5722_v33 = vld [vmem:[#allocation5 + $0x40c] sm:$0xf0]  ;;  %v5678_v3 = vld [vmem:[#allocation5 + $0x3b4] sm:$0xf0] }
 0x32d   : > { %v3378_v48 = vpop.f32.mrf.mxu0  ;;  %v5725_v50 = vor.u32 %v6590_v56, %v5722_v33 }
 0x32e   : > { %8640 = vst [vmem:[#allocation61_spill] sm:$0xff] %v7797_v19  ;;  %v3454_v51 = vpop.f32.mrf.mxu2  ;;  %v3379_v7 = vadd.f32 %v3378_v48, %v3340_v32  ;;  %3882 = vmatpush.bf16.msrb.mxu2 %v6341_v46  ;;  %v6491_v48 = vld [vmem:[#allocation5 + $0xcc] sm:$0xf] }
 0x32f   : > { %3804 = vmatpush.bf16.msrb.mxu0 %v5725_v50  ;;  %v6030_v50 = vld [vmem:[#allocation5 + $0x674] sm:$0xf0] }
 0x330   : > { %3628 = vmatmul.bf16.gmra.mxu3 %v7417_v6  ;;  %3661 = vmatmul.bf16.gmra.mxu0 %v7367_v45 }
 0x331   : > { %v3416_v58 = vpop.f32.mrf.mxu1 }
 0x332   : > { %v3417_v1 = vadd.f32 %v3416_v58, %v3379_v7  ;;  %v5326_v7 = vld [vmem:[#allocation5 + $0xf4] sm:$0xf0]  ;;  %v6579_v58 = vld [vmem:[#allocation5 + $0x38c] sm:$0xf] }
 0x333   : > { %v3467_v14 = vpop.f32.mrf.mxu3 }
 0x334   : > { %v7801_v41 = vadd.f32 %v3454_v51, %v3417_v1  ;;  %3699 = vmatmul.bf16.gmra.mxu1 %v7346_v52  ;;  %v5329_v1 = vor.u32 %v6491_v48, %v5326_v7 }
 0x335   : > { %v3380_v55 = vpop.f32.mrf.mxu0 }
 0x336   : > { %8641 = vst [vmem:[#allocation62_spill] sm:$0xff] %v7801_v41  ;;  %v3456_v32 = vpop.f32.mrf.mxu2  ;;  %v5681_v41 = vor.u32 %v6579_v58, %v5678_v3  ;;  %3767 = vmatpush.bf16.msrb.mxu3 %v5329_v1 }
 0x337   : > { %v6667_v32 = vld [vmem:[#allocation5 + $0x64c] sm:$0xf] }
 0x338   : > { %3805 = vmatpush.bf16.msrb.mxu0 %v5681_v41  ;;  %v6033_v55 = vor.u32 %v6667_v32, %v6030_v50  ;;  %v5634_v32 = vld [vmem:[#allocation5 + $0x35c] sm:$0xf0]  ;;  %v6656_v50 = vld [vmem:[#allocation5 + $0x5f4] sm:$0xf] }
 0x339   : > { %v3418_v62 = vpop.f32.mrf.mxu1 }
 0x33a   : > { %v5282_v62 = vld [vmem:[#allocation5 + $0x9c] sm:$0xf0]  ;;  %3843 = vmatpush.bf16.msrb.mxu1 %v6033_v55  ;;  %v5989_v55 = vor.u32 %v6656_v50, %v5986_v26  ;;  %v6557_v26 = vld [vmem:[#allocation5 + $0x2dc] sm:$0xf] }
 0x33b   : > { %6436 = vmatmul.msk.bf16.gmra.mxu2 %vm631_vm3, %v7382_v29  ;;  %v3469_v51 = vpop.f32.mrf.mxu3 }
 0x33d   : > { %v3505_v19 = vpop.f32.mrf.mxu0 }
 0x33e   : > { %v3581_v60 = vpop.f32.mrf.mxu2  ;;  %v3506_v56 = vadd.f32 %v3505_v19, %v3467_v14  ;;  %v5285_v14 = vor.u32 %v6480_v4, %v5282_v62  ;;  %v6469_v62 = vld [vmem:[#allocation5 + $0x1c] sm:$0xf]  ;;  %3844 = vmatpush.bf16.msrb.mxu1 %v5989_v55 }
 0x340   : > { %3633 = vmatmul.bf16.gmra.mxu3 %v7447_v47  ;;  %3666 = vmatmul.bf16.gmra.mxu0 %v7423_v13 }
 0x341   : > { %v3543_v46 = vpop.f32.mrf.mxu1  ;;  %3768 = vmatpush.bf16.msrb.mxu3 %v5285_v14  ;;  %v5238_v14 = vld [vmem:[#allocation5 + $0x44] sm:$0xf0] }
 0x342   : > { %v3544_v33 = vadd.f32 %v3543_v46, %v3506_v56  ;;  %v6294_v56 = vld [vmem:[#allocation5 + $0x884] sm:$0xf0]  ;;  %v6568_v46 = vld [vmem:[#allocation5 + $0x334] sm:$0xf] }
 0x343   : > { %v3472_v31 = vpop.f32.mrf.mxu3  ;;  %v5637_v4 = vor.u32 %v6568_v46, %v5634_v32  ;;  %v5590_v46 = vld [vmem:[#allocation5 + $0x304] sm:$0xf0] }
 0x344   : > { %v7808_v9 = vadd.f32 %v3581_v60, %v3544_v33  ;;  %3704 = vmatmul.bf16.gmra.mxu1 %v7402_v57  ;;  %v6733_v60 = vld [vmem:[#allocation5 + $0x85c] sm:$0xf]  ;;  %v5593_v32 = vor.u32 %v6557_v26, %v5590_v46 }
 0x345   : > { %v3507_v41 = vpop.f32.mrf.mxu0  ;;  %v6297_v33 = vor.u32 %v6733_v60, %v6294_v56  ;;  %3806 = vmatpush.bf16.msrb.mxu0 %v5637_v4 }
 0x346   : > { %8642 = vst [vmem:[#allocation63_spill] sm:$0xff] %v7808_v9  ;;  %4436 = vrot.lane.b32.xlu0 %v7808_v9, %s6972_s21  ;;  %v3583_v19 = vpop.f32.mrf.mxu2  ;;  %v3508_v48 = vadd.f32 %v3507_v41, %v3469_v51  ;;  %v6618_v9 = vld [vmem:[#allocation5 + $0x4c0] sm:$0xf0] }
 0x347   : > { %3883 = vmatpush.bf16.msrb.mxu2 %v6297_v33 }
 0x349   : > { %v3545_v7 = vpop.f32.mrf.mxu1  ;;  %3807 = vmatpush.bf16.msrb.mxu0 %v5593_v32 }
 0x34a   : > { %v3546_v58 = vadd.f32 %v3545_v7, %v3508_v48  ;;  %v5241_v48 = vor.u32 %v6469_v62, %v5238_v14  ;;  %v6645_v14 = vld [vmem:[#allocation5 + $0x59c] sm:$0xf] }
 0x34b   : > { %6437 = vmatmul.msk.bf16.gmra.mxu2 %vm631_vm3, %v7411_v63  ;;  %v3474_v1 = vpop.f32.mrf.mxu3 }
 0x34c   : > { %v7815_v3 = vadd.f32 %v3583_v19, %v3546_v58  ;;  %3769 = vmatpush.bf16.msrb.mxu3 %v5241_v48  ;;  %v5552_v48 = vld [vmem:[#allocation5 + $0x288] sm:$0xf] }
 0x34d   : > { %v3510_v41 = vpop.f32.mrf.mxu0 }
 0x34e   : > { %8643 = vst [vmem:[#allocation64_spill] sm:$0xff] %v7815_v3  ;;  %4448 = vrot.lane.b32.xlu0 %v7815_v3, %s6972_s21  ;;  %v3586_v51 = vpop.f32.mrf.mxu2  ;;  %v3511_v19 = vadd.f32 %v3510_v41, %v3472_v31  ;;  %v5942_v41 = vld [vmem:[#allocation5 + $0x5c4] sm:$0xf0]  ;;  %v5860_v3 = vld [vmem:[#allocation5 + $0x4f0] sm:$0xf] }
 0x350   : > { %3638 = vmatmul.bf16.gmra.mxu3 %v7486_v49  ;;  %3671 = vmatmul.bf16.gmra.mxu0 %v7452_v54 }
 0x351   : > { %v3548_v7 = vpop.f32.mrf.mxu1 }
 0x352   : > { %v3549_v58 = vadd.f32 %v3548_v7, %v3511_v19  ;;  %v5945_v19 = vor.u32 %v6645_v14, %v5942_v41  ;;  %v6552_v7 = vld [vmem:[#allocation5 + $0x2b0] sm:$0xf0] }
 0x353   : > { %v3477_v60 = vpop.f32.mrf.mxu3  ;;  %v5553_v26 = vor.u32 %v6552_v7, %v5552_v48  ;;  %v6640_v14 = vld [vmem:[#allocation5 + $0x570] sm:$0xf0] }
 0x354   : > { %v7821_v56 = vadd.f32 %v3586_v51, %v3549_v58  ;;  %3709 = vmatmul.bf16.gmra.mxu1 %v7459_v16 }
 0x355   : > { %v3512_v33 = vpop.f32.mrf.mxu0  ;;  %3845 = vmatpush.bf16.msrb.mxu1 %v5945_v19  ;;  %3914 = vmatpush.bf16.msra.mxu3 %v5553_v26  ;;  %v6728_v19 = vld [vmem:[#allocation5 + $0x830] sm:$0xf0] }
 0x356   : > { %8644 = vst [vmem:[#allocation65_spill] sm:$0xff] %v7821_v56  ;;  %4460 = vrot.lane.b32.xlu0 %v7821_v56, %s6972_s21  ;;  %v3588_v31 = vpop.f32.mrf.mxu2  ;;  %v3513_v50 = vadd.f32 %v3512_v33, %v3474_v1  ;;  %v5508_v56 = vld [vmem:[#allocation5 + $0x230] sm:$0xf] }
 0x359   : > { %v3550_v4 = vpop.f32.mrf.mxu1 }
 0x35a   : > { %v3551_v55 = vadd.f32 %v3550_v4, %v3513_v50  ;;  %v7837_v4 = vld [vmem:[#allocation5 + $0x968] sm:$0xff] }
 0x35b   : > { %6438 = vmatmul.msk.bf16.gmra.mxu2 %vm631_vm3, %v7464_v25  ;;  %v3479_v62 = vpop.f32.mrf.mxu3  ;;  %v2038_v41 = vunpack.c.l.b16 %v7837_v4 }
 0x35c   : > { %v7828_v51 = vadd.f32 %v3588_v31, %v3551_v55  ;;  %v5904_v55 = vld [vmem:[#allocation5 + $0x548] sm:$0xf] }
 0x35d   : > { %v3515_v46 = vpop.f32.mrf.mxu0  ;;  %v5905_v48 = vor.u32 %v6640_v14, %v5904_v55 }
 0x35e   : > { %8645 = vst [vmem:[#allocation66_spill] sm:$0xff] %v7828_v51  ;;  %4472 = vrot.lane.b32.xlu0 %v7828_v51, %s6972_s21  ;;  %v3591_v58 = vpop.f32.mrf.mxu2  ;;  %v3516_v1 = vadd.f32 %v3515_v46, %v3477_v60  ;;  %v6256_v60 = vld [vmem:[#allocation5 + $0x808] sm:$0xf] }
 0x35f   : > { %v6257_v26 = vor.u32 %v6728_v19, %v6256_v60  ;;  %3952 = vmatpush.bf16.msra.mxu0 %v5905_v48  ;;  %v6629_v19 = vld [vmem:[#allocation5 + $0x518] sm:$0xf0] }
 0x360   : > { %3643 = vmatmul.bf16.gmra.mxu3 %v7501_v21  ;;  %3676 = vmatmul.bf16.gmra.mxu0 %v7490_v53 }
 0x361   : > { %v3553_v32 = vpop.f32.mrf.mxu1  ;;  %3990 = vmatpush.bf16.msra.mxu1 %v6257_v26 }
 0x362   : > { %v3554_v33 = vadd.f32 %v3553_v32, %v3516_v1  ;;  %v2346_v1 = vpack.c.b16 %v2038_v41, %v2038_v41  ;;  %v5861_v41 = vor.u32 %v6629_v19, %v5860_v3  ;;  %v6530_v3 = vld [vmem:[#allocation5 + $0x200] sm:$0xf0] }
 0x363   : > { %v3482_v31 = vpop.f32.mrf.mxu3 }
 0x364   : > { %v7834_v50 = vadd.f32 %v3591_v58, %v3554_v33  ;;  %3714 = vmatmul.bf16.gmra.mxu1 %v7477_v35  ;;  %v2690_v33 = vsel %vm2664_vm1, %v2346_v1, 0  ;;  %3953 = vmatpush.bf16.msra.mxu0 %v5861_v41 }
 0x365   : > { %v3517_v46 = vpop.f32.mrf.mxu0  ;;  %4032 = vmatpush.bf16.msra.mxu2 %v2690_v33 }
 0x366   : > { %8646 = vst [vmem:[#allocation67_spill] sm:$0xff] %v7834_v50  ;;  %4484 = vrot.lane.b32.xlu0 %v7834_v50, %s6972_s21  ;;  %v3593_v7 = vpop.f32.mrf.mxu2  ;;  %v3518_v58 = vadd.f32 %v3517_v46, %v3479_v62  ;;  %v6541_v50 = vld [vmem:[#allocation5 + $0x258] sm:$0xf0] }
 0x367   : > { %v5509_v60 = vor.u32 %v6541_v50, %v5508_v56  ;;  %v6212_v56 = vld [vmem:[#allocation5 + $0x7b0] sm:$0xf]  ;;  %v6717_v50 = vld [vmem:[#allocation5 + $0x7d8] sm:$0xf0] }
 0x369   : > { %v3555_v32 = vpop.f32.mrf.mxu1  ;;  %3915 = vmatpush.bf16.msra.mxu3 %v5509_v60 }
 0x36a   : > { %v3556_v51 = vadd.f32 %v3555_v32, %v3518_v58  ;;  %v5464_v58 = vld [vmem:[#allocation5 + $0x1d8] sm:$0xf]  ;;  %v6213_v32 = vor.u32 %v6717_v50, %v6212_v56 }
 0x36b   : > { %6439 = vmatmul.msk.bf16.gmra.mxu2 %vm631_vm3, %v7483_v42  ;;  %v3484_v55 = vpop.f32.mrf.mxu3  ;;  %v5465_v33 = vor.u32 %v6530_v3, %v5464_v58 }
 0x36c   : > { %v7845_v14 = vadd.f32 %v3593_v7, %v3556_v51  ;;  %3991 = vmatpush.bf16.msra.mxu1 %v6213_v32 }
 0x36d   : > { %v3520_v48 = vpop.f32.mrf.mxu0  ;;  %3916 = vmatpush.bf16.msra.mxu3 %v5465_v33 }
 0x36e   : > { %8647 = vst [vmem:[#allocation68_spill] sm:$0xff] %v7845_v14  ;;  %4496 = vrot.lane.b32.xlu0 %v7845_v14, %s6972_s21  ;;  %v3596_v62 = vpop.f32.mrf.mxu2  ;;  %v3521_v26 = vadd.f32 %v3520_v48, %v3482_v31  ;;  %v6388_v48 = vld [vmem:[#allocation5 + $0x910] sm:$0xf]  ;;  %v6168_v14 = vld [vmem:[#allocation5 + $0x758] sm:$0xf] }
 0x370   : > { %3770 = vmatmul.bf16.vlgmr.msrb.gmra.mxu3 %v7316_v23  ;;  %3681 = vmatmul.bf16.gmra.mxu0 %v7504_v28 }
 0x371   : > { %v3558_v46 = vpop.f32.mrf.mxu1 }
 0x372   : > { %v3559_v1 = vadd.f32 %v3558_v46, %v3521_v26  ;;  %v5816_v26 = vld [vmem:[#allocation5 + $0x498] sm:$0xf] }
 0x373   : > { %v3487_v51 = vpop.f32.mrf.mxu3  ;;  %v5817_v50 = vor.u32 %v6618_v9, %v5816_v26 }
 0x374   : > { %v7851_v7 = vadd.f32 %v3596_v62, %v3559_v1  ;;  %3719 = vmatmul.bf16.gmra.mxu1 %v7496_v0  ;;  %v6761_v62 = vld [vmem:[#allocation5 + $0x938] sm:$0xf0] }
 0x375   : > { %v3522_v60 = vpop.f32.mrf.mxu0  ;;  %v6389_v1 = vor.u32 %v6761_v62, %v6388_v48  ;;  %3954 = vmatpush.bf16.msra.mxu0 %v5817_v50  ;;  %v6607_v48 = vld [vmem:[#allocation5 + $0x468] sm:$0xf0] }
 0x376   : > { %8648 = vst [vmem:[#allocation69_spill] sm:$0xff] %v7851_v7  ;;  %4508 = vrot.lane.b32.xlu0 %v7851_v7, %s6972_s21  ;;  %v3598_v31 = vpop.f32.mrf.mxu2  ;;  %v3523_v19 = vadd.f32 %v3522_v60, %v3484_v55  ;;  %v6706_v7 = vld [vmem:[#allocation5 + $0x780] sm:$0xf0] }
 0x377   : > { %4033 = vmatpush.bf16.msra.mxu2 %v6389_v1  ;;  %v6169_v58 = vor.u32 %v6706_v7, %v6168_v14  ;;  %v5420_v14 = vld [vmem:[#allocation5 + $0x180] sm:$0xf]  ;;  %v6519_v7 = vld [vmem:[#allocation5 + $0x1a8] sm:$0xf0] }
 0x379   : > { %v3560_v41 = vpop.f32.mrf.mxu1  ;;  %3992 = vmatpush.bf16.msra.mxu1 %v6169_v58 }
 0x37a   : > { %v3561_v46 = vadd.f32 %v3560_v41, %v3523_v19  ;;  %v5421_v41 = vor.u32 %v6519_v7, %v5420_v14  ;;  %v6508_v14 = vld [vmem:[#allocation5 + $0x150] sm:$0xf0] }
 0x37b   : > { %6440 = vmatmul.msk.bf16.vlgmr.msrb.gmra.mxu2 %vm631_vm3, %v7297_v10  ;;  %v3489_v56 = vpop.f32.mrf.mxu3 }
 0x37c   : > { %v7858_v38 = vadd.f32 %v3598_v31, %v3561_v46  ;;  %v5772_v31 = vld [vmem:[#allocation5 + $0x440] sm:$0xf]  ;;  %3917 = vmatpush.bf16.msra.mxu3 %v5421_v41 }
 0x37d   : > { %v3525_v32 = vpop.f32.mrf.mxu0  ;;  %v5773_v62 = vor.u32 %v6607_v48, %v5772_v31 }
 0x37e   : > { %8649 = vst [vmem:[#allocation70_spill] sm:$0xff] %v7858_v38  ;;  %4520 = vrot.lane.b32.xlu0 %v7858_v38, %s6972_s21  ;;  %v3601_v55 = vpop.f32.mrf.mxu2  ;;  %v3526_v3 = vadd.f32 %v3525_v32, %v3487_v51  ;;  %v6124_v32 = vld [vmem:[#allocation5 + $0x700] sm:$0xf] }
 0x37f   : > { %3955 = vmatpush.bf16.msra.mxu0 %v5773_v62 }
 0x380   : > { %3775 = vmatmul.bf16.gmra.mxu3 %v7362_v61  ;;  %3808 = vmatmul.bf16.vlgmr.msrb.gmra.mxu0 %v7319_v27 }
 0x381   : > { %v3563_v33 = vpop.f32.mrf.mxu1 }
 0x382   : > { %v3564_v60 = vadd.f32 %v3563_v33, %v3526_v3  ;;  %v6695_v3 = vld [vmem:[#allocation5 + $0x728] sm:$0xf0]  ;;  %v5376_v33 = vld [vmem:[#allocation5 + $0x128] sm:$0xf] }
 0x383   : > { %v3492_v9 = vpop.f32.mrf.mxu3  ;;  %v5377_v31 = vor.u32 %v6508_v14, %v5376_v33  ;;  %v6684_v33 = vld [vmem:[#allocation5 + $0x6d0] sm:$0xf0] }
 0x384   : > { %v7864_v19 = vadd.f32 %v3601_v55, %v3564_v60  ;;  %3846 = vmatmul.bf16.vlgmr.msrb.gmra.mxu1 %v7304_v12  ;;  %v6125_v60 = vor.u32 %v6695_v3, %v6124_v32  ;;  %v6596_v32 = vld [vmem:[#allocation5 + $0x410] sm:$0xf0]  ;;  %v6080_v3 = vld [vmem:[#allocation5 + $0x6a8] sm:$0xf] }
 0x385   : > { %v3527_v26 = vpop.f32.mrf.mxu0  ;;  %3918 = vmatpush.bf16.msra.mxu3 %v5377_v31  ;;  %v6081_v14 = vor.u32 %v6684_v33, %v6080_v3 }
 0x386   : > { %8650 = vst [vmem:[#allocation71_spill] sm:$0xff] %v7864_v19  ;;  %4532 = vrot.lane.b32.xlu0 %v7864_v19, %s6972_s21  ;;  %v3603_v51 = vpop.f32.mrf.mxu2  ;;  %v3528_v46 = vadd.f32 %v3527_v26, %v3489_v56  ;;  %3993 = vmatpush.bf16.msra.mxu1 %v6125_v60 }
 0x389   : > { %v3565_v1 = vpop.f32.mrf.mxu1 }
 0x38a   : > { %v3566_v50 = vadd.f32 %v3565_v1, %v3528_v46  ;;  %v6344_v46 = vld [vmem:[#allocation5 + $0x8b8] sm:$0xf]  ;;  %v6750_v1 = vld [vmem:[#allocation5 + $0x8e0] sm:$0xf0]  ;;  %3994 = vmatpush.bf16.msra.mxu1 %v6081_v14 }
 0x38b   : > { %6441 = vmatmul.msk.bf16.gmra.mxu2 %vm631_vm3, %v7326_v39  ;;  %v3494_v58 = vpop.f32.mrf.mxu3  ;;  %v5288_v14 = vld [vmem:[#allocation5 + $0x78] sm:$0xf] }
 0x38c   : > { %v7871_v55 = vadd.f32 %v3603_v51, %v3566_v50  ;;  %v5728_v50 = vld [vmem:[#allocation5 + $0x3e8] sm:$0xf]  ;;  %v6345_v58 = vor.u32 %v6750_v1, %v6344_v46  ;;  %v6585_v1 = vld [vmem:[#allocation5 + $0x3b8] sm:$0xf0] }
 0x38d   : > { %v3530_v56 = vpop.f32.mrf.mxu0  ;;  %v5729_v60 = vor.u32 %v6596_v32, %v5728_v50 }
 0x38e   : > { %8651 = vst [vmem:[#allocation72_spill] sm:$0xff] %v7871_v55  ;;  %4544 = vrot.lane.b32.xlu0 %v7871_v55, %s6972_s21  ;;  %v3606_v7 = vpop.f32.mrf.mxu2  ;;  %v3531_v41 = vadd.f32 %v3530_v56, %v3492_v9  ;;  %4034 = vmatpush.bf16.msra.mxu2 %v6345_v58 }
 0x38f   : > { %3956 = vmatpush.bf16.msra.mxu0 %v5729_v60  ;;  %v6673_v60 = vld [vmem:[#allocation5 + $0x678] sm:$0xf0] }
 0x390   : > { %3780 = vmatmul.bf16.gmra.mxu3 %v7417_v6  ;;  %3813 = vmatmul.bf16.gmra.mxu0 %v7367_v45 }
 0x391   : > { %v3568_v48 = vpop.f32.mrf.mxu1 }
 0x392   : > { %v3569_v62 = vadd.f32 %v3568_v48, %v3531_v41  ;;  %v5332_v41 = vld [vmem:[#allocation5 + $0xd0] sm:$0xf]  ;;  %v6497_v48 = vld [vmem:[#allocation5 + $0xf8] sm:$0xf0] }
 0x393   : > { %v3619_v51 = vpop.f32.mrf.mxu3  ;;  %v5333_v46 = vor.u32 %v6497_v48, %v5332_v41 }
 0x394   : > { %v7877_v26 = vadd.f32 %v3606_v7, %v3569_v62  ;;  %3851 = vmatmul.bf16.gmra.mxu1 %v7346_v52  ;;  %v5684_v62 = vld [vmem:[#allocation5 + $0x390] sm:$0xf] }
 0x395   : > { %v3532_v31 = vpop.f32.mrf.mxu0  ;;  %v5685_v19 = vor.u32 %v6585_v1, %v5684_v62  ;;  %3919 = vmatpush.bf16.msra.mxu3 %v5333_v46  ;;  %v6300_v1 = vld [vmem:[#allocation5 + $0x860] sm:$0xf] }
 0x396   : > { %8652 = vst [vmem:[#allocation73_spill] sm:$0xff] %v7877_v26  ;;  %4556 = vrot.lane.b32.xlu0 %v7877_v26, %s6972_s21  ;;  %v3608_v9 = vpop.f32.mrf.mxu2 }
 0x397   : > { %3957 = vmatpush.bf16.msra.mxu0 %v5685_v19  ;;  %v6036_v9 = vld [vmem:[#allocation5 + $0x650] sm:$0xf] }
 0x398   : > { %v6037_v31 = vor.u32 %v6673_v60, %v6036_v9  ;;  %v6574_v9 = vld [vmem:[#allocation5 + $0x360] sm:$0xf0]  ;;  %v5992_v60 = vld [vmem:[#allocation5 + $0x5f8] sm:$0xf] }
 0x399   : > { %v3570_v7 = vpop.f32.mrf.mxu1 }
 0x39a   : > { %v6486_v7 = vld [vmem:[#allocation5 + $0xa0] sm:$0xf0]  ;;  %3995 = vmatpush.bf16.msra.mxu1 %v6037_v31 }
 0x39b   : > { %6442 = vmatmul.msk.bf16.gmra.mxu2 %vm631_vm3, %v7382_v29  ;;  %v3621_v56 = vpop.f32.mrf.mxu3 }
 0x39d   : > { %v3657_v26 = vpop.f32.mrf.mxu0 }
 0x39e   : > { %v3733_v55 = vpop.f32.mrf.mxu2  ;;  %v3658_v50 = vadd.f32 %v3657_v26, %v3619_v51  ;;  %v5289_v51 = vor.u32 %v6486_v7, %v5288_v14  ;;  %v5244_v7 = vld [vmem:[#allocation5 + $0x20] sm:$0xf] }
 0x3a0   : > { %3785 = vmatmul.bf16.gmra.mxu3 %v7447_v47  ;;  %3818 = vmatmul.bf16.gmra.mxu0 %v7423_v13 }
 0x3a1   : > { %v3695_v58 = vpop.f32.mrf.mxu1  ;;  %3920 = vmatpush.bf16.msra.mxu3 %v5289_v51  ;;  %v6475_v51 = vld [vmem:[#allocation5 + $0x48] sm:$0xf0] }
 0x3a2   : > { %v3696_v32 = vadd.f32 %v3695_v58, %v3658_v50  ;;  %v6739_v50 = vld [vmem:[#allocation5 + $0x888] sm:$0xf0]  ;;  %v5640_v58 = vld [vmem:[#allocation5 + $0x338] sm:$0xf] }
 0x3a3   : > { %v3624_v3 = vpop.f32.mrf.mxu3  ;;  %v5641_v31 = vor.u32 %v6574_v9, %v5640_v58  ;;  %v6563_v58 = vld [vmem:[#allocation5 + $0x308] sm:$0xf0] }
 0x3a4   : > { %v3734_v33 = vadd.f32 %v3733_v55, %v3696_v32  ;;  %3856 = vmatmul.bf16.gmra.mxu1 %v7402_v57  ;;  %v6301_v32 = vor.u32 %v6739_v50, %v6300_v1  ;;  %v5596_v50 = vld [vmem:[#allocation5 + $0x2e0] sm:$0xf] }
 0x3a5   : > { %v3659_v26 = vpop.f32.mrf.mxu0  ;;  %3958 = vmatpush.bf16.msra.mxu0 %v5641_v31  ;;  %v5597_v9 = vor.u32 %v6563_v58, %v5596_v50 }
 0x3a6   : > { %4438 = vrot.lane.b32.xlu1 %v3734_v33, %s6972_s21  ;;  %v3735_v41 = vpop.f32.mrf.mxu2  ;;  %v3660_v19 = vadd.f32 %v3659_v26, %v3621_v56  ;;  %v6662_v33 = vld [vmem:[#allocation5 + $0x620] sm:$0xf0]  ;;  %4035 = vmatpush.bf16.msra.mxu2 %v6301_v32 }
 0x3a7   : > { %v5993_v56 = vor.u32 %v6662_v33, %v5992_v60 }
 0x3a9   : > { %v3697_v48 = vpop.f32.mrf.mxu1  ;;  %3996 = vmatpush.bf16.msra.mxu1 %v5993_v56  ;;  %3959 = vmatpush.bf16.msra.mxu0 %v5597_v9 }
 0x3aa   : > { %v3698_v62 = vadd.f32 %v3697_v48, %v3660_v19  ;;  %v5245_v19 = vor.u32 %v6475_v51, %v5244_v7  ;;  %v5948_v51 = vld [vmem:[#allocation5 + $0x5a0] sm:$0xf] }
 0x3ab   : > { %6443 = vmatmul.msk.bf16.gmra.mxu2 %vm631_vm3, %v7411_v63  ;;  %v3626_v55 = vpop.f32.mrf.mxu3 }
 0x3ac   : > { %v3736_v46 = vadd.f32 %v3735_v41, %v3698_v62  ;;  %3921 = vmatpush.bf16.msra.mxu3 %v5245_v19 }
 0x3ad   : > { %v3662_v26 = vpop.f32.mrf.mxu0 }
 0x3ae   : > { %4450 = vrot.lane.b32.xlu1 %v3736_v46, %s6972_s21  ;;  %v3738_v14 = vpop.f32.mrf.mxu2  ;;  %v3663_v48 = vadd.f32 %v3662_v26, %v3624_v3  ;;  %v6547_v26 = vld [vmem:[#allocation5 + $0x28c] sm:$0xf] }
 0x3b0   : > { %3790 = vmatmul.bf16.gmra.mxu3 %v7486_v49  ;;  %3823 = vmatmul.bf16.gmra.mxu0 %v7452_v54 }
 0x3b1   : > { %v3700_v41 = vpop.f32.mrf.mxu1 }
 0x3b2   : > { %v3701_v62 = vadd.f32 %v3700_v41, %v3663_v48  ;;  %v5554_v48 = vld [vmem:[#allocation5 + $0x2b4] sm:$0xf0] }
 0x3b3   : > { %v3629_v1 = vpop.f32.mrf.mxu3 }
 0x3b4   : > { %v3739_v46 = vadd.f32 %v3738_v14, %v3701_v62  ;;  %3861 = vmatmul.bf16.gmra.mxu1 %v7459_v16  ;;  %v6651_v14 = vld [vmem:[#allocation5 + $0x5c8] sm:$0xf0]  ;;  %v5557_v62 = vor.u32 %v6547_v26, %v5554_v48 }
 0x3b5   : > { %v3664_v3 = vpop.f32.mrf.mxu0  ;;  %v5949_v19 = vor.u32 %v6651_v14, %v5948_v51  ;;  %v6258_v51 = vld [vmem:[#allocation5 + $0x834] sm:$0xf0] }
 0x3b6   : > { %4462 = vrot.lane.b32.xlu1 %v3739_v46, %s6972_s21  ;;  %v3740_v32 = vpop.f32.mrf.mxu2  ;;  %v3665_v60 = vadd.f32 %v3664_v3, %v3626_v55  ;;  %4066 = vmatpush.bf16.msrb.mxu3 %v5557_v62  ;;  %v2039_v3 = vunpack.c.h.b16 %v7837_v4 }
 0x3b7   : > { %3997 = vmatpush.bf16.msra.mxu1 %v5949_v19 }
 0x3b8   : > { %v2347_v14 = vpack.c.b16 %v2039_v3, %v2039_v3  ;;  %v5862_v3 = vld [vmem:[#allocation5 + $0x51c] sm:$0xf0] }
 0x3b9   : > { %v3702_v33 = vpop.f32.mrf.mxu1 }
 0x3ba   : > { %v3703_v31 = vadd.f32 %v3702_v33, %v3665_v60  ;;  %v6635_v60 = vld [vmem:[#allocation5 + $0x54c] sm:$0xf]  ;;  %v5906_v33 = vld [vmem:[#allocation5 + $0x574] sm:$0xf0]  ;;  %v2693_v62 = vsel %vm2664_vm1, %v2347_v14, 0 }
 0x3bb   : > { %6444 = vmatmul.msk.bf16.gmra.mxu2 %vm631_vm3, %v7464_v25  ;;  %v3631_v56 = vpop.f32.mrf.mxu3 }
 0x3bc   : > { %v3741_v7 = vadd.f32 %v3740_v32, %v3703_v31  ;;  %v6723_v31 = vld [vmem:[#allocation5 + $0x80c] sm:$0xf]  ;;  %4184 = vmatpush.bf16.msrb.mxu2 %v2693_v62  ;;  %v6525_v62 = vld [vmem:[#allocation5 + $0x1dc] sm:$0xf] }
 0x3bd   : > { %v3667_v46 = vpop.f32.mrf.mxu0  ;;  %v6261_v26 = vor.u32 %v6723_v31, %v6258_v51 }
 0x3be   : > { %4474 = vrot.lane.b32.xlu1 %v3741_v7, %s6972_s21  ;;  %v3743_v41 = vpop.f32.mrf.mxu2  ;;  %v3668_v50 = vadd.f32 %v3667_v46, %v3629_v1  ;;  %v5909_v7 = vor.u32 %v6635_v60, %v5906_v33 }
 0x3bf   : > { %4142 = vmatpush.bf16.msrb.mxu1 %v6261_v26 }
 0x3c0   : > { %3795 = vmatmul.bf16.gmra.mxu3 %v7501_v21  ;;  %3828 = vmatmul.bf16.gmra.mxu0 %v7490_v53 }
 0x3c1   : > { %v3705_v55 = vpop.f32.mrf.mxu1  ;;  %4104 = vmatpush.bf16.msrb.mxu0 %v5909_v7 }
 0x3c2   : > { %v3706_v58 = vadd.f32 %v3705_v55, %v3668_v50  ;;  %v6536_v55 = vld [vmem:[#allocation5 + $0x234] sm:$0xf] }
 0x3c3   : > { %v3634_v9 = vpop.f32.mrf.mxu3 }
 0x3c4   : > { %v3744_v32 = vadd.f32 %v3743_v41, %v3706_v58  ;;  %3866 = vmatmul.bf16.gmra.mxu1 %v7477_v35  ;;  %v5510_v58 = vld [vmem:[#allocation5 + $0x25c] sm:$0xf0] }
 0x3c5   : > { %v3669_v19 = vpop.f32.mrf.mxu0  ;;  %v5513_v60 = vor.u32 %v6536_v55, %v5510_v58 }
 0x3c6   : > { %4486 = vrot.lane.b32.xlu1 %v3744_v32, %s6972_s21  ;;  %v3745_v1 = vpop.f32.mrf.mxu2  ;;  %v3670_v48 = vadd.f32 %v3669_v19, %v3631_v56  ;;  %v6624_v32 = vld [vmem:[#allocation5 + $0x4f4] sm:$0xf] }
 0x3c7   : > { %v5865_v56 = vor.u32 %v6624_v32, %v5862_v3  ;;  %4067 = vmatpush.bf16.msrb.mxu3 %v5513_v60  ;;  %v6712_v19 = vld [vmem:[#allocation5 + $0x7b4] sm:$0xf]  ;;  %v6390_v3 = vld [vmem:[#allocation5 + $0x93c] sm:$0xf0] }
 0x3c8   : > { %v6756_v60 = vld [vmem:[#allocation5 + $0x914] sm:$0xf] }
 0x3c9   : > { %v3707_v41 = vpop.f32.mrf.mxu1  ;;  %4105 = vmatpush.bf16.msrb.mxu0 %v5865_v56  ;;  %v6613_v56 = vld [vmem:[#allocation5 + $0x49c] sm:$0xf] }
 0x3ca   : > { %v3708_v46 = vadd.f32 %v3707_v41, %v3670_v48  ;;  %v6214_v48 = vld [vmem:[#allocation5 + $0x7dc] sm:$0xf0] }
 0x3cb   : > { %6445 = vmatmul.msk.bf16.gmra.mxu2 %vm631_vm3, %v7483_v42  ;;  %v3636_v4 = vpop.f32.mrf.mxu3  ;;  %v6217_v41 = vor.u32 %v6712_v19, %v6214_v48  ;;  %v6701_v19 = vld [vmem:[#allocation5 + $0x75c] sm:$0xf] }
 0x3cc   : > { %v3746_v50 = vadd.f32 %v3745_v1, %v3708_v46  ;;  %v5466_v46 = vld [vmem:[#allocation5 + $0x204] sm:$0xf0] }
 0x3cd   : > { %v3672_v31 = vpop.f32.mrf.mxu0  ;;  %4143 = vmatpush.bf16.msrb.mxu1 %v6217_v41 }
 0x3ce   : > { %4498 = vrot.lane.b32.xlu1 %v3746_v50, %s6972_s21  ;;  %v3748_v33 = vpop.f32.mrf.mxu2  ;;  %v3673_v7 = vadd.f32 %v3672_v31, %v3634_v9  ;;  %v5469_v9 = vor.u32 %v6525_v62, %v5466_v46  ;;  %v6393_v31 = vor.u32 %v6756_v60, %v6390_v3  ;;  %v5422_v60 = vld [vmem:[#allocation5 + $0x1ac] sm:$0xf0]  ;;  %v6602_v3 = vld [vmem:[#allocation5 + $0x444] sm:$0xf] }
 0x3d0   : > { %3922 = vmatmul.bf16.vlgmr.msra.gmra.mxu3 %v7316_v23  ;;  %3833 = vmatmul.bf16.gmra.mxu0 %v7504_v28 }
 0x3d1   : > { %v3710_v51 = vpop.f32.mrf.mxu1  ;;  %4068 = vmatpush.bf16.msrb.mxu3 %v5469_v9  ;;  %4185 = vmatpush.bf16.msrb.mxu2 %v6393_v31 }
 0x3d2   : > { %v3711_v14 = vadd.f32 %v3710_v51, %v3673_v7  ;;  %v5818_v7 = vld [vmem:[#allocation5 + $0x4c4] sm:$0xf0] }
 0x3d3   : > { %v3639_v1 = vpop.f32.mrf.mxu3 }
 0x3d4   : > { %v3749_v26 = vadd.f32 %v3748_v33, %v3711_v14  ;;  %3871 = vmatmul.bf16.gmra.mxu1 %v7496_v0  ;;  %v5821_v14 = vor.u32 %v6613_v56, %v5818_v7 }
 0x3d5   : > { %v3674_v55 = vpop.f32.mrf.mxu0 }
 0x3d6   : > { %4510 = vrot.lane.b32.xlu1 %v3749_v26, %s6972_s21  ;;  %v3750_v50 = vpop.f32.mrf.mxu2  ;;  %v3675_v58 = vadd.f32 %v3674_v55, %v3636_v4  ;;  %v6170_v26 = vld [vmem:[#allocation5 + $0x784] sm:$0xf0]  ;;  %4106 = vmatpush.bf16.msrb.mxu0 %v5821_v14 }
 0x3d7   : > { %v6173_v62 = vor.u32 %v6701_v19, %v6170_v26 }
 0x3d9   : > { %v3712_v32 = vpop.f32.mrf.mxu1  ;;  %4144 = vmatpush.bf16.msrb.mxu1 %v6173_v62 }
 0x3da   : > { %v3713_v33 = vadd.f32 %v3712_v32, %v3675_v58 }
 0x3db   : > { %6446 = vmatmul.msk.bf16.vlgmr.msra.gmra.mxu2 %vm631_vm3, %v7297_v10  ;;  %v3641_v51 = vpop.f32.mrf.mxu3 }
 0x3dc   : > { %v3751_v48 = vadd.f32 %v3750_v50, %v3713_v33  ;;  %v6514_v50 = vld [vmem:[#allocation5 + $0x184] sm:$0xf]  ;;  %v5774_v33 = vld [vmem:[#allocation5 + $0x46c] sm:$0xf0] }
 0x3dd   : > { %v3677_v41 = vpop.f32.mrf.mxu0  ;;  %v5425_v56 = vor.u32 %v6514_v50, %v5422_v60  ;;  %v5777_v7 = vor.u32 %v6602_v3, %v5774_v33 }
 0x3de   : > { %4522 = vrot.lane.b32.xlu1 %v3751_v48, %s6972_s21  ;;  %v3753_v4 = vpop.f32.mrf.mxu2  ;;  %v3678_v46 = vadd.f32 %v3677_v41, %v3639_v1  ;;  %v6126_v41 = vld [vmem:[#allocation5 + $0x72c] sm:$0xf0] }
 0x3df   : > { %4069 = vmatpush.bf16.msrb.mxu3 %v5425_v56  ;;  %4107 = vmatpush.bf16.msrb.mxu0 %v5777_v7  ;;  %v6745_v7 = vld [vmem:[#allocation5 + $0x8bc] sm:$0xf] }
 0x3e0   : > { %3927 = vmatmul.bf16.gmra.mxu3 %v7362_v61  ;;  %3960 = vmatmul.bf16.vlgmr.msra.gmra.mxu0 %v7319_v27 }
 0x3e1   : > { %v3715_v9 = vpop.f32.mrf.mxu1 }
 0x3e2   : > { %v3716_v55 = vadd.f32 %v3715_v9, %v3678_v46  ;;  %v6503_v46 = vld [vmem:[#allocation5 + $0x12c] sm:$0xf] }
 0x3e3   : > { %v3644_v58 = vpop.f32.mrf.mxu3 }
 0x3e4   : > { %v3754_v32 = vadd.f32 %v3753_v4, %v3716_v55  ;;  %3998 = vmatmul.bf16.vlgmr.msra.gmra.mxu1 %v7304_v12  ;;  %v6690_v4 = vld [vmem:[#allocation5 + $0x704] sm:$0xf]  ;;  %v5378_v55 = vld [vmem:[#allocation5 + $0x154] sm:$0xf0] }
 0x3e5   : > { %v3679_v1 = vpop.f32.mrf.mxu0  ;;  %v6129_v9 = vor.u32 %v6690_v4, %v6126_v41  ;;  %v5381_v50 = vor.u32 %v6503_v46, %v5378_v55 }
 0x3e6   : > { %4534 = vrot.lane.b32.xlu1 %v3754_v32, %s6972_s21  ;;  %v3755_v31 = vpop.f32.mrf.mxu2  ;;  %v3680_v14 = vadd.f32 %v3679_v1, %v3641_v51  ;;  %v6346_v1 = vld [vmem:[#allocation5 + $0x8e4] sm:$0xf0] }
 0x3e7   : > { %4145 = vmatpush.bf16.msrb.mxu1 %v6129_v9  ;;  %4070 = vmatpush.bf16.msrb.mxu3 %v5381_v50  ;;  %v5334_v50 = vld [vmem:[#allocation5 + $0xfc] sm:$0xf0] }
 0x3e9   : > { %v3717_v19 = vpop.f32.mrf.mxu1 }
 0x3ea   : > { %v3718_v26 = vadd.f32 %v3717_v19, %v3680_v14  ;;  %v6591_v14 = vld [vmem:[#allocation5 + $0x3ec] sm:$0xf]  ;;  %v6349_v19 = vor.u32 %v6745_v7, %v6346_v1 }
 0x3eb   : > { %6447 = vmatmul.msk.bf16.gmra.mxu2 %vm631_vm3, %v7326_v39  ;;  %v3646_v48 = vpop.f32.mrf.mxu3 }
 0x3ec   : > { %v3756_v62 = vadd.f32 %v3755_v31, %v3718_v26  ;;  %v5730_v26 = vld [vmem:[#allocation5 + $0x414] sm:$0xf0]  ;;  %v6679_v48 = vld [vmem:[#allocation5 + $0x6ac] sm:$0xf]  ;;  %4186 = vmatpush.bf16.msrb.mxu2 %v6349_v19 }
 0x3ed   : > { %v3682_v60 = vpop.f32.mrf.mxu0  ;;  %v5733_v4 = vor.u32 %v6591_v14, %v5730_v26  ;;  %v7929_v26 = vpop.permute.xlu0 %4436 }
 0x3ee   : > { %4546 = vrot.lane.b32.xlu1 %v3756_v62, %s6972_s21  ;;  %v3758_v32 = vpop.f32.mrf.mxu2  ;;  %v3683_v51 = vadd.f32 %v3682_v60, %v3644_v58  ;;  %v6082_v62 = vld [vmem:[#allocation5 + $0x6d4] sm:$0xf0]  ;;  %v6580_v60 = vld [vmem:[#allocation5 + $0x394] sm:$0xf] }
 0x3ef   : > { %v6085_v41 = vor.u32 %v6679_v48, %v6082_v62  ;;  %4108 = vmatpush.bf16.msrb.mxu0 %v5733_v4  ;;  %v6038_v4 = vld [vmem:[#allocation5 + $0x67c] sm:$0xf0] }
 0x3f0   : > { %3932 = vmatmul.bf16.gmra.mxu3 %v7417_v6  ;;  %3965 = vmatmul.bf16.gmra.mxu0 %v7367_v45 }
 0x3f1   : > { %v3720_v3 = vpop.f32.mrf.mxu1  ;;  %4146 = vmatpush.bf16.msrb.mxu1 %v6085_v41  ;;  %v6481_v41 = vld [vmem:[#allocation5 + $0x7c] sm:$0xf] }
 0x3f2   : > { %v3721_v56 = vadd.f32 %v3720_v3, %v3683_v51  ;;  %v5686_v3 = vld [vmem:[#allocation5 + $0x3bc] sm:$0xf0] }
 0x3f3   : > { %v3771_v33 = vpop.f32.mrf.mxu3  ;;  %v5689_v7 = vor.u32 %v6580_v60, %v5686_v3 }
 0x3f4   : > { %v3759_v31 = vadd.f32 %v3758_v32, %v3721_v56  ;;  %4003 = vmatmul.bf16.gmra.mxu1 %v7346_v52  ;;  %v6492_v32 = vld [vmem:[#allocation5 + $0xd4] sm:$0xf] }
 0x3f5   : > { %v3684_v46 = vpop.f32.mrf.mxu0  ;;  %v5337_v51 = vor.u32 %v6492_v32, %v5334_v50  ;;  %4109 = vmatpush.bf16.msrb.mxu0 %v5689_v7 }
 0x3f6   : > { %4558 = vrot.lane.b32.xlu1 %v3759_v31, %s6972_s21  ;;  %v3760_v58 = vpop.f32.mrf.mxu2 }
 0x3f7   : > { %4071 = vmatpush.bf16.msrb.mxu3 %v5337_v51  ;;  %v6668_v58 = vld [vmem:[#allocation5 + $0x654] sm:$0xf] }
 0x3f8   : > { %v6041_v46 = vor.u32 %v6668_v58, %v6038_v4  ;;  %v6657_v4 = vld [vmem:[#allocation5 + $0x5fc] sm:$0xf] }
 0x3f9   : > { %v3722_v9 = vpop.f32.mrf.mxu1 }
 0x3fa   : > { %v5290_v9 = vld [vmem:[#allocation5 + $0xa4] sm:$0xf0]  ;;  %4147 = vmatpush.bf16.msrb.mxu1 %v6041_v46 }
 0x3fb   : > { %6448 = vmatmul.msk.bf16.gmra.mxu2 %vm631_vm3, %v7382_v29  ;;  %v3773_v55 = vpop.f32.mrf.mxu3  ;;  %v5293_v32 = vor.u32 %v6481_v41, %v5290_v9  ;;  %v5994_v41 = vld [vmem:[#allocation5 + $0x624] sm:$0xf0] }
 0x3fc   : > { %v5997_v9 = vor.u32 %v6657_v4, %v5994_v41 }
 0x3fd   : > { %v3809_v31 = vpop.f32.mrf.mxu0  ;;  %4072 = vmatpush.bf16.msrb.mxu3 %v5293_v32  ;;  %v6470_v32 = vld [vmem:[#allocation5 + $0x24] sm:$0xf] }
 0x3fe   : > { %v3885_v56 = vpop.f32.mrf.mxu2  ;;  %v3810_v1 = vadd.f32 %v3809_v31, %v3771_v33  ;;  %v6734_v31 = vld [vmem:[#allocation5 + $0x864] sm:$0xf]  ;;  %4148 = vmatpush.bf16.msrb.mxu1 %v5997_v9 }
 0x400   : > { %3937 = vmatmul.bf16.gmra.mxu3 %v7447_v47  ;;  %3970 = vmatmul.bf16.gmra.mxu0 %v7423_v13 }
 0x401   : > { %v3847_v14 = vpop.f32.mrf.mxu1 }
 0x402   : > { %v3848_v19 = vadd.f32 %v3847_v14, %v3810_v1  ;;  %v6302_v1 = vld [vmem:[#allocation5 + $0x88c] sm:$0xf0]  ;;  %v6569_v14 = vld [vmem:[#allocation5 + $0x33c] sm:$0xf] }
 0x403   : > { %v3776_v48 = vpop.f32.mrf.mxu3  ;;  %v6305_v58 = vor.u32 %v6734_v31, %v6302_v1 }
 0x404   : > { %v3886_v62 = vadd.f32 %v3885_v56, %v3848_v19  ;;  %4008 = vmatmul.bf16.gmra.mxu1 %v7402_v57  ;;  %v7935_v19 = vpop.permute.xlu0 %4448 }
 0x405   : > { %v3811_v50 = vpop.f32.mrf.mxu0  ;;  %4187 = vmatpush.bf16.msrb.mxu2 %v6305_v58 }
 0x406   : > { %4440 = vrot.lane.b32.xlu2 %v3886_v62, %s6972_s21  ;;  %v3887_v33 = vpop.f32.mrf.mxu2  ;;  %v3812_v60 = vadd.f32 %v3811_v50, %v3773_v55  ;;  %v5642_v62 = vld [vmem:[#allocation5 + $0x364] sm:$0xf0]  ;;  %v5246_v50 = vld [vmem:[#allocation5 + $0x4c] sm:$0xf0] }
 0x407   : > { %v5645_v46 = vor.u32 %v6569_v14, %v5642_v62  ;;  %v6558_v14 = vld [vmem:[#allocation5 + $0x2e4] sm:$0xf]  ;;  %v5598_v62 = vld [vmem:[#allocation5 + $0x30c] sm:$0xf0] }
 0x408   : > { %v5601_v4 = vor.u32 %v6558_v14, %v5598_v62 }
 0x409   : > { %v3849_v51 = vpop.f32.mrf.mxu1  ;;  %4110 = vmatpush.bf16.msrb.mxu0 %v5645_v46 }
 0x40a   : > { %v3850_v3 = vadd.f32 %v3849_v51, %v3812_v60  ;;  %v5249_v51 = vor.u32 %v6470_v32, %v5246_v50 }
 0x40b   : > { %6449 = vmatmul.msk.bf16.gmra.mxu2 %vm631_vm3, %v7411_v63  ;;  %v3778_v56 = vpop.f32.mrf.mxu3 }
 0x40c   : > { %v3888_v7 = vadd.f32 %v3887_v33, %v3850_v3  ;;  %4073 = vmatpush.bf16.msrb.mxu3 %v5249_v51  ;;  %v6646_v51 = vld [vmem:[#allocation5 + $0x5a4] sm:$0xf] }
 0x40d   : > { %v3814_v60 = vpop.f32.mrf.mxu0  ;;  %4111 = vmatpush.bf16.msrb.mxu0 %v5601_v4 }
 0x40e   : > { %4452 = vrot.lane.b32.xlu2 %v3888_v7, %s6972_s21  ;;  %v3890_v55 = vpop.f32.mrf.mxu2  ;;  %v3815_v33 = vadd.f32 %v3814_v60, %v3776_v48  ;;  %v7942_v48 = vpop.permute.xlu0 %4460 }
 0x410   : > { %3942 = vmatmul.bf16.gmra.mxu3 %v7486_v49  ;;  %3975 = vmatmul.bf16.gmra.mxu0 %v7452_v54 }
 0x411   : > { %v3852_v3 = vpop.f32.mrf.mxu1 }
 0x412   : > { %v3853_v31 = vadd.f32 %v3852_v3, %v3815_v33  ;;  %v5950_v33 = vld [vmem:[#allocation5 + $0x5cc] sm:$0xf0] }
 0x413   : > { %v3781_v1 = vpop.f32.mrf.mxu3  ;;  %v5560_v3 = vld [vmem:[#allocation5 + $0x290] sm:$0xf] }
 0x414   : > { %v3891_v7 = vadd.f32 %v3890_v55, %v3853_v31  ;;  %4013 = vmatmul.bf16.gmra.mxu1 %v7459_v16  ;;  %v5953_v31 = vor.u32 %v6646_v51, %v5950_v33  ;;  %v5912_v33 = vld [vmem:[#allocation5 + $0x550] sm:$0xf] }
 0x415   : > { %v3816_v41 = vpop.f32.mrf.mxu0 }
 0x416   : > { %4464 = vrot.lane.b32.xlu2 %v3891_v7, %s6972_s21  ;;  %v3892_v58 = vpop.f32.mrf.mxu2  ;;  %v3817_v46 = vadd.f32 %v3816_v41, %v3778_v56  ;;  %v6553_v7 = vld [vmem:[#allocation5 + $0x2b8] sm:$0xf0]  ;;  %4149 = vmatpush.bf16.msrb.mxu1 %v5953_v31 }
 0x417   : > { %v5561_v62 = vor.u32 %v6553_v7, %v5560_v3  ;;  %v6641_v3 = vld [vmem:[#allocation5 + $0x578] sm:$0xf0]  ;;  %v6264_v7 = vld [vmem:[#allocation5 + $0x810] sm:$0xf] }
 0x418   : > { %v7944_v9 = vpop.permute.xlu1 %4438 }
 0x419   : > { %v3854_v32 = vpop.f32.mrf.mxu1  ;;  %4218 = vmatpush.bf16.msra.mxu3 %v5561_v62 }
 0x41a   : > { %v3855_v50 = vadd.f32 %v3854_v32, %v3817_v46  ;;  %v7952_v46 = vpop.permute.xlu0 %4472 }
 0x41b   : > { %6450 = vmatmul.msk.bf16.gmra.mxu2 %vm631_vm3, %v7464_v25  ;;  %v3783_v55 = vpop.f32.mrf.mxu3 }
 0x41c   : > { %v3893_v60 = vadd.f32 %v3892_v58, %v3855_v50 }
 0x41d   : > { %v3819_v4 = vpop.f32.mrf.mxu0 }
 0x41e   : > { %4476 = vrot.lane.b32.xlu2 %v3893_v60, %s6972_s21  ;;  %v3895_v14 = vpop.f32.mrf.mxu2  ;;  %v3820_v56 = vadd.f32 %v3819_v4, %v3781_v1  ;;  %v1105_v60 = vld [vmem:[#allocation5 + $0x970] sm:$0xf]  ;;  %v5913_v1 = vor.u32 %v6641_v3, %v5912_v33  ;;  %v6729_v4 = vld [vmem:[#allocation5 + $0x838] sm:$0xf0]  ;;  %v5516_v3 = vld [vmem:[#allocation5 + $0x238] sm:$0xf] }
 0x41f   : > { %v2040_v31 = vunpack.c.l.b16 %v1105_v60  ;;  %v6265_v40 = vor.u32 %v6729_v4, %v6264_v7  ;;  %v6542_v7 = vld [vmem:[#allocation5 + $0x260] sm:$0xf0] }
 0x420   : > { %v7949_v41 = vpop.permute.xlu1 %4450  ;;  %3947 = vmatmul.bf16.gmra.mxu3 %v7501_v21  ;;  %3980 = vmatmul.bf16.gmra.mxu0 %v7490_v53 }
 0x421   : > { %v3857_v32 = vpop.f32.mrf.mxu1  ;;  %v2348_v62 = vpack.c.b16 %v2040_v31, %v2040_v31  ;;  %4256 = vmatpush.bf16.msra.mxu0 %v5913_v1  ;;  %4294 = vmatpush.bf16.msra.mxu1 %v6265_v40  ;;  %v5517_v31 = vor.u32 %v6542_v7, %v5516_v3  ;;  %v6718_v7 = vld [vmem:[#allocation5 + $0x7e0] sm:$0xf0] }
 0x422   : > { %v3858_v58 = vadd.f32 %v3857_v32, %v3820_v56  ;;  %v7960_v60 = vpop.permute.xlu0 %4484 }
 0x423   : > { %v3786_v50 = vpop.f32.mrf.mxu3  ;;  %4219 = vmatpush.bf16.msra.mxu3 %v5517_v31 }
 0x424   : > { %v3896_v51 = vadd.f32 %v3895_v14, %v3858_v58  ;;  %4018 = vmatmul.bf16.gmra.mxu1 %v7477_v35  ;;  %v2696_v58 = vsel %vm2664_vm1, %v2348_v62, 0  ;;  %vm4568_vm1 = vcmask 785408  }
 0x425   : > { %v3821_v21 = vpop.f32.mrf.mxu0  ;;  %4336 = vmatpush.bf16.msra.mxu2 %v2696_v58  ;;  %v6630_v58 = vld [vmem:[#allocation5 + $0x520] sm:$0xf0] }
 0x426   : > { %4488 = vrot.lane.b32.xlu2 %v3896_v51, %s6972_s21  ;;  %v3897_v38 = vpop.f32.mrf.mxu2  ;;  %v3822_v56 = vadd.f32 %v3821_v21, %v3783_v55 }
 0x428   : > { %v7957_v32 = vpop.permute.xlu1 %4462 }
 0x429   : > { %v3859_v14 = vpop.f32.mrf.mxu1 }
 0x42a   : > { %v3860_v35 = vadd.f32 %v3859_v14, %v3822_v56 }
 0x42b   : > { %6451 = vmatmul.msk.bf16.gmra.mxu2 %vm631_vm3, %v7483_v42  ;;  %v3788_v51 = vpop.f32.mrf.mxu3 }
 0x42c   : > { %v3898_v33 = vadd.f32 %v3897_v38, %v3860_v35  ;;  %v4497_v35 = vpop.permute.xlu0 %4496  ;;  %v5868_v38 = vld [vmem:[#allocation5 + $0x4f8] sm:$0xf] }
 0x42d   : > { %v3824_v55 = vpop.f32.mrf.mxu0 }
 0x42e   : > { %4500 = vrot.lane.b32.xlu2 %v3898_v33, %s6972_s21  ;;  %v3900_v21 = vpop.f32.mrf.mxu2  ;;  %v3825_v40 = vadd.f32 %v3824_v55, %v3786_v50  ;;  %v6220_v33 = vld [vmem:[#allocation5 + $0x7b8] sm:$0xf]  ;;  %v5869_v50 = vor.u32 %v6630_v58, %v5868_v38 }
 0x42f   : > { %v6221_v55 = vor.u32 %v6718_v7, %v6220_v33  ;;  %v6762_v33 = vld [vmem:[#allocation5 + $0x940] sm:$0xf0] }
 0x430   : > { %v7965_v1 = vpop.permute.xlu1 %4474  ;;  %4074 = vmatmul.bf16.vlgmr.msrb.gmra.mxu3 %v7316_v23  ;;  %3985 = vmatmul.bf16.gmra.mxu0 %v7504_v28  ;;  %v6531_v28 = vld [vmem:[#allocation5 + $0x208] sm:$0xf0] }
 0x431   : > { %v3862_v4 = vpop.f32.mrf.mxu1  ;;  %4257 = vmatpush.bf16.msra.mxu0 %v5869_v50  ;;  %4295 = vmatpush.bf16.msra.mxu1 %v6221_v55 }
 0x432   : > { %v3863_v62 = vadd.f32 %v3862_v4, %v3825_v40 }
 0x433   : > { %v3791_v56 = vpop.f32.mrf.mxu3 }
 0x434   : > { %v3901_v14 = vadd.f32 %v3900_v21, %v3863_v62  ;;  %4023 = vmatmul.bf16.gmra.mxu1 %v7496_v0  ;;  %v5472_v0 = vld [vmem:[#allocation5 + $0x1e0] sm:$0xf] }
 0x435   : > { %v3826_v31 = vpop.f32.mrf.mxu0  ;;  %v5473_v58 = vor.u32 %v6531_v28, %v5472_v0  ;;  %v5824_v28 = vld [vmem:[#allocation5 + $0x4a0] sm:$0xf] }
 0x436   : > { %4512 = vrot.lane.b32.xlu2 %v3901_v14, %s6972_s21  ;;  %v3902_v3 = vpop.f32.mrf.mxu2  ;;  %v3827_v23 = vadd.f32 %v3826_v31, %v3788_v51  ;;  %v6396_v14 = vld [vmem:[#allocation5 + $0x918] sm:$0xf]  ;;  %v4509_v51 = vpop.permute.xlu0 %4508 }
 0x437   : > { %v6397_v50 = vor.u32 %v6762_v33, %v6396_v14  ;;  %4220 = vmatpush.bf16.msra.mxu3 %v5473_v58  ;;  %v6707_v33 = vld [vmem:[#allocation5 + $0x788] sm:$0xf0] }
 0x438   : > { %v7971_v42 = vpop.permute.xlu1 %4486 }
 0x439   : > { %v3864_v40 = vpop.f32.mrf.mxu1  ;;  %4337 = vmatpush.bf16.msra.mxu2 %v6397_v50  ;;  %v6520_v50 = vld [vmem:[#allocation5 + $0x1b0] sm:$0xf0] }
 0x43a   : > { %v3865_v21 = vadd.f32 %v3864_v40, %v3827_v23 }
 0x43b   : > { %6452 = vmatmul.msk.bf16.vlgmr.msrb.gmra.mxu2 %vm631_vm3, %v7297_v10  ;;  %v3793_v4 = vpop.f32.mrf.mxu3 }
 0x43c   : > { %v3903_v62 = vadd.f32 %v3902_v3, %v3865_v21 }
 0x43d   : > { %v3829_v7 = vpop.f32.mrf.mxu0 }
 0x43e   : > { %4524 = vrot.lane.b32.xlu2 %v3903_v62, %s6972_s21  ;;  %v3905_v38 = vpop.f32.mrf.mxu2  ;;  %v3830_v31 = vadd.f32 %v3829_v7, %v3791_v56  ;;  %v6619_v56 = vld [vmem:[#allocation5 + $0x4c8] sm:$0xf0]  ;;  %v6176_v62 = vld [vmem:[#allocation5 + $0x760] sm:$0xf]  ;;  %v5428_v7 = vld [vmem:[#allocation5 + $0x188] sm:$0xf] }
 0x43f   : > { %v5825_v58 = vor.u32 %v6619_v56, %v5824_v28  ;;  %v4569_v56 = vsel %vm4568_vm1, %v7929_v26, %v7944_v9 }
 0x440   : > { %v7976_v55 = vpop.permute.xlu1 %4498  ;;  %4079 = vmatmul.bf16.gmra.mxu3 %v7362_v61  ;;  %4112 = vmatmul.bf16.vlgmr.msrb.gmra.mxu0 %v7319_v27  ;;  %v4521_v27 = vpop.permute.xlu0 %4520 }
 0x441   : > { %v3867_v23 = vpop.f32.mrf.mxu1  ;;  %v4594_v0 = vsel %vm4568_vm1, %v4497_v35, %v7976_v55  ;;  %4258 = vmatpush.bf16.msra.mxu0 %v5825_v58 }
 0x442   : > { %v3868_v3 = vadd.f32 %v3867_v23, %v3830_v31  ;;  %v5429_v23 = vor.u32 %v6520_v50, %v5428_v7  ;;  %v6608_v7 = vld [vmem:[#allocation5 + $0x470] sm:$0xf0] }
 0x443   : > { %v3796_v40 = vpop.f32.mrf.mxu3 }
 0x444   : > { %v3906_v21 = vadd.f32 %v3905_v38, %v3868_v3  ;;  %4150 = vmatmul.bf16.vlgmr.msrb.gmra.mxu1 %v7304_v12  ;;  %v6177_v38 = vor.u32 %v6707_v33, %v6176_v62  ;;  %v7986_v3 = vmax.f32 %v7555_v15, %v4594_v0  ;;  %4221 = vmatpush.bf16.msra.mxu3 %v5429_v23  ;;  %v5780_v33 = vld [vmem:[#allocation5 + $0x448] sm:$0xf] }
 0x445   : > { %v3831_v31 = vpop.f32.mrf.mxu0  ;;  %v5781_v50 = vor.u32 %v6608_v7, %v5780_v33 }
 0x446   : > { %4536 = vrot.lane.b32.xlu2 %v3906_v21, %s6972_s21  ;;  %v3907_v14 = vpop.f32.mrf.mxu2  ;;  %v3832_v12 = vadd.f32 %v3831_v31, %v3793_v4  ;;  %v7990_v21 = vld [vmem:[#allocation7] sm:$0x3f]  ;;  %4296 = vmatpush.bf16.msra.mxu1 %v6177_v38  ;;  %v2748_v4 = vadd.f32 %v7519_v20, %v7517_v18  ;;  %v4793_v0 = vrot.slane %v7986_v3, 2 }
 0x447   : > { %v8009_v26 = vperm.slane %v7990_v21, 0  ;;  %v6696_v31 = vld [vmem:[#allocation5 + $0x730] sm:$0xf0]  ;;  %4259 = vmatpush.bf16.msra.mxu0 %v5781_v50  ;;  %v6352_v50 = vld [vmem:[#allocation5 + $0x8c0] sm:$0xf] }
 0x448   : > { %v7988_v35 = vpop.permute.xlu1 %4510  ;;  %v2786_v38 = vadd.f32 %v7524_v22, %v2748_v4  ;;  %v4574_v22 = vsel %vm4568_vm1, %v7935_v19, %v7949_v41 }
 0x449   : > { %v3869_v61 = vpop.f32.mrf.mxu1  ;;  %v4599_v28 = vsel %vm4568_vm1, %v4509_v51, %v7988_v35 }
 0x44a   : > { %v3870_v62 = vadd.f32 %v3869_v61, %v3832_v12  ;;  %v4726_v15 = vmax.f32 %v7562_v59, %v4599_v28  ;;  %v4690_v61 = vmax.f32 %v7513_v37, %v4569_v56  ;;  %v6132_v59 = vld [vmem:[#allocation5 + $0x708] sm:$0xf] }
 0x44b   : > { %6453 = vmatmul.msk.bf16.gmra.mxu2 %vm631_vm3, %v7326_v39  ;;  %v3798_v51 = vpop.f32.mrf.mxu3  ;;  %v6133_v28 = vor.u32 %v6696_v31, %v6132_v59  ;;  %v5384_v59 = vld [vmem:[#allocation5 + $0x130] sm:$0xf] }
 0x44c   : > { %v3908_v58 = vadd.f32 %v3907_v14, %v3870_v62  ;;  %v4794_v12 = vrot.slane %v4726_v15, 2 }
 0x44d   : > { %v3834_v23 = vpop.f32.mrf.mxu0  ;;  %4297 = vmatpush.bf16.msra.mxu1 %v6133_v28  ;;  %v5736_v28 = vld [vmem:[#allocation5 + $0x3f0] sm:$0xf] }
 0x44e   : > { %v4795_v18 = vsel %vm4792_vm7, %v4793_v0, %v4794_v12  ;;  %4548 = vrot.lane.b32.xlu2 %v3908_v58, %s6972_s21  ;;  %v3910_v20 = vpop.f32.mrf.mxu2  ;;  %v3835_v62 = vadd.f32 %v3834_v23, %v3796_v40  ;;  %v4533_v0 = vpop.permute.xlu0 %4532  ;;  %v2824_v58 = vadd.f32 %v7522_v24, %v2786_v38  ;;  %v6751_v23 = vld [vmem:[#allocation5 + $0x8e8] sm:$0xf0]  ;;  %v6597_v24 = vld [vmem:[#allocation5 + $0x418] sm:$0xf0] }
 0x44f   : > { %v4895_v14 = vmax.f32 %v4690_v61, %v4795_v18  ;;  %v6509_v18 = vld [vmem:[#allocation5 + $0x158] sm:$0xf0] }
 0x450   : > { %v8016_v15 = vpop.permute.xlu1 %4522  ;;  %4084 = vmatmul.bf16.gmra.mxu3 %v7417_v6  ;;  %4117 = vmatmul.bf16.gmra.mxu0 %v7367_v45  ;;  %v4696_v19 = vmax.f32 %v2824_v58, %v4574_v22 }
 0x451   : > { %v4945_v37 = vadd.f32 %v8009_v26, %v4895_v14  ;;  %v3872_v56 = vpop.f32.mrf.mxu1  ;;  %v4604_v51 = vsel %vm4568_vm1, %v4521_v27, %v8016_v15  ;;  %v5385_v14 = vor.u32 %v6509_v18, %v5384_v59 }
 0x452   : > { %v3873_v40 = vadd.f32 %v3872_v56, %v3835_v62  ;;  %v4732_v4 = vmax.f32 %v7566_v36, %v4604_v51  ;;  %v6088_v56 = vld [vmem:[#allocation5 + $0x6b0] sm:$0xf]  ;;  %v6685_v51 = vld [vmem:[#allocation5 + $0x6d8] sm:$0xf0] }
 0x453   : > { %v4981_v27 = vmax.f32 %v4945_v37, 0.0  ;;  %v3923_v61 = vpop.f32.mrf.mxu3  ;;  %v5737_v37 = vor.u32 %v6597_v24, %v5736_v28  ;;  %4222 = vmatpush.bf16.msra.mxu3 %v5385_v14  ;;  %v6586_v28 = vld [vmem:[#allocation5 + $0x3c0] sm:$0xf0] }
 0x454   : > { %v3911_v33 = vadd.f32 %v3910_v20, %v3873_v40  ;;  %v4811_v7 = vrot.slane %v4732_v4, 2  ;;  %4155 = vmatmul.bf16.gmra.mxu1 %v7346_v52  ;;  %v6353_v20 = vor.u32 %v6751_v23, %v6352_v50  ;;  %v6089_v40 = vor.u32 %v6685_v51, %v6088_v56 }
 0x455   : > { %5017 = vst [vmem:[%s8028_s22] sm:$0xff] %v4981_v27  ;;  %v3836_v62 = vpop.f32.mrf.mxu0  ;;  %4260 = vmatpush.bf16.msra.mxu0 %v5737_v37  ;;  %v4579_v27 = vsel %vm4568_vm1, %v7942_v48, %v7957_v32  ;;  %v5692_v48 = vld [vmem:[#allocation5 + $0x398] sm:$0xf] }
 0x456   : > { %v4812_v31 = vsel %vm4792_vm7, %v4794_v12, %v4811_v7  ;;  %4560 = vrot.lane.b32.xlu2 %v3911_v33, %s6972_s21  ;;  %v3912_v36 = vpop.f32.mrf.mxu2  ;;  %4338 = vmatpush.bf16.msra.mxu2 %v6353_v20  ;;  %v4702_v14 = vmax.f32 %v7530_v8, %v4579_v27 }
 0x457   : > { %v4901_v38 = vmax.f32 %v4696_v19, %v4812_v31  ;;  %4298 = vmatpush.bf16.msra.mxu1 %v6089_v40  ;;  %v2753_v19 = vadd.f32 %v7543_v17, %v7539_v30  ;;  %v5340_v31 = vld [vmem:[#allocation5 + $0xd8] sm:$0xf]  ;;  %v4545_v36 = vpop.permute.xlu0 %4544 }
 0x458   : > { %v8037_v22 = vpop.permute.xlu1 %4534 }
 0x459   : > { %v4951_v4 = vadd.f32 %v8009_v26, %v4901_v38  ;;  %v3874_v12 = vpop.f32.mrf.mxu1  ;;  %v4609_v58 = vsel %vm4568_vm1, %v4533_v0, %v8037_v22  ;;  %v6498_v0 = vld [vmem:[#allocation5 + $0x100] sm:$0xf0]  ;;  %v5693_v38 = vor.u32 %v6586_v28, %v5692_v48  ;;  %v2791_v30 = vadd.f32 %v7541_v5, %v2753_v19  ;;  %v6044_v19 = vld [vmem:[#allocation5 + $0x658] sm:$0xf] }
 0x45a   : > { %v4738_v33 = vmax.f32 %v7573_v11, %v4609_v58  ;;  %v5341_v23 = vor.u32 %v6498_v0, %v5340_v31  ;;  %v4584_v5 = vsel %vm4568_vm1, %v7952_v46, %v7965_v1  ;;  %v6487_v46 = vld [vmem:[#allocation5 + $0xa8] sm:$0xf0] }
 0x45b   : > { %v4987_v59 = vmax.f32 %v4951_v4, 0.0  ;;  %6454 = vmatmul.msk.bf16.gmra.mxu2 %vm631_vm3, %v7382_v29  ;;  %v3925_v18 = vpop.f32.mrf.mxu3  ;;  %4261 = vmatpush.bf16.msra.mxu0 %v5693_v38  ;;  %v2829_v4 = vadd.f32 %v7535_v2, %v2791_v30 }
 0x45c   : > { %v4823_v50 = vrot.slane %v4738_v33, 2  ;;  %4223 = vmatpush.bf16.msra.mxu3 %v5341_v23 }
 0x45d   : > { %5024 = vst [vmem:[%s8028_s22 + $0x30] sm:$0xff] %v4987_v59  ;;  %v3961_v62 = vpop.f32.mrf.mxu0  ;;  %v6674_v59 = vld [vmem:[#allocation5 + $0x680] sm:$0xf0]  ;;  %v4708_v31 = vmax.f32 %v2829_v4, %v4584_v5 }
 0x45e   : > { %v4824_v11 = vsel %vm4792_vm7, %v4811_v7, %v4823_v50  ;;  %v4037_v24 = vpop.f32.mrf.mxu2  ;;  %v3962_v20 = vadd.f32 %v3961_v62, %v3923_v61  ;;  %v6045_v0 = vor.u32 %v6674_v59, %v6044_v19  ;;  %v4589_v62 = vsel %vm4568_vm1, %v7960_v60, %v7971_v42  ;;  %v6575_v19 = vld [vmem:[#allocation5 + $0x368] sm:$0xf0] }
 0x45f   : > { %v4907_v17 = vmax.f32 %v4702_v14, %v4824_v11  ;;  %v4557_v2 = vpop.permute.xlu0 %4556  ;;  %v4714_v4 = vmax.f32 %v7550_v34, %v4589_v62  ;;  %v6476_v34 = vld [vmem:[#allocation5 + $0x50] sm:$0xf0] }
 0x460   : > { %v8054_v37 = vpop.permute.xlu2 %4440  ;;  %v8056_v56 = vpop.permute.xlu1 %4546  ;;  %4089 = vmatmul.bf16.gmra.mxu3 %v7447_v47  ;;  %4122 = vmatmul.bf16.gmra.mxu0 %v7423_v13 }
 0x461   : > { %v4957_v8 = vadd.f32 %v8009_v26, %v4907_v17  ;;  %v3999_v51 = vpop.f32.mrf.mxu1  ;;  %v4614_v7 = vsel %vm4568_vm1, %v4545_v36, %v8056_v56  ;;  %v5296_v36 = vld [vmem:[#allocation5 + $0x80] sm:$0xf]  ;;  %4299 = vmatpush.bf16.msra.mxu1 %v6045_v0 }
 0x462   : > { %v4000_v40 = vadd.f32 %v3999_v51, %v3962_v20  ;;  %v4744_v61 = vmax.f32 %v7577_v43, %v4614_v7  ;;  %v5297_v23 = vor.u32 %v6487_v46, %v5296_v36  ;;  %v6000_v0 = vld [vmem:[#allocation5 + $0x600] sm:$0xf]  ;;  %v6663_v36 = vld [vmem:[#allocation5 + $0x628] sm:$0xf0]  ;;  %v5252_v46 = vld [vmem:[#allocation5 + $0x28] sm:$0xf] }
 0x463   : > { %v4993_v12 = vmax.f32 %v4957_v8, 0.0  ;;  %v3928_v58 = vpop.f32.mrf.mxu3 }
 0x464   : > { %v4038_v27 = vadd.f32 %v4037_v24, %v4000_v40  ;;  %v4835_v33 = vrot.slane %v4744_v61, 2  ;;  %4160 = vmatmul.bf16.gmra.mxu1 %v7402_v57  ;;  %4224 = vmatpush.bf16.msra.mxu3 %v5297_v23  ;;  %v6308_v40 = vld [vmem:[#allocation5 + $0x868] sm:$0xf]  ;;  %v6740_v61 = vld [vmem:[#allocation5 + $0x890] sm:$0xf0]  ;;  %v6001_v23 = vor.u32 %v6663_v36, %v6000_v0 }
 0x465   : > { %5030 = vst [vmem:[%s8028_s22 + $0x60] sm:$0xff] %v4993_v12  ;;  %v3963_v28 = vpop.f32.mrf.mxu0  ;;  %v6309_v12 = vor.u32 %v6740_v61, %v6308_v40  ;;  %v8653_v36 = vld [vmem:[#allocation17_spill] sm:$0xff] }
 0x466   : > { %v4836_v14 = vsel %vm4792_vm7, %v4823_v50, %v4835_v33  ;;  %4442 = vrot.lane.b32.xlu0 %v4038_v27, %s6972_s21  ;;  %v4039_v43 = vpop.f32.mrf.mxu2  ;;  %v3964_v11 = vadd.f32 %v3963_v28, %v3925_v18  ;;  %v5648_v27 = vld [vmem:[#allocation5 + $0x340] sm:$0xf]  ;;  %4300 = vmatpush.bf16.msra.mxu1 %v6001_v23 }
 0x467   : > { %v4913_v48 = vmax.f32 %v4708_v31, %v4836_v14  ;;  %v5649_v31 = vor.u32 %v6575_v19, %v5648_v27  ;;  %4339 = vmatpush.bf16.msra.mxu2 %v6309_v12  ;;  %v6564_v12 = vld [vmem:[#allocation5 + $0x310] sm:$0xf0]  ;;  %v5956_v27 = vld [vmem:[#allocation5 + $0x5a8] sm:$0xf] }
 0x468   : > { %v8072_v24 = vpop.permute.xlu2 %4452  ;;  %v8074_v38 = vpop.permute.xlu1 %4558 }
 0x469   : > { %v4963_v30 = vadd.f32 %v8009_v26, %v4913_v48  ;;  %v4001_v17 = vpop.f32.mrf.mxu1  ;;  %v4619_v50 = vsel %vm4568_vm1, %v4557_v2, %v8074_v38  ;;  %4262 = vmatpush.bf16.msra.mxu0 %v5649_v31 }
 0x46a   : > { %v4002_v20 = vadd.f32 %v4001_v17, %v3964_v11  ;;  %v4750_v8 = vmax.f32 %v7582_v44, %v4619_v50 }
 0x46b   : > { %v4999_v18 = vmax.f32 %v4963_v30, 0.0  ;;  %6455 = vmatmul.msk.bf16.gmra.mxu2 %vm631_vm3, %v7411_v63  ;;  %v3930_v51 = vpop.f32.mrf.mxu3 }
 0x46c   : > { %v4040_v7 = vadd.f32 %v4039_v43, %v4002_v20  ;;  %v4847_v5 = vrot.slane %v4750_v8, 2 }
 0x46d   : > { %5036 = vst [vmem:[%s8028_s22 + $0x90] sm:$0xff] %v4999_v18  ;;  %v3966_v43 = vpop.f32.mrf.mxu0 }
 0x46e   : > { %v4848_v60 = vsel %vm4792_vm7, %v4835_v33, %v4847_v5  ;;  %v4925_v59 = vmax.f32 %v7986_v3, %v4847_v5  ;;  %4454 = vrot.lane.b32.xlu0 %v4040_v7, %s6972_s21  ;;  %v4042_v44 = vpop.f32.mrf.mxu2  ;;  %v3967_v48 = vadd.f32 %v3966_v43, %v3928_v58  ;;  %v5253_v3 = vor.u32 %v6476_v34, %v5252_v46  ;;  %v8654_v34 = vld [vmem:[#allocation14_spill] sm:$0xff] }
 0x46f   : > { %v4919_v14 = vmax.f32 %v4714_v4, %v4848_v60  ;;  %v5604_v4 = vld [vmem:[#allocation5 + $0x2e8] sm:$0xf] }
 0x470   : > { %v4975_v2 = vadd.f32 %v8009_v26, %v4925_v59  ;;  %v8091_v28 = vpop.permute.xlu2 %4464  ;;  %4094 = vmatmul.bf16.gmra.mxu3 %v7486_v49  ;;  %4127 = vmatmul.bf16.gmra.mxu0 %v7452_v54  ;;  %v5605_v60 = vor.u32 %v6564_v12, %v5604_v4  ;;  %v6652_v59 = vld [vmem:[#allocation5 + $0x5d0] sm:$0xf0] }
 0x471   : > { %v4969_v33 = vadd.f32 %v8009_v26, %v4919_v14  ;;  %v4004_v11 = vpop.f32.mrf.mxu1  ;;  %4225 = vmatpush.bf16.msra.mxu3 %v5253_v3  ;;  %v5957_v31 = vor.u32 %v6652_v59, %v5956_v27  ;;  %v8659_v59 = vld [vmem:[#allocation18_spill] sm:$0xff] }
 0x472   : > { %v5011_v30 = vmax.f32 %v4975_v2, 0.0  ;;  %v4005_v17 = vadd.f32 %v4004_v11, %v3967_v48  ;;  %4263 = vmatpush.bf16.msra.mxu0 %v5605_v60 }
 0x473   : > { %v5005_v50 = vmax.f32 %v4969_v33, 0.0  ;;  %v3933_v62 = vpop.f32.mrf.mxu3  ;;  %4301 = vmatpush.bf16.msra.mxu1 %v5957_v31 }
 0x474   : > { %5048 = vst [vmem:[%s8028_s22 + $0xf0] sm:$0x3] %v5011_v30  ;;  %v4043_v58 = vadd.f32 %v4042_v44, %v4005_v17  ;;  %4165 = vmatmul.bf16.gmra.mxu1 %v7459_v16  ;;  %v8655_v17 = vld [vmem:[#allocation15_spill] sm:$0xff] }
 0x475   : > { %5042 = vst [vmem:[%s8028_s22 + $0xc0] sm:$0xff] %v5005_v50  ;;  %v3968_v8 = vpop.f32.mrf.mxu0 }
 0x476   : > { %4466 = vrot.lane.b32.xlu0 %v4043_v58, %s6972_s21  ;;  %v4044_v20 = vpop.f32.mrf.mxu2  ;;  %v3969_v18 = vadd.f32 %v3968_v8, %v3930_v51 }
 0x478   : > { %v8100_v26 = vpop.permute.xlu2 %4476 }
 0x479   : > { %v4006_v7 = vpop.f32.mrf.mxu1 }
 0x47a   : > { %v4007_v5 = vadd.f32 %v4006_v7, %v3969_v18  ;;  %v8656_v18 = vld [vmem:[#allocation24_spill] sm:$0xff] }
 0x47b   : > { %6456 = vmatmul.msk.bf16.gmra.mxu2 %vm631_vm3, %v7464_v25  ;;  %v3935_v40 = vpop.f32.mrf.mxu3 }
 0x47c   : > { %v4045_v61 = vadd.f32 %v4044_v20, %v4007_v5 }
 0x47d   : > { %v3971_v44 = vpop.f32.mrf.mxu0 }
 0x47e   : > { %4478 = vrot.lane.b32.xlu0 %v4045_v61, %s6972_s21  ;;  %v4047_v19 = vpop.f32.mrf.mxu2  ;;  %v3972_v51 = vadd.f32 %v3971_v44, %v3933_v62  ;;  %v8657_v61 = vld [vmem:[#allocation11_spill] sm:$0xff] }
 0x480   : > { %v8105_v0 = vpop.permute.xlu2 %4488  ;;  %4099 = vmatmul.bf16.gmra.mxu3 %v8653_v36  ;;  %4132 = vmatmul.bf16.gmra.mxu0 %v7490_v53 }
 0x481   : > { %v4009_v46 = vpop.f32.mrf.mxu1 }
 0x482   : > { %v4010_v14 = vadd.f32 %v4009_v46, %v3972_v51 }
 0x483   : > { %v3938_v43 = vpop.f32.mrf.mxu3 }
 0x484   : > { %v4048_v23 = vadd.f32 %v4047_v19, %v4010_v14  ;;  %4170 = vmatmul.bf16.gmra.mxu1 %v8654_v34  ;;  %v8658_v19 = vld [vmem:[#allocation25_spill] sm:$0xff]  ;;  %v8660_v14 = vld [vmem:[#allocation16_spill] sm:$0xff] }
 0x485   : > { %v3973_v48 = vpop.f32.mrf.mxu0 }
 0x486   : > { %4490 = vrot.lane.b32.xlu0 %v4048_v23, %s6972_s21  ;;  %v4049_v2 = vpop.f32.mrf.mxu2  ;;  %v3974_v3 = vadd.f32 %v3973_v48, %v3935_v40 }
 0x488   : > { %v8111_v33 = vpop.permute.xlu2 %4500 }
 0x489   : > { %v4011_v11 = vpop.f32.mrf.mxu1  ;;  %v4595_v58 = vsel %vm4568_vm1, %v7976_v55, %v8111_v33  ;;  %v4570_v55 = vsel %vm4568_vm1, %v7944_v9, %v8054_v37 }
 0x48a   : > { %v4012_v30 = vadd.f32 %v4011_v11, %v3974_v3  ;;  %v8120_v7 = vmax.f32 %v8656_v18, %v4595_v58 }
 0x48b   : > { %6457 = vmatmul.msk.bf16.gmra.mxu2 %vm631_vm3, %v8655_v17  ;;  %v3940_v50 = vpop.f32.mrf.mxu3 }
 0x48c   : > { %v4050_v62 = vadd.f32 %v4049_v2, %v4012_v30  ;;  %v4796_v31 = vrot.slane %v8120_v7, 2 }
 0x48d   : > { %v3976_v8 = vpop.f32.mrf.mxu0 }
 0x48e   : > { %4502 = vrot.lane.b32.xlu0 %v4050_v62, %s6972_s21  ;;  %v4052_v20 = vpop.f32.mrf.mxu2  ;;  %v3977_v5 = vadd.f32 %v3976_v8, %v3938_v43  ;;  %v8661_v43 = vld [vmem:[#allocation19_spill] sm:$0xff]  ;;  %v4575_v8 = vsel %vm4568_vm1, %v7949_v41, %v8072_v24 }
 0x48f   : > { %v4691_v23 = vmax.f32 %v8661_v43, %v4570_v55 }
 0x490   : > { %v8122_v40 = vpop.permute.xlu2 %4512  ;;  %4226 = vmatmul.bf16.vlgmr.msra.gmra.mxu3 %v8657_v61  ;;  %4137 = vmatmul.bf16.gmra.mxu0 %v8659_v59 }
 0x491   : > { %v4014_v4 = vpop.f32.mrf.mxu1  ;;  %v4600_v12 = vsel %vm4568_vm1, %v7988_v35, %v8122_v40  ;;  %v8137_v35 = vperm.slane %v7990_v21, 1 }
 0x492   : > { %v4015_v27 = vadd.f32 %v4014_v4, %v3977_v5  ;;  %v4727_v60 = vmax.f32 %v8658_v19, %v4600_v12  ;;  %v8662_v5 = vld [vmem:[#allocation26_spill] sm:$0xff] }
 0x493   : > { %v3943_v44 = vpop.f32.mrf.mxu3 }
 0x494   : > { %v4053_v51 = vadd.f32 %v4052_v20, %v4015_v27  ;;  %v4797_v46 = vrot.slane %v4727_v60, 2  ;;  %4175 = vmatmul.bf16.gmra.mxu1 %v8660_v14  ;;  %v8663_v27 = vld [vmem:[#allocation20_spill] sm:$0xff] }
 0x495   : > { %v3978_v3 = vpop.f32.mrf.mxu0  ;;  %v4697_v19 = vmax.f32 %v8663_v27, %v4575_v8 }
 0x496   : > { %v4798_v2 = vsel %vm4792_vm7, %v4796_v31, %v4797_v46  ;;  %4514 = vrot.lane.b32.xlu0 %v4053_v51, %s6972_s21  ;;  %v4054_v9 = vpop.f32.mrf.mxu2  ;;  %v3979_v11 = vadd.f32 %v3978_v3, %v3940_v50  ;;  %v8665_v3 = vld [vmem:[#allocation27_spill] sm:$0xff] }
 0x497   : > { %v4896_v48 = vmax.f32 %v4691_v23, %v4798_v2  ;;  %v8664_v23 = vld [vmem:[#allocation13_spill] sm:$0xff] }
 0x498   : > { %v8141_v30 = vpop.permute.xlu2 %4524 }
 0x499   : > { %v4946_v62 = vadd.f32 %v8137_v35, %v4896_v48  ;;  %v4016_v58 = vpop.f32.mrf.mxu1  ;;  %v4605_v20 = vsel %vm4568_vm1, %v8016_v15, %v8141_v30 }
 0x49a   : > { %v4017_v18 = vadd.f32 %v4016_v58, %v3979_v11  ;;  %v4733_v61 = vmax.f32 %v8662_v5, %v4605_v20  ;;  %v8668_v5 = vld [vmem:[#allocation21_spill] sm:$0xff] }
 0x49b   : > { %v4982_v4 = vmax.f32 %v4946_v62, 0.0  ;;  %6458 = vmatmul.msk.bf16.vlgmr.msra.gmra.mxu2 %vm631_vm3, %v7297_v10  ;;  %v3945_v50 = vpop.f32.mrf.mxu3 }
 0x49c   : > { %v4055_v12 = vadd.f32 %v4054_v9, %v4017_v18  ;;  %v4813_v55 = vrot.slane %v4733_v61, 2  ;;  %v8667_v18 = vld [vmem:[#allocation10_spill] sm:$0xff] }
 0x49d   : > { %5018 = vst [vmem:[%s8028_s22 + $0x8] sm:$0xff] %v4982_v4  ;;  %v3981_v41 = vpop.f32.mrf.mxu0 }
 0x49e   : > { %v4814_v60 = vsel %vm4792_vm7, %v4797_v46, %v4813_v55  ;;  %4526 = vrot.lane.b32.xlu0 %v4055_v12, %s6972_s21  ;;  %v4057_v15 = vpop.f32.mrf.mxu2  ;;  %v3982_v51 = vadd.f32 %v3981_v41, %v3943_v44  ;;  %v4580_v46 = vsel %vm4568_vm1, %v7957_v32, %v8091_v28  ;;  %v8666_v44 = vld [vmem:[#allocation12_spill] sm:$0xff] }
 0x49f   : > { %v4902_v31 = vmax.f32 %v4697_v19, %v4814_v60  ;;  %v4703_v61 = vmax.f32 %v8668_v5, %v4580_v46  ;;  %v8670_v46 = vld [vmem:[#allocation22_spill] sm:$0xff] }
 0x4a0   : > { %v8157_v43 = vpop.permute.xlu2 %4536  ;;  %4231 = vmatmul.bf16.gmra.mxu3 %v8664_v23  ;;  %4264 = vmatmul.bf16.vlgmr.msra.gmra.mxu0 %v8666_v44 }
 0x4a1   : > { %v4952_v10 = vadd.f32 %v8137_v35, %v4902_v31  ;;  %v4019_v2 = vpop.f32.mrf.mxu1  ;;  %v4610_v9 = vsel %vm4568_vm1, %v8037_v22, %v8157_v43 }
 0x4a2   : > { %v4020_v48 = vadd.f32 %v4019_v2, %v3982_v51  ;;  %v4739_v11 = vmax.f32 %v8665_v3, %v4610_v9  ;;  %v8669_v51 = vld [vmem:[#allocation28_spill] sm:$0xff] }
 0x4a3   : > { %v4988_v62 = vmax.f32 %v4952_v10, 0.0  ;;  %v3948_v58 = vpop.f32.mrf.mxu3 }
 0x4a4   : > { %v4058_v20 = vadd.f32 %v4057_v15, %v4020_v48  ;;  %v4825_v8 = vrot.slane %v4739_v11, 2  ;;  %4302 = vmatmul.bf16.vlgmr.msra.gmra.mxu1 %v8667_v18 }
 0x4a5   : > { %5025 = vst [vmem:[%s8028_s22 + $0x38] sm:$0xff] %v4988_v62  ;;  %v3983_v12 = vpop.f32.mrf.mxu0 }
 0x4a6   : > { %v4826_v22 = vsel %vm4792_vm7, %v4813_v55, %v4825_v8  ;;  %4538 = vrot.lane.b32.xlu0 %v4058_v20, %s6972_s21  ;;  %v4059_v4 = vpop.f32.mrf.mxu2  ;;  %v3984_v27 = vadd.f32 %v3983_v12, %v3945_v50  ;;  %v4585_v55 = vsel %vm4568_vm1, %v7965_v1, %v8100_v26  ;;  %v8672_v12 = vld [vmem:[#allocation23_spill] sm:$0xff] }
 0x4a7   : > { %v4908_v32 = vmax.f32 %v4703_v61, %v4826_v22  ;;  %v4709_v48 = vmax.f32 %v8670_v46, %v4585_v55  ;;  %v8671_v61 = vld [vmem:[#allocation29_spill] sm:$0xff] }
 0x4a8   : > { %v8174_v19 = vpop.permute.xlu2 %4548 }
 0x4a9   : > { %v4958_v60 = vadd.f32 %v8137_v35, %v4908_v32  ;;  %v4021_v15 = vpop.f32.mrf.mxu1  ;;  %v4615_v31 = vsel %vm4568_vm1, %v8056_v56, %v8174_v19 }
 0x4aa   : > { %v4022_v41 = vadd.f32 %v4021_v15, %v3984_v27  ;;  %v4745_v23 = vmax.f32 %v8669_v51, %v4615_v31 }
 0x4ab   : > { %v4994_v10 = vmax.f32 %v4958_v60, 0.0  ;;  %6459 = vmatmul.msk.bf16.gmra.mxu2 %vm631_vm3, %v7326_v39  ;;  %v3950_v50 = vpop.f32.mrf.mxu3 }
 0x4ac   : > { %v4060_v2 = vadd.f32 %v4059_v4, %v4022_v41  ;;  %v4837_v9 = vrot.slane %v4745_v23, 2 }
 0x4ad   : > { %5031 = vst [vmem:[%s8028_s22 + $0x68] sm:$0xff] %v4994_v10  ;;  %v3986_v1 = vpop.f32.mrf.mxu0 }
 0x4ae   : > { %v4838_v3 = vsel %vm4792_vm7, %v4825_v8, %v4837_v9  ;;  %4550 = vrot.lane.b32.xlu0 %v4060_v2, %s6972_s21  ;;  %v4062_v56 = vpop.f32.mrf.mxu2  ;;  %v3987_v44 = vadd.f32 %v3986_v1, %v3948_v58  ;;  %v4590_v8 = vsel %vm4568_vm1, %v7971_v42, %v8105_v0 }
 0x4af   : > { %v4914_v11 = vmax.f32 %v4709_v48, %v4838_v3  ;;  %v4715_v27 = vmax.f32 %v8672_v12, %v4590_v8 }
 0x4b0   : > { %v8190_v62 = vpop.permute.xlu2 %4560  ;;  %4236 = vmatmul.bf16.gmra.mxu3 %v7417_v6  ;;  %4269 = vmatmul.bf16.gmra.mxu0 %v7367_v45 }
 0x4b1   : > { %v4964_v39 = vadd.f32 %v8137_v35, %v4914_v11  ;;  %v4024_v20 = vpop.f32.mrf.mxu1  ;;  %v4620_v18 = vsel %vm4568_vm1, %v8074_v38, %v8190_v62 }
 0x4b2   : > { %v4025_v5 = vadd.f32 %v4024_v20, %v3987_v44  ;;  %v4751_v22 = vmax.f32 %v8671_v61, %v4620_v18 }
 0x4b3   : > { %v5000_v58 = vmax.f32 %v4964_v39, 0.0  ;;  %v4075_v4 = vpop.f32.mrf.mxu3 }
 0x4b4   : > { %v4063_v32 = vadd.f32 %v4062_v56, %v4025_v5  ;;  %v4849_v6 = vrot.slane %v4751_v22, 2  ;;  %4307 = vmatmul.bf16.gmra.mxu1 %v7346_v52 }
 0x4b5   : > { %5037 = vst [vmem:[%s8028_s22 + $0x98] sm:$0xff] %v5000_v58  ;;  %v3988_v45 = vpop.f32.mrf.mxu0 }
 0x4b6   : > { %v4850_v38 = vsel %vm4792_vm7, %v4837_v9, %v4849_v6  ;;  %v4926_v42 = vmax.f32 %v8120_v7, %v4849_v6  ;;  %4562 = vrot.lane.b32.xlu0 %v4063_v32, %s6972_s21  ;;  %v4064_v60 = vpop.f32.mrf.mxu2 }
 0x4b7   : > { %v4920_v15 = vmax.f32 %v4715_v27, %v4850_v38 }
 0x4b8   : > { %v4976_v31 = vadd.f32 %v8137_v35, %v4926_v42 }
 0x4b9   : > { %v4970_v55 = vadd.f32 %v8137_v35, %v4920_v15  ;;  %v4026_v41 = vpop.f32.mrf.mxu1 }
 0x4ba   : > { %v5012_v52 = vmax.f32 %v4976_v31, 0.0 }
 0x4bb   : > { %v5006_v51 = vmax.f32 %v4970_v55, 0.0  ;;  %6460 = vmatmul.msk.bf16.gmra.mxu2 %vm631_vm3, %v7382_v29  ;;  %v4077_v23 = vpop.f32.mrf.mxu3 }
 0x4bc   : > { %5049 = vst [vmem:[%s8028_s22 + $0xf8] sm:$0x3] %v5012_v52 }
 0x4bd   : > { %5043 = vst [vmem:[%s8028_s22 + $0xc8] sm:$0xff] %v5006_v51  ;;  %v4113_v7 = vpop.f32.mrf.mxu0 }
 0x4be   : > { %v4189_v10 = vpop.f32.mrf.mxu2  ;;  %v4114_v50 = vadd.f32 %v4113_v7, %v4075_v4 }
 0x4c0   : > { %4241 = vmatmul.bf16.gmra.mxu3 %v7447_v47  ;;  %4274 = vmatmul.bf16.gmra.mxu0 %v7423_v13 }
 0x4c1   : > { %v4151_v2 = vpop.f32.mrf.mxu1 }
 0x4c2   : > { %v4152_v9 = vadd.f32 %v4151_v2, %v4114_v50 }
 0x4c3   : > { %v4080_v46 = vpop.f32.mrf.mxu3 }
 0x4c4   : > { %v4190_v35 = vadd.f32 %v4189_v10, %v4152_v9  ;;  %4312 = vmatmul.bf16.gmra.mxu1 %v7402_v57 }
 0x4c5   : > { %v4115_v29 = vpop.f32.mrf.mxu0 }
 0x4c6   : > { %4444 = vrot.lane.b32.xlu1 %v4190_v35, %s6972_s21  ;;  %v4191_v48 = vpop.f32.mrf.mxu2  ;;  %v4116_v3 = vadd.f32 %v4115_v29, %v4077_v23 }
 0x4c9   : > { %v4153_v56 = vpop.f32.mrf.mxu1 }
 0x4ca   : > { %v4154_v11 = vadd.f32 %v4153_v56, %v4116_v3 }
 0x4cb   : > { %6461 = vmatmul.msk.bf16.gmra.mxu2 %vm631_vm3, %v7411_v63  ;;  %v4082_v1 = vpop.f32.mrf.mxu3 }
 0x4cc   : > { %v4192_v47 = vadd.f32 %v4191_v48, %v4154_v11 }
 0x4cd   : > { %v4118_v13 = vpop.f32.mrf.mxu0 }
 0x4ce   : > { %4456 = vrot.lane.b32.xlu1 %v4192_v47, %s6972_s21  ;;  %v4194_v44 = vpop.f32.mrf.mxu2  ;;  %v4119_v39 = vadd.f32 %v4118_v13, %v4080_v46 }
 0x4d0   : > { %4246 = vmatmul.bf16.gmra.mxu3 %v7486_v49  ;;  %4279 = vmatmul.bf16.gmra.mxu0 %v7452_v54 }
 0x4d1   : > { %v4156_v57 = vpop.f32.mrf.mxu1 }
 0x4d2   : > { %v4157_v20 = vadd.f32 %v4156_v57, %v4119_v39 }
 0x4d3   : > { %v4085_v18 = vpop.f32.mrf.mxu3 }
 0x4d4   : > { %v4195_v8 = vadd.f32 %v4194_v44, %v4157_v20  ;;  %4317 = vmatmul.bf16.gmra.mxu1 %v7459_v16 }
 0x4d5   : > { %v4120_v5 = vpop.f32.mrf.mxu0 }
 0x4d6   : > { %4468 = vrot.lane.b32.xlu1 %v4195_v8, %s6972_s21  ;;  %v4196_v63 = vpop.f32.mrf.mxu2  ;;  %v4121_v61 = vadd.f32 %v4120_v5, %v4082_v1  ;;  %v8673_v8 = vld [vmem:[#allocation35_spill] sm:$0xff] }
 0x4d8   : > { %v8225_v22 = vpop.permute.xlu0 %4442 }
 0x4d9   : > { %v4158_v58 = vpop.f32.mrf.mxu1 }
 0x4da   : > { %v4159_v4 = vadd.f32 %v4158_v58, %v4121_v61 }
 0x4db   : > { %6462 = vmatmul.msk.bf16.gmra.mxu2 %vm631_vm3, %v7464_v25  ;;  %v4087_v49 = vpop.f32.mrf.mxu3 }
 0x4dc   : > { %v4197_v32 = vadd.f32 %v4196_v63, %v4159_v4 }
 0x4dd   : > { %v4123_v6 = vpop.f32.mrf.mxu0 }
 0x4de   : > { %4480 = vrot.lane.b32.xlu1 %v4197_v32, %s6972_s21  ;;  %v4199_v54 = vpop.f32.mrf.mxu2  ;;  %v4124_v12 = vadd.f32 %v4123_v6, %v4085_v18  ;;  %v8674_v32 = vld [vmem:[#allocation36_spill] sm:$0xff] }
 0x4e0   : > { %v8230_v16 = vpop.permute.xlu0 %4454  ;;  %4251 = vmatmul.bf16.gmra.mxu3 %v8653_v36  ;;  %4284 = vmatmul.bf16.gmra.mxu0 %v7490_v53 }
 0x4e1   : > { %v4161_v27 = vpop.f32.mrf.mxu1 }
 0x4e2   : > { %v4162_v38 = vadd.f32 %v4161_v27, %v4124_v12 }
 0x4e3   : > { %v4090_v42 = vpop.f32.mrf.mxu3 }
 0x4e4   : > { %v4200_v60 = vadd.f32 %v4199_v54, %v4162_v38  ;;  %4322 = vmatmul.bf16.gmra.mxu1 %v8654_v34 }
 0x4e5   : > { %v4125_v15 = vpop.f32.mrf.mxu0 }
 0x4e6   : > { %4492 = vrot.lane.b32.xlu1 %v4200_v60, %s6972_s21  ;;  %v4201_v25 = vpop.f32.mrf.mxu2  ;;  %v4126_v45 = vadd.f32 %v4125_v15, %v4087_v49  ;;  %v4571_v49 = vsel %vm4568_vm1, %v8054_v37, %v8225_v22 }
 0x4e8   : > { %v8236_v31 = vpop.permute.xlu0 %4466 }
 0x4e9   : > { %v4163_v55 = vpop.f32.mrf.mxu1 }
 0x4ea   : > { %v4164_v41 = vadd.f32 %v4163_v55, %v4126_v45 }
 0x4eb   : > { %6463 = vmatmul.msk.bf16.gmra.mxu2 %vm631_vm3, %v8655_v17  ;;  %v4092_v36 = vpop.f32.mrf.mxu3  ;;  %vm5022_vm3 = vcmask 261120  }
 0x4ec   : > { %v4202_v52 = vadd.f32 %v4201_v25, %v4164_v41  ;;  %v8270_v25 = vperm.slane %v7990_v21, 2  ;;  %v4576_v21 = vsel %vm4568_vm1, %v8072_v24, %v8230_v16 }
 0x4ed   : > { %v4128_v51 = vpop.f32.mrf.mxu0 }
 0x4ee   : > { %4504 = vrot.lane.b32.xlu1 %v4202_v52, %s6972_s21  ;;  %v4204_v53 = vpop.f32.mrf.mxu2  ;;  %v4129_v23 = vadd.f32 %v4128_v51, %v4090_v42  ;;  %v8675_v42 = vld [vmem:[#allocation30_spill] sm:$0xff] }
 0x4ef   : > { %v4692_v60 = vmax.f32 %v8675_v42, %v4571_v49 }
 0x4f0   : > { %v8241_v34 = vpop.permute.xlu0 %4478  ;;  %4289 = vmatmul.bf16.gmra.mxu0 %v8659_v59 }
 0x4f1   : > { %v4166_v10 = vpop.f32.mrf.mxu1 }
 0x4f2   : > { %v4167_v7 = vadd.f32 %v4166_v10, %v4129_v23  ;;  %v8676_v23 = vld [vmem:[#allocation37_spill] sm:$0xff] }
 0x4f3   : > { %v4095_v50 = vpop.f32.mrf.mxu3 }
 0x4f4   : > { %v4205_v2 = vadd.f32 %v4204_v53, %v4167_v7  ;;  %4327 = vmatmul.bf16.gmra.mxu1 %v8660_v14 }
 0x4f5   : > { %v4130_v9 = vpop.f32.mrf.mxu0 }
 0x4f6   : > { %4516 = vrot.lane.b32.xlu1 %v4205_v2, %s6972_s21  ;;  %v4206_v17 = vpop.f32.mrf.mxu2  ;;  %v4131_v46 = vadd.f32 %v4130_v9, %v4092_v36  ;;  %v8677_v9 = vld [vmem:[#allocation31_spill] sm:$0xff] }
 0x4f8   : > { %v8246_v35 = vpop.permute.xlu0 %4490 }
 0x4f9   : > { %v4168_v48 = vpop.f32.mrf.mxu1 }
 0x4fa   : > { %v4169_v29 = vadd.f32 %v4168_v48, %v4131_v46  ;;  %v4698_v46 = vmax.f32 %v8677_v9, %v4576_v21 }
 0x4fb   : > { %v4097_v3 = vpop.f32.mrf.mxu3 }
 0x4fc   : > { %v4207_v56 = vadd.f32 %v4206_v17, %v4169_v29 }
 0x4fd   : > { %v4133_v1 = vpop.f32.mrf.mxu0 }
 0x4fe   : > { %4528 = vrot.lane.b32.xlu1 %v4207_v56, %s6972_s21  ;;  %v4209_v11 = vpop.f32.mrf.mxu2  ;;  %v4134_v59 = vadd.f32 %v4133_v1, %v4095_v50 }
 0x500   : > { %v8249_v47 = vpop.permute.xlu0 %4502 }
 0x501   : > { %v4171_v44 = vpop.f32.mrf.mxu1  ;;  %v4596_v57 = vsel %vm4568_vm1, %v8111_v33, %v8249_v47 }
 0x502   : > { %v4172_v14 = vadd.f32 %v4171_v44, %v4134_v59  ;;  %v8256_v63 = vmax.f32 %v8673_v8, %v4596_v57  ;;  %v4581_v59 = vsel %vm4568_vm1, %v8091_v28, %v8236_v31  ;;  %v8678_v44 = vld [vmem:[#allocation38_spill] sm:$0xff] }
 0x503   : > { %v4100_v13 = vpop.f32.mrf.mxu3 }
 0x504   : > { %v4210_v39 = vadd.f32 %v4209_v11, %v4172_v14  ;;  %v4799_v12 = vrot.slane %v8256_v63, 2 }
 0x505   : > { %v4135_v18 = vpop.f32.mrf.mxu0 }
 0x506   : > { %4540 = vrot.lane.b32.xlu1 %v4210_v39, %s6972_s21  ;;  %v4211_v20 = vpop.f32.mrf.mxu2  ;;  %v4136_v5 = vadd.f32 %v4135_v18, %v4097_v3 }
 0x508   : > { %v8258_v61 = vpop.permute.xlu0 %4514 }
 0x509   : > { %v4173_v58 = vpop.f32.mrf.mxu1  ;;  %v4601_v4 = vsel %vm4568_vm1, %v8122_v40, %v8258_v61 }
 0x50a   : > { %v4174_v33 = vadd.f32 %v4173_v58, %v4136_v5  ;;  %v4728_v54 = vmax.f32 %v8674_v32, %v4601_v4 }
 0x50b   : > { %v4102_v6 = vpop.f32.mrf.mxu3 }
 0x50c   : > { %v4212_v27 = vadd.f32 %v4211_v20, %v4174_v33  ;;  %v4800_v38 = vrot.slane %v4728_v54, 2  ;;  %v8679_v20 = vld [vmem:[#allocation32_spill] sm:$0xff]  ;;  %v4586_v54 = vsel %vm4568_vm1, %v8100_v26, %v8241_v34 }
 0x50d   : > { %v4138_v45 = vpop.f32.mrf.mxu0  ;;  %v4704_v18 = vmax.f32 %v8679_v20, %v4581_v59 }
 0x50e   : > { %v4801_v15 = vsel %vm4792_vm7, %v4799_v12, %v4800_v38  ;;  %4552 = vrot.lane.b32.xlu1 %v4212_v27, %s6972_s21  ;;  %v4214_v40 = vpop.f32.mrf.mxu2  ;;  %v4139_v55 = vadd.f32 %v4138_v45, %v4100_v13  ;;  %v8680_v12 = vld [vmem:[#allocation39_spill] sm:$0xff] }
 0x50f   : > { %v4897_v37 = vmax.f32 %v4692_v60, %v4801_v15 }
 0x510   : > { %v8274_v41 = vpop.permute.xlu0 %4526 }
 0x511   : > { %v4947_v36 = vadd.f32 %v8270_v25, %v4897_v37  ;;  %v4176_v52 = vpop.f32.mrf.mxu1  ;;  %v4606_v53 = vsel %vm4568_vm1, %v8141_v30, %v8274_v41 }
 0x512   : > { %v4177_v51 = vadd.f32 %v4176_v52, %v4139_v55  ;;  %v4734_v10 = vmax.f32 %v8676_v23, %v4606_v53  ;;  %v4591_v23 = vsel %vm4568_vm1, %v8105_v0, %v8246_v35 }
 0x513   : > { %v4983_v7 = vmax.f32 %v4947_v36, 0.0  ;;  %v4227_v50 = vpop.f32.mrf.mxu3 }
 0x514   : > { %v4215_v2 = vadd.f32 %v4214_v40, %v4177_v51  ;;  %v4815_v17 = vrot.slane %v4734_v10, 2  ;;  %v8681_v40 = vld [vmem:[#allocation33_spill] sm:$0xff] }
 0x515   : > { %5019 = vst [vmem:[%s8028_s22 + $0x10] sm:$0xff] %v4983_v7  ;;  %v4140_v3 = vpop.f32.mrf.mxu0  ;;  %v4710_v37 = vmax.f32 %v8681_v40, %v4586_v54  ;;  %v8682_v7 = vld [vmem:[#allocation40_spill] sm:$0xff] }
 0x516   : > { %v4816_v48 = vsel %vm4792_vm7, %v4800_v38, %v4815_v17  ;;  %4564 = vrot.lane.b32.xlu1 %v4215_v2, %s6972_s21  ;;  %v4216_v30 = vpop.f32.mrf.mxu2 }
 0x517   : > { %v4903_v29 = vmax.f32 %v4698_v46, %v4816_v48  ;;  %v8683_v48 = vld [vmem:[#allocation34_spill] sm:$0xff] }
 0x518   : > { %v8288_v56 = vpop.permute.xlu0 %4538  ;;  %v4716_v30 = vmax.f32 %v8683_v48, %v4591_v23 }
 0x519   : > { %v4953_v24 = vadd.f32 %v8270_v25, %v4903_v29  ;;  %v4178_v11 = vpop.f32.mrf.mxu1  ;;  %v4611_v1 = vsel %vm4568_vm1, %v8157_v43, %v8288_v56 }
 0x51a   : > { %v4740_v14 = vmax.f32 %v8678_v44, %v4611_v1 }
 0x51b   : > { %v4989_v13 = vmax.f32 %v4953_v24, 0.0  ;;  %v4229_v39 = vpop.f32.mrf.mxu3 }
 0x51c   : > { %v4827_v57 = vrot.slane %v4740_v14, 2 }
 0x51d   : > { %5026 = vst [vmem:[%s8028_s22 + $0x40] sm:$0xff] %v4989_v13  ;;  %v4265_v4 = vpop.f32.mrf.mxu0 }
 0x51e   : > { %v4828_v8 = vsel %vm4792_vm7, %v4815_v17, %v4827_v57  ;;  %v4341_v5 = vpop.f32.mrf.mxu2  ;;  %v4266_v49 = vadd.f32 %v4265_v4, %v4227_v50 }
 0x51f   : > { %v4909_v58 = vmax.f32 %v4704_v18, %v4828_v8 }
 0x520   : > { %v8301_v43 = vpop.permute.xlu0 %4550 }
 0x521   : > { %v4959_v33 = vadd.f32 %v8270_v25, %v4909_v58  ;;  %v4303_v28 = vpop.f32.mrf.mxu1  ;;  %v4616_v32 = vsel %vm4568_vm1, %v8174_v19, %v8301_v43 }
 0x522   : > { %v4304_v6 = vadd.f32 %v4303_v28, %v4266_v49  ;;  %v4746_v27 = vmax.f32 %v8680_v12, %v4616_v32 }
 0x523   : > { %v4995_v38 = vmax.f32 %v4959_v33, 0.0  ;;  %v4232_v42 = vpop.f32.mrf.mxu3 }
 0x524   : > { %v4342_v60 = vadd.f32 %v4341_v5, %v4304_v6  ;;  %v4839_v15 = vrot.slane %v4746_v27, 2 }
 0x525   : > { %5032 = vst [vmem:[%s8028_s22 + $0x70] sm:$0xff] %v4995_v38  ;;  %v4267_v36 = vpop.f32.mrf.mxu0 }
 0x526   : > { %v4840_v45 = vsel %vm4792_vm7, %v4827_v57, %v4839_v15  ;;  %4446 = vrot.lane.b32.xlu2 %v4342_v60, %s6972_s21  ;;  %v4343_v55 = vpop.f32.mrf.mxu2  ;;  %v4268_v52 = vadd.f32 %v4267_v36, %v4229_v39 }
 0x527   : > { %v4915_v19 = vmax.f32 %v4710_v37, %v4840_v45 }
 0x528   : > { %v8315_v26 = vpop.permute.xlu0 %4562 }
 0x529   : > { %v4965_v53 = vadd.f32 %v8270_v25, %v4915_v19  ;;  %v4305_v21 = vpop.f32.mrf.mxu1  ;;  %v4621_v51 = vsel %vm4568_vm1, %v8190_v62, %v8315_v26 }
 0x52a   : > { %v4306_v10 = vadd.f32 %v4305_v21, %v4268_v52  ;;  %v4752_v50 = vmax.f32 %v8682_v7, %v4621_v51 }
 0x52b   : > { %v5001_v2 = vmax.f32 %v4965_v53, 0.0  ;;  %v4234_v17 = vpop.f32.mrf.mxu3 }
 0x52c   : > { %v4344_v9 = vadd.f32 %v4343_v55, %v4306_v10  ;;  %v4851_v46 = vrot.slane %v4752_v50, 2 }
 0x52d   : > { %5038 = vst [vmem:[%s8028_s22 + $0xa0] sm:$0xff] %v5001_v2  ;;  %v4270_v24 = vpop.f32.mrf.mxu0 }
 0x52e   : > { %v4852_v29 = vsel %vm4792_vm7, %v4839_v15, %v4851_v46  ;;  %v4927_v62 = vmax.f32 %v8256_v63, %v4851_v46  ;;  %4458 = vrot.lane.b32.xlu2 %v4344_v9, %s6972_s21  ;;  %v4346_v3 = vpop.f32.mrf.mxu2  ;;  %v4271_v1 = vadd.f32 %v4270_v24, %v4232_v42 }
 0x52f   : > { %v4921_v0 = vmax.f32 %v4716_v30, %v4852_v29 }
 0x530   : > { %v4977_v11 = vadd.f32 %v8270_v25, %v4927_v62 }
 0x531   : > { %v4971_v59 = vadd.f32 %v8270_v25, %v4921_v0  ;;  %v4308_v44 = vpop.f32.mrf.mxu1 }
 0x532   : > { %v5013_v14 = vmax.f32 %v4977_v11, 0.0  ;;  %v4309_v13 = vadd.f32 %v4308_v44, %v4271_v1 }
 0x533   : > { %v5007_v39 = vmax.f32 %v4971_v59, 0.0  ;;  %v4237_v57 = vpop.f32.mrf.mxu3 }
 0x534   : > { %5050 = vst [vmem:[%s8028_s22 + $0x100] sm:$0x3] %v5013_v14  ;;  %v4347_v20 = vadd.f32 %v4346_v3, %v4309_v13 }
 0x535   : > { %5044 = vst [vmem:[%s8028_s22 + $0xd0] sm:$0xff] %v5007_v39  ;;  %v4272_v18 = vpop.f32.mrf.mxu0 }
 0x536   : > { %4470 = vrot.lane.b32.xlu2 %v4347_v20, %s6972_s21  ;;  %v4348_v63 = vpop.f32.mrf.mxu2  ;;  %v4273_v8 = vadd.f32 %v4272_v18, %v4234_v17 }
 0x538   : > { %v8335_v5 = vpop.permute.xlu1 %4444 }
 0x539   : > { %v4310_v58 = vpop.f32.mrf.mxu1 }
 0x53a   : > { %v4311_v4 = vadd.f32 %v4310_v58, %v4273_v8 }
 0x53b   : > { %v4239_v49 = vpop.f32.mrf.mxu3 }
 0x53c   : > { %v4349_v33 = vadd.f32 %v4348_v63, %v4311_v4  ;;  %v4572_v4 = vsel %vm4568_vm1, %v8225_v22, %v8335_v5 }
 0x53d   : > { %v4275_v28 = vpop.f32.mrf.mxu0 }
 0x53e   : > { %4482 = vrot.lane.b32.xlu2 %v4349_v33, %s6972_s21  ;;  %v4351_v25 = vpop.f32.mrf.mxu2  ;;  %v4276_v32 = vadd.f32 %v4275_v28, %v4237_v57  ;;  %v8684_v57 = vld [vmem:[#allocation46_spill] sm:$0xff] }
 0x540   : > { %v8338_v54 = vpop.permute.xlu1 %4456 }
 0x541   : > { %v4313_v6 = vpop.f32.mrf.mxu1 }
 0x542   : > { %v4314_v12 = vadd.f32 %v4313_v6, %v4276_v32 }
 0x543   : > { %v4242_v27 = vpop.f32.mrf.mxu3 }
 0x544   : > { %v4352_v38 = vadd.f32 %v4351_v25, %v4314_v12  ;;  %v8686_v12 = vld [vmem:[#allocation41_spill] sm:$0xff] }
 0x545   : > { %v4277_v60 = vpop.f32.mrf.mxu0 }
 0x546   : > { %4494 = vrot.lane.b32.xlu2 %v4352_v38, %s6972_s21  ;;  %v4353_v42 = vpop.f32.mrf.mxu2  ;;  %v4278_v15 = vadd.f32 %v4277_v60, %v4239_v49  ;;  %v8685_v49 = vld [vmem:[#allocation47_spill] sm:$0xff]  ;;  %v8370_v38 = vld [vmem:[#allocation7] sm:$0x3f] }
 0x548   : > { %v8341_v40 = vpop.permute.xlu1 %4468 }
 0x549   : > { %v4315_v37 = vpop.f32.mrf.mxu1 }
 0x54a   : > { %v4316_v45 = vadd.f32 %v4315_v37, %v4278_v15 }
 0x54b   : > { %v4244_v55 = vpop.f32.mrf.mxu3 }
 0x54c   : > { %v4354_v19 = vadd.f32 %v4353_v42, %v4316_v45  ;;  %v8373_v42 = vperm.slane %v8370_v38, 3 }
 0x54d   : > { %v4280_v52 = vpop.f32.mrf.mxu0 }
 0x54e   : > { %4506 = vrot.lane.b32.xlu2 %v4354_v19, %s6972_s21  ;;  %v4356_v36 = vpop.f32.mrf.mxu2  ;;  %v4281_v53 = vadd.f32 %v4280_v52, %v4242_v27  ;;  %v4693_v27 = vmax.f32 %v8686_v12, %v4572_v4  ;;  %v4577_v52 = vsel %vm4568_vm1, %v8230_v16, %v8338_v54  ;;  %v8691_v4 = vld [vmem:[#allocation50_spill] sm:$0xff] }
 0x550   : > { %v8344_v21 = vpop.permute.xlu1 %4480 }
 0x551   : > { %v4318_v51 = vpop.f32.mrf.mxu1 }
 0x552   : > { %v4319_v23 = vadd.f32 %v4318_v51, %v4281_v53  ;;  %v8687_v51 = vld [vmem:[#allocation48_spill] sm:$0xff] }
 0x553   : > { %v4247_v10 = vpop.f32.mrf.mxu3 }
 0x554   : > { %v4357_v7 = vadd.f32 %v4356_v36, %v4319_v23 }
 0x555   : > { %v4282_v2 = vpop.f32.mrf.mxu0 }
 0x556   : > { %4518 = vrot.lane.b32.xlu2 %v4357_v7, %s6972_s21  ;;  %v4358_v50 = vpop.f32.mrf.mxu2  ;;  %v4283_v17 = vadd.f32 %v4282_v2, %v4244_v55  ;;  %v8688_v2 = vld [vmem:[#allocation42_spill] sm:$0xff] }
 0x558   : > { %v8347_v9 = vpop.permute.xlu1 %4492 }
 0x559   : > { %v4320_v46 = vpop.f32.mrf.mxu1 }
 0x55a   : > { %v4321_v48 = vadd.f32 %v4320_v46, %v4283_v17  ;;  %v4699_v17 = vmax.f32 %v8688_v2, %v4577_v52 }
 0x55b   : > { %v4249_v30 = vpop.f32.mrf.mxu3 }
 0x55c   : > { %v4359_v29 = vadd.f32 %v4358_v50, %v4321_v48 }
 0x55d   : > { %v4285_v3 = vpop.f32.mrf.mxu0 }
 0x55e   : > { %4530 = vrot.lane.b32.xlu2 %v4359_v29, %s6972_s21  ;;  %v4361_v62 = vpop.f32.mrf.mxu2  ;;  %v4286_v0 = vadd.f32 %v4285_v3, %v4247_v10 }
 0x560   : > { %v8350_v24 = vpop.permute.xlu1 %4504 }
 0x561   : > { %v4323_v11 = vpop.f32.mrf.mxu1  ;;  %v4597_v14 = vsel %vm4568_vm1, %v8249_v47, %v8350_v24 }
 0x562   : > { %v4324_v1 = vadd.f32 %v4323_v11, %v4286_v0  ;;  %v8357_v20 = vmax.f32 %v8684_v57, %v4597_v14  ;;  %v4582_v0 = vsel %vm4568_vm1, %v8236_v31, %v8341_v40  ;;  %v8689_v11 = vld [vmem:[#allocation49_spill] sm:$0xff]  ;;  %v8690_v14 = vld [vmem:[#allocation43_spill] sm:$0xff] }
 0x563   : > { %v4252_v59 = vpop.f32.mrf.mxu3 }
 0x564   : > { %v4362_v44 = vadd.f32 %v4361_v62, %v4324_v1  ;;  %v4802_v28 = vrot.slane %v8357_v20, 2 }
 0x565   : > { %v4287_v39 = vpop.f32.mrf.mxu0 }
 0x566   : > { %4542 = vrot.lane.b32.xlu2 %v4362_v44, %s6972_s21  ;;  %v4363_v13 = vpop.f32.mrf.mxu2  ;;  %v4288_v63 = vadd.f32 %v4287_v39, %v4249_v30 }
 0x568   : > { %v8359_v18 = vpop.permute.xlu1 %4516 }
 0x569   : > { %v4325_v8 = vpop.f32.mrf.mxu1  ;;  %v4602_v58 = vsel %vm4568_vm1, %v8258_v61, %v8359_v18 }
 0x56a   : > { %v4326_v47 = vadd.f32 %v4325_v8, %v4288_v63  ;;  %v4729_v33 = vmax.f32 %v8685_v49, %v4602_v58  ;;  %v4587_v58 = vsel %vm4568_vm1, %v8241_v34, %v8344_v21 }
 0x56b   : > { %v4254_v25 = vpop.f32.mrf.mxu3 }
 0x56c   : > { %v4364_v32 = vadd.f32 %v4363_v13, %v4326_v47  ;;  %v4803_v6 = vrot.slane %v4729_v33, 2  ;;  %v4705_v13 = vmax.f32 %v8690_v14, %v4582_v0  ;;  %v8692_v25 = vld [vmem:[#allocation44_spill] sm:$0xff]  ;;  %v8698_v0 = vld [vmem:[#allocation58_spill] sm:$0xff] }
 0x56d   : > { %v4290_v15 = vpop.f32.mrf.mxu0 }
 0x56e   : > { %v4804_v61 = vsel %vm4792_vm7, %v4802_v28, %v4803_v6  ;;  %4554 = vrot.lane.b32.xlu2 %v4364_v32, %s6972_s21  ;;  %v4366_v22 = vpop.f32.mrf.mxu2  ;;  %v4291_v37 = vadd.f32 %v4290_v15, %v4252_v59  ;;  %v4711_v28 = vmax.f32 %v8692_v25, %v4587_v58  ;;  %v8701_v25 = vld [vmem:[#allocation70_spill] sm:$0xff] }
 0x56f   : > { %v4898_v60 = vmax.f32 %v4693_v27, %v4804_v61  ;;  %v4592_v61 = vsel %vm4568_vm1, %v8246_v35, %v8347_v9 }
 0x570   : > { %v8377_v45 = vpop.permute.xlu1 %4528 }
 0x571   : > { %v4948_v55 = vadd.f32 %v8373_v42, %v4898_v60  ;;  %v4328_v19 = vpop.f32.mrf.mxu1  ;;  %v4607_v36 = vsel %vm4568_vm1, %v8274_v41, %v8377_v45 }
 0x572   : > { %v4329_v53 = vadd.f32 %v4328_v19, %v4291_v37  ;;  %v4735_v23 = vmax.f32 %v8687_v51, %v4607_v36 }
 0x573   : > { %v4984_v10 = vmax.f32 %v4948_v55, 0.0  ;;  %v8694_v55 = vld [vmem:[#allocation45_spill] sm:$0xff] }
 0x574   : > { %v4367_v7 = vadd.f32 %v4366_v22, %v4329_v53  ;;  %v4817_v50 = vrot.slane %v4735_v23, 2  ;;  %v8693_v22 = vld [vmem:[#allocation51_spill] sm:$0xff]  ;;  %v4717_v19 = vmax.f32 %v8694_v55, %v4592_v61 }
 0x575   : > { %5020 = vst [vmem:[%s8028_s22 + $0x18] sm:$0xff] %v4984_v10  ;;  %v4292_v30 = vpop.f32.mrf.mxu0 }
 0x576   : > { %v4818_v46 = vsel %vm4792_vm7, %v4803_v6, %v4817_v50  ;;  %4566 = vrot.lane.b32.xlu2 %v4367_v7, %s6972_s21  ;;  %v4368_v48 = vpop.f32.mrf.mxu2 }
 0x577   : > { %v4904_v41 = vmax.f32 %v4699_v17, %v4818_v46  ;;  %v8696_v48 = vld [vmem:[#allocation57_spill] sm:$0xff] }
 0x578   : > { %v8391_v29 = vpop.permute.xlu1 %4540 }
 0x579   : > { %v4954_v16 = vadd.f32 %v8373_v42, %v4904_v41  ;;  %v4330_v62 = vpop.f32.mrf.mxu1  ;;  %v4612_v3 = vsel %vm4568_vm1, %v8288_v56, %v8391_v29 }
 0x57a   : > { %v4741_v1 = vmax.f32 %v8689_v11, %v4612_v3 }
 0x57b   : > { %v4990_v59 = vmax.f32 %v4954_v16, 0.0  ;;  %v8697_v16 = vld [vmem:[#allocation69_spill] sm:$0xff] }
 0x57c   : > { %v4829_v44 = vrot.slane %v4741_v1, 2 }
 0x57d   : > { %5027 = vst [vmem:[%s8028_s22 + $0x48] sm:$0xff] %v4990_v59  ;;  %v8699_v59 = vld [vmem:[#allocation63_spill] sm:$0xff] }
 0x57e   : > { %v4830_v39 = vsel %vm4792_vm7, %v4817_v50, %v4829_v44 }
 0x57f   : > { %v4910_v57 = vmax.f32 %v4705_v13, %v4830_v39  ;;  %v8459_v13 = vperm.slane %v8370_v38, 5 }
 0x580   : > { %v4447_v63 = vpop.permute.xlu2 %4446  ;;  %v8404_v8 = vpop.permute.xlu1 %4552 }
 0x581   : > { %v4960_v56 = vadd.f32 %v8373_v42, %v4910_v57  ;;  %v4617_v31 = vsel %vm4568_vm1, %v8301_v43, %v8404_v8  ;;  %v4573_v3 = vsel %vm4568_vm1, %v8335_v5, %v4447_v63  ;;  %v8700_v57 = vld [vmem:[#allocation52_spill] sm:$0xff] }
 0x582   : > { %v4747_v47 = vmax.f32 %v8691_v4, %v4617_v31 }
 0x583   : > { %v4996_v49 = vmax.f32 %v4960_v56, 0.0  ;;  %v8463_v56 = vperm.slane %v8370_v38, 4 }
 0x584   : > { %v4841_v33 = vrot.slane %v4747_v47, 2 }
 0x585   : > { %5033 = vst [vmem:[%s8028_s22 + $0x78] sm:$0xff] %v4996_v49 }
 0x586   : > { %v4842_v32 = vsel %vm4792_vm7, %v4829_v44, %v4841_v33  ;;  %v4695_v44 = vmax.f32 %v8699_v59, %v4447_v63 }
 0x587   : > { %v4916_v6 = vmax.f32 %v4711_v28, %v4842_v32 }
 0x588   : > { %v4459_v12 = vpop.permute.xlu2 %4458  ;;  %v8417_v27 = vpop.permute.xlu1 %4564 }
 0x589   : > { %v4966_v43 = vadd.f32 %v8373_v42, %v4916_v6  ;;  %v4622_v34 = vsel %vm4568_vm1, %v8315_v26, %v8417_v27  ;;  %v4578_v28 = vsel %vm4568_vm1, %v8338_v54, %v4459_v12  ;;  %v8702_v6 = vld [vmem:[#allocation59_spill] sm:$0xff] }
 0x58a   : > { %v4753_v60 = vmax.f32 %v8693_v22, %v4622_v34  ;;  %v8703_v22 = vld [vmem:[#allocation64_spill] sm:$0xff] }
 0x58b   : > { %v5002_v15 = vmax.f32 %v4966_v43, 0.0 }
 0x58c   : > { %v4853_v37 = vrot.slane %v4753_v60, 2  ;;  %v4701_v60 = vmax.f32 %v8703_v22, %v4459_v12 }
 0x58d   : > { %5039 = vst [vmem:[%s8028_s22 + $0xa8] sm:$0xff] %v5002_v15 }
 0x58e   : > { %v4854_v36 = vsel %vm4792_vm7, %v4841_v33, %v4853_v37  ;;  %v4928_v52 = vmax.f32 %v8357_v20, %v4853_v37  ;;  %v8695_v20 = vld [vmem:[#allocation68_spill] sm:$0xff]  ;;  %v8704_v37 = vld [vmem:[#allocation53_spill] sm:$0xff] }
 0x58f   : > { %v4922_v53 = vmax.f32 %v4717_v19, %v4854_v36  ;;  %v4700_v55 = vmax.f32 %v8704_v37, %v4578_v28 }
 0x590   : > { %v4978_v51 = vadd.f32 %v8373_v42, %v4928_v52  ;;  %v8432_v26 = vpop.permute.xlu2 %4470 }
 0x591   : > { %v4972_v23 = vadd.f32 %v8373_v42, %v4922_v53 }
 0x592   : > { %v5014_v10 = vmax.f32 %v4978_v51, 0.0 }
 0x593   : > { %v5008_v35 = vmax.f32 %v4972_v23, 0.0  ;;  %v8705_v23 = vld [vmem:[#allocation71_spill] sm:$0xff] }
 0x594   : > { %5051 = vst [vmem:[%s8028_s22 + $0x108] sm:$0x3] %v5014_v10 }
 0x595   : > { %5045 = vst [vmem:[%s8028_s22 + $0xd8] sm:$0xff] %v5008_v35  ;;  %v4583_v35 = vsel %vm4568_vm1, %v8341_v40, %v8432_v26 }
 0x598   : > { %v8437_v7 = vpop.permute.xlu2 %4482 }
 0x5a0   : > { %v8439_v50 = vpop.permute.xlu2 %4494 }
 0x5a1   : > { %v4593_v22 = vsel %vm4568_vm1, %v8347_v9, %v8439_v50 }
 0x5a8   : > { %v4507_v2 = vpop.permute.xlu2 %4506 }
 0x5a9   : > { %v4598_v17 = vsel %vm4568_vm1, %v8350_v24, %v4507_v2  ;;  %v8444_v46 = vmax.f32 %v8695_v20, %v4507_v2 }
 0x5aa   : > { %v8447_v41 = vmax.f32 %v8696_v48, %v4598_v17  ;;  %v8706_v17 = vld [vmem:[#allocation60_spill] sm:$0xff] }
 0x5ab   : > { %v4808_v1 = vrot.slane %v8444_v46, 2 }
 0x5ac   : > { %v4805_v14 = vrot.slane %v8447_v41, 2 }
 0x5b0   : > { %v4519_v30 = vpop.permute.xlu2 %4518 }
 0x5b1   : > { %v4603_v42 = vsel %vm4568_vm1, %v8359_v18, %v4519_v30  ;;  %v4731_v62 = vmax.f32 %v8697_v16, %v4519_v30  ;;  %v4694_v18 = vmax.f32 %v8700_v57, %v4573_v3  ;;  %v8708_v3 = vld [vmem:[#allocation54_spill] sm:$0xff]  ;;  %v4588_v57 = vsel %vm4568_vm1, %v8344_v21, %v8437_v7 }
 0x5b2   : > { %v4730_v11 = vmax.f32 %v8698_v0, %v4603_v42  ;;  %v8707_v42 = vld [vmem:[#allocation65_spill] sm:$0xff]  ;;  %v4706_v0 = vmax.f32 %v8708_v3, %v4583_v35 }
 0x5b3   : > { %v4809_v24 = vrot.slane %v4731_v62, 2  ;;  %v4707_v16 = vmax.f32 %v8707_v42, %v8432_v26 }
 0x5b4   : > { %v4806_v39 = vrot.slane %v4730_v11, 2 }
 0x5b5   : > { %v4810_v5 = vsel %vm4792_vm7, %v4808_v1, %v4809_v24 }
 0x5b6   : > { %v4807_v31 = vsel %vm4792_vm7, %v4805_v14, %v4806_v39  ;;  %v4900_v58 = vmax.f32 %v4695_v44, %v4810_v5  ;;  %v8709_v14 = vld [vmem:[#allocation72_spill] sm:$0xff]  ;;  %v8710_v5 = vld [vmem:[#allocation61_spill] sm:$0xff] }
 0x5b7   : > { %v4899_v4 = vmax.f32 %v4694_v18, %v4807_v31 }
 0x5b8   : > { %v4950_v63 = vadd.f32 %v8459_v13, %v4900_v58  ;;  %v4531_v47 = vpop.permute.xlu2 %4530 }
 0x5b9   : > { %v4949_v49 = vadd.f32 %v8463_v56, %v4899_v4  ;;  %v4608_v33 = vsel %vm4568_vm1, %v8377_v45, %v4531_v47  ;;  %v4737_v38 = vmax.f32 %v8701_v25, %v4531_v47 }
 0x5ba   : > { %v4986_v32 = vmax.f32 %v4950_v63, 0.0  ;;  %v4736_v43 = vmax.f32 %v8702_v6, %v4608_v33  ;;  %v8711_v63 = vld [vmem:[#allocation66_spill] sm:$0xff]  ;;  %v8712_v33 = vld [vmem:[#allocation55_spill] sm:$0xff] }
 0x5bb   : > { %v4985_v34 = vmax.f32 %v4949_v49, 0.0  ;;  %v4821_v61 = vrot.slane %v4737_v38, 2  ;;  %v4713_v47 = vmax.f32 %v8711_v63, %v8437_v7  ;;  %v4712_v25 = vmax.f32 %v8712_v33, %v4588_v57 }
 0x5bc   : > { %5023 = vst.msk [vmem:[%s8028_s22 + $0x28] sm:$0xff] %vm5022_vm3, %v4986_v32  ;;  %v4819_v15 = vrot.slane %v4736_v43, 2 }
 0x5bd   : > { %5021 = vst [vmem:[%s8028_s22 + $0x20] sm:$0xff] %v4985_v34  ;;  %v4822_v45 = vsel %vm4792_vm7, %v4809_v24, %v4821_v61  ;;  %v8713_v34 = vld [vmem:[#allocation73_spill] sm:$0xff] }
 0x5be   : > { %v4820_v19 = vsel %vm4792_vm7, %v4806_v39, %v4819_v15  ;;  %v4906_v36 = vmax.f32 %v4701_v60, %v4822_v45 }
 0x5bf   : > { %v4905_v54 = vmax.f32 %v4700_v55, %v4820_v19  ;;  %v8715_v19 = vld [vmem:[#allocation67_spill] sm:$0xff] }
 0x5c0   : > { %v4956_v52 = vadd.f32 %v8459_v13, %v4906_v36  ;;  %v4543_v53 = vpop.permute.xlu2 %4542  ;;  %v4719_v36 = vmax.f32 %v8715_v19, %v8439_v50 }
 0x5c1   : > { %v4955_v51 = vadd.f32 %v8463_v56, %v4905_v54  ;;  %v4613_v12 = vsel %vm4568_vm1, %v8391_v29, %v4543_v53  ;;  %v4743_v10 = vmax.f32 %v8705_v23, %v4543_v53 }
 0x5c2   : > { %v4992_v2 = vmax.f32 %v4956_v52, 0.0  ;;  %v4742_v20 = vmax.f32 %v8706_v17, %v4613_v12  ;;  %v8716_v52 = vld [vmem:[#allocation56_spill] sm:$0xff] }
 0x5c3   : > { %v4991_v48 = vmax.f32 %v4955_v51, 0.0  ;;  %v4833_v30 = vrot.slane %v4743_v10, 2  ;;  %v4718_v53 = vmax.f32 %v8716_v52, %v4593_v22 }
 0x5c4   : > { %5029 = vst.msk [vmem:[%s8028_s22 + $0x58] sm:$0xff] %vm5022_vm3, %v4992_v2  ;;  %v4831_v62 = vrot.slane %v4742_v20, 2 }
 0x5c5   : > { %5028 = vst [vmem:[%s8028_s22 + $0x50] sm:$0xff] %v4991_v48  ;;  %v4834_v29 = vsel %vm4792_vm7, %v4821_v61, %v4833_v30 }
 0x5c6   : > { %v4832_v11 = vsel %vm4792_vm7, %v4819_v15, %v4831_v62  ;;  %v4912_v40 = vmax.f32 %v4707_v16, %v4834_v29  ;;  %v8714_v15 = vld [vmem:[#allocation62_spill] sm:$0xff] }
 0x5c7   : > { %v4911_v1 = vmax.f32 %v4706_v0, %v4832_v11 }
 0x5c8   : > { %v4962_v24 = vadd.f32 %v8459_v13, %v4912_v40  ;;  %v4555_v59 = vpop.permute.xlu2 %4554 }
 0x5c9   : > { %v4961_v44 = vadd.f32 %v8463_v56, %v4911_v1  ;;  %v4618_v26 = vsel %vm4568_vm1, %v8404_v8, %v4555_v59  ;;  %v4749_v39 = vmax.f32 %v8709_v14, %v4555_v59 }
 0x5ca   : > { %v4998_v18 = vmax.f32 %v4962_v24, 0.0  ;;  %v4748_v31 = vmax.f32 %v8710_v5, %v4618_v26 }
 0x5cb   : > { %v4997_v58 = vmax.f32 %v4961_v44, 0.0  ;;  %v4845_v4 = vrot.slane %v4749_v39, 2 }
 0x5cc   : > { %5035 = vst.msk [vmem:[%s8028_s22 + $0x88] sm:$0xff] %vm5022_vm3, %v4998_v18  ;;  %v4843_v49 = vrot.slane %v4748_v31, 2 }
 0x5cd   : > { %5034 = vst [vmem:[%s8028_s22 + $0x80] sm:$0xff] %v4997_v58  ;;  %v4846_v8 = vsel %vm4792_vm7, %v4833_v30, %v4845_v4 }
 0x5ce   : > { %v4844_v38 = vsel %vm4792_vm7, %v4831_v62, %v4843_v49  ;;  %v4918_v21 = vmax.f32 %v4713_v47, %v4846_v8 }
 0x5cf   : > { %v4917_v28 = vmax.f32 %v4712_v25, %v4844_v38 }
 0x5d0   : > { %v4968_v32 = vadd.f32 %v8459_v13, %v4918_v21  ;;  %v4567_v6 = vpop.permute.xlu2 %4566 }
 0x5d1   : > { %v4967_v43 = vadd.f32 %v8463_v56, %v4917_v28  ;;  %v4623_v7 = vsel %vm4568_vm1, %v8417_v27, %v4567_v6  ;;  %v4755_v61 = vmax.f32 %v8713_v34, %v4567_v6 }
 0x5d2   : > { %v5004_v60 = vmax.f32 %v4968_v32, 0.0  ;;  %v4754_v37 = vmax.f32 %v8714_v15, %v4623_v7 }
 0x5d3   : > { %v5003_v55 = vmax.f32 %v4967_v43, 0.0  ;;  %v4857_v45 = vrot.slane %v4755_v61, 2 }
 0x5d4   : > { %5041 = vst.msk [vmem:[%s8028_s22 + $0xb8] sm:$0xff] %vm5022_vm3, %v5004_v60  ;;  %v4855_v54 = vrot.slane %v4754_v37, 2 }
 0x5d5   : > { %5040 = vst [vmem:[%s8028_s22 + $0xb0] sm:$0xff] %v5003_v55  ;;  %v4858_v27 = vsel %vm4792_vm7, %v4845_v4, %v4857_v45  ;;  %v4930_v9 = vmax.f32 %v8444_v46, %v4857_v45 }
 0x5d6   : > { %v4856_v51 = vsel %vm4792_vm7, %v4843_v49, %v4855_v54  ;;  %v4924_v12 = vmax.f32 %v4719_v36, %v4858_v27  ;;  %v4929_v23 = vmax.f32 %v8447_v41, %v4855_v54 }
 0x5d7   : > { %v4923_v50 = vmax.f32 %v4718_v53, %v4856_v51  ;;  %v4980_v10 = vadd.f32 %v8459_v13, %v4930_v9 }
 0x5d8   : > { %v4974_v35 = vadd.f32 %v8459_v13, %v4924_v12  ;;  %v4979_v2 = vadd.f32 %v8463_v56, %v4929_v23 }
 0x5d9   : > { %v4973_v17 = vadd.f32 %v8463_v56, %v4923_v50  ;;  %v5016_v20 = vmax.f32 %v4980_v10, 0.0 }
 0x5da   : > { %v5010_v48 = vmax.f32 %v4974_v35, 0.0  ;;  %v5015_v46 = vmax.f32 %v4979_v2, 0.0 }
 0x5db   : > { %v5009_v30 = vmax.f32 %v4973_v17, 0.0  ;;  %5054 = vst.msk [vmem:[%s8028_s22 + $0x118] sm:$0x3] %vm5053_vm8, %v5016_v20 }
 0x5dc   : > { %5047 = vst.msk [vmem:[%s8028_s22 + $0xe8] sm:$0xff] %vm5022_vm3, %v5010_v48 }
 0x5dd   : > { %5046 = vst [vmem:[%s8028_s22 + $0xe0] sm:$0xff] %v5009_v30 }
 0x5de   : > { %5052 = vst [vmem:[%s8028_s22 + $0x110] sm:$0x3] %v5015_v46 }
 0x5df PF: > { %p14_p4 = scmp.ge.s32.totalorder %s7042_s4, 4   ;;  %s8717_s12 = smov %s6956_s13 }
 0x5e0   : > { %s8718_s13 = smov %s6960_s14  ;;  %s8719_s14 = smov %s7053_s8 }
 0x5e1   : > { %s8720_s15 = smov %s7042_s4  ;;  %16 = sbr.rel (!%p14_p4) target bundleno = 4 (0x4), region = 115 }
 0x5e6   :  { %5076 = vsyncpa [#allocation4], 1 }
 0x5e7   :  { %5078 = vsyncpa [#allocation4 + $0x1], 1 }
 0x5e8   :  { %5079 = vsyncpa [#allocation6], 1 }

</bundles_post_ra>
